<compile_context>
chip_gen: v7x
topology: tpu7x:2x2x1
jax: 0.10.0
libtpu: 0.0.40
codegen_flags: <defaults>
</compile_context>

<pallas_src>
import jax
import jax.numpy as jnp
import numpy as np
from jax import lax
from jax.experimental import pallas as pl
from jax.experimental.pallas import tpu as pltpu

PAD = 8                      # max dilation -> max spatial padding needed
DILATIONS = (1, 2, 4, 8)


def dblock_kernel(x_ref, wd_ref, bd_ref, wc_ref, scale_ref, shift_ref,
                  beta_ref, out_ref, xpad_scr):
    # x_ref    : (1, H, W, C) f32        un-padded input (one batch element)
    # wd_ref   : (4, 9*C, C) bf16        fused dilated-conv taps [dil, tap*ci, co]
    # bd_ref   : (4, 1, C) f32           dilated-conv biases (zeroed in __init__)
    # wc_ref   : (5C, Cout) bf16         1x1 conv weight, pre-transposed
    # scale_ref/shift_ref : (1, Cout)    inference BatchNorm folded to scale/shift
    # beta_ref : (1, 1) f32              channel-attention beta (init 0)
    # out_ref  : (1, HW, Cout) f32       lane-dense output slab
    # xpad_scr : (H+2*PAD, W+2*PAD, C) bf16 scratch (zero-padded input copy)
    _, HW, Cout = out_ref.shape
    _, H, W, C = x_ref.shape

    x = x_ref[0]                                       # (H, W, C) f32

    # Zero-padded bf16 copy of the input built in VMEM (no HBM round trip).
    # Halo is re-zeroed every step: with "parallel" grid semantics a per-core
    # scratch may start at any batch index, so one-time init is unsafe.
    xpad_scr[...] = jnp.zeros_like(xpad_scr)
    xpad_scr[PAD:PAD + H, PAD:PAD + W, :] = x.astype(jnp.bfloat16)
    xpad = xpad_scr[...]                               # (H+2P, W+2P, C) bf16

    # Identity branch + four dilated 3x3 convs (each = ONE fused MXU matmul).
    branches = [x.reshape(HW, C)]                      # identity branch in f32
    for di, d in enumerate(DILATIONS):
        taps = []
        for ky in range(3):
            h0 = PAD + d * (ky - 1)
            for kx in range(3):
                w0 = PAD + d * (kx - 1)
                taps.append(xpad[h0:h0 + H, w0:w0 + W, :])
        slab = jnp.concatenate(taps, axis=-1).reshape(HW, 9 * C)   # (HW, 9C) bf16
        acc = jnp.dot(slab, wd_ref[di], preferred_element_type=jnp.float32)
        acc = acc + bd_ref[di]                         # (HW, C) + (1, C)
        branches.append(jnp.maximum(acc, 0.0))
    feat = jnp.concatenate(branches, axis=-1)          # (HW, 5C) f32 value

    # ChannelAttentionModule (kept in f32): gram over channels, "max - gram"
    # row softmax, then feat_e = feat @ att^T.
    gram = lax.dot_general(feat, feat, (((0,), (0,)), ((), ())),
                           preferred_element_type=jnp.float32)     # (5C, 5C)
    att_new = jnp.max(gram, axis=-1, keepdims=True) - gram
    e = jnp.exp(att_new - jnp.max(att_new, axis=-1, keepdims=True))
    att = e * pl.reciprocal(jnp.sum(e, axis=-1, keepdims=True), approx=True)
    feat_e = lax.dot_general(feat, att, (((1,), (1,)), ((), ())),
                             preferred_element_type=jnp.float32)   # (HW, 5C)
    out_feat = beta_ref[0, 0] * feat_e + feat

    # 1x1 conv (5C -> Cout, no bias) + BatchNorm (inference) as scale/shift.
    y = jnp.dot(out_feat.astype(jnp.bfloat16), wc_ref[...],
                preferred_element_type=jnp.float32)                # (HW, Cout)
    y = y * scale_ref[...] + shift_ref[...]
    out_ref[...] = y[jnp.newaxis]                      # lane-dense slab store


def dblock_forward(x_nchw, params):
    B, C, H, W = x_nchw.shape
    wd, bd, wc_t = params["wd"], params["bd"], params["wc_t"]
    bn_scale, bn_shift, beta = params["bn_scale"], params["bn_shift"], params["beta"]
    Cout = wc_t.shape[1]
    C5 = 5 * C
    HW = H * W

    x_nhwc = jnp.transpose(x_nchw, (0, 2, 3, 1)).astype(jnp.float32)

    # Explicit VMEM budget sized from the per-step buffers (+2x headroom),
    # clamped to [32 MiB, 128 MiB].
    f32b, bf16b = 4, 2
    block_in = H * W * C * f32b
    block_out = HW * Cout * f32b
    weights = (4 * 9 * C * C * bf16b + 4 * C * f32b + C5 * Cout * bf16b
               + 2 * Cout * f32b + f32b)
    scratch = (H + 2 * PAD) * (W + 2 * PAD) * C * bf16b
    work = HW * 9 * C * bf16b + 3 * HW * C5 * f32b + 3 * C5 * C5 * f32b
    needed = 2 * (block_in + block_out + weights) + scratch + work
    vmem_limit = int(min(128 * 2 ** 20, max(32 * 2 ** 20, 2 * needed)))

    # TODO(synk): for production channel counts (C >= 512) add spatial (HW) and
    # per-dilation weight grid axes with a gram accumulator (P3) so wd and the
    # (5C,5C) attention buffers fit the v7x 64 MiB VMEM.
    out_flat = pl.pallas_call(
        dblock_kernel,
        out_shape=jax.ShapeDtypeStruct((B, HW, Cout), jnp.float32),
        grid_spec=pltpu.PrefetchScalarGridSpec(
            num_scalar_prefetch=0,
            grid=(B,),
            in_specs=[
                pl.BlockSpec((1, H, W, C), lambda b: (b, 0, 0, 0)),
                pl.BlockSpec((4, 9 * C, C), lambda b: (0, 0, 0)),
                pl.BlockSpec((4, 1, C), lambda b: (0, 0, 0)),
                pl.BlockSpec((C5, Cout), lambda b: (0, 0)),
                pl.BlockSpec((1, Cout), lambda b: (0, 0)),
                pl.BlockSpec((1, Cout), lambda b: (0, 0)),
                pl.BlockSpec((1, 1), lambda b: (0, 0)),
            ],
            out_specs=pl.BlockSpec((1, HW, Cout), lambda b: (b, 0, 0)),
            scratch_shapes=[
                pltpu.VMEM((H + 2 * PAD, W + 2 * PAD, C), jnp.bfloat16)],
        ),
        compiler_params=pltpu.CompilerParams(
            dimension_semantics=("parallel",),
            vmem_limit_bytes=vmem_limit),
    )(x_nhwc, wd, bd, wc_t, bn_scale, bn_shift, beta)

    out_nhwc = out_flat.reshape(B, H, W, Cout)
    return jnp.transpose(out_nhwc, (0, 3, 1, 2))       # back to NCHW


def init_params(key, channel):
    # Shapes follow Dblock.__init__ (scaled down: 5120->1024 becomes 5C->C).
    C = channel
    Cout = channel
    ks = jax.random.split(key, 6)
    w_dil = [0.05 * jax.random.normal(ks[i], (C, C, 3, 3), jnp.float32)
             for i in range(4)]                     # torch (Cout, Cin, kH, kW)
    b_dil = [jnp.zeros((C,), jnp.float32) for _ in range(4)]  # zeroed by __init__
    wc = 0.05 * jax.random.normal(ks[4], (Cout, 5 * C), jnp.float32)  # 1x1, no bias
    beta = jnp.zeros((), jnp.float32)               # cam5.beta = zeros(1)
    bn_gamma = jnp.ones((Cout,), jnp.float32)
    bn_beta = jnp.zeros((Cout,), jnp.float32)
    bn_mean = jnp.zeros((Cout,), jnp.float32)
    bn_var = jnp.ones((Cout,), jnp.float32)
    eps = 1e-5

    # kernel-side packing: per dilation, the 9 taps become one (9C, C) matrix
    # (row block t holds input channels of tap t) -> one fused matmul each.
    wd = jnp.stack([
        jnp.transpose(w, (2, 3, 1, 0)).reshape(9 * C, C) for w in w_dil
    ]).astype(jnp.bfloat16)                                       # (4, 9C, C)
    bd = jnp.stack([b.reshape(1, C) for b in b_dil])              # (4, 1, C)
    wc_t = wc.T.astype(jnp.bfloat16)                              # (5C, Cout)
    # TODO(synk): BatchNorm2d implemented in inference mode (running stats folded
    # to scale/shift); training-mode batch statistics would need a cross-batch pass.
    scale = (bn_gamma / jnp.sqrt(bn_var + eps)).reshape(1, Cout)
    shift = (bn_beta - bn_mean * bn_gamma / jnp.sqrt(bn_var + eps)).reshape(1, Cout)

    torch_like = dict(w_dil=w_dil, b_dil=b_dil, wc=wc, beta=beta,
                      bn_gamma=bn_gamma, bn_beta=bn_beta,
                      bn_mean=bn_mean, bn_var=bn_var, eps=eps)
    kernel_params = dict(wd=wd, bd=bd, wc_t=wc_t, bn_scale=scale,
                         bn_shift=shift, beta=beta.reshape(1, 1))
    return torch_like, kernel_params


def reference_forward(x_nchw, p):
    # Pure-JAX reference mirroring the PyTorch forward (eval-mode BN), f32.
    dn = ("NCHW", "OIHW", "NCHW")
    hi = lax.Precision.HIGHEST
    outs = [x_nchw]
    for w, b, d in zip(p["w_dil"], p["b_dil"], DILATIONS):
        y = lax.conv_general_dilated(x_nchw, w, (1, 1), ((d, d), (d, d)),
                                     rhs_dilation=(d, d), dimension_numbers=dn,
                                     precision=hi)
        outs.append(jnp.maximum(y + b[None, :, None, None], 0.0))
    cat = jnp.concatenate(outs, axis=1)
    B, C5, H, W = cat.shape
    fa = cat.reshape(B, C5, H * W)
    att = jnp.einsum("bcp,bdp->bcd", fa, fa, precision=hi)
    att_new = jnp.max(att, axis=-1, keepdims=True) - att
    att = jax.nn.softmax(att_new, axis=-1)
    fe = jnp.einsum("bcd,bdp->bcp", att, fa, precision=hi).reshape(B, C5, H, W)
    out = p["beta"] * fe + cat
    y = jnp.einsum("oc,bchw->bohw", p["wc"], out, precision=hi)
    y = (y - p["bn_mean"][None, :, None, None]) / jnp.sqrt(
        p["bn_var"] + p["eps"])[None, :, None, None]
    return y * p["bn_gamma"][None, :, None, None] + p["bn_beta"][None, :, None, None]


if __name__ == "__main__":
    channel, B, H, W = 8, 2, 16, 16
    key = jax.random.PRNGKey(0)
    kparam, kx = jax.random.split(key)
    torch_like, kernel_params = init_params(kparam, channel)
    x = jax.random.normal(kx, (B, channel, H, W), jnp.float32)   # NCHW like torch

    out = dblock_forward(x, kernel_params)
    out = jax.block_until_ready(out)

    ref = reference_forward(x, torch_like)
    # bf16 MXU operands with f32 accumulation -> slightly looser tolerance.
    np.testing.assert_allclose(np.asarray(out), np.asarray(ref),
                               rtol=2e-2, atol=2e-2)
    print("KERNEL_OK")
</pallas_src>

<mosaic_0001>
module attributes {stable_mosaic.version = 11 : i64} {
  func.func @dblock_kernel(%arg0: i32, %arg1: memref<1x16x16x8xf32, #tpu.memory_space<vmem>>, %arg2: memref<4x72x8xbf16, #tpu.memory_space<vmem>>, %arg3: memref<4x1x8xf32, #tpu.memory_space<vmem>>, %arg4: memref<40x8xbf16, #tpu.memory_space<vmem>>, %arg5: memref<1x8xf32, #tpu.memory_space<vmem>>, %arg6: memref<1x8xf32, #tpu.memory_space<vmem>>, %arg7: memref<1x1xf32, #tpu.memory_space<vmem>>, %arg8: memref<1x256x8xf32, #tpu.memory_space<vmem>>, %arg9: memref<32x32x8xbf16, #tpu.memory_space<vmem>>) attributes {dimension_semantics = [#tpu.dimension_semantics<parallel>], iteration_bounds = array<i64: 2>, scalar_prefetch = 0 : i64, scratch_operands = 1 : i64, tpu.core_type = #tpu.core_type<tc>, window_params = [{transform_indices = @transform_0, window_bounds = array<i64: 1, 16, 16, 8>}, {pipeline_mode = #tpu.pipeline_mode<synchronous>, transform_indices = @transform_1, window_bounds = array<i64: 4, 72, 8>}, {pipeline_mode = #tpu.pipeline_mode<synchronous>, transform_indices = @transform_2, window_bounds = array<i64: 4, 1, 8>}, {pipeline_mode = #tpu.pipeline_mode<synchronous>, transform_indices = @transform_3, window_bounds = array<i64: 40, 8>}, {pipeline_mode = #tpu.pipeline_mode<synchronous>, transform_indices = @transform_4, window_bounds = array<i64: 1, 8>}, {pipeline_mode = #tpu.pipeline_mode<synchronous>, transform_indices = @transform_5, window_bounds = array<i64: 1, 8>}, {pipeline_mode = #tpu.pipeline_mode<synchronous>, transform_indices = @transform_6, window_bounds = array<i64: 1, 1>}, {transform_indices = @transform_7, window_bounds = array<i64: 1, 256, 8>}]} {
    %c0 = arith.constant 0 : index
    %c0_0 = arith.constant 0 : index
    %c0_1 = arith.constant 0 : index
    %c0_2 = arith.constant 0 : index
    %0 = vector.load %arg1[%c0, %c0_0, %c0_1, %c0_2] : memref<1x16x16x8xf32, #tpu.memory_space<vmem>>, vector<1x16x16x8xf32>
    %1 = vector.shape_cast %0 : vector<1x16x16x8xf32> to vector<16x16x8xf32>
    %cst = arith.constant 0.000000e+00 : bf16
    %2 = vector.broadcast %cst : bf16 to vector<32x32x8xbf16>
    %c0_3 = arith.constant 0 : index
    %c0_4 = arith.constant 0 : index
    %c0_5 = arith.constant 0 : index
    %3 = vector.load %arg9[%c0_3, %c0_4, %c0_5] : memref<32x32x8xbf16, #tpu.memory_space<vmem>>, vector<32x32x8xbf16>
    tpu.vector_store %arg9[%c0_3, %c0_4, %c0_5], %2 {strides = array<i32>} : memref<32x32x8xbf16, #tpu.memory_space<vmem>>, vector<32x32x8xbf16>,
    %4 = arith.truncf %1 : vector<16x16x8xf32> to vector<16x16x8xbf16>
    %c8 = arith.constant 8 : index
    %c8_6 = arith.constant 8 : index
    %c0_7 = arith.constant 0 : index
    %5 = vector.load %arg9[%c8, %c8_6, %c0_7] : memref<32x32x8xbf16, #tpu.memory_space<vmem>>, vector<16x16x8xbf16>
    tpu.vector_store %arg9[%c8, %c8_6, %c0_7], %4 {strides = array<i32>} : memref<32x32x8xbf16, #tpu.memory_space<vmem>>, vector<16x16x8xbf16>,
    %c0_8 = arith.constant 0 : index
    %c0_9 = arith.constant 0 : index
    %c0_10 = arith.constant 0 : index
    %6 = vector.load %arg9[%c0_8, %c0_9, %c0_10] : memref<32x32x8xbf16, #tpu.memory_space<vmem>>, vector<32x32x8xbf16>
    %7 = vector.shape_cast %1 : vector<16x16x8xf32> to vector<256x8xf32>
    %8 = vector.extract_strided_slice %6 {offsets = [7, 7, 0], sizes = [16, 16, 8], strides = [1, 1, 1]} : vector<32x32x8xbf16> to vector<16x16x8xbf16>
    %9 = vector.extract_strided_slice %6 {offsets = [7, 8, 0], sizes = [16, 16, 8], strides = [1, 1, 1]} : vector<32x32x8xbf16> to vector<16x16x8xbf16>
    %10 = vector.extract_strided_slice %6 {offsets = [7, 9, 0], sizes = [16, 16, 8], strides = [1, 1, 1]} : vector<32x32x8xbf16> to vector<16x16x8xbf16>
    %11 = vector.extract_strided_slice %6 {offsets = [8, 7, 0], sizes = [16, 16, 8], strides = [1, 1, 1]} : vector<32x32x8xbf16> to vector<16x16x8xbf16>
    %12 = vector.extract_strided_slice %6 {offsets = [8, 8, 0], sizes = [16, 16, 8], strides = [1, 1, 1]} : vector<32x32x8xbf16> to vector<16x16x8xbf16>
    %13 = vector.extract_strided_slice %6 {offsets = [8, 9, 0], sizes = [16, 16, 8], strides = [1, 1, 1]} : vector<32x32x8xbf16> to vector<16x16x8xbf16>
    %14 = vector.extract_strided_slice %6 {offsets = [9, 7, 0], sizes = [16, 16, 8], strides = [1, 1, 1]} : vector<32x32x8xbf16> to vector<16x16x8xbf16>
    %15 = vector.extract_strided_slice %6 {offsets = [9, 8, 0], sizes = [16, 16, 8], strides = [1, 1, 1]} : vector<32x32x8xbf16> to vector<16x16x8xbf16>
    %16 = vector.extract_strided_slice %6 {offsets = [9, 9, 0], sizes = [16, 16, 8], strides = [1, 1, 1]} : vector<32x32x8xbf16> to vector<16x16x8xbf16>
    %17 = tpu.concatenate %8, %9, %10, %11, %12, %13, %14, %15, %16 in 2 : vector<16x16x8xbf16>, vector<16x16x8xbf16>, vector<16x16x8xbf16>, vector<16x16x8xbf16>, vector<16x16x8xbf16>, vector<16x16x8xbf16>, vector<16x16x8xbf16>, vector<16x16x8xbf16>, vector<16x16x8xbf16> -> vector<16x16x72xbf16>
    %18 = vector.shape_cast %17 : vector<16x16x72xbf16> to vector<256x72xbf16>
    %c0_11 = arith.constant 0 : index
    %c0_12 = arith.constant 0 : index
    %c0_13 = arith.constant 0 : index
    %19 = vector.load %arg2[%c0_11, %c0_12, %c0_13] : memref<4x72x8xbf16, #tpu.memory_space<vmem>>, vector<1x72x8xbf16>
    %20 = vector.shape_cast %19 : vector<1x72x8xbf16> to vector<72x8xbf16>
    %cst_14 = arith.constant dense<0.000000e+00> : vector<256x8xf32>
    %21 = tpu.matmul %18, %20, %cst_14 {dimension_numbers = #tpu.dot_dimension_numbers<[1], [0], [0], [1], [0, 0, 1, 1], [], []>} : vector<256x72xbf16>, vector<72x8xbf16>, vector<256x8xf32> -> vector<256x8xf32>
    %c0_15 = arith.constant 0 : index
    %c0_16 = arith.constant 0 : index
    %c0_17 = arith.constant 0 : index
    %22 = vector.load %arg3[%c0_15, %c0_16, %c0_17] : memref<4x1x8xf32, #tpu.memory_space<vmem>>, vector<1x1x8xf32>
    %23 = vector.shape_cast %22 : vector<1x1x8xf32> to vector<1x8xf32>
    %24 = vector.broadcast %23 : vector<1x8xf32> to vector<256x8xf32>
    %25 = arith.addf %21, %24 : vector<256x8xf32>
    %cst_18 = arith.constant 0.000000e+00 : f32
    %26 = vector.broadcast %cst_18 : f32 to vector<256x8xf32>
    %27 = arith.maximumf %25, %26 : vector<256x8xf32>
    %28 = vector.extract_strided_slice %6 {offsets = [6, 6, 0], sizes = [16, 16, 8], strides = [1, 1, 1]} : vector<32x32x8xbf16> to vector<16x16x8xbf16>
    %29 = vector.extract_strided_slice %6 {offsets = [6, 8, 0], sizes = [16, 16, 8], strides = [1, 1, 1]} : vector<32x32x8xbf16> to vector<16x16x8xbf16>
    %30 = vector.extract_strided_slice %6 {offsets = [6, 10, 0], sizes = [16, 16, 8], strides = [1, 1, 1]} : vector<32x32x8xbf16> to vector<16x16x8xbf16>
    %31 = vector.extract_strided_slice %6 {offsets = [8, 6, 0], sizes = [16, 16, 8], strides = [1, 1, 1]} : vector<32x32x8xbf16> to vector<16x16x8xbf16>
    %32 = vector.extract_strided_slice %6 {offsets = [8, 8, 0], sizes = [16, 16, 8], strides = [1, 1, 1]} : vector<32x32x8xbf16> to vector<16x16x8xbf16>
    %33 = vector.extract_strided_slice %6 {offsets = [8, 10, 0], sizes = [16, 16, 8], strides = [1, 1, 1]} : vector<32x32x8xbf16> to vector<16x16x8xbf16>
    %34 = vector.extract_strided_slice %6 {offsets = [10, 6, 0], sizes = [16, 16, 8], strides = [1, 1, 1]} : vector<32x32x8xbf16> to vector<16x16x8xbf16>
    %35 = vector.extract_strided_slice %6 {offsets = [10, 8, 0], sizes = [16, 16, 8], strides = [1, 1, 1]} : vector<32x32x8xbf16> to vector<16x16x8xbf16>
    %36 = vector.extract_strided_slice %6 {offsets = [10, 10, 0], sizes = [16, 16, 8], strides = [1, 1, 1]} : vector<32x32x8xbf16> to vector<16x16x8xbf16>
    %37 = tpu.concatenate %28, %29, %30, %31, %32, %33, %34, %35, %36 in 2 : vector<16x16x8xbf16>, vector<16x16x8xbf16>, vector<16x16x8xbf16>, vector<16x16x8xbf16>, vector<16x16x8xbf16>, vector<16x16x8xbf16>, vector<16x16x8xbf16>, vector<16x16x8xbf16>, vector<16x16x8xbf16> -> vector<16x16x72xbf16>
    %38 = vector.shape_cast %37 : vector<16x16x72xbf16> to vector<256x72xbf16>
    %c1 = arith.constant 1 : index
    %c0_19 = arith.constant 0 : index
    %c0_20 = arith.constant 0 : index
    %39 = vector.load %arg2[%c1, %c0_19, %c0_20] : memref<4x72x8xbf16, #tpu.memory_space<vmem>>, vector<1x72x8xbf16>
    %40 = vector.shape_cast %39 : vector<1x72x8xbf16> to vector<72x8xbf16>
    %cst_21 = arith.constant dense<0.000000e+00> : vector<256x8xf32>
    %41 = tpu.matmul %38, %40, %cst_21 {dimension_numbers = #tpu.dot_dimension_numbers<[1], [0], [0], [1], [0, 0, 1, 1], [], []>} : vector<256x72xbf16>, vector<72x8xbf16>, vector<256x8xf32> -> vector<256x8xf32>
    %c1_22 = arith.constant 1 : index
    %c0_23 = arith.constant 0 : index
    %c0_24 = arith.constant 0 : index
    %42 = vector.load %arg3[%c1_22, %c0_23, %c0_24] : memref<4x1x8xf32, #tpu.memory_space<vmem>>, vector<1x1x8xf32>
    %43 = vector.shape_cast %42 : vector<1x1x8xf32> to vector<1x8xf32>
    %44 = vector.broadcast %43 : vector<1x8xf32> to vector<256x8xf32>
    %45 = arith.addf %41, %44 : vector<256x8xf32>
    %cst_25 = arith.constant 0.000000e+00 : f32
    %46 = vector.broadcast %cst_25 : f32 to vector<256x8xf32>
    %47 = arith.maximumf %45, %46 : vector<256x8xf32>
    %48 = vector.extract_strided_slice %6 {offsets = [4, 4, 0], sizes = [16, 16, 8], strides = [1, 1, 1]} : vector<32x32x8xbf16> to vector<16x16x8xbf16>
    %49 = vector.extract_strided_slice %6 {offsets = [4, 8, 0], sizes = [16, 16, 8], strides = [1, 1, 1]} : vector<32x32x8xbf16> to vector<16x16x8xbf16>
    %50 = vector.extract_strided_slice %6 {offsets = [4, 12, 0], sizes = [16, 16, 8], strides = [1, 1, 1]} : vector<32x32x8xbf16> to vector<16x16x8xbf16>
    %51 = vector.extract_strided_slice %6 {offsets = [8, 4, 0], sizes = [16, 16, 8], strides = [1, 1, 1]} : vector<32x32x8xbf16> to vector<16x16x8xbf16>
    %52 = vector.extract_strided_slice %6 {offsets = [8, 8, 0], sizes = [16, 16, 8], strides = [1, 1, 1]} : vector<32x32x8xbf16> to vector<16x16x8xbf16>
    %53 = vector.extract_strided_slice %6 {offsets = [8, 12, 0], sizes = [16, 16, 8], strides = [1, 1, 1]} : vector<32x32x8xbf16> to vector<16x16x8xbf16>
    %54 = vector.extract_strided_slice %6 {offsets = [12, 4, 0], sizes = [16, 16, 8], strides = [1, 1, 1]} : vector<32x32x8xbf16> to vector<16x16x8xbf16>
    %55 = vector.extract_strided_slice %6 {offsets = [12, 8, 0], sizes = [16, 16, 8], strides = [1, 1, 1]} : vector<32x32x8xbf16> to vector<16x16x8xbf16>
    %56 = vector.extract_strided_slice %6 {offsets = [12, 12, 0], sizes = [16, 16, 8], strides = [1, 1, 1]} : vector<32x32x8xbf16> to vector<16x16x8xbf16>
    %57 = tpu.concatenate %48, %49, %50, %51, %52, %53, %54, %55, %56 in 2 : vector<16x16x8xbf16>, vector<16x16x8xbf16>, vector<16x16x8xbf16>, vector<16x16x8xbf16>, vector<16x16x8xbf16>, vector<16x16x8xbf16>, vector<16x16x8xbf16>, vector<16x16x8xbf16>, vector<16x16x8xbf16> -> vector<16x16x72xbf16>
    %58 = vector.shape_cast %57 : vector<16x16x72xbf16> to vector<256x72xbf16>
    %c2 = arith.constant 2 : index
    %c0_26 = arith.constant 0 : index
    %c0_27 = arith.constant 0 : index
    %59 = vector.load %arg2[%c2, %c0_26, %c0_27] : memref<4x72x8xbf16, #tpu.memory_space<vmem>>, vector<1x72x8xbf16>
    %60 = vector.shape_cast %59 : vector<1x72x8xbf16> to vector<72x8xbf16>
    %cst_28 = arith.constant dense<0.000000e+00> : vector<256x8xf32>
    %61 = tpu.matmul %58, %60, %cst_28 {dimension_numbers = #tpu.dot_dimension_numbers<[1], [0], [0], [1], [0, 0, 1, 1], [], []>} : vector<256x72xbf16>, vector<72x8xbf16>, vector<256x8xf32> -> vector<256x8xf32>
    %c2_29 = arith.constant 2 : index
    %c0_30 = arith.constant 0 : index
    %c0_31 = arith.constant 0 : index
    %62 = vector.load %arg3[%c2_29, %c0_30, %c0_31] : memref<4x1x8xf32, #tpu.memory_space<vmem>>, vector<1x1x8xf32>
    %63 = vector.shape_cast %62 : vector<1x1x8xf32> to vector<1x8xf32>
    %64 = vector.broadcast %63 : vector<1x8xf32> to vector<256x8xf32>
    %65 = arith.addf %61, %64 : vector<256x8xf32>
    %cst_32 = arith.constant 0.000000e+00 : f32
    %66 = vector.broadcast %cst_32 : f32 to vector<256x8xf32>
    %67 = arith.maximumf %65, %66 : vector<256x8xf32>
    %68 = vector.extract_strided_slice %6 {offsets = [0, 0, 0], sizes = [16, 16, 8], strides = [1, 1, 1]} : vector<32x32x8xbf16> to vector<16x16x8xbf16>
    %69 = vector.extract_strided_slice %6 {offsets = [0, 8, 0], sizes = [16, 16, 8], strides = [1, 1, 1]} : vector<32x32x8xbf16> to vector<16x16x8xbf16>
    %70 = vector.extract_strided_slice %6 {offsets = [0, 16, 0], sizes = [16, 16, 8], strides = [1, 1, 1]} : vector<32x32x8xbf16> to vector<16x16x8xbf16>
    %71 = vector.extract_strided_slice %6 {offsets = [8, 0, 0], sizes = [16, 16, 8], strides = [1, 1, 1]} : vector<32x32x8xbf16> to vector<16x16x8xbf16>
    %72 = vector.extract_strided_slice %6 {offsets = [8, 8, 0], sizes = [16, 16, 8], strides = [1, 1, 1]} : vector<32x32x8xbf16> to vector<16x16x8xbf16>
    %73 = vector.extract_strided_slice %6 {offsets = [8, 16, 0], sizes = [16, 16, 8], strides = [1, 1, 1]} : vector<32x32x8xbf16> to vector<16x16x8xbf16>
    %74 = vector.extract_strided_slice %6 {offsets = [16, 0, 0], sizes = [16, 16, 8], strides = [1, 1, 1]} : vector<32x32x8xbf16> to vector<16x16x8xbf16>
    %75 = vector.extract_strided_slice %6 {offsets = [16, 8, 0], sizes = [16, 16, 8], strides = [1, 1, 1]} : vector<32x32x8xbf16> to vector<16x16x8xbf16>
    %76 = vector.extract_strided_slice %6 {offsets = [16, 16, 0], sizes = [16, 16, 8], strides = [1, 1, 1]} : vector<32x32x8xbf16> to vector<16x16x8xbf16>
    %77 = tpu.concatenate %68, %69, %70, %71, %72, %73, %74, %75, %76 in 2 : vector<16x16x8xbf16>, vector<16x16x8xbf16>, vector<16x16x8xbf16>, vector<16x16x8xbf16>, vector<16x16x8xbf16>, vector<16x16x8xbf16>, vector<16x16x8xbf16>, vector<16x16x8xbf16>, vector<16x16x8xbf16> -> vector<16x16x72xbf16>
    %78 = vector.shape_cast %77 : vector<16x16x72xbf16> to vector<256x72xbf16>
    %c3 = arith.constant 3 : index
    %c0_33 = arith.constant 0 : index
    %c0_34 = arith.constant 0 : index
    %79 = vector.load %arg2[%c3, %c0_33, %c0_34] : memref<4x72x8xbf16, #tpu.memory_space<vmem>>, vector<1x72x8xbf16>
    %80 = vector.shape_cast %79 : vector<1x72x8xbf16> to vector<72x8xbf16>
    %cst_35 = arith.constant dense<0.000000e+00> : vector<256x8xf32>
    %81 = tpu.matmul %78, %80, %cst_35 {dimension_numbers = #tpu.dot_dimension_numbers<[1], [0], [0], [1], [0, 0, 1, 1], [], []>} : vector<256x72xbf16>, vector<72x8xbf16>, vector<256x8xf32> -> vector<256x8xf32>
    %c3_36 = arith.constant 3 : index
    %c0_37 = arith.constant 0 : index
    %c0_38 = arith.constant 0 : index
    %82 = vector.load %arg3[%c3_36, %c0_37, %c0_38] : memref<4x1x8xf32, #tpu.memory_space<vmem>>, vector<1x1x8xf32>
    %83 = vector.shape_cast %82 : vector<1x1x8xf32> to vector<1x8xf32>
    %84 = vector.broadcast %83 : vector<1x8xf32> to vector<256x8xf32>
    %85 = arith.addf %81, %84 : vector<256x8xf32>
    %cst_39 = arith.constant 0.000000e+00 : f32
    %86 = vector.broadcast %cst_39 : f32 to vector<256x8xf32>
    %87 = arith.maximumf %85, %86 : vector<256x8xf32>
    %88 = tpu.concatenate %7, %27, %47, %67, %87 in 1 : vector<256x8xf32>, vector<256x8xf32>, vector<256x8xf32>, vector<256x8xf32>, vector<256x8xf32> -> vector<256x40xf32>
    %cst_40 = arith.constant dense<0.000000e+00> : vector<40x40xf32>
    %89 = tpu.matmul %88, %88, %cst_40 {dimension_numbers = #tpu.dot_dimension_numbers<[0], [0], [1], [1], [0, 1, 1, 1], [], []>} : vector<256x40xf32>, vector<256x40xf32>, vector<40x40xf32> -> vector<40x40xf32>
    %cst_41 = arith.constant dense<0xFF800000> : vector<40xf32>
    %90 = vector.multi_reduction <maximumf>, %89, %cst_41 [1] : vector<40x40xf32> to vector<40xf32>
    %91 = vector.shape_cast %90 : vector<40xf32> to vector<40x1xf32>
    %92 = vector.broadcast %91 : vector<40x1xf32> to vector<40x40xf32>
    %93 = arith.subf %92, %89 : vector<40x40xf32>
    %cst_42 = arith.constant dense<0xFF800000> : vector<40xf32>
    %94 = vector.multi_reduction <maximumf>, %93, %cst_42 [1] : vector<40x40xf32> to vector<40xf32>
    %95 = vector.shape_cast %94 : vector<40xf32> to vector<40x1xf32>
    %96 = vector.broadcast %95 : vector<40x1xf32> to vector<40x40xf32>
    %97 = arith.subf %93, %96 : vector<40x40xf32>
    %98 = math.exp %97 : vector<40x40xf32>
    %cst_43 = arith.constant dense<0.000000e+00> : vector<40xf32>
    %99 = vector.multi_reduction <add>, %98, %cst_43 [1] : vector<40x40xf32> to vector<40xf32>
    %100 = vector.shape_cast %99 : vector<40xf32> to vector<40x1xf32>
    %101 = tpu.reciprocal %100 {approx = true} : vector<40x1xf32> -> vector<40x1xf32>
    %102 = vector.broadcast %101 : vector<40x1xf32> to vector<40x40xf32>
    %103 = arith.mulf %98, %102 : vector<40x40xf32>
    %cst_44 = arith.constant dense<0.000000e+00> : vector<256x40xf32>
    %104 = tpu.matmul %88, %103, %cst_44 {dimension_numbers = #tpu.dot_dimension_numbers<[1], [1], [0], [0], [0, 0, 1, 0], [], []>} : vector<256x40xf32>, vector<40x40xf32>, vector<256x40xf32> -> vector<256x40xf32>
    %c0_45 = arith.constant 0 : index
    %c0_46 = arith.constant 0 : index
    %105 = vector.load %arg7[%c0_45, %c0_46] : memref<1x1xf32, #tpu.memory_space<vmem>>, vector<1x1xf32>
    %106 = vector.extract %105[0, 0] : f32 from vector<1x1xf32>
    %107 = vector.broadcast %106 : f32 to vector<256x40xf32>
    %108 = arith.mulf %107, %104 : vector<256x40xf32>
    %109 = arith.addf %108, %88 : vector<256x40xf32>
    %110 = arith.truncf %109 : vector<256x40xf32> to vector<256x40xbf16>
    %c0_47 = arith.constant 0 : index
    %c0_48 = arith.constant 0 : index
    %111 = vector.load %arg4[%c0_47, %c0_48] : memref<40x8xbf16, #tpu.memory_space<vmem>>, vector<40x8xbf16>
    %cst_49 = arith.constant dense<0.000000e+00> : vector<256x8xf32>
    %112 = tpu.matmul %110, %111, %cst_49 {dimension_numbers = #tpu.dot_dimension_numbers<[1], [0], [0], [1], [0, 0, 1, 1], [], []>} : vector<256x40xbf16>, vector<40x8xbf16>, vector<256x8xf32> -> vector<256x8xf32>
    %c0_50 = arith.constant 0 : index
    %c0_51 = arith.constant 0 : index
    %113 = vector.load %arg5[%c0_50, %c0_51] : memref<1x8xf32, #tpu.memory_space<vmem>>, vector<1x8xf32>
    %114 = vector.broadcast %113 : vector<1x8xf32> to vector<256x8xf32>
    %115 = arith.mulf %112, %114 : vector<256x8xf32>
    %c0_52 = arith.constant 0 : index
    %c0_53 = arith.constant 0 : index
    %116 = vector.load %arg6[%c0_52, %c0_53] : memref<1x8xf32, #tpu.memory_space<vmem>>, vector<1x8xf32>
    %117 = vector.broadcast %116 : vector<1x8xf32> to vector<256x8xf32>
    %118 = arith.addf %115, %117 : vector<256x8xf32>
    %119 = vector.shape_cast %118 : vector<256x8xf32> to vector<1x256x8xf32>
    %c0_54 = arith.constant 0 : index
    %c0_55 = arith.constant 0 : index
    %c0_56 = arith.constant 0 : index
    %120 = vector.load %arg8[%c0_54, %c0_55, %c0_56] : memref<1x256x8xf32, #tpu.memory_space<vmem>>, vector<1x256x8xf32>
    tpu.vector_store %arg8[%c0_54, %c0_55, %c0_56], %119 {strides = array<i32>} : memref<1x256x8xf32, #tpu.memory_space<vmem>>, vector<1x256x8xf32>,
    return
  }
  func.func @transform_0(%arg0: i32) -> (i32, i32, i32, i32) {
    %c0_i32 = arith.constant 0 : i32
    %c0_i32_0 = arith.constant 0 : i32
    %c0_i32_1 = arith.constant 0 : i32
    %c0_i32_2 = arith.constant 0 : i32
    return %arg0, %c0_i32, %c0_i32_0, %c0_i32_1 : i32, i32, i32, i32
  }
  func.func @transform_1(%arg0: i32) -> (i32, i32, i32) {
    %c0_i32 = arith.constant 0 : i32
    %c0_i32_0 = arith.constant 0 : i32
    %c0_i32_1 = arith.constant 0 : i32
    %c0_i32_2 = arith.constant 0 : i32
    return %c0_i32, %c0_i32_0, %c0_i32_1 : i32, i32, i32
  }
  func.func @transform_2(%arg0: i32) -> (i32, i32, i32) {
    %c0_i32 = arith.constant 0 : i32
    %c0_i32_0 = arith.constant 0 : i32
    %c0_i32_1 = arith.constant 0 : i32
    %c0_i32_2 = arith.constant 0 : i32
    return %c0_i32, %c0_i32_0, %c0_i32_1 : i32, i32, i32
  }
  func.func @transform_3(%arg0: i32) -> (i32, i32) {
    %c0_i32 = arith.constant 0 : i32
    %c0_i32_0 = arith.constant 0 : i32
    %c0_i32_1 = arith.constant 0 : i32
    return %c0_i32, %c0_i32_0 : i32, i32
  }
  func.func @transform_4(%arg0: i32) -> (i32, i32) {
    %c0_i32 = arith.constant 0 : i32
    %c0_i32_0 = arith.constant 0 : i32
    %c0_i32_1 = arith.constant 0 : i32
    return %c0_i32, %c0_i32_0 : i32, i32
  }
  func.func @transform_5(%arg0: i32) -> (i32, i32) {
    %c0_i32 = arith.constant 0 : i32
    %c0_i32_0 = arith.constant 0 : i32
    %c0_i32_1 = arith.constant 0 : i32
    return %c0_i32, %c0_i32_0 : i32, i32
  }
  func.func @transform_6(%arg0: i32) -> (i32, i32) {
    %c0_i32 = arith.constant 0 : i32
    %c0_i32_0 = arith.constant 0 : i32
    %c0_i32_1 = arith.constant 0 : i32
    return %c0_i32, %c0_i32_0 : i32, i32
  }
  func.func @transform_7(%arg0: i32) -> (i32, i32, i32) {
    %c0_i32 = arith.constant 0 : i32
    %c0_i32_0 = arith.constant 0 : i32
    %c0_i32_1 = arith.constant 0 : i32
    return %arg0, %c0_i32, %c0_i32_0 : i32, i32, i32
  }
}

</mosaic_0001>

<bundles_post_ra>
// kernel: tpu_custom_call.1
= control target key start
LH: loop header
LB: loop body
LE: loop exit
PB: predicated region body
PF: predicated region fallthrough
CT: control target
= control target key end

     0   :  { %s8520_s26 = smov 0   ;;  %s15012_s0 = inlined_call_operand.vmem [shape: f32[2,16,16,8], index: 0, kind: input, shape index: {}]   ;;  %s15013_s1 = inlined_call_operand.vmem [shape: bf16[4,72,8], index: 1, kind: input, shape index: {}]   ;;  %s15014_s2 = inlined_call_operand.vmem [shape: f32[4,1,8], index: 2, kind: input, shape index: {}]   ;;  %s15015_s3 = inlined_call_operand.vmem [shape: bf16[40,8], index: 3, kind: input, shape index: {}]   ;;  %s15016_s4 = inlined_call_operand.vmem [shape: f32[1,8], index: 4, kind: input, shape index: {}]   ;;  %s15017_s5 = inlined_call_operand.vmem [shape: f32[1,8], index: 5, kind: input, shape index: {}]   ;;  %s15018_s6 = inlined_call_operand.<no memory space> [shape: f32[1,1], index: 6, kind: input, shape index: {}]   ;;  %s15019_s7 = inlined_call_operand.vmem [shape: f32[2,256,8], index: 7, kind: output, shape index: {}]  }
   0x1   :  { %v12_v0 = vstv %s15018_s6 }
   0x2   :  { %13 = vst [vmem:[#allocation3] sm:$0x1] %v12_v0 }
   0x3 LB: > { %s7486_s27 = sadd.s32 4294967295, %s8466_s26   ;;  %p7490_p0 = scmp.ge.s32.totalorder %s8466_s26, 1  ;;  %s8466_s26 = sphi %s8520_s26, %s19_s26  }
   0x4   : > { %p239_p1 = scmp.lt.s32.totalorder %s8466_s26, 3 }
   0x6   : > { %p240_p2 = pnand %p7490_p0, %p239_p1 }
   0x8   : > { %243 = sbr.rel (%p240_p2) target bundleno = 3329 (0xd01), region = 48 }
   0xf   : > { %vm314_vm0 = vcmask 64512   ;;  %p8530_p3 = scmp.lt.s32.totalorder %s7486_s27, 1  ;;  %v8468_v1 = vmov 0   ;;  %vm446_vm1 = vcmask 60416   ;;  %vm444_vm2 = vcmask 64516   ;;  %s8469_s9 = smov 8  }
  0x10   : > { %330 = vst.msk [vmem:[#allocation2 + $0x78] sm:$0xff] %vm314_vm0, %v8468_v1  ;;  %315 = vst.msk [vmem:[#allocation2] sm:$0xff] %vm314_vm0, %v8468_v1  ;;  %vm542_vm3 = vsmask.f32 7424  ;;  %vm879_vm4 = vcmask 1046528   ;;  %s8470_s10 = smov 16  }
  0x11   : > { %316 = vst.msk [vmem:[#allocation2 + $0x8] sm:$0xff] %vm314_vm0, %v8468_v1  ;;  %317 = vst.msk [vmem:[#allocation2 + $0x10] sm:$0xff] %vm314_vm0, %v8468_v1  ;;  %s16211_s27 = smov (!%p8530_p3, %s7486_s27), 1  ;;  %s8471_s11 = smov 24   ;;  %vm2534_vm5 = vcmask 1045504   ;;  %vm2268_vm6 = vcmask 1043456  }
  0x12   : > { %318 = vst.msk [vmem:[#allocation2 + $0x18] sm:$0xff] %vm314_vm0, %v8468_v1  ;;  %319 = vst.msk [vmem:[#allocation2 + $0x20] sm:$0xff] %vm314_vm0, %v8468_v1  ;;  %s7673_s28 = sshll.u32 %s16211_s27, 8  ;;  %s8472_s12 = smov 32   ;;  %vm1480_vm7 = vcmask 130048   ;;  %vm1545_vm8 = vcmask 195584  }
  0x13   : > { %320 = vst.msk [vmem:[#allocation2 + $0x28] sm:$0xff] %vm314_vm0, %v8468_v1  ;;  %321 = vst.msk [vmem:[#allocation2 + $0x30] sm:$0xff] %vm314_vm0, %v8468_v1  ;;  %s8674_s8 = scalar_lea.vmem %s15012_s0, %s7673_s28  ;;  %s8473_s13 = smov 40   ;;  %vm1610_vm9 = vcmask 261120   ;;  %vm1675_vm10 = vcmask 326656   ;;  %vm1740_vm11 = vcmask 392192  }
  0x14   : > { %322 = vst.msk [vmem:[#allocation2 + $0x38] sm:$0xff] %vm314_vm0, %v8468_v1  ;;  %323 = vst.msk [vmem:[#allocation2 + $0x40] sm:$0xff] %vm314_vm0, %v8468_v1  ;;  %v282_v2 = vld [vmem:[%s8674_s8] sm:$0xff]  ;;  %v283_v3 = vld [vmem:[%s8674_s8 + $0x8] sm:$0xff]  ;;  %s8474_s14 = smov 48   ;;  %s8475_s15 = smov 56  }
  0x15   : > { %324 = vst.msk [vmem:[#allocation2 + $0x48] sm:$0xff] %vm314_vm0, %v8468_v1  ;;  %325 = vst.msk [vmem:[#allocation2 + $0x50] sm:$0xff] %vm314_vm0, %v8468_v1  ;;  %v284_v4 = vld [vmem:[%s8674_s8 + $0x10] sm:$0xff]  ;;  %v379_v5 = vpack.c.bf16 %v283_v3, %v282_v2  ;;  %v285_v6 = vld [vmem:[%s8674_s8 + $0x18] sm:$0xff]  ;;  %s8476_s22 = smov 64   ;;  %vm1805_vm12 = vcmask 457728  }
  0x16   : > { %326 = vst.msk [vmem:[#allocation2 + $0x58] sm:$0xff] %vm314_vm0, %v8468_v1  ;;  %327 = vst.msk [vmem:[#allocation2 + $0x60] sm:$0xff] %vm314_vm0, %v8468_v1  ;;  %v286_v7 = vld [vmem:[%s8674_s8 + $0x20] sm:$0xff]  ;;  %v287_v8 = vld [vmem:[%s8674_s8 + $0x28] sm:$0xff]  ;;  %v380_v11 = vpack.c.bf16 %v285_v6, %v284_v4  ;;  %vm1870_vm13 = vcmask 523264   ;;  %vm2219_vm15 = vcmask 588800  }
  0x17   : > { %328 = vst.msk [vmem:[#allocation2 + $0x68] sm:$0xff] %vm314_vm0, %v8468_v1  ;;  %329 = vst.msk [vmem:[#allocation2 + $0x70] sm:$0xff] %vm314_vm0, %v8468_v1  ;;  %v8682_v9 = vld [vmem:[#allocation2 + $0x78] sm:$0xff]  ;;  %v381_v12 = vpack.c.bf16 %v287_v8, %v286_v7  ;;  %v288_v13 = vld [vmem:[%s8674_s8 + $0x30] sm:$0xff]  ;;  %v411_v20 = vrot.slane %v379_v5, 4 }
  0x18   : > { %331 = vst.msk [vmem:[#allocation2 + $0x80] sm:$0xff] %vm314_vm0, %v8468_v1  ;;  %332 = vst.msk [vmem:[#allocation2 + $0x88] sm:$0xff] %vm314_vm0, %v8468_v1  ;;  %v551_v14 = vshll.u32 %v8682_v9, 16  ;;  %v555_v15 = vshrl.u32 %v8682_v9, 16  ;;  %v289_v18 = vld [vmem:[%s8674_s8 + $0x38] sm:$0xff]  ;;  %v290_v19 = vld [vmem:[%s8674_s8 + $0x40] sm:$0xff] }
  0x19   : > { %333 = vst.msk [vmem:[#allocation2 + $0x90] sm:$0xff] %vm314_vm0, %v8468_v1  ;;  %334 = vst.msk [vmem:[#allocation2 + $0x98] sm:$0xff] %vm314_vm0, %v8468_v1  ;;  %v412_v21 = vrot.slane %v380_v11, 4  ;;  %v413_v22 = vrot.slane %v381_v12, 4  ;;  %v382_v23 = vpack.c.bf16 %v289_v18, %v288_v13  ;;  %v291_v24 = vld [vmem:[%s8674_s8 + $0x48] sm:$0xff]  ;;  %v292_v25 = vld [vmem:[%s8674_s8 + $0x50] sm:$0xff] }
  0x1a   : > { %335 = vst.msk [vmem:[#allocation2 + $0xa0] sm:$0xff] %vm314_vm0, %v8468_v1  ;;  %336 = vst.msk [vmem:[#allocation2 + $0xa8] sm:$0xff] %vm314_vm0, %v8468_v1  ;;  %v293_v26 = vld [vmem:[%s8674_s8 + $0x58] sm:$0xff]  ;;  %v553_v27 = vrot.slane %v551_v14, 1  ;;  %v383_v29 = vpack.c.bf16 %v291_v24, %v290_v19  ;;  %v294_v31 = vld [vmem:[%s8674_s8 + $0x60] sm:$0xff] }
  0x1b   : > { %337 = vst.msk [vmem:[#allocation2 + $0xb0] sm:$0xff] %vm314_vm0, %v8468_v1  ;;  %338 = vst.msk [vmem:[#allocation2 + $0xb8] sm:$0xff] %vm314_vm0, %v8468_v1  ;;  %v384_v30 = vpack.c.bf16 %v293_v26, %v292_v25  ;;  %v295_v32 = vld [vmem:[%s8674_s8 + $0x68] sm:$0xff]  ;;  %v296_v33 = vld [vmem:[%s8674_s8 + $0x70] sm:$0xff]  ;;  %v414_v34 = vrot.slane %v382_v23, 4 }
  0x1c   : > { %339 = vst.msk [vmem:[#allocation2 + $0xc0] sm:$0xff] %vm314_vm0, %v8468_v1  ;;  %340 = vst.msk [vmem:[#allocation2 + $0xc8] sm:$0xff] %vm314_vm0, %v8468_v1  ;;  %v385_v35 = vpack.c.bf16 %v295_v32, %v294_v31  ;;  %v297_v36 = vld [vmem:[%s8674_s8 + $0x78] sm:$0xff]  ;;  %v298_v37 = vld [vmem:[%s8674_s8 + $0x80] sm:$0xff]  ;;  %v557_v39 = vor.u32 %v555_v15, %v553_v27  ;;  %v415_v41 = vrot.slane %v383_v29, 4 }
  0x1d   : > { %341 = vst.msk [vmem:[#allocation2 + $0xd0] sm:$0xff] %vm314_vm0, %v8468_v1  ;;  %342 = vst.msk [vmem:[#allocation2 + $0xd8] sm:$0xff] %vm314_vm0, %v8468_v1  ;;  %v299_v38 = vld [vmem:[%s8674_s8 + $0x88] sm:$0xff]  ;;  %v416_v42 = vrot.slane %v384_v30, 4  ;;  %v300_v43 = vld [vmem:[%s8674_s8 + $0x90] sm:$0xff]  ;;  %v386_v47 = vpack.c.bf16 %v297_v36, %v296_v33 }
  0x1e   : > { %343 = vst.msk [vmem:[#allocation2 + $0xe0] sm:$0xff] %vm314_vm0, %v8468_v1  ;;  %344 = vst.msk [vmem:[#allocation2 + $0xe8] sm:$0xff] %vm314_vm0, %v8468_v1  ;;  %v8684_v10 = vld [vmem:[#allocation2 + $0x70] sm:$0xff]  ;;  %v301_v44 = vld [vmem:[%s8674_s8 + $0x98] sm:$0xff]  ;;  %v417_v46 = vrot.slane %v385_v35, 4  ;;  %v387_v48 = vpack.c.bf16 %v299_v38, %v298_v37  ;;  %785 = vrot.lane.b32.xlu0 %v557_v39, %s8469_s9 }
  0x1f   : > { %345 = vst.msk [vmem:[#allocation2 + $0xf0] sm:$0xff] %vm314_vm0, %v8468_v1  ;;  %346 = vst.msk [vmem:[#allocation2 + $0xf8] sm:$0xff] %vm314_vm0, %v8468_v1  ;;  %v544_v16 = vshrl.u32 %v8684_v10, 16  ;;  %v546_v17 = vshll.u32 %v8684_v10, 16  ;;  %v302_v45 = vld [vmem:[%s8674_s8 + $0xa0] sm:$0xff]  ;;  %v388_v49 = vpack.c.bf16 %v301_v44, %v300_v43  ;;  %v303_v50 = vld [vmem:[%s8674_s8 + $0xa8] sm:$0xff] }
  0x20   : > { %347 = vst.msk [vmem:[#allocation2 + $0x100] sm:$0xff] %vm314_vm0, %v8468_v1  ;;  %348 = vst.msk [vmem:[#allocation2 + $0x108] sm:$0xff] %vm314_vm0, %v8468_v1  ;;  %v304_v51 = vld [vmem:[%s8674_s8 + $0xb0] sm:$0xff]  ;;  %v305_v52 = vld [vmem:[%s8674_s8 + $0xb8] sm:$0xff]  ;;  %v389_v54 = vpack.c.bf16 %v303_v50, %v302_v45  ;;  %v418_v59 = vrot.slane %v386_v47, 4  ;;  %v419_v60 = vrot.slane %v387_v48, 4 }
  0x21   : > { %349 = vst.msk [vmem:[#allocation2 + $0x110] sm:$0xff] %vm314_vm0, %v8468_v1  ;;  %350 = vst.msk [vmem:[#allocation2 + $0x118] sm:$0xff] %vm314_vm0, %v8468_v1  ;;  %v548_v28 = vrot.slane %v546_v17, 1  ;;  %v390_v55 = vpack.c.bf16 %v305_v52, %v304_v51  ;;  %v306_v56 = vld [vmem:[%s8674_s8 + $0xc0] sm:$0xff]  ;;  %v307_v57 = vld [vmem:[%s8674_s8 + $0xc8] sm:$0xff]  ;;  %v420_v61 = vrot.slane %v388_v49, 4 }
  0x22   : > { %351 = vst.msk [vmem:[#allocation2 + $0x120] sm:$0xff] %vm314_vm0, %v8468_v1  ;;  %352 = vst.msk [vmem:[#allocation2 + $0x128] sm:$0xff] %vm314_vm0, %v8468_v1  ;;  %v308_v58 = vld [vmem:[%s8674_s8 + $0xd0] sm:$0xff]  ;;  %v391_v62 = vpack.c.bf16 %v307_v57, %v306_v56  ;;  %v309_v63 = vld [vmem:[%s8674_s8 + $0xd8] sm:$0xff]  ;;  %v421_v2 = vrot.slane %v389_v54, 4 }
  0x23   : > { %353 = vst.msk [vmem:[#allocation2 + $0x130] sm:$0xff] %vm314_vm0, %v8468_v1  ;;  %354 = vst.msk [vmem:[#allocation2 + $0x138] sm:$0xff] %vm314_vm0, %v8468_v1  ;;  %v549_v40 = vor.u32 %v548_v28, %v544_v16  ;;  %v310_v0 = vld [vmem:[%s8674_s8 + $0xe0] sm:$0xff]  ;;  %v422_v3 = vrot.slane %v390_v55, 4  ;;  %v392_v4 = vpack.c.bf16 %v309_v63, %v308_v58  ;;  %vm1935_vm14 = vsmask.f32 4352 }
  0x24   : > { %355 = vst.msk [vmem:[#allocation2 + $0x140] sm:$0xff] %vm314_vm0, %v8468_v1  ;;  %356 = vst.msk [vmem:[#allocation2 + $0x148] sm:$0xff] %vm314_vm0, %v8468_v1  ;;  %v423_v6 = vrot.slane %v391_v62, 4 }
  0x25   : > { %357 = vst.msk [vmem:[#allocation2 + $0x150] sm:$0xff] %vm314_vm0, %v8468_v1  ;;  %358 = vst.msk [vmem:[#allocation2 + $0x158] sm:$0xff] %vm314_vm0, %v8468_v1  ;;  %v554_v53 = vsel %vm542_vm3, %v549_v40, %v553_v27  ;;  %v424_v12 = vrot.slane %v392_v4, 4 }
  0x26   : > { %359 = vst.msk [vmem:[#allocation2 + $0x160] sm:$0xff] %vm314_vm0, %v8468_v1  ;;  %360 = vst.msk [vmem:[#allocation2 + $0x168] sm:$0xff] %vm314_vm0, %v8468_v1  ;;  %783 = vrot.lane.b32.xlu0 %v554_v53, %s8469_s9 }
  0x27   : > { %361 = vst.msk [vmem:[#allocation2 + $0x170] sm:$0xff] %vm314_vm0, %v8468_v1  ;;  %362 = vst.msk [vmem:[#allocation2 + $0x178] sm:$0xff] %vm314_vm0, %v8468_v1 }
  0x28   : > { %363 = vst.msk [vmem:[#allocation2 + $0x180] sm:$0xff] %vm314_vm0, %v8468_v1  ;;  %364 = vst.msk [vmem:[#allocation2 + $0x188] sm:$0xff] %vm314_vm0, %v8468_v1 }
  0x29   : > { %365 = vst.msk [vmem:[#allocation2 + $0x190] sm:$0xff] %vm314_vm0, %v8468_v1  ;;  %366 = vst.msk [vmem:[#allocation2 + $0x198] sm:$0xff] %vm314_vm0, %v8468_v1 }
  0x2a   : > { %367 = vst.msk [vmem:[#allocation2 + $0x1a0] sm:$0xff] %vm314_vm0, %v8468_v1  ;;  %368 = vst.msk [vmem:[#allocation2 + $0x1a8] sm:$0xff] %vm314_vm0, %v8468_v1 }
  0x2b   : > { %369 = vst.msk [vmem:[#allocation2 + $0x1b0] sm:$0xff] %vm314_vm0, %v8468_v1  ;;  %370 = vst.msk [vmem:[#allocation2 + $0x1b8] sm:$0xff] %vm314_vm0, %v8468_v1 }
  0x2c   : > { %371 = vst.msk [vmem:[#allocation2 + $0x1c0] sm:$0xff] %vm314_vm0, %v8468_v1  ;;  %372 = vst.msk [vmem:[#allocation2 + $0x1c8] sm:$0xff] %vm314_vm0, %v8468_v1 }
  0x2d   : > { %373 = vst.msk [vmem:[#allocation2 + $0x1d0] sm:$0xff] %vm314_vm0, %v8468_v1  ;;  %374 = vst.msk [vmem:[#allocation2 + $0x1d8] sm:$0xff] %vm314_vm0, %v8468_v1 }
  0x2e   : > { %375 = vst.msk [vmem:[#allocation2 + $0x1e0] sm:$0xff] %vm314_vm0, %v8468_v1  ;;  %376 = vst.msk [vmem:[#allocation2 + $0x1e8] sm:$0xff] %vm314_vm0, %v8468_v1 }
  0x2f   : > { %377 = vst.msk [vmem:[#allocation2 + $0x1f0] sm:$0xff] %vm314_vm0, %v8468_v1  ;;  %378 = vst.msk [vmem:[#allocation2 + $0x1f8] sm:$0xff] %vm314_vm0, %v8468_v1  ;;  %v311_v1 = vld [vmem:[%s8674_s8 + $0xe8] sm:$0xff] }
  0x30   : > { %447 = vst.msk [vmem:[#allocation2 + $0x88] sm:$0xf] %vm446_vm1, %v411_v20  ;;  %449 = vst.msk [vmem:[#allocation2 + $0x98] sm:$0xf] %vm446_vm1, %v412_v21  ;;  %v393_v5 = vpack.c.bf16 %v311_v1, %v310_v0 }
  0x31   : > { %448 = vst.msk [vmem:[#allocation2 + $0x90] sm:$0xf0] %vm444_vm2, %v412_v21  ;;  %445 = vst.msk [vmem:[#allocation2 + $0x80] sm:$0xf0] %vm444_vm2, %v411_v20 }
  0x32   : > { %450 = vst.msk [vmem:[#allocation2 + $0xa0] sm:$0xf0] %vm444_vm2, %v413_v22  ;;  %452 = vst.msk [vmem:[#allocation2 + $0xb0] sm:$0xf0] %vm444_vm2, %v414_v34  ;;  %v425_v13 = vrot.slane %v393_v5, 4 }
  0x33   : > { %451 = vst.msk [vmem:[#allocation2 + $0xa8] sm:$0xf] %vm446_vm1, %v413_v22  ;;  %453 = vst.msk [vmem:[#allocation2 + $0xb8] sm:$0xf] %vm446_vm1, %v414_v34 }
  0x34   : > { %454 = vst.msk [vmem:[#allocation2 + $0xc0] sm:$0xf0] %vm444_vm2, %v415_v41  ;;  %456 = vst.msk [vmem:[#allocation2 + $0xd0] sm:$0xf0] %vm444_vm2, %v416_v42 }
  0x35   : > { %455 = vst.msk [vmem:[#allocation2 + $0xc8] sm:$0xf] %vm446_vm1, %v415_v41  ;;  %457 = vst.msk [vmem:[#allocation2 + $0xd8] sm:$0xf] %vm446_vm1, %v416_v42 }
  0x36   : > { %458 = vst.msk [vmem:[#allocation2 + $0xe0] sm:$0xf0] %vm444_vm2, %v417_v46  ;;  %460 = vst.msk [vmem:[#allocation2 + $0xf0] sm:$0xf0] %vm444_vm2, %v418_v59 }
  0x37   : > { %459 = vst.msk [vmem:[#allocation2 + $0xe8] sm:$0xf] %vm446_vm1, %v417_v46  ;;  %461 = vst.msk [vmem:[#allocation2 + $0xf8] sm:$0xf] %vm446_vm1, %v418_v59  ;;  %v8737_v7 = vld [vmem:[#allocation2 + $0x88] sm:$0xff]  ;;  %v8741_v11 = vld [vmem:[#allocation2 + $0x98] sm:$0xff] }
  0x38   : > { %462 = vst.msk [vmem:[#allocation2 + $0x100] sm:$0xf0] %vm444_vm2, %v419_v60  ;;  %464 = vst.msk [vmem:[#allocation2 + $0x110] sm:$0xf0] %vm444_vm2, %v420_v61  ;;  %v8739_v8 = vld [vmem:[#allocation2 + $0x90] sm:$0xff]  ;;  %v566_v14 = vshll.u32 %v8737_v7, 16 }
  0x39   : > { %463 = vst.msk [vmem:[#allocation2 + $0x108] sm:$0xf] %vm446_vm1, %v419_v60  ;;  %465 = vst.msk [vmem:[#allocation2 + $0x118] sm:$0xf] %vm446_vm1, %v420_v61  ;;  %v570_v15 = vshrl.u32 %v8737_v7, 16  ;;  %v574_v16 = vshrl.u32 %v8739_v8, 16 }
  0x3a   : > { %466 = vst.msk [vmem:[#allocation2 + $0x120] sm:$0xf0] %vm444_vm2, %v421_v2  ;;  %468 = vst.msk [vmem:[#allocation2 + $0x130] sm:$0xf0] %vm444_vm2, %v422_v3  ;;  %v576_v17 = vshll.u32 %v8739_v8, 16  ;;  %v8751_v18 = vld [vmem:[#allocation2 + $0xa0] sm:$0xff] }
  0x3b   : > { %467 = vst.msk [vmem:[#allocation2 + $0x128] sm:$0xf] %vm446_vm1, %v421_v2  ;;  %469 = vst.msk [vmem:[#allocation2 + $0x138] sm:$0xf] %vm446_vm1, %v422_v3  ;;  %v8753_v19 = vld [vmem:[#allocation2 + $0xa8] sm:$0xff]  ;;  %v581_v20 = vshll.u32 %v8741_v11, 16 }
  0x3c   : > { %470 = vst.msk [vmem:[#allocation2 + $0x140] sm:$0xf0] %vm444_vm2, %v423_v6  ;;  %v589_v21 = vshrl.u32 %v8751_v18, 16  ;;  %v591_v22 = vshll.u32 %v8751_v18, 16  ;;  %v8760_v23 = vld [vmem:[#allocation2 + $0xb0] sm:$0xff]  ;;  %v8762_v24 = vld [vmem:[#allocation2 + $0xb8] sm:$0xff] }
  0x3d   : > { %471 = vst.msk [vmem:[#allocation2 + $0x148] sm:$0xf] %vm446_vm1, %v423_v6  ;;  %473 = vst.msk [vmem:[#allocation2 + $0x158] sm:$0xf] %vm446_vm1, %v424_v12  ;;  %v8768_v25 = vrot.slane %v566_v14, 1  ;;  %v578_v26 = vrot.slane %v576_v17, 1 }
  0x3e   : > { %472 = vst.msk [vmem:[#allocation2 + $0x150] sm:$0xf0] %vm444_vm2, %v424_v12  ;;  %474 = vst.msk [vmem:[#allocation2 + $0x160] sm:$0xf0] %vm444_vm2, %v425_v13  ;;  %v585_v27 = vshrl.u32 %v8741_v11, 16  ;;  %v596_v28 = vshll.u32 %v8753_v19, 16 }
  0x3f   : > { %475 = vst.msk [vmem:[#allocation2 + $0x168] sm:$0xf] %vm446_vm1, %v425_v13  ;;  %v583_v29 = vrot.slane %v581_v20, 1  ;;  %v593_v30 = vrot.slane %v591_v22, 1  ;;  %v604_v31 = vshrl.u32 %v8760_v23, 16  ;;  %v606_v32 = vshll.u32 %v8760_v23, 16 }
  0x40   : > { %v8775_v33 = vor.u32 %v570_v15, %v8768_v25  ;;  %v579_v34 = vor.u32 %v578_v26, %v574_v16  ;;  %v598_v35 = vrot.slane %v596_v28, 1  ;;  %v611_v36 = vshll.u32 %v8762_v24, 16  ;;  %v8778_v37 = vld [vmem:[#allocation2 + $0xc0] sm:$0xff]  ;;  %v8780_v40 = vld [vmem:[#allocation2 + $0xc8] sm:$0xff]  ;;  %v8782_v41 = vld [vmem:[#allocation2 + $0xd0] sm:$0xff] }
  0x41   : > { %v594_v38 = vor.u32 %v593_v30, %v589_v21  ;;  %v608_v39 = vrot.slane %v606_v32, 1  ;;  %v8789_v43 = vor.u32 %v585_v27, %v583_v29  ;;  %v600_v44 = vshrl.u32 %v8753_v19, 16  ;;  %v8800_v51 = vld [vmem:[#allocation2 + $0xd8] sm:$0xff]  ;;  %v8803_v54 = vld [vmem:[#allocation2 + $0xe0] sm:$0xff]  ;;  %v8810_v57 = vld [vmem:[#allocation2 + $0xe8] sm:$0xff] }
  0x42   : > { %789 = vrot.lane.b32.xlu1 %v8775_v33, %s8469_s9  ;;  %v8787_v42 = vsel %vm542_vm3, %v579_v34, %v583_v29  ;;  %v613_v46 = vrot.slane %v611_v36, 1  ;;  %v621_v47 = vshll.u32 %v8778_v37, 16  ;;  %v619_v49 = vshrl.u32 %v8778_v37, 16  ;;  %v8820_v1 = vld [vmem:[#allocation2 + $0x80] sm:$0xff]  ;;  %v8822_v2 = vld [vmem:[#allocation2 + $0xf0] sm:$0xff]  ;;  %v8842_v26 = vld [vmem:[#allocation2 + $0xf8] sm:$0xff] }
  0x43   : > { %791 = vrot.lane.b32.xlu0 %v8787_v42, %s8469_s9  ;;  %v609_v45 = vor.u32 %v608_v39, %v604_v31  ;;  %v8796_v48 = vsel %vm542_vm3, %v594_v38, %v598_v35  ;;  %v626_v50 = vshll.u32 %v8780_v40, 16  ;;  %v636_v52 = vshll.u32 %v8782_v41, 16  ;;  %v8834_v14 = vld [vmem:[#allocation2 + $0x100] sm:$0xff]  ;;  %v8856_v38 = vld [vmem:[#allocation2 + $0x108] sm:$0xff]  ;;  %v8858_v39 = vld [vmem:[#allocation2 + $0x110] sm:$0xff] }
  0x44   : > { %v623_v53 = vrot.slane %v621_v47, 1  ;;  %v8807_v55 = vor.u32 %v600_v44, %v598_v35  ;;  %v615_v56 = vshrl.u32 %v8762_v24, 16  ;;  %v634_v59 = vshrl.u32 %v8782_v41, 16 }
  0x45   : > { %v8815_v58 = vsel %vm542_vm3, %v609_v45, %v613_v46  ;;  %v641_v60 = vshll.u32 %v8800_v51, 16  ;;  %v628_v62 = vrot.slane %v626_v50, 1  ;;  %v638_v63 = vrot.slane %v636_v52, 1 }
  0x46   : > { %793 = vrot.lane.b32.xlu1 %v8789_v43, %s8469_s9  ;;  %v624_v61 = vor.u32 %v623_v53, %v619_v49  ;;  %v651_v0 = vshll.u32 %v8803_v54, 16  ;;  %v8826_v3 = vor.u32 %v615_v56, %v613_v46  ;;  %v630_v4 = vshrl.u32 %v8780_v40, 16 }
  0x47   : > { %795 = vrot.lane.b32.xlu0 %v8796_v48, %s8469_s9  ;;  %v656_v5 = vshll.u32 %v8810_v57, 16  ;;  %v643_v6 = vrot.slane %v641_v60, 1  ;;  %v649_v12 = vshrl.u32 %v8803_v54, 16  ;;  %v561_v13 = vshll.u32 %v8820_v1, 16  ;;  %v8874_v60 = vld [vmem:[#allocation2 + $0x120] sm:$0xff] }
  0x48   : > { %v8837_v15 = vsel %vm542_vm3, %v624_v61, %v628_v62  ;;  %v639_v16 = vor.u32 %v638_v63, %v634_v59  ;;  %v653_v17 = vrot.slane %v651_v0, 1  ;;  %v666_v20 = vshll.u32 %v8822_v2, 16  ;;  %v8872_v59 = vld [vmem:[#allocation2 + $0x118] sm:$0xff] }
  0x49   : > { %v645_v21 = vshrl.u32 %v8800_v51, 16  ;;  %v559_v22 = vshrl.u32 %v8820_v1, 16  ;;  %v8846_v27 = vor.u32 %v630_v4, %v628_v62  ;;  %v658_v28 = vrot.slane %v656_v5, 1 }
  0x4a   : > { %797 = vrot.lane.b32.xlu1 %v8807_v55, %s8469_s9  ;;  %v664_v29 = vshrl.u32 %v8822_v2, 16  ;;  %v563_v30 = vrot.slane %v561_v13, 1  ;;  %v681_v31 = vshll.u32 %v8834_v14, 16  ;;  %v8853_v32 = vsel %vm542_vm3, %v639_v16, %v643_v6  ;;  %v8890_v13 = vld [vmem:[#allocation2 + $0x128] sm:$0xff] }
  0x4b   : > { %799 = vrot.lane.b32.xlu0 %v8815_v58, %s8469_s9  ;;  %15353 = vst [vmem:[#allocation4_spill] sm:$0xff] %v8846_v27  ;;  %v654_v34 = vor.u32 %v653_v17, %v649_v12  ;;  %v668_v35 = vrot.slane %v666_v20, 1  ;;  %v671_v36 = vshll.u32 %v8842_v26, 16  ;;  %v8862_v44 = vor.u32 %v645_v21, %v643_v6  ;;  %v8893_v17 = vld [vmem:[#allocation2 + $0x130] sm:$0xff] }
  0x4c   : > { %v564_v45 = vor.u32 %v563_v30, %v559_v22  ;;  %v679_v46 = vshrl.u32 %v8834_v14, 16  ;;  %v683_v47 = vrot.slane %v681_v31, 1  ;;  %v686_v49 = vshll.u32 %v8856_v38, 16 }
  0x4d   : > { %15354 = vst [vmem:[#allocation5_spill] sm:$0xff] %v8862_v44  ;;  %v8869_v50 = vsel %vm542_vm3, %v654_v34, %v658_v28  ;;  %v669_v52 = vor.u32 %v668_v35, %v664_v29  ;;  %v673_v53 = vrot.slane %v671_v36, 1  ;;  %v696_v56 = vshll.u32 %v8858_v39, 16  ;;  %v8907_v35 = vld [vmem:[#allocation2 + $0x138] sm:$0xff]  ;;  %v8910_v36 = vld [vmem:[#allocation2 + $0x140] sm:$0xff] }
  0x4e   : > { %801 = vrot.lane.b32.xlu1 %v8826_v3, %s8469_s9  ;;  %15355 = vst [vmem:[#allocation6_spill] sm:$0xff] %v8869_v50  ;;  %v660_v61 = vshrl.u32 %v8810_v57, 16  ;;  %v8883_v62 = vsel %vm542_vm3, %v564_v45, %v8768_v25  ;;  %v684_v63 = vor.u32 %v683_v47, %v679_v46  ;;  %v688_v0 = vrot.slane %v686_v49, 1 }
  0x4f   : > { %803 = vrot.lane.b32.xlu0 %v8837_v15, %s8469_s9  ;;  %v694_v4 = vshrl.u32 %v8858_v39, 16  ;;  %v8887_v5 = vsel %vm542_vm3, %v669_v52, %v673_v53  ;;  %v698_v6 = vrot.slane %v696_v56, 1  ;;  %v701_v12 = vshll.u32 %v8872_v59, 16 }
  0x50   : > { %15356 = vst [vmem:[#allocation7_spill] sm:$0xff] %v8887_v5  ;;  %v711_v16 = vshll.u32 %v8874_v60, 16  ;;  %v8897_v25 = vor.u32 %v660_v61, %v658_v28  ;;  %v675_v20 = vshrl.u32 %v8842_v26, 16  ;;  %v8903_v21 = vsel %vm542_vm3, %v684_v63, %v688_v0 }
  0x51   : > { %15358 = vst [vmem:[#allocation9_spill] sm:$0xff] %v8903_v21  ;;  %v709_v22 = vshrl.u32 %v8874_v60, 16  ;;  %v716_v29 = vshll.u32 %v8890_v13, 16  ;;  %v699_v30 = vor.u32 %v698_v6, %v694_v4  ;;  %v703_v31 = vrot.slane %v701_v12, 1  ;;  %v8924_v4 = vld [vmem:[#allocation2 + $0x148] sm:$0xff]  ;;  %v8927_v6 = vld [vmem:[#allocation2 + $0x150] sm:$0xff] }
  0x52   : > { %805 = vrot.lane.b32.xlu1 %v8846_v27, %s8469_s9  ;;  %15357 = vst [vmem:[#allocation8_spill] sm:$0xff] %v8897_v25  ;;  %v713_v34 = vrot.slane %v711_v16, 1  ;;  %v726_v28 = vshll.u32 %v8893_v17, 16  ;;  %v8914_v45 = vor.u32 %v675_v20, %v673_v53  ;;  %v690_v46 = vshrl.u32 %v8856_v38, 16 }
  0x53   : > { %807 = vrot.lane.b32.xlu0 %v8853_v32, %s8469_s9  ;;  %v718_v47 = vrot.slane %v716_v29, 1  ;;  %v724_v49 = vshrl.u32 %v8893_v17, 16  ;;  %v731_v52 = vshll.u32 %v8907_v35, 16  ;;  %v8922_v56 = vsel %vm542_vm3, %v699_v30, %v703_v31 }
  0x54   : > { %15359 = vst [vmem:[#allocation10_spill] sm:$0xff] %v8914_v45  ;;  %15360 = vst [vmem:[#allocation11_spill] sm:$0xff] %v8922_v56  ;;  %v714_v61 = vor.u32 %v713_v34, %v709_v22  ;;  %v728_v63 = vrot.slane %v726_v28, 1  ;;  %v741_v53 = vshll.u32 %v8910_v36, 16  ;;  %v8931_v12 = vor.u32 %v690_v46, %v688_v0  ;;  %v8944_v46 = vld [vmem:[#allocation2 + $0x160] sm:$0xff] }
  0x55   : > { %v705_v16 = vshrl.u32 %v8872_v59, 16  ;;  %v733_v20 = vrot.slane %v731_v52, 1  ;;  %v739_v22 = vshrl.u32 %v8910_v36, 16  ;;  %v746_v29 = vshll.u32 %v8924_v4, 16 }
  0x56   : > { %809 = vrot.lane.b32.xlu1 %v8862_v44, %s8469_s9  ;;  %15361 = vst [vmem:[#allocation12_spill] sm:$0xff] %v8931_v12  ;;  %v8939_v30 = vsel %vm542_vm3, %v714_v61, %v718_v47  ;;  %v729_v34 = vor.u32 %v728_v63, %v724_v49  ;;  %v743_v28 = vrot.slane %v741_v53, 1  ;;  %v756_v0 = vshll.u32 %v8927_v6, 16 }
  0x57   : > { %811 = vrot.lane.b32.xlu0 %v8869_v50, %s8469_s9  ;;  %15362 = vst [vmem:[#allocation13_spill] sm:$0xff] %v8939_v30  ;;  %v8948_v52 = vor.u32 %v705_v16, %v703_v31  ;;  %v748_v49 = vrot.slane %v746_v29, 1  ;;  %v754_v61 = vshrl.u32 %v8927_v6, 16  ;;  %v735_v16 = vshrl.u32 %v8907_v35, 16  ;;  %v312_v29 = vld [vmem:[%s8674_s8 + $0xf0] sm:$0xff] }
  0x58   : > { %v8956_v53 = vsel %vm542_vm3, %v729_v34, %v733_v20  ;;  %v750_v27 = vshrl.u32 %v8924_v4, 16 }
  0x59   : > { %15363 = vst [vmem:[#allocation14_spill] sm:$0xff] %v8948_v52  ;;  %15364 = vst [vmem:[#allocation15_spill] sm:$0xff] %v8956_v53 }
  0x5a   : > { %787 = vrot.lane.b32.xlu1 %v8883_v62, %s8469_s9 }
  0x5b   : > { %815 = vrot.lane.b32.xlu0 %v8887_v5, %s8469_s9  ;;  %v8959_v5 = vld [vmem:[#allocation2 + $0x168] sm:$0xff] }
  0x5e   : > { %813 = vrot.lane.b32.xlu1 %v8897_v25, %s8469_s9  ;;  %v758_v25 = vrot.slane %v756_v0, 1 }
  0x5f   : > { %819 = vrot.lane.b32.xlu0 %v8903_v21, %s8469_s9  ;;  %v8941_v21 = vld [vmem:[#allocation2 + $0x158] sm:$0xff] }
  0x60   : > { %v761_v63 = vshll.u32 %v8941_v21, 16  ;;  %v759_v44 = vor.u32 %v758_v25, %v754_v61 }
  0x62   : > { %817 = vrot.lane.b32.xlu1 %v8914_v45, %s8469_s9  ;;  %v744_v45 = vor.u32 %v743_v28, %v739_v22  ;;  %v763_v34 = vrot.slane %v761_v63, 1  ;;  %v769_v22 = vshrl.u32 %v8944_v46, 16  ;;  %v880_v63 = vrot.slane %v8684_v10, 1 }
  0x63   : > { %823 = vrot.lane.b32.xlu0 %v8922_v56, %s8469_s9  ;;  %v720_v56 = vshrl.u32 %v8890_v13, 16  ;;  %v883_v10 = vrot.slane %v8820_v1, 1 }
  0x64   : > { %v8972_v0 = vsel %vm542_vm3, %v744_v45, %v748_v49  ;;  %v8985_v25 = vsel %vm542_vm3, %v759_v44, %v763_v34  ;;  %v8999_v44 = vrot.slane %v8682_v9, 1  ;;  %v9014_v9 = vrot.slane %v8737_v7, 1 }
  0x65   : > { %v8963_v31 = vor.u32 %v720_v56, %v718_v47  ;;  %15366 = vst [vmem:[#allocation17_spill] sm:$0xff] %v8972_v0  ;;  %v8977_v56 = vor.u32 %v735_v16, %v733_v20  ;;  %15368 = vst [vmem:[#allocation19_spill] sm:$0xff] %v8985_v25  ;;  %v765_v20 = vshrl.u32 %v8941_v21, 16 }
  0x66   : > { %821 = vrot.lane.b32.xlu1 %v8931_v12, %s8469_s9  ;;  %v771_v12 = vshll.u32 %v8944_v46, 16  ;;  %15371 = vst [vmem:[#allocation22_spill] sm:$0xff] %v8999_v44  ;;  %v9024_v16 = vsel %vm879_vm4, %v883_v10, %v9014_v9  ;;  %v9064_v10 = vrot.slane %v8780_v40, 1 }
  0x67   : > { %827 = vrot.lane.b32.xlu0 %v8939_v30, %s8469_s9  ;;  %15365 = vst [vmem:[#allocation16_spill] sm:$0xff] %v8963_v31  ;;  %v313_v30 = vld [vmem:[%s8674_s8 + $0xf8] sm:$0xff]  ;;  %15367 = vst [vmem:[#allocation18_spill] sm:$0xff] %v8977_v56 }
  0x68   : > { %v394_v28 = vpack.c.bf16 %v313_v30, %v312_v29  ;;  %v773_v50 = vrot.slane %v771_v12, 1  ;;  %v8989_v30 = vor.u32 %v750_v27, %v748_v49  ;;  %v780_v27 = vshrl.u32 %v8959_v5, 16  ;;  %15378 = vst [vmem:[#allocation29_spill] sm:$0xff] %v9064_v10 }
  0x69   : > { %v886_v29 = vrot.slane %v8739_v8, 1 }
  0x6a   : > { %825 = vrot.lane.b32.xlu1 %v8948_v52, %s8469_s9  ;;  %v776_v52 = vshll.u32 %v8959_v5, 16  ;;  %v426_v47 = vrot.slane %v394_v28, 4  ;;  %v774_v45 = vor.u32 %v773_v50, %v769_v22  ;;  %15369 = vst [vmem:[#allocation20_spill] sm:$0xff] %v8989_v30  ;;  %v9003_v50 = vor.u32 %v765_v20, %v763_v34 }
  0x6b   : > { %831 = vrot.lane.b32.xlu0 %v8956_v53, %s8469_s9  ;;  %v9028_v34 = vrot.slane %v8741_v11, 1  ;;  %v889_v28 = vrot.slane %v8751_v18, 1  ;;  %v9052_v20 = vrot.slane %v8762_v24, 1 }
  0x6c   : > { %476 = vst.msk [vmem:[#allocation2 + $0x170] sm:$0xf0] %vm444_vm2, %v426_v47  ;;  %v778_v12 = vrot.slane %v776_v52, 1  ;;  %15372 = vst [vmem:[#allocation23_spill] sm:$0xff] %v9003_v50  ;;  %v9010_v52 = vsel %vm879_vm4, %v880_v63, %v8999_v44 }
  0x6d   : > { %477 = vst.msk [vmem:[#allocation2 + $0x178] sm:$0xf] %vm446_vm1, %v426_v47  ;;  %15373 = vst [vmem:[#allocation24_spill] sm:$0xff] %v9010_v52  ;;  %v9036_v22 = vsel %vm879_vm4, %v886_v29, %v9028_v34  ;;  %v9040_v47 = vrot.slane %v8753_v19, 1  ;;  %vm3408_vm1 = vcmask 1044480  }
  0x6e   : > { %829 = vrot.lane.b32.xlu1 %v8963_v31, %s8469_s9  ;;  %v8995_v61 = vsel %vm542_vm3, %v774_v45, %v778_v12  ;;  %v9018_v49 = vor.u32 %v780_v27, %v778_v12  ;;  %v892_v12 = vrot.slane %v8760_v23, 1  ;;  %15376 = vst [vmem:[#allocation27_spill] sm:$0xff] %v9052_v20  ;;  %v895_v27 = vrot.slane %v8778_v37, 1  ;;  %vm8159_vm2 = vmpackc.low %vm1675_vm10, %vm1675_vm10 }
  0x6f   : > { %835 = vrot.lane.b32.xlu0 %v8972_v0, %s8469_s9  ;;  %15370 = vst [vmem:[#allocation21_spill] sm:$0xff] %v8995_v61  ;;  %15375 = vst [vmem:[#allocation26_spill] sm:$0xff] %v9040_v47  ;;  %v9048_v45 = vsel %vm879_vm4, %v889_v28, %v9040_v47  ;;  %v898_v28 = vrot.slane %v8782_v41, 1 }
  0x70   : > { %15374 = vst [vmem:[#allocation25_spill] sm:$0xff] %v9018_v49  ;;  %v9060_v63 = vsel %vm879_vm4, %v892_v12, %v9052_v20  ;;  %v9072_v29 = vsel %vm879_vm4, %v895_v27, %v9064_v10  ;;  %v9076_v12 = vrot.slane %v8800_v51, 1  ;;  %v9088_v27 = vrot.slane %v8810_v57, 1 }
  0x71   : > { %15377 = vst [vmem:[#allocation28_spill] sm:$0xff] %v9060_v63  ;;  %15379 = vst [vmem:[#allocation30_spill] sm:$0xff] %v9072_v29 }
  0x72   : > { %833 = vrot.lane.b32.xlu1 %v8977_v56, %s8469_s9  ;;  %15380 = vst [vmem:[#allocation31_spill] sm:$0xff] %v9076_v12  ;;  %15382 = vst [vmem:[#allocation33_spill] sm:$0xff] %v9088_v27 }
  0x73   : > { %839 = vrot.lane.b32.xlu0 %v8985_v25, %s8469_s9 }
  0x76   : > { %837 = vrot.lane.b32.xlu1 %v8989_v30, %s8469_s9 }
  0x77   : > { %843 = vrot.lane.b32.xlu0 %v8995_v61, %s8469_s9 }
  0x7a   : > { %841 = vrot.lane.b32.xlu1 %v9003_v50, %s8469_s9 }
  0x7b   : > { %928 = vrot.lane.b32.xlu0 %v9010_v52, %s8470_s10  ;;  %v901_v52 = vrot.slane %v8803_v54, 1 }
  0x7e   : > { %845 = vrot.lane.b32.xlu1 %v9018_v49, %s8469_s9 }
  0x7f   : > { %932 = vrot.lane.b32.xlu0 %v9024_v16, %s8470_s10 }
  0x82   : > { %930 = vrot.lane.b32.xlu1 %v8999_v44, %s8470_s10  ;;  %v9084_v44 = vsel %vm879_vm4, %v898_v28, %v9076_v12  ;;  %v9100_v28 = vrot.slane %v8842_v26, 1 }
  0x83   : > { %936 = vrot.lane.b32.xlu0 %v9036_v22, %s8470_s10  ;;  %15381 = vst [vmem:[#allocation32_spill] sm:$0xff] %v9084_v44 }
  0x84   : > { %15384 = vst [vmem:[#allocation35_spill] sm:$0xff] %v9100_v28 }
  0x86   : > { %934 = vrot.lane.b32.xlu1 %v9014_v9, %s8470_s10 }
  0x87   : > { %940 = vrot.lane.b32.xlu0 %v9048_v45, %s8470_s10 }
  0x8a   : > { %938 = vrot.lane.b32.xlu1 %v9028_v34, %s8470_s10 }
  0x8b   : > { %944 = vrot.lane.b32.xlu0 %v9060_v63, %s8470_s10 }
  0x8e   : > { %942 = vrot.lane.b32.xlu1 %v9040_v47, %s8470_s10  ;;  %v9096_v47 = vsel %vm879_vm4, %v901_v52, %v9088_v27  ;;  %v9112_v52 = vrot.slane %v8856_v38, 1 }
  0x8f   : > { %948 = vrot.lane.b32.xlu0 %v9072_v29, %s8470_s10  ;;  %15383 = vst [vmem:[#allocation34_spill] sm:$0xff] %v9096_v47  ;;  %v904_v29 = vrot.slane %v8822_v2, 1 }
  0x90   : > { %15386 = vst [vmem:[#allocation37_spill] sm:$0xff] %v9112_v52  ;;  %v9162_v63 = vpop.permute.xlu0 %785 }
  0x91   : > { %15395 = vst [vmem:[#allocation46_spill] sm:$0xff] %v9162_v63 }
  0x92   : > { %946 = vrot.lane.b32.xlu1 %v9052_v20, %s8470_s10  ;;  %v9108_v20 = vsel %vm879_vm4, %v904_v29, %v9100_v28  ;;  %v9124_v29 = vrot.slane %v8872_v59, 1 }
  0x93   : > { %952 = vrot.lane.b32.xlu0 %v9084_v44, %s8470_s10  ;;  %15385 = vst [vmem:[#allocation36_spill] sm:$0xff] %v9108_v20  ;;  %v907_v44 = vrot.slane %v8834_v14, 1 }
  0x94   : > { %15388 = vst [vmem:[#allocation39_spill] sm:$0xff] %v9124_v29 }
  0x96   : > { %950 = vrot.lane.b32.xlu1 %v9064_v10, %s8470_s10  ;;  %v9120_v10 = vsel %vm879_vm4, %v907_v44, %v9112_v52  ;;  %v9136_v44 = vrot.slane %v8890_v13, 1 }
  0x97   : > { %956 = vrot.lane.b32.xlu0 %v9096_v47, %s8470_s10  ;;  %15387 = vst [vmem:[#allocation38_spill] sm:$0xff] %v9120_v10  ;;  %v910_v47 = vrot.slane %v8858_v39, 1 }
  0x98   : > { %15390 = vst [vmem:[#allocation41_spill] sm:$0xff] %v9136_v44  ;;  %v9180_v63 = vpop.permute.xlu0 %783 }
  0x99   : > { %15398 = vst [vmem:[#allocation49_spill] sm:$0xff] %v9180_v63 }
  0x9a   : > { %954 = vrot.lane.b32.xlu1 %v9076_v12, %s8470_s10  ;;  %v9132_v12 = vsel %vm879_vm4, %v910_v47, %v9124_v29  ;;  %v9148_v47 = vrot.slane %v8907_v35, 1 }
  0x9b   : > { %960 = vrot.lane.b32.xlu0 %v9108_v20, %s8470_s10  ;;  %15389 = vst [vmem:[#allocation40_spill] sm:$0xff] %v9132_v12  ;;  %v913_v20 = vrot.slane %v8874_v60, 1 }
  0x9c   : > { %15392 = vst [vmem:[#allocation43_spill] sm:$0xff] %v9148_v47 }
  0x9e   : > { %958 = vrot.lane.b32.xlu1 %v9088_v27, %s8470_s10  ;;  %v9144_v27 = vsel %vm879_vm4, %v913_v20, %v9136_v44  ;;  %v9160_v20 = vrot.slane %v8924_v4, 1 }
  0x9f   : > { %964 = vrot.lane.b32.xlu0 %v9120_v10, %s8470_s10  ;;  %15391 = vst [vmem:[#allocation42_spill] sm:$0xff] %v9144_v27  ;;  %v916_v10 = vrot.slane %v8893_v17, 1 }
  0xa0   : > { %15394 = vst [vmem:[#allocation45_spill] sm:$0xff] %v9160_v20 }
  0xa2   : > { %962 = vrot.lane.b32.xlu1 %v9100_v28, %s8470_s10  ;;  %v9156_v28 = vsel %vm879_vm4, %v916_v10, %v9148_v47  ;;  %v922_v10 = vrot.slane %v8927_v6, 1 }
  0xa3   : > { %968 = vrot.lane.b32.xlu0 %v9132_v12, %s8470_s10  ;;  %15393 = vst [vmem:[#allocation44_spill] sm:$0xff] %v9156_v28  ;;  %v919_v12 = vrot.slane %v8910_v36, 1 }
  0xa6   : > { %966 = vrot.lane.b32.xlu1 %v9112_v52, %s8470_s10  ;;  %v9174_v52 = vrot.slane %v8941_v21, 1 }
  0xa7   : > { %972 = vrot.lane.b32.xlu0 %v9144_v27, %s8470_s10  ;;  %v9170_v27 = vsel %vm879_vm4, %v919_v12, %v9160_v20  ;;  %v925_v12 = vrot.slane %v8944_v46, 1 }
  0xa8   : > { %15396 = vst [vmem:[#allocation47_spill] sm:$0xff] %v9170_v27  ;;  %15397 = vst [vmem:[#allocation48_spill] sm:$0xff] %v9174_v52 }
  0xaa   : > { %970 = vrot.lane.b32.xlu1 %v9124_v29, %s8470_s10  ;;  %v9188_v29 = vrot.slane %v8959_v5, 1 }
  0xab   : > { %976 = vrot.lane.b32.xlu0 %v9156_v28, %s8470_s10  ;;  %v9184_v28 = vsel %vm879_vm4, %v922_v10, %v9174_v52 }
  0xac   : > { %15399 = vst [vmem:[#allocation50_spill] sm:$0xff] %v9184_v28  ;;  %15400 = vst [vmem:[#allocation51_spill] sm:$0xff] %v9188_v29  ;;  %v9198_v63 = vsel %vm879_vm4, %v925_v12, %v9188_v29 }
  0xad   : > { %15402 = vst [vmem:[#allocation53_spill] sm:$0xff] %v9198_v63 }
  0xae   : > { %974 = vrot.lane.b32.xlu1 %v9136_v44, %s8470_s10 }
  0xaf   : > { %980 = vrot.lane.b32.xlu0 %v9170_v27, %s8470_s10 }
  0xb2   : > { %978 = vrot.lane.b32.xlu1 %v9148_v47, %s8470_s10 }
  0xb3   : > { %984 = vrot.lane.b32.xlu0 %v9184_v28, %s8470_s10 }
  0xb4   : > { %v9194_v44 = vpop.permute.xlu1 %789 }
  0xb5   : > { %15401 = vst [vmem:[#allocation52_spill] sm:$0xff] %v9194_v44  ;;  %v9200_v27 = vpop.permute.xlu0 %791  ;;  %v15455_v44 = vld [vmem:[#allocation9_spill] sm:$0xff] }
  0xb6   : > { %15403 = vst [vmem:[#allocation54_spill] sm:$0xff] %v9200_v27  ;;  %982 = vrot.lane.b32.xlu1 %v9160_v20, %s8470_s10 }
  0xb7   : > { %988 = vrot.lane.b32.xlu0 %v9198_v63, %s8470_s10 }
  0xb8   : > { %v9206_v10 = vpop.permute.xlu1 %793 }
  0xb9   : > { %15404 = vst [vmem:[#allocation55_spill] sm:$0xff] %v9206_v10  ;;  %v9208_v47 = vpop.permute.xlu0 %795 }
  0xba   : > { %15405 = vst [vmem:[#allocation56_spill] sm:$0xff] %v9208_v47  ;;  %986 = vrot.lane.b32.xlu1 %v9174_v52, %s8470_s10 }
  0xbb   : > { %994 = vrot.lane.b32.xlu0 %v8820_v1, %s8471_s11 }
  0xbc   : > { %v9214_v12 = vpop.permute.xlu1 %797 }
  0xbd   : > { %15406 = vst [vmem:[#allocation57_spill] sm:$0xff] %v9214_v12  ;;  %v9216_v27 = vpop.permute.xlu0 %799 }
  0xbe   : > { %15407 = vst [vmem:[#allocation58_spill] sm:$0xff] %v9216_v27  ;;  %990 = vrot.lane.b32.xlu1 %v9188_v29, %s8470_s10 }
  0xbf   : > { %998 = vrot.lane.b32.xlu0 %v8739_v8, %s8471_s11 }
  0xc0   : > { %v9222_v10 = vpop.permute.xlu1 %801 }
  0xc1   : > { %15408 = vst [vmem:[#allocation59_spill] sm:$0xff] %v9222_v10  ;;  %v9224_v47 = vpop.permute.xlu0 %803 }
  0xc2   : > { %15409 = vst [vmem:[#allocation60_spill] sm:$0xff] %v9224_v47  ;;  %996 = vrot.lane.b32.xlu1 %v8737_v7, %s8471_s11 }
  0xc3   : > { %1002 = vrot.lane.b32.xlu0 %v8751_v18, %s8471_s11 }
  0xc4   : > { %v9230_v1 = vpop.permute.xlu1 %805 }
  0xc5   : > { %15410 = vst [vmem:[#allocation61_spill] sm:$0xff] %v9230_v1  ;;  %v9232_v12 = vpop.permute.xlu0 %807 }
  0xc6   : > { %15411 = vst [vmem:[#allocation62_spill] sm:$0xff] %v9232_v12  ;;  %1000 = vrot.lane.b32.xlu1 %v8741_v11, %s8471_s11 }
  0xc7   : > { %1006 = vrot.lane.b32.xlu0 %v8760_v23, %s8471_s11 }
  0xc8   : > { %v9238_v8 = vpop.permute.xlu1 %809 }
  0xc9   : > { %15412 = vst [vmem:[#allocation63_spill] sm:$0xff] %v9238_v8  ;;  %v9240_v10 = vpop.permute.xlu0 %811  ;;  %v9344_v8 = vld [vmem:[#allocation2 + $0x178] sm:$0xff] }
  0xca   : > { %15413 = vst [vmem:[#allocation64_spill] sm:$0xff] %v9240_v10  ;;  %1004 = vrot.lane.b32.xlu1 %v8753_v19, %s8471_s11 }
  0xcb   : > { %1010 = vrot.lane.b32.xlu0 %v8778_v37, %s8471_s11 }
  0xcc   : > { %v9246_v7 = vpop.permute.xlu1 %787 }
  0xcd   : > { %v9248_v18 = vpop.permute.xlu0 %815 }
  0xce   : > { %15414 = vst [vmem:[#allocation65_spill] sm:$0xff] %v9248_v18  ;;  %1008 = vrot.lane.b32.xlu1 %v8762_v24, %s8471_s11 }
  0xcf   : > { %1014 = vrot.lane.b32.xlu0 %v8782_v41, %s8471_s11 }
  0xd0   : > { %v9254_v11 = vpop.permute.xlu1 %813 }
  0xd1   : > { %15415 = vst [vmem:[#allocation66_spill] sm:$0xff] %v9254_v11  ;;  %v9256_v23 = vpop.permute.xlu0 %819 }
  0xd2   : > { %15416 = vst [vmem:[#allocation67_spill] sm:$0xff] %v9256_v23  ;;  %1012 = vrot.lane.b32.xlu1 %v8780_v40, %s8471_s11 }
  0xd3   : > { %1018 = vrot.lane.b32.xlu0 %v8803_v54, %s8471_s11 }
  0xd4   : > { %v9262_v19 = vpop.permute.xlu1 %817 }
  0xd5   : > { %15417 = vst [vmem:[#allocation68_spill] sm:$0xff] %v9262_v19  ;;  %v9264_v10 = vpop.permute.xlu0 %823 }
  0xd6   : > { %15418 = vst [vmem:[#allocation69_spill] sm:$0xff] %v9264_v10  ;;  %1016 = vrot.lane.b32.xlu1 %v8800_v51, %s8471_s11 }
  0xd7   : > { %1022 = vrot.lane.b32.xlu0 %v8822_v2, %s8471_s11 }
  0xd8   : > { %v9270_v24 = vpop.permute.xlu1 %821 }
  0xd9   : > { %15419 = vst [vmem:[#allocation70_spill] sm:$0xff] %v9270_v24  ;;  %v9272_v18 = vpop.permute.xlu0 %827 }
  0xda   : > { %15420 = vst [vmem:[#allocation71_spill] sm:$0xff] %v9272_v18  ;;  %1020 = vrot.lane.b32.xlu1 %v8810_v57, %s8471_s11 }
  0xdb   : > { %1026 = vrot.lane.b32.xlu0 %v8834_v14, %s8471_s11 }
  0xdc   : > { %v9278_v40 = vpop.permute.xlu1 %825 }
  0xdd   : > { %15421 = vst [vmem:[#allocation72_spill] sm:$0xff] %v9278_v40  ;;  %v9280_v23 = vpop.permute.xlu0 %831 }
  0xde   : > { %15422 = vst [vmem:[#allocation73_spill] sm:$0xff] %v9280_v23  ;;  %1024 = vrot.lane.b32.xlu1 %v8842_v26, %s8471_s11 }
  0xdf   : > { %1030 = vrot.lane.b32.xlu0 %v8858_v39, %s8471_s11 }
  0xe0   : > { %v9286_v10 = vpop.permute.xlu1 %829 }
  0xe1   : > { %15423 = vst [vmem:[#allocation74_spill] sm:$0xff] %v9286_v10  ;;  %v9288_v24 = vpop.permute.xlu0 %835 }
  0xe2   : > { %15424 = vst [vmem:[#allocation75_spill] sm:$0xff] %v9288_v24  ;;  %1028 = vrot.lane.b32.xlu1 %v8856_v38, %s8471_s11 }
  0xe3   : > { %1034 = vrot.lane.b32.xlu0 %v8874_v60, %s8471_s11 }
  0xe4   : > { %v9294_v18 = vpop.permute.xlu1 %833 }
  0xe5   : > { %15425 = vst [vmem:[#allocation76_spill] sm:$0xff] %v9294_v18  ;;  %v9296_v40 = vpop.permute.xlu0 %839 }
  0xe6   : > { %15426 = vst [vmem:[#allocation77_spill] sm:$0xff] %v9296_v40  ;;  %1032 = vrot.lane.b32.xlu1 %v8872_v59, %s8471_s11 }
  0xe7   : > { %1038 = vrot.lane.b32.xlu0 %v8893_v17, %s8471_s11 }
  0xe8   : > { %v9302_v23 = vpop.permute.xlu1 %837 }
  0xe9   : > { %15427 = vst [vmem:[#allocation78_spill] sm:$0xff] %v9302_v23  ;;  %v9304_v10 = vpop.permute.xlu0 %843 }
  0xea   : > { %15428 = vst [vmem:[#allocation79_spill] sm:$0xff] %v9304_v10  ;;  %1036 = vrot.lane.b32.xlu1 %v8890_v13, %s8471_s11 }
  0xeb   : > { %1042 = vrot.lane.b32.xlu0 %v8910_v36, %s8471_s11 }
  0xec   : > { %v9310_v24 = vpop.permute.xlu1 %841 }
  0xed   : > { %15429 = vst [vmem:[#allocation80_spill] sm:$0xff] %v9310_v24  ;;  %v9312_v18 = vpop.permute.xlu0 %928  ;;  %v9328_v24 = vld [vmem:[#allocation2 + $0x170] sm:$0xff] }
  0xee   : > { %1040 = vrot.lane.b32.xlu1 %v8907_v35, %s8471_s11 }
  0xef   : > { %1046 = vrot.lane.b32.xlu0 %v8927_v6, %s8471_s11 }
  0xf0   : > { %v9318_v40 = vpop.permute.xlu1 %845 }
  0xf1   : > { %15430 = vst [vmem:[#allocation81_spill] sm:$0xff] %v9318_v40  ;;  %v9320_v23 = vpop.permute.xlu0 %932 }
  0xf2   : > { %1044 = vrot.lane.b32.xlu1 %v8924_v4, %s8471_s11 }
  0xf3   : > { %1050 = vrot.lane.b32.xlu0 %v8944_v46, %s8471_s11 }
  0xf4   : > { %v9326_v10 = vpop.permute.xlu1 %930 }
  0xf5   : > { %v9330_v19 = vpop.permute.xlu0 %936 }
  0xf6   : > { %15431 = vst [vmem:[#allocation82_spill] sm:$0xff] %v9330_v19  ;;  %1048 = vrot.lane.b32.xlu1 %v8941_v21, %s8471_s11  ;;  %v15451_v19 = vld [vmem:[#allocation7_spill] sm:$0xff] }
  0xf7   : > { %1054 = vrot.lane.b32.xlu0 %v9328_v24, %s8471_s11 }
  0xf8   : > { %v9336_v40 = vpop.permute.xlu1 %934 }
  0xf9   : > { %15432 = vst [vmem:[#allocation83_spill] sm:$0xff] %v9336_v40  ;;  %v9338_v11 = vpop.permute.xlu0 %940 }
  0xfa   : > { %15433 = vst [vmem:[#allocation84_spill] sm:$0xff] %v9338_v11  ;;  %1052 = vrot.lane.b32.xlu1 %v8959_v5, %s8471_s11 }
  0xfb   : > { %1073 = vrot.lane.b32.xlu0 %v8883_v62, %s8472_s12 }
  0xfc   : > { %v9346_v12 = vpop.permute.xlu1 %938 }
  0xfd   : > { %15434 = vst [vmem:[#allocation85_spill] sm:$0xff] %v9346_v12  ;;  %v9348_v1 = vpop.permute.xlu0 %944 }
  0xfe   : > { %15435 = vst [vmem:[#allocation86_spill] sm:$0xff] %v9348_v1  ;;  %1056 = vrot.lane.b32.xlu1 %v9344_v8, %s8471_s11 }
  0xff   : > { %1077 = vrot.lane.b32.xlu0 %v8787_v42, %s8472_s12 }
 0x100   : > { %v9354_v47 = vpop.permute.xlu1 %942 }
 0x101   : > { %15436 = vst [vmem:[#allocation87_spill] sm:$0xff] %v9354_v47  ;;  %v9356_v27 = vpop.permute.xlu0 %948 }
 0x102   : > { %15437 = vst [vmem:[#allocation88_spill] sm:$0xff] %v9356_v27  ;;  %1075 = vrot.lane.b32.xlu1 %v8775_v33, %s8472_s12 }
 0x103   : > { %1081 = vrot.lane.b32.xlu0 %v8796_v48, %s8472_s12 }
 0x104   : > { %v9362_v62 = vpop.permute.xlu1 %946 }
 0x105   : > { %15438 = vst [vmem:[#allocation89_spill] sm:$0xff] %v9362_v62  ;;  %v9364_v11 = vpop.permute.xlu0 %952  ;;  %v15447_v62 = vld [vmem:[#allocation6_spill] sm:$0xff] }
 0x106   : > { %15439 = vst [vmem:[#allocation90_spill] sm:$0xff] %v9364_v11  ;;  %1079 = vrot.lane.b32.xlu1 %v8789_v43, %s8472_s12 }
 0x107   : > { %1085 = vrot.lane.b32.xlu0 %v8815_v58, %s8472_s12 }
 0x108   : > { %v9370_v1 = vpop.permute.xlu1 %950 }
 0x109   : > { %15440 = vst [vmem:[#allocation91_spill] sm:$0xff] %v9370_v1  ;;  %v9372_v47 = vpop.permute.xlu0 %956 }
 0x10a   : > { %15441 = vst [vmem:[#allocation92_spill] sm:$0xff] %v9372_v47  ;;  %1083 = vrot.lane.b32.xlu1 %v8807_v55, %s8472_s12  ;;  %v15446_v47 = vld [vmem:[#allocation4_spill] sm:$0xff] }
 0x10b   : > { %1089 = vrot.lane.b32.xlu0 %v8837_v15, %s8472_s12 }
 0x10c   : > { %v9378_v33 = vpop.permute.xlu1 %954 }
 0x10d   : > { %15442 = vst [vmem:[#allocation93_spill] sm:$0xff] %v9378_v33  ;;  %v9380_v27 = vpop.permute.xlu0 %960 }
 0x10e   : > { %15443 = vst [vmem:[#allocation94_spill] sm:$0xff] %v9380_v27  ;;  %1087 = vrot.lane.b32.xlu1 %v8826_v3, %s8472_s12  ;;  %v15450_v27 = vld [vmem:[#allocation5_spill] sm:$0xff] }
 0x10f   : > { %1093 = vrot.lane.b32.xlu0 %v8853_v32, %s8472_s12 }
 0x110   : > { %v9386_v11 = vpop.permute.xlu1 %958 }
 0x111   : > { %15444 = vst [vmem:[#allocation95_spill] sm:$0xff] %v9386_v11  ;;  %v9388_v1 = vpop.permute.xlu0 %964 }
 0x112   : > { %15445 = vst [vmem:[#allocation96_spill] sm:$0xff] %v9388_v1  ;;  %1091 = vrot.lane.b32.xlu1 %v15446_v47, %s8472_s12  ;;  %v15454_v1 = vld [vmem:[#allocation8_spill] sm:$0xff] }
 0x113   : > { %1097 = vrot.lane.b32.xlu0 %v15447_v62, %s8472_s12 }
 0x114   : > { %v9394_v12 = vpop.permute.xlu1 %962 }
 0x115   : > { %15448 = vst [vmem:[#allocation4_spill] sm:$0xff] %v9394_v12  ;;  %v9396_v33 = vpop.permute.xlu0 %968 }
 0x116   : > { %15449 = vst [vmem:[#allocation97_spill] sm:$0xff] %v9396_v33  ;;  %1095 = vrot.lane.b32.xlu1 %v15450_v27, %s8472_s12  ;;  %v15458_v33 = vld [vmem:[#allocation10_spill] sm:$0xff]  ;;  %v15459_v27 = vld [vmem:[#allocation11_spill] sm:$0xff] }
 0x117   : > { %1101 = vrot.lane.b32.xlu0 %v15451_v19, %s8472_s12 }
 0x118   : > { %v9402_v40 = vpop.permute.xlu1 %966 }
 0x119   : > { %15452 = vst [vmem:[#allocation98_spill] sm:$0xff] %v9402_v40  ;;  %v9404_v11 = vpop.permute.xlu0 %972 }
 0x11a   : > { %15453 = vst [vmem:[#allocation99_spill] sm:$0xff] %v9404_v11  ;;  %1099 = vrot.lane.b32.xlu1 %v15454_v1, %s8472_s12  ;;  %v15462_v11 = vld [vmem:[#allocation12_spill] sm:$0xff]  ;;  %v15463_v1 = vld [vmem:[#allocation13_spill] sm:$0xff] }
 0x11b   : > { %1105 = vrot.lane.b32.xlu0 %v15455_v44, %s8472_s12 }
 0x11c   : > { %v9410_v62 = vpop.permute.xlu1 %970 }
 0x11d   : > { %15456 = vst [vmem:[#allocation100_spill] sm:$0xff] %v9410_v62  ;;  %v9412_v12 = vpop.permute.xlu0 %976 }
 0x11e   : > { %15457 = vst [vmem:[#allocation101_spill] sm:$0xff] %v9412_v12  ;;  %1103 = vrot.lane.b32.xlu1 %v15458_v33, %s8472_s12  ;;  %v15466_v12 = vld [vmem:[#allocation14_spill] sm:$0xff] }
 0x11f   : > { %1109 = vrot.lane.b32.xlu0 %v15459_v27, %s8472_s12  ;;  %v15497_v33 = vld [vmem:[#allocation34_spill] sm:$0xff] }
 0x120   : > { %v9418_v19 = vpop.permute.xlu1 %974 }
 0x121   : > { %15460 = vst [vmem:[#allocation102_spill] sm:$0xff] %v9418_v19  ;;  %v9420_v40 = vpop.permute.xlu0 %980 }
 0x122   : > { %15461 = vst [vmem:[#allocation103_spill] sm:$0xff] %v9420_v40  ;;  %1107 = vrot.lane.b32.xlu1 %v15462_v11, %s8472_s12  ;;  %v1061_v40 = vshll.u32 %v9328_v24, 16  ;;  %v15493_v11 = vld [vmem:[#allocation32_spill] sm:$0xff] }
 0x123   : > { %1113 = vrot.lane.b32.xlu0 %v15463_v1, %s8472_s12 }
 0x124   : > { %v9426_v44 = vpop.permute.xlu1 %978  ;;  %v1063_v1 = vrot.slane %v1061_v40, 1 }
 0x125   : > { %15464 = vst [vmem:[#allocation104_spill] sm:$0xff] %v9426_v44  ;;  %v9428_v62 = vpop.permute.xlu0 %984 }
 0x126   : > { %15465 = vst [vmem:[#allocation105_spill] sm:$0xff] %v9428_v62  ;;  %1111 = vrot.lane.b32.xlu1 %v15466_v12, %s8472_s12  ;;  %v1059_v62 = vshrl.u32 %v9328_v24, 16  ;;  %v1066_v12 = vshll.u32 %v9344_v8, 16 }
 0x127   : > { %1117 = vrot.lane.b32.xlu0 %v8956_v53, %s8472_s12 }
 0x128   : > { %v9434_v27 = vpop.permute.xlu1 %982 }
 0x129   : > { %15467 = vst [vmem:[#allocation106_spill] sm:$0xff] %v9434_v27  ;;  %v9437_v19 = vpop.permute.xlu0 %988  ;;  %v1064_v27 = vor.u32 %v1063_v1, %v1059_v62 }
 0x12a   : > { %15468 = vst [vmem:[#allocation107_spill] sm:$0xff] %v9437_v19  ;;  %1115 = vrot.lane.b32.xlu1 %v8963_v31, %s8472_s12  ;;  %v1068_v31 = vrot.slane %v1066_v12, 1  ;;  %v1070_v12 = vshrl.u32 %v9344_v8, 16 }
 0x12b   : > { %1121 = vrot.lane.b32.xlu0 %v8972_v0, %s8472_s12 }
 0x12c   : > { %v9443_v44 = vpop.permute.xlu1 %986 }
 0x12d   : > { %15469 = vst [vmem:[#allocation108_spill] sm:$0xff] %v9443_v44  ;;  %v9447_v53 = vpop.permute.xlu0 %994  ;;  %v9464_v44 = vsel %vm542_vm3, %v1064_v27, %v1068_v31 }
 0x12e   : > { %15470 = vst [vmem:[#allocation109_spill] sm:$0xff] %v9447_v53  ;;  %1119 = vrot.lane.b32.xlu1 %v8977_v56, %s8472_s12  ;;  %15474 = vst [vmem:[#allocation113_spill] sm:$0xff] %v9464_v44 }
 0x12f   : > { %1125 = vrot.lane.b32.xlu0 %v8985_v25, %s8472_s12 }
 0x130   : > { %v9453_v19 = vpop.permute.xlu1 %990 }
 0x131   : > { %15471 = vst [vmem:[#allocation110_spill] sm:$0xff] %v9453_v19  ;;  %v9455_v0 = vpop.permute.xlu0 %998  ;;  %v9479_v19 = vor.u32 %v1070_v12, %v1068_v31 }
 0x132   : > { %15472 = vst [vmem:[#allocation111_spill] sm:$0xff] %v9455_v0  ;;  %1123 = vrot.lane.b32.xlu1 %v8989_v30, %s8472_s12  ;;  %v15488_v30 = vld [vmem:[#allocation26_spill] sm:$0xff]  ;;  %v15509_v0 = vld [vmem:[#allocation40_spill] sm:$0xff] }
 0x133   : > { %1129 = vrot.lane.b32.xlu0 %v8995_v61, %s8472_s12  ;;  %15478 = vst [vmem:[#allocation117_spill] sm:$0xff] %v9479_v19 }
 0x134   : > { %v9461_v40 = vpop.permute.xlu1 %996 }
 0x135   : > { %15473 = vst [vmem:[#allocation112_spill] sm:$0xff] %v9461_v40  ;;  %v9466_v56 = vpop.permute.xlu0 %1002 }
 0x136   : > { %15475 = vst [vmem:[#allocation114_spill] sm:$0xff] %v9466_v56  ;;  %1127 = vrot.lane.b32.xlu1 %v9003_v50, %s8472_s12 }
 0x137   : > { %1133 = vrot.lane.b32.xlu0 %v9464_v44, %s8472_s12 }
 0x138   : > { %v9473_v1 = vpop.permute.xlu1 %1000 }
 0x139   : > { %15476 = vst [vmem:[#allocation115_spill] sm:$0xff] %v9473_v1  ;;  %v9475_v62 = vpop.permute.xlu0 %1006  ;;  %v15505_v1 = vld [vmem:[#allocation38_spill] sm:$0xff] }
 0x13a   : > { %15477 = vst [vmem:[#allocation116_spill] sm:$0xff] %v9475_v62  ;;  %1131 = vrot.lane.b32.xlu1 %v9018_v49, %s8472_s12 }
 0x13b   : > { %1140 = vrot.lane.b32.xlu0 %v9024_v16, %s8473_s13 }
 0x13c   : > { %v9483_v27 = vpop.permute.xlu1 %1004 }
 0x13d   : > { %15479 = vst [vmem:[#allocation118_spill] sm:$0xff] %v9483_v27  ;;  %v9485_v61 = vpop.permute.xlu0 %1010  ;;  %v15501_v27 = vld [vmem:[#allocation36_spill] sm:$0xff] }
 0x13e   : > { %15480 = vst [vmem:[#allocation119_spill] sm:$0xff] %v9485_v61  ;;  %1135 = vrot.lane.b32.xlu1 %v9479_v19, %s8472_s12  ;;  %v15485_v19 = vld [vmem:[#allocation28_spill] sm:$0xff] }
 0x13f   : > { %1144 = vrot.lane.b32.xlu0 %v9036_v22, %s8473_s13 }
 0x140   : > { %v9491_v44 = vpop.permute.xlu1 %1008 }
 0x141   : > { %15481 = vst [vmem:[#allocation120_spill] sm:$0xff] %v9491_v44  ;;  %v9493_v50 = vpop.permute.xlu0 %1014 }
 0x142   : > { %15482 = vst [vmem:[#allocation121_spill] sm:$0xff] %v9493_v50  ;;  %1142 = vrot.lane.b32.xlu1 %v9014_v9, %s8473_s13  ;;  %v15489_v50 = vld [vmem:[#allocation30_spill] sm:$0xff] }
 0x143   : > { %1148 = vrot.lane.b32.xlu0 %v9048_v45, %s8473_s13 }
 0x144   : > { %v9499_v31 = vpop.permute.xlu1 %1012 }
 0x145   : > { %15483 = vst [vmem:[#allocation122_spill] sm:$0xff] %v9499_v31  ;;  %v9501_v12 = vpop.permute.xlu0 %1018 }
 0x146   : > { %15484 = vst [vmem:[#allocation123_spill] sm:$0xff] %v9501_v12  ;;  %1146 = vrot.lane.b32.xlu1 %v9028_v34, %s8473_s13  ;;  %v15492_v12 = vld [vmem:[#allocation27_spill] sm:$0xff] }
 0x147   : > { %1152 = vrot.lane.b32.xlu0 %v15485_v19, %s8473_s13 }
 0x148   : > { %v9507_v49 = vpop.permute.xlu1 %1016 }
 0x149   : > { %15486 = vst [vmem:[#allocation28_spill] sm:$0xff] %v9507_v49  ;;  %v9509_v25 = vpop.permute.xlu0 %1022 }
 0x14a   : > { %15487 = vst [vmem:[#allocation124_spill] sm:$0xff] %v9509_v25  ;;  %1150 = vrot.lane.b32.xlu1 %v15488_v30, %s8473_s13  ;;  %v15496_v25 = vld [vmem:[#allocation29_spill] sm:$0xff] }
 0x14b   : > { %1156 = vrot.lane.b32.xlu0 %v15489_v50, %s8473_s13 }
 0x14c   : > { %v9515_v61 = vpop.permute.xlu1 %1020 }
 0x14d   : > { %15490 = vst [vmem:[#allocation26_spill] sm:$0xff] %v9515_v61  ;;  %v9517_v31 = vpop.permute.xlu0 %1026 }
 0x14e   : > { %15491 = vst [vmem:[#allocation30_spill] sm:$0xff] %v9517_v31  ;;  %1154 = vrot.lane.b32.xlu1 %v15492_v12, %s8473_s13  ;;  %v15500_v31 = vld [vmem:[#allocation31_spill] sm:$0xff] }
 0x14f   : > { %1160 = vrot.lane.b32.xlu0 %v15493_v11, %s8473_s13 }
 0x150   : > { %v9523_v44 = vpop.permute.xlu1 %1024 }
 0x151   : > { %15494 = vst [vmem:[#allocation27_spill] sm:$0xff] %v9523_v44  ;;  %v9525_v49 = vpop.permute.xlu0 %1030 }
 0x152   : > { %15495 = vst [vmem:[#allocation32_spill] sm:$0xff] %v9525_v49  ;;  %1158 = vrot.lane.b32.xlu1 %v15496_v25, %s8473_s13  ;;  %v15504_v49 = vld [vmem:[#allocation33_spill] sm:$0xff] }
 0x153   : > { %1164 = vrot.lane.b32.xlu0 %v15497_v33, %s8473_s13 }
 0x154   : > { %v9531_v62 = vpop.permute.xlu1 %1028 }
 0x155   : > { %15498 = vst [vmem:[#allocation29_spill] sm:$0xff] %v9531_v62  ;;  %v9533_v61 = vpop.permute.xlu0 %1034 }
 0x156   : > { %15499 = vst [vmem:[#allocation125_spill] sm:$0xff] %v9533_v61  ;;  %1162 = vrot.lane.b32.xlu1 %v15500_v31, %s8473_s13  ;;  %v15508_v61 = vld [vmem:[#allocation35_spill] sm:$0xff] }
 0x157   : > { %1168 = vrot.lane.b32.xlu0 %v15501_v27, %s8473_s13 }
 0x158   : > { %v9539_v56 = vpop.permute.xlu1 %1032 }
 0x159   : > { %15502 = vst [vmem:[#allocation31_spill] sm:$0xff] %v9539_v56  ;;  %v9541_v44 = vpop.permute.xlu0 %1038 }
 0x15a   : > { %15503 = vst [vmem:[#allocation126_spill] sm:$0xff] %v9541_v44  ;;  %1166 = vrot.lane.b32.xlu1 %v15504_v49, %s8473_s13  ;;  %v15512_v44 = vld [vmem:[#allocation37_spill] sm:$0xff]  ;;  %v15513_v49 = vld [vmem:[#allocation42_spill] sm:$0xff] }
 0x15b   : > { %1172 = vrot.lane.b32.xlu0 %v15505_v1, %s8473_s13 }
 0x15c   : > { %v9547_v33 = vpop.permute.xlu1 %1036 }
 0x15d   : > { %15506 = vst [vmem:[#allocation127_spill] sm:$0xff] %v9547_v33  ;;  %v9549_v62 = vpop.permute.xlu0 %1042 }
 0x15e   : > { %15507 = vst [vmem:[#allocation128_spill] sm:$0xff] %v9549_v62  ;;  %1170 = vrot.lane.b32.xlu1 %v15508_v61, %s8473_s13  ;;  %v15516_v62 = vld [vmem:[#allocation39_spill] sm:$0xff]  ;;  %v15517_v61 = vld [vmem:[#allocation44_spill] sm:$0xff] }
 0x15f   : > { %1176 = vrot.lane.b32.xlu0 %v15509_v0, %s8473_s13 }
 0x160   : > { %v9555_v27 = vpop.permute.xlu1 %1040 }
 0x161   : > { %15510 = vst [vmem:[#allocation129_spill] sm:$0xff] %v9555_v27  ;;  %v9557_v56 = vpop.permute.xlu0 %1046 }
 0x162   : > { %15511 = vst [vmem:[#allocation130_spill] sm:$0xff] %v9557_v56  ;;  %1174 = vrot.lane.b32.xlu1 %v15512_v44, %s8473_s13  ;;  %v15520_v56 = vld [vmem:[#allocation41_spill] sm:$0xff]  ;;  %v15521_v44 = vld [vmem:[#allocation47_spill] sm:$0xff] }
 0x163   : > { %1180 = vrot.lane.b32.xlu0 %v15513_v49, %s8473_s13 }
 0x164   : > { %v9563_v1 = vpop.permute.xlu1 %1044 }
 0x165   : > { %15514 = vst [vmem:[#allocation131_spill] sm:$0xff] %v9563_v1  ;;  %v9565_v33 = vpop.permute.xlu0 %1050 }
 0x166   : > { %15515 = vst [vmem:[#allocation132_spill] sm:$0xff] %v9565_v33  ;;  %1178 = vrot.lane.b32.xlu1 %v15516_v62, %s8473_s13  ;;  %v15523_v33 = vld [vmem:[#allocation43_spill] sm:$0xff] }
 0x167   : > { %1184 = vrot.lane.b32.xlu0 %v15517_v61, %s8473_s13  ;;  %v9635_v62 = vld [vmem:[#allocation2 + $0x98] sm:$0xff] }
 0x168   : > { %v9571_v0 = vpop.permute.xlu1 %1048 }
 0x169   : > { %15518 = vst [vmem:[#allocation133_spill] sm:$0xff] %v9571_v0  ;;  %v9573_v27 = vpop.permute.xlu0 %1054  ;;  %v9591_v0 = vrot.slane %v9344_v8, 1 }
 0x16a   : > { %15519 = vst [vmem:[#allocation134_spill] sm:$0xff] %v9573_v27  ;;  %1182 = vrot.lane.b32.xlu1 %v15520_v56, %s8473_s13  ;;  %v1137_v27 = vrot.slane %v9328_v24, 1 }
 0x16b   : > { %1188 = vrot.lane.b32.xlu0 %v15521_v44, %s8473_s13  ;;  %15525 = vst [vmem:[#allocation137_spill] sm:$0xff] %v9591_v0 }
 0x16c   : > { %v9579_v49 = vpop.permute.xlu1 %1052 }
 0x16d   : > { %15522 = vst [vmem:[#allocation135_spill] sm:$0xff] %v9579_v49  ;;  %v9581_v1 = vpop.permute.xlu0 %1073 }
 0x16e   : > { %1186 = vrot.lane.b32.xlu1 %v15523_v33, %s8473_s13 }
 0x16f   : > { %1192 = vrot.lane.b32.xlu0 %v9184_v28, %s8473_s13  ;;  %v9603_v28 = vsel %vm879_vm4, %v1137_v27, %v9591_v0 }
 0x170   : > { %v9587_v61 = vpop.permute.xlu1 %1056  ;;  %15526 = vst [vmem:[#allocation138_spill] sm:$0xff] %v9603_v28 }
 0x171   : > { %15524 = vst [vmem:[#allocation136_spill] sm:$0xff] %v9587_v61  ;;  %v9593_v56 = vpop.permute.xlu0 %1077 }
 0x172   : > { %1190 = vrot.lane.b32.xlu1 %v9160_v20, %s8473_s13 }
 0x173   : > { %1196 = vrot.lane.b32.xlu0 %v9198_v63, %s8473_s13  ;;  %v9617_v63 = vld [vmem:[#allocation2 + $0x90] sm:$0xff] }
 0x174   : > { %v9599_v49 = vpop.permute.xlu1 %1075 }
 0x175   : > { %v9605_v61 = vpop.permute.xlu0 %1081 }
 0x176   : > { %15527 = vst [vmem:[#allocation139_spill] sm:$0xff] %v9605_v61  ;;  %1194 = vrot.lane.b32.xlu1 %v9174_v52, %s8473_s13  ;;  %v9657_v61 = vld [vmem:[#allocation2 + $0xb8] sm:$0xff] }
 0x177   : > { %1200 = vrot.lane.b32.xlu0 %v9603_v28, %s8473_s13  ;;  %v9627_v28 = vld [vmem:[#allocation2 + $0xa0] sm:$0xff] }
 0x178   : > { %v9611_v44 = vpop.permute.xlu1 %1079 }
 0x179   : > { %15528 = vst [vmem:[#allocation140_spill] sm:$0xff] %v9611_v44  ;;  %v9613_v20 = vpop.permute.xlu0 %1085  ;;  %v9667_v44 = vld [vmem:[#allocation2 + $0xc8] sm:$0xff] }
 0x17a   : > { %15529 = vst [vmem:[#allocation141_spill] sm:$0xff] %v9613_v20  ;;  %1198 = vrot.lane.b32.xlu1 %v9188_v29, %s8473_s13  ;;  %v9639_v20 = vld [vmem:[#allocation2 + $0xb0] sm:$0xff] }
 0x17b   : > { %1206 = vrot.lane.b32.xlu0 %v9617_v63, %s8474_s14 }
 0x17c   : > { %v9621_v27 = vpop.permute.xlu1 %1083 }
 0x17d   : > { %15530 = vst [vmem:[#allocation142_spill] sm:$0xff] %v9621_v27  ;;  %v9623_v33 = vpop.permute.xlu0 %1089  ;;  %v9647_v27 = vld [vmem:[#allocation2 + $0xa8] sm:$0xff] }
 0x17e   : > { %15531 = vst [vmem:[#allocation143_spill] sm:$0xff] %v9623_v33  ;;  %1202 = vrot.lane.b32.xlu1 %v9591_v0, %s8473_s13 }
 0x17f   : > { %1210 = vrot.lane.b32.xlu0 %v9627_v28, %s8474_s14 }
 0x180   : > { %v9631_v52 = vpop.permute.xlu1 %1087 }
 0x181   : > { %15532 = vst [vmem:[#allocation144_spill] sm:$0xff] %v9631_v52  ;;  %v9633_v29 = vpop.permute.xlu0 %1093 }
 0x182   : > { %15533 = vst [vmem:[#allocation145_spill] sm:$0xff] %v9633_v29  ;;  %1208 = vrot.lane.b32.xlu1 %v9635_v62, %s8474_s14 }
 0x183   : > { %1214 = vrot.lane.b32.xlu0 %v9639_v20, %s8474_s14 }
 0x184   : > { %v9643_v0 = vpop.permute.xlu1 %1091 }
 0x185   : > { %15534 = vst [vmem:[#allocation146_spill] sm:$0xff] %v9643_v0  ;;  %v9645_v33 = vpop.permute.xlu0 %1097 }
 0x186   : > { %15535 = vst [vmem:[#allocation147_spill] sm:$0xff] %v9645_v33  ;;  %1212 = vrot.lane.b32.xlu1 %v9647_v27, %s8474_s14 }
 0x187   : > { %1218 = vrot.lane.b32.xlu0 %v8778_v37, %s8474_s14 }
 0x188   : > { %v9653_v29 = vpop.permute.xlu1 %1095 }
 0x189   : > { %15536 = vst [vmem:[#allocation148_spill] sm:$0xff] %v9653_v29  ;;  %v9655_v52 = vpop.permute.xlu0 %1101 }
 0x18a   : > { %15537 = vst [vmem:[#allocation149_spill] sm:$0xff] %v9655_v52  ;;  %1216 = vrot.lane.b32.xlu1 %v9657_v61, %s8474_s14 }
 0x18b   : > { %1222 = vrot.lane.b32.xlu0 %v8782_v41, %s8474_s14 }
 0x18c   : > { %v9663_v33 = vpop.permute.xlu1 %1099 }
 0x18d   : > { %15538 = vst [vmem:[#allocation150_spill] sm:$0xff] %v9663_v33  ;;  %v9665_v0 = vpop.permute.xlu0 %1105 }
 0x18e   : > { %15539 = vst [vmem:[#allocation151_spill] sm:$0xff] %v9665_v0  ;;  %1220 = vrot.lane.b32.xlu1 %v9667_v44, %s8474_s14 }
 0x18f   : > { %1226 = vrot.lane.b32.xlu0 %v8803_v54, %s8474_s14 }
 0x190   : > { %v9673_v37 = vpop.permute.xlu1 %1103 }
 0x191   : > { %15540 = vst [vmem:[#allocation152_spill] sm:$0xff] %v9673_v37  ;;  %v9675_v52 = vpop.permute.xlu0 %1109 }
 0x192   : > { %15541 = vst [vmem:[#allocation153_spill] sm:$0xff] %v9675_v52  ;;  %1224 = vrot.lane.b32.xlu1 %v8800_v51, %s8474_s14 }
 0x193   : > { %1230 = vrot.lane.b32.xlu0 %v8822_v2, %s8474_s14 }
 0x194   : > { %v9681_v41 = vpop.permute.xlu1 %1107 }
 0x195   : > { %15542 = vst [vmem:[#allocation154_spill] sm:$0xff] %v9681_v41  ;;  %v9683_v0 = vpop.permute.xlu0 %1113 }
 0x196   : > { %15543 = vst [vmem:[#allocation155_spill] sm:$0xff] %v9683_v0  ;;  %1228 = vrot.lane.b32.xlu1 %v8810_v57, %s8474_s14 }
 0x197   : > { %1234 = vrot.lane.b32.xlu0 %v8834_v14, %s8474_s14 }
 0x198   : > { %v9689_v54 = vpop.permute.xlu1 %1111 }
 0x199   : > { %15544 = vst [vmem:[#allocation156_spill] sm:$0xff] %v9689_v54  ;;  %v9691_v37 = vpop.permute.xlu0 %1117 }
 0x19a   : > { %15545 = vst [vmem:[#allocation157_spill] sm:$0xff] %v9691_v37  ;;  %1232 = vrot.lane.b32.xlu1 %v8842_v26, %s8474_s14  ;;  %v9812_v37 = vld [vmem:[#allocation2 + $0x78] sm:$0xff] }
 0x19b   : > { %1238 = vrot.lane.b32.xlu0 %v8858_v39, %s8474_s14 }
 0x19c   : > { %v9697_v51 = vpop.permute.xlu1 %1115 }
 0x19d   : > { %15546 = vst [vmem:[#allocation158_spill] sm:$0xff] %v9697_v51  ;;  %v9699_v2 = vpop.permute.xlu0 %1121  ;;  %v9815_v51 = vrot.slane %v9812_v37, 2 }
 0x19e   : > { %15547 = vst [vmem:[#allocation159_spill] sm:$0xff] %v9699_v2  ;;  %1236 = vrot.lane.b32.xlu1 %v8856_v38, %s8474_s14 }
 0x19f   : > { %1242 = vrot.lane.b32.xlu0 %v8874_v60, %s8474_s14  ;;  %15565 = vst [vmem:[#allocation173_spill] sm:$0xff] %v9815_v51 }
 0x1a0   : > { %v9705_v57 = vpop.permute.xlu1 %1119 }
 0x1a1   : > { %15548 = vst [vmem:[#allocation160_spill] sm:$0xff] %v9705_v57  ;;  %v9707_v14 = vpop.permute.xlu0 %1125 }
 0x1a2   : > { %15549 = vst [vmem:[#allocation161_spill] sm:$0xff] %v9707_v14  ;;  %1240 = vrot.lane.b32.xlu1 %v8872_v59, %s8474_s14 }
 0x1a3   : > { %1246 = vrot.lane.b32.xlu0 %v8893_v17, %s8474_s14 }
 0x1a4   : > { %v9713_v26 = vpop.permute.xlu1 %1123 }
 0x1a5   : > { %15550 = vst [vmem:[#allocation162_spill] sm:$0xff] %v9713_v26  ;;  %v9715_v39 = vpop.permute.xlu0 %1129 }
 0x1a6   : > { %15551 = vst [vmem:[#allocation163_spill] sm:$0xff] %v9715_v39  ;;  %1244 = vrot.lane.b32.xlu1 %v8890_v13, %s8474_s14  ;;  %v9733_v39 = vld [vmem:[#allocation2 + $0x60] sm:$0xff]  ;;  %v9735_v13 = vld [vmem:[#allocation2 + $0x68] sm:$0xff] }
 0x1a7   : > { %1250 = vrot.lane.b32.xlu0 %v8910_v36, %s8474_s14 }
 0x1a8   : > { %v9721_v38 = vpop.permute.xlu1 %1127 }
 0x1a9   : > { %15552 = vst [vmem:[#allocation164_spill] sm:$0xff] %v9721_v38  ;;  %v9723_v60 = vpop.permute.xlu0 %1133 }
 0x1aa   : > { %15553 = vst [vmem:[#allocation165_spill] sm:$0xff] %v9723_v60  ;;  %1248 = vrot.lane.b32.xlu1 %v8907_v35, %s8474_s14  ;;  %v2467_v35 = vrot.slane %v9733_v39, 1 }
 0x1ab   : > { %1254 = vrot.lane.b32.xlu0 %v8927_v6, %s8474_s14  ;;  %v2468_v6 = vrot.slane %v9735_v13, 1 }
 0x1ac   : > { %v9729_v59 = vpop.permute.xlu1 %1131 }
 0x1ad   : > { %15554 = vst [vmem:[#allocation166_spill] sm:$0xff] %v9729_v59  ;;  %v9731_v17 = vpop.permute.xlu0 %1140 }
 0x1ae   : > { %1252 = vrot.lane.b32.xlu1 %v8924_v4, %s8474_s14  ;;  %v2469_v4 = vsel %vm879_vm4, %v2467_v35, %v2468_v6  ;;  %v9771_v35 = vrot.slane %v9735_v13, 2 }
 0x1af   : > { %1258 = vrot.lane.b32.xlu0 %v8944_v46, %s8474_s14 }
 0x1b0   : > { %v9741_v36 = vpop.permute.xlu1 %1135  ;;  %15556 = vst [vmem:[#allocation168_spill] sm:$0xff] %v9771_v35 }
 0x1b1   : > { %15555 = vst [vmem:[#allocation167_spill] sm:$0xff] %v9741_v36  ;;  %v9745_v60 = vpop.permute.xlu0 %1144 }
 0x1b2   : > { %1256 = vrot.lane.b32.xlu1 %v8941_v21, %s8474_s14 }
 0x1b3   : > { %1262 = vrot.lane.b32.xlu0 %v9328_v24, %s8474_s14  ;;  %v2535_v24 = vrot.slane %v9733_v39, 2 }
 0x1b4   : > { %v9751_v59 = vpop.permute.xlu1 %1142 }
 0x1b5   : > { %v9754_v38 = vpop.permute.xlu0 %1148  ;;  %v9785_v26 = vsel %vm2534_vm5, %v2535_v24, %v9771_v35  ;;  %v15563_v24 = vld [vmem:[#allocation22_spill] sm:$0xff] }
 0x1b6   : > { %1260 = vrot.lane.b32.xlu1 %v8959_v5, %s8474_s14 }
 0x1b7   : > { %2470 = vrot.lane.b32.xlu0 %v2469_v4, %s8469_s9  ;;  %v15558_v4 = vld [vmem:[#allocation24_spill] sm:$0xff] }
 0x1b8   : > { %v9759_v46 = vpop.permute.xlu1 %1146  ;;  %15559 = vst [vmem:[#allocation24_spill] sm:$0xff] %v9785_v26 }
 0x1b9   : > { %v9761_v36 = vpop.permute.xlu0 %1152 }
 0x1ba   : > { %1264 = vrot.lane.b32.xlu1 %v9344_v8, %s8474_s14  ;;  %v8258_v8 = vld [vmem:[%s15013_s1] sm:$0xff]  }
 0x1bb   : > { %1285 = vrot.lane.b32.xlu0 %v8787_v42, %s8475_s15  ;;  %7862 = vmatprep.subr.bf16.mxu0 %v8258_v8 }
 0x1bc   : > { %v9767_v21 = vpop.permute.xlu1 %1150  ;;  %7863 = vmatpush3.bf16.msra.mxu0 %v8258_v8 }
 0x1bd   : > { %v9773_v5 = vpop.permute.xlu0 %1156 }
 0x1be   : > { %15557 = vst [vmem:[#allocation169_spill] sm:$0xff] %v9773_v5  ;;  %2472 = vrot.lane.b32.xlu1 %v2468_v6, %s8469_s9  ;;  %v8259_v6 = vld [vmem:[%s15013_s1 + $0x8] sm:$0xff]  }
 0x1bf   : > { %2474 = vrot.lane.b32.xlu0 %v15558_v4, %s8469_s9  ;;  %7864 = vmatprep.subr.bf16.mxu0 %v8259_v6 }
 0x1c0   : > { %v9781_v42 = vpop.permute.xlu1 %1154  ;;  %7865 = vmatpush3.bf16.msra.mxu0 %v8259_v6 }
 0x1c1   : > { %v9787_v14 = vpop.permute.xlu0 %1160 }
 0x1c2   : > { %15560 = vst [vmem:[#allocation170_spill] sm:$0xff] %v9787_v14  ;;  %1287 = vrot.lane.b32.xlu1 %v8789_v43, %s8475_s15  ;;  %v8260_v43 = vld [vmem:[%s15013_s1 + $0x10] sm:$0xff]  }
 0x1c3   : > { %2583 = vrot.lane.b32.xlu0 %v9785_v26, %s8470_s10  ;;  %v9809_v26 = vld [vmem:[#allocation2 + $0x70] sm:$0xff]  ;;  %7866 = vmatprep.subr.bf16.mxu0 %v8260_v43 }
 0x1c4   : > { %v9796_v4 = vpop.permute.xlu1 %1158  ;;  %v2538_v57 = vrot.slane %v9809_v26, 2  ;;  %7867 = vmatpush3.bf16.msra.mxu0 %v8260_v43  ;;  %v8262_v43 = vld [vmem:[%s15013_s1 + $0x20] ss:$0 sps:$4 sm:$0xff]  }
 0x1c5   : > { %15561 = vst [vmem:[#allocation171_spill] sm:$0xff] %v9796_v4  ;;  %v9798_v2 = vpop.permute.xlu0 %1164 }
 0x1c6   : > { %15562 = vst [vmem:[#allocation172_spill] sm:$0xff] %v9798_v2  ;;  %2476 = vrot.lane.b32.xlu1 %v15563_v24, %s8469_s9  ;;  %v9830_v0 = vsel %vm2534_vm5, %v2538_v57, %v9815_v51  ;;  %v2270_v57 = vsel %vm2268_vm6, %v8262_v43, 0 }
 0x1c7   : > { %1289 = vrot.lane.b32.xlu0 %v8796_v48, %s8475_s15  ;;  %v8261_v48 = vld [vmem:[%s15013_s1 + $0x18] sm:$0xff]   ;;  %15568 = vst [vmem:[#allocation176_spill] sm:$0xff] %v9830_v0 }
 0x1c8   : > { %v9807_v8 = vpop.permute.xlu1 %1162  ;;  %7868 = vmatprep.subr.bf16.mxu0 %v8261_v48 }
 0x1c9   : > { %15564 = vst [vmem:[#allocation22_spill] sm:$0xff] %v9807_v8  ;;  %v9817_v24 = vpop.permute.xlu0 %1168  ;;  %7869 = vmatpush3.bf16.msra.mxu0 %v8261_v48 }
 0x1ca   : > { %15566 = vst [vmem:[#allocation174_spill] sm:$0xff] %v9817_v24  ;;  %2585 = vrot.lane.b32.xlu1 %v9771_v35, %s8470_s10  ;;  %8176 = vmatprep.subr.msk.bf16.mxu0 %vm2268_vm6, %v8262_v43  ;;  %v9861_v43 = vld [vmem:[#allocation2 + $0x80] sm:$0xff] }
 0x1cb   : > { %1352 = vrot.lane.b32.xlu0 %v9036_v22, %s8476_s22 }
 0x1cc   : > { %v9826_v6 = vpop.permute.xlu1 %1166 }
 0x1cd   : > { %15567 = vst [vmem:[#allocation175_spill] sm:$0xff] %v9826_v6  ;;  %v9832_v54 = vpop.permute.xlu0 %1172  ;;  %7871 = vmatpush3.bf16.msra.mxu0 %v2270_v57  ;;  %v9864_v57 = vld [vmem:[#allocation2 + $0x88] sm:$0xff] }
 0x1ce   : > { %15569 = vst [vmem:[#allocation177_spill] sm:$0xff] %v9832_v54  ;;  %1291 = vrot.lane.b32.xlu1 %v8807_v55, %s8475_s15  ;;  %v9867_v41 = vrot.slane %v9864_v57, 2  ;;  %v9883_v54 = vrot.slane %v9635_v62, 2 }
 0x1cf   : > { %2587 = vrot.lane.b32.xlu0 %v9830_v0, %s8470_s10 }
 0x1d0   : > { %v9841_v35 = vpop.permute.xlu1 %1170  ;;  %15575 = vst [vmem:[#allocation183_spill] sm:$0xff] %v9867_v41  ;;  %15579 = vst [vmem:[#allocation187_spill] sm:$0xff] %v9883_v54 }
 0x1d1   : > { %15570 = vst [vmem:[#allocation178_spill] sm:$0xff] %v9841_v35  ;;  %v9843_v52 = vpop.permute.xlu0 %1176 }
 0x1d2   : > { %15571 = vst [vmem:[#allocation179_spill] sm:$0xff] %v9843_v52  ;;  %1354 = vrot.lane.b32.xlu1 %v9028_v34, %s8476_s22  ;;  %v2541_v52 = vrot.slane %v9861_v43, 2 }
 0x1d3   : > { %1356 = vrot.lane.b32.xlu0 %v9048_v45, %s8476_s22 }
 0x1d4   : > { %v9851_v55 = vpop.permute.xlu1 %1174 }
 0x1d5   : > { %15572 = vst [vmem:[#allocation180_spill] sm:$0xff] %v9851_v55  ;;  %v9853_v48 = vpop.permute.xlu0 %1180 }
 0x1d6   : > { %15573 = vst [vmem:[#allocation181_spill] sm:$0xff] %v9853_v48  ;;  %2589 = vrot.lane.b32.xlu1 %v9815_v51, %s8470_s10  ;;  %v9879_v48 = vsel %vm2534_vm5, %v2541_v52, %v9867_v41 }
 0x1d7   : > { %2647 = vrot.lane.b32.xlu0 %v9024_v16, %s8472_s12  ;;  %15578 = vst [vmem:[#allocation186_spill] sm:$0xff] %v9879_v48 }
 0x1d8   : > { %v9859_v0 = vpop.permute.xlu1 %1178 }
 0x1d9   : > { %15574 = vst [vmem:[#allocation182_spill] sm:$0xff] %v9859_v0  ;;  %v9869_v55 = vpop.permute.xlu0 %1184  ;;  %v2544_v0 = vrot.slane %v9617_v63, 2 }
 0x1da   : > { %15576 = vst [vmem:[#allocation184_spill] sm:$0xff] %v9869_v55  ;;  %1358 = vrot.lane.b32.xlu1 %v15488_v30, %s8476_s22  ;;  %v8263_v55 = vld [vmem:[%s15013_s1 + $0x24] sm:$0xff]  }
 0x1db   : > { %2651 = vrot.lane.b32.xlu0 %v9036_v22, %s8472_s12  ;;  %v9898_v52 = vsel %vm2534_vm5, %v2544_v0, %v9883_v54  ;;  %7904 = vmatprep.subr.bf16.mxu1 %v8263_v55  ;;  %v8265_v0 = vld [vmem:[%s15013_s1 + $0x34] sm:$0xff]  }
 0x1dc   : > { %v9875_v51 = vpop.permute.xlu1 %1182  ;;  %15582 = vst [vmem:[#allocation190_spill] sm:$0xff] %v9898_v52  ;;  %7905 = vmatpush3.bf16.msra.mxu1 %v8263_v55 }
 0x1dd   : > { %15577 = vst [vmem:[#allocation185_spill] sm:$0xff] %v9875_v51  ;;  %v9885_v35 = vpop.permute.xlu0 %1188 }
 0x1de   : > { %15580 = vst [vmem:[#allocation188_spill] sm:$0xff] %v9885_v35  ;;  %2649 = vrot.lane.b32.xlu1 %v9014_v9, %s8472_s12  ;;  %v8264_v35 = vld [vmem:[%s15013_s1 + $0x2c] sm:$0xff]  }
 0x1df   : > { %2717 = vrot.lane.b32.xlu0 %v9879_v48, %s8473_s13  ;;  %7906 = vmatprep.subr.bf16.mxu1 %v8264_v35 }
 0x1e0   : > { %v9894_v51 = vpop.permute.xlu1 %1186  ;;  %7907 = vmatpush3.bf16.msra.mxu1 %v8264_v35  ;;  %v8266_v35 = vld [vmem:[%s15013_s1 + $0x3c] sm:$0xff]  }
 0x1e1   : > { %15581 = vst [vmem:[#allocation189_spill] sm:$0xff] %v9894_v51  ;;  %v9900_v24 = vpop.permute.xlu0 %1192  ;;  %7908 = vmatprep.subr.bf16.mxu1 %v8265_v0 }
 0x1e2   : > { %15583 = vst [vmem:[#allocation191_spill] sm:$0xff] %v9900_v24  ;;  %2653 = vrot.lane.b32.xlu1 %v9028_v34, %s8472_s12  ;;  %v2547_v24 = vrot.slane %v9627_v28, 2 }
 0x1e3   : > { %2721 = vrot.lane.b32.xlu0 %v9898_v52, %s8473_s13 }
 0x1e4   : > { %v9909_v6 = vpop.permute.xlu1 %1190  ;;  %7909 = vmatpush3.bf16.msra.mxu1 %v8265_v0  ;;  %v8267_v0 = vld [vmem:[%s15013_s1 + $0x44] ss:$0 sps:$4 sm:$0xff]  }
 0x1e5   : > { %15584 = vst [vmem:[#allocation192_spill] sm:$0xff] %v9909_v6  ;;  %v9911_v51 = vpop.permute.xlu0 %1196  ;;  %v9924_v6 = vrot.slane %v9647_v27, 2  ;;  %7910 = vmatprep.subr.bf16.mxu1 %v8266_v35 }
 0x1e6   : > { %15585 = vst [vmem:[#allocation193_spill] sm:$0xff] %v9911_v51  ;;  %2719 = vrot.lane.b32.xlu1 %v9867_v41, %s8473_s13 }
 0x1e7   : > { %2790 = vrot.lane.b32.xlu0 %v9048_v45, %s8475_s15  ;;  %v9939_v33 = vsel %vm2534_vm5, %v2547_v24, %v9924_v6  ;;  %v9954_v24 = vrot.slane %v9657_v61, 2 }
 0x1e8   : > { %v9920_v55 = vpop.permute.xlu1 %1194  ;;  %15589 = vst [vmem:[#allocation197_spill] sm:$0xff] %v9939_v33  ;;  %7911 = vmatpush3.bf16.msra.mxu1 %v8266_v35  ;;  %v3551_v35 = vsel %vm2268_vm6, %v8267_v0, 0 }
 0x1e9   : > { %15586 = vst [vmem:[#allocation194_spill] sm:$0xff] %v9920_v55  ;;  %v9926_v51 = vpop.permute.xlu0 %1200  ;;  %15591 = vst [vmem:[#allocation199_spill] sm:$0xff] %v9954_v24  ;;  %8177 = vmatprep.subr.msk.bf16.mxu1 %vm2268_vm6, %v8267_v0 }
 0x1ea   : > { %15587 = vst [vmem:[#allocation195_spill] sm:$0xff] %v9926_v51  ;;  %2723 = vrot.lane.b32.xlu1 %v9883_v54, %s8473_s13 }
 0x1eb   : > { %2794 = vrot.lane.b32.xlu0 %v15485_v19, %s8475_s15 }
 0x1ec   : > { %v9935_v55 = vpop.permute.xlu1 %1198  ;;  %7913 = vmatpush3.bf16.msra.mxu1 %v3551_v35 }
 0x1ed   : > { %15588 = vst [vmem:[#allocation196_spill] sm:$0xff] %v9935_v55  ;;  %v9941_v2 = vpop.permute.xlu0 %1206  ;;  %v2550_v55 = vrot.slane %v9639_v20, 2 }
 0x1ee   : > { %2792 = vrot.lane.b32.xlu1 %v15488_v30, %s8475_s15 }
 0x1ef   : > { %2860 = vrot.lane.b32.xlu0 %v9939_v33, %s8476_s22  ;;  %v9968_v20 = vsel %vm2534_vm5, %v2550_v55, %v9954_v24 }
 0x1f0   : > { %v9950_v51 = vpop.permute.xlu1 %1202  ;;  %15592 = vst [vmem:[#allocation200_spill] sm:$0xff] %v9968_v20 }
 0x1f1   : > { %15590 = vst [vmem:[#allocation198_spill] sm:$0xff] %v9950_v51  ;;  %v9956_v8 = vpop.permute.xlu0 %1210 }
 0x1f2   : > { %2796 = vrot.lane.b32.xlu1 %v15492_v12, %s8475_s15 }
 0x1f3   : > { %2478 = vrot.lane.b32.xlu0 %v9024_v16, %s8469_s9 }
 0x1f4   : > { %v9964_v29 = vpop.permute.xlu1 %1208 }
 0x1f5   : > { %v9970_v61 = vpop.permute.xlu0 %1214 }
 0x1f6   : > { %2862 = vrot.lane.b32.xlu1 %v9924_v6, %s8476_s22 }
 0x1f7   : > { %2864 = vrot.lane.b32.xlu0 %v9968_v20, %s8476_s22 }
 0x1f8   : > { %v9976_v0 = vpop.permute.xlu1 %1212 }
 0x1f9   : > { %v9978_v35 = vpop.permute.xlu0 %1218 }
 0x1fa   : > { %15593 = vst [vmem:[#allocation201_spill] sm:$0xff] %v9978_v35  ;;  %2480 = vrot.lane.b32.xlu1 %v9014_v9, %s8469_s9 }
 0x1fb   : > { %1293 = vrot.lane.b32.xlu0 %v8815_v58, %s8475_s15 }
 0x1fc   : > { %v9984_v16 = vpop.permute.xlu1 %1216 }
 0x1fd   : > { %v9986_v55 = vpop.permute.xlu0 %1222 }
 0x1fe   : > { %15594 = vst [vmem:[#allocation202_spill] sm:$0xff] %v9986_v55  ;;  %2866 = vrot.lane.b32.xlu1 %v9954_v24, %s8476_s22 }
 0x1ff   : > { %2482 = vrot.lane.b32.xlu0 %v9036_v22, %s8469_s9 }
 0x200   : > { %v9992_v51 = vpop.permute.xlu1 %1220 }
 0x201   : > { %15595 = vst [vmem:[#allocation203_spill] sm:$0xff] %v9992_v51  ;;  %v9994_v14 = vpop.permute.xlu0 %1226  ;;  %v15620_v51 = vld [vmem:[#allocation46_spill] sm:$0xff] }
 0x202   : > { %15596 = vst [vmem:[#allocation204_spill] sm:$0xff] %v9994_v14  ;;  %1295 = vrot.lane.b32.xlu1 %v8826_v3, %s8475_s15 }
 0x203   : > { %2591 = vrot.lane.b32.xlu0 %v9879_v48, %s8470_s10 }
 0x204   : > { %v10000_v58 = vpop.permute.xlu1 %1224 }
 0x205   : > { %15597 = vst [vmem:[#allocation205_spill] sm:$0xff] %v10000_v58  ;;  %v10002_v9 = vpop.permute.xlu0 %1230 }
 0x206   : > { %15598 = vst [vmem:[#allocation206_spill] sm:$0xff] %v10002_v9  ;;  %2484 = vrot.lane.b32.xlu1 %v9028_v34, %s8469_s9  ;;  %v8314_v9 = vld [vmem:[#allocation2 + $0xd8] sm:$0xff] }
 0x207   : > { %1297 = vrot.lane.b32.xlu0 %v8837_v15, %s8475_s15 }
 0x208   : > { %v10008_v22 = vpop.permute.xlu1 %1228 }
 0x209   : > { %15599 = vst [vmem:[#allocation207_spill] sm:$0xff] %v10008_v22  ;;  %v10010_v4 = vpop.permute.xlu0 %1234  ;;  %v10098_v22 = vrot.slane %v8314_v9, 2  ;;  %v15619_v9 = vld [vmem:[#allocation49_spill] sm:$0xff] }
 0x20a   : > { %15600 = vst [vmem:[#allocation208_spill] sm:$0xff] %v10010_v4  ;;  %2593 = vrot.lane.b32.xlu1 %v9867_v41, %s8470_s10 }
 0x20b   : > { %1360 = vrot.lane.b32.xlu0 %v15485_v19, %s8476_s22 }
 0x20c   : > { %v10016_v3 = vpop.permute.xlu1 %1232 }
 0x20d   : > { %15601 = vst [vmem:[#allocation209_spill] sm:$0xff] %v10016_v3  ;;  %v10018_v48 = vpop.permute.xlu0 %1238 }
 0x20e   : > { %15602 = vst [vmem:[#allocation210_spill] sm:$0xff] %v10018_v48  ;;  %1299 = vrot.lane.b32.xlu1 %v15446_v47, %s8475_s15 }
 0x20f   : > { %2595 = vrot.lane.b32.xlu0 %v9898_v52, %s8470_s10 }
 0x210   : > { %v10024_v15 = vpop.permute.xlu1 %1236 }
 0x211   : > { %15603 = vst [vmem:[#allocation211_spill] sm:$0xff] %v10024_v15  ;;  %v10026_v34 = vpop.permute.xlu0 %1242  ;;  %v8313_v15 = vld [vmem:[#allocation2 + $0xd0] sm:$0xff] }
 0x212   : > { %15604 = vst [vmem:[#allocation212_spill] sm:$0xff] %v10026_v34  ;;  %1362 = vrot.lane.b32.xlu1 %v15492_v12, %s8476_s22  ;;  %v2556_v3 = vrot.slane %v8313_v15, 2  ;;  %v1417_v15 = vsel %vm314_vm0, %v9809_v26, %v15619_v9 }
 0x213   : > { %1364 = vrot.lane.b32.xlu0 %v15489_v50, %s8476_s22 }
 0x214   : > { %v10032_v41 = vpop.permute.xlu1 %1240 }
 0x215   : > { %15605 = vst [vmem:[#allocation213_spill] sm:$0xff] %v10032_v41  ;;  %v10034_v4 = vpop.permute.xlu0 %1246 }
 0x216   : > { %15606 = vst [vmem:[#allocation214_spill] sm:$0xff] %v10034_v4  ;;  %2597 = vrot.lane.b32.xlu1 %v9883_v54, %s8470_s10 }
 0x217   : > { %2655 = vrot.lane.b32.xlu0 %v9048_v45, %s8472_s12 }
 0x218   : > { %v10040_v47 = vpop.permute.xlu1 %1244 }
 0x219   : > { %15607 = vst [vmem:[#allocation215_spill] sm:$0xff] %v10040_v47  ;;  %v10042_v52 = vpop.permute.xlu0 %1250  ;;  %v10078_v47 = vrot.slane %v9667_v44, 2 }
 0x21a   : > { %15608 = vst [vmem:[#allocation216_spill] sm:$0xff] %v10042_v52  ;;  %1366 = vrot.lane.b32.xlu1 %v15496_v25, %s8476_s22 }
 0x21b   : > { %2659 = vrot.lane.b32.xlu0 %v15485_v19, %s8472_s12 }
 0x21c   : > { %v10048_v34 = vpop.permute.xlu1 %1248 }
 0x21d   : > { %15609 = vst [vmem:[#allocation217_spill] sm:$0xff] %v10048_v34  ;;  %v10050_v41 = vpop.permute.xlu0 %1254 }
 0x21e   : > { %15610 = vst [vmem:[#allocation218_spill] sm:$0xff] %v10050_v41  ;;  %2657 = vrot.lane.b32.xlu1 %v15488_v30, %s8472_s12 }
 0x21f   : > { %2725 = vrot.lane.b32.xlu0 %v9939_v33, %s8473_s13 }
 0x220   : > { %v10056_v54 = vpop.permute.xlu1 %1252 }
 0x221   : > { %15611 = vst [vmem:[#allocation219_spill] sm:$0xff] %v10056_v54  ;;  %v10058_v4 = vpop.permute.xlu0 %1258  ;;  %v10074_v54 = vld [vmem:[#allocation2 + $0xc0] sm:$0xff] }
 0x222   : > { %15612 = vst [vmem:[#allocation220_spill] sm:$0xff] %v10058_v4  ;;  %2661 = vrot.lane.b32.xlu1 %v15492_v12, %s8472_s12  ;;  %15616 = vst [vmem:[#allocation224_spill] sm:$0xff] %v10074_v54  ;;  %v2553_v4 = vrot.slane %v10074_v54, 2 }
 0x223   : > { %2729 = vrot.lane.b32.xlu0 %v9968_v20, %s8473_s13 }
 0x224   : > { %v10064_v52 = vpop.permute.xlu1 %1256 }
 0x225   : > { %15613 = vst [vmem:[#allocation221_spill] sm:$0xff] %v10064_v52  ;;  %v10066_v34 = vpop.permute.xlu0 %1262 }
 0x226   : > { %15614 = vst [vmem:[#allocation222_spill] sm:$0xff] %v10066_v34  ;;  %2727 = vrot.lane.b32.xlu1 %v9924_v6, %s8473_s13 }
 0x227   : > { %2798 = vrot.lane.b32.xlu0 %v15489_v50, %s8475_s15 }
 0x228   : > { %v10072_v41 = vpop.permute.xlu1 %1260 }
 0x229   : > { %15615 = vst [vmem:[#allocation223_spill] sm:$0xff] %v10072_v41  ;;  %v10080_v48 = vpop.permute.xlu0 %2470  ;;  %v10090_v41 = vsel %vm2534_vm5, %v2553_v4, %v10078_v47 }
 0x22a   : > { %2731 = vrot.lane.b32.xlu1 %v9954_v24, %s8473_s13 }
 0x22b   : > { %2802 = vrot.lane.b32.xlu0 %v15493_v11, %s8475_s15 }
 0x22c   : > { %v10086_v34 = vpop.permute.xlu1 %1264 }
 0x22d   : > { %15617 = vst [vmem:[#allocation225_spill] sm:$0xff] %v10086_v34  ;;  %v1286_v52 = vpop.permute.xlu0 %1285  ;;  %v10108_v34 = vsel %vm2534_vm5, %v2556_v3, %v10098_v22  ;;  %v1482_v3 = vsel %vm1480_vm7, %v1417_v15, %v9312_v18 }
 0x22e   : > { %2800 = vrot.lane.b32.xlu1 %v15496_v25, %s8475_s15  ;;  %15618 = vst [vmem:[#allocation226_spill] sm:$0xff] %v10108_v34  ;;  %v1547_v58 = vsel %vm1545_vm8, %v1482_v3, %v9447_v53 }
 0x22f   : > { %2868 = vrot.lane.b32.xlu0 %v10090_v41, %s8476_s22  ;;  %v1612_v55 = vsel %vm1610_vm9, %v1547_v58, %v9581_v1  ;;  %v15621_v58 = vld [vmem:[#allocation111_spill] sm:$0xff] }
 0x230   : > { %v10096_v44 = vpop.permute.xlu1 %2472  ;;  %v1677_v9 = vsel %vm1675_vm10, %v1612_v55, %v9731_v17 }
 0x231   : > { %v10100_v14 = vpop.permute.xlu0 %2474  ;;  %v1742_v15 = vsel %vm1740_vm11, %v1677_v9, %v9941_v2 }
 0x232   : > { %2804 = vrot.lane.b32.xlu1 %v15500_v31, %s8475_s15  ;;  %v1807_v1 = vsel %vm1805_vm12, %v1742_v15, %v1286_v52 }
 0x233   : > { %2486 = vrot.lane.b32.xlu0 %v9048_v45, %s8469_s9 }
 0x234   : > { %v1288_v4 = vpop.permute.xlu1 %1287 }
 0x235   : > { %v10110_v54 = vpop.permute.xlu0 %2583 }
 0x236   : > { %2870 = vrot.lane.b32.xlu1 %v10078_v47, %s8476_s22 }
 0x237   : > { %2872 = vrot.lane.b32.xlu0 %v10108_v34, %s8476_s22 }
 0x238   : > { %v10119_v45 = vpop.permute.xlu1 %2476 }
 0x239   : > { %v1290_v5 = vpop.permute.xlu0 %1289 }
 0x23a   : > { %2488 = vrot.lane.b32.xlu1 %v15488_v30, %s8469_s9  ;;  %v1419_v30 = vsel %vm314_vm0, %v9812_v37, %v15620_v51 }
 0x23b   : > { %1301 = vrot.lane.b32.xlu0 %v8853_v32, %s8475_s15  ;;  %v1421_v32 = vsel %vm314_vm0, %v9861_v43, %v9246_v7  ;;  %v1484_v17 = vsel %vm1480_vm7, %v1419_v30, %v9326_v10  ;;  %v15622_v30 = vld [vmem:[#allocation5_spill] sm:$0xff] }
 0x23c   : > { %v10133_v18 = vpop.permute.xlu1 %2585  ;;  %v1486_v51 = vsel %vm1480_vm7, %v1421_v32, %v9320_v23  ;;  %v1549_v2 = vsel %vm1545_vm8, %v1484_v17, %v9461_v40 }
 0x23d   : > { %v1353_v3 = vpop.permute.xlu0 %1352  ;;  %v1551_v9 = vsel %vm1545_vm8, %v1486_v51, %v15621_v58  ;;  %v1614_v7 = vsel %vm1610_vm9, %v1549_v2, %v9599_v49  ;;  %v15623_v49 = vld [vmem:[#allocation52_spill] sm:$0xff]  ;;  %v15624_v51 = vld [vmem:[#allocation83_spill] sm:$0xff] }
 0x23e   : > { %2874 = vrot.lane.b32.xlu1 %v10098_v22, %s8476_s22  ;;  %v1872_v55 = vsel %vm1870_vm13, %v1807_v1, %v1353_v3  ;;  %v1616_v10 = vsel %vm1610_vm9, %v1551_v9, %v9593_v56  ;;  %v1423_v56 = vsel %vm314_vm0, %v9864_v57, %v15623_v49  ;;  %v15625_v49 = vld [vmem:[#allocation115_spill] sm:$0xff] }
 0x23f   : > { %2490 = vrot.lane.b32.xlu0 %v15485_v19, %s8469_s9  ;;  %v1679_v19 = vsel %vm1675_vm10, %v1614_v7, %v9751_v59  ;;  %v1936_v3 = vshrl.u32 %v1872_v55, 16  ;;  %v1939_v23 = vshll.u32 %v1872_v55, 16  ;;  %v1681_v1 = vsel %vm1675_vm10, %v1616_v10, %v9745_v60 }
 0x240   : > { %v1292_v52 = vpop.permute.xlu1 %1291  ;;  %v1744_v32 = vsel %vm1740_vm11, %v1679_v19, %v9964_v29  ;;  %v1746_v59 = vsel %vm1740_vm11, %v1681_v1, %v9956_v8  ;;  %v1488_v2 = vsel %vm1480_vm7, %v1423_v56, %v15624_v51  ;;  %v15627_v56 = vld [vmem:[#allocation140_spill] sm:$0xff] }
 0x241   : > { %v10159_v15 = vpop.permute.xlu0 %2587  ;;  %v1809_v17 = vsel %vm1805_vm12, %v1744_v32, %v1288_v4  ;;  %v1811_v60 = vsel %vm1805_vm12, %v1746_v59, %v1290_v5  ;;  %v1938_v7 = vrot.slane %v1936_v3, 3  ;;  %v1941_v10 = vrot.slane %v1939_v23, 4  ;;  %v15626_v32 = vld [vmem:[#allocation6_spill] sm:$0xff] }
 0x242   : > { %1303 = vrot.lane.b32.xlu1 %v15622_v30, %s8475_s15  ;;  %v1553_v1 = vsel %vm1545_vm8, %v1488_v2, %v15625_v49 }
 0x243   : > { %2599 = vrot.lane.b32.xlu0 %v9939_v33, %s8470_s10  ;;  %v1618_v5 = vsel %vm1610_vm9, %v1553_v1, %v15627_v56  ;;  %v1942_v2 = vor.u32 %v1941_v10, %v1938_v7  ;;  %v15628_v56 = vld [vmem:[#allocation8_spill] sm:$0xff] }
 0x244   : > { %v1355_v55 = vpop.permute.xlu1 %1354  ;;  %v1683_v23 = vsel %vm1675_vm10, %v1618_v5, %v9759_v46 }
 0x245   : > { %v1874_v29 = vsel %vm1870_vm13, %v1809_v17, %v1355_v55  ;;  %v1357_v9 = vpop.permute.xlu0 %1356 }
 0x246   : > { %v1943_v19 = vshrl.u32 %v1874_v29, 16  ;;  %v1946_v30 = vshll.u32 %v1874_v29, 16  ;;  %2492 = vrot.lane.b32.xlu1 %v15492_v12, %s8469_s9  ;;  %v1876_v4 = vsel %vm1870_vm13, %v1811_v60, %v1357_v9  ;;  %v1748_v29 = vsel %vm1740_vm11, %v1683_v23, %v9976_v0 }
 0x247   : > { %1305 = vrot.lane.b32.xlu0 %v15626_v32, %s8475_s15  ;;  %v1951_v12 = vshrl.u32 %v1876_v4, 16  ;;  %v1954_v51 = vshll.u32 %v1876_v4, 16  ;;  %v1813_v9 = vsel %vm1805_vm12, %v1748_v29, %v1292_v52 }
 0x248   : > { %v1945_v59 = vrot.slane %v1943_v19, 3  ;;  %v1948_v17 = vrot.slane %v1946_v30, 4  ;;  %v10192_v3 = vpop.permute.xlu1 %2589 }
 0x249   : > { %v2648_v55 = vpop.permute.xlu0 %2647  ;;  %v1953_v4 = vrot.slane %v1951_v12, 3  ;;  %v1956_v7 = vrot.slane %v1954_v51, 4  ;;  %v15629_v12 = vld [vmem:[#allocation34_spill] sm:$0xff] }
 0x24a   : > { %2601 = vrot.lane.b32.xlu1 %v9924_v6, %s8470_s10  ;;  %v1949_v60 = vor.u32 %v1948_v17, %v1945_v59 }
 0x24b   : > { %1368 = vrot.lane.b32.xlu0 %v15493_v11, %s8476_s22  ;;  %v1957_v23 = vor.u32 %v1956_v7, %v1953_v4 }
 0x24c   : > { %v1359_v19 = vpop.permute.xlu1 %1358  ;;  %v1950_v46 = vsel %vm1935_vm14, %v1942_v2, %v1949_v60 }
 0x24d   : > { %v1878_v30 = vsel %vm1870_vm13, %v1813_v9, %v1359_v19  ;;  %v10205_v1 = vpop.permute.xlu0 %2651  ;;  %7872 = vmatprep.mubr.msk.bf16.mxu0 %vm2219_vm15, %v1950_v46  ;;  %v15630_v46 = vld [vmem:[#allocation33_spill] sm:$0xff] }
 0x24e   : > { %v1958_v10 = vshrl.u32 %v1878_v30, 16  ;;  %v1961_v32 = vshll.u32 %v1878_v30, 16  ;;  %1307 = vrot.lane.b32.xlu1 %v15628_v56, %s8475_s15  ;;  %v2926_v30 = vsel %vm314_vm0, %v9733_v39, %v10080_v48 }
 0x24f   : > { %2603 = vrot.lane.b32.xlu0 %v9968_v20, %s8470_s10  ;;  %v2991_v7 = vsel %vm1480_vm7, %v2926_v30, %v10110_v54 }
 0x250   : > { %v1960_v52 = vrot.slane %v1958_v10, 3  ;;  %v1963_v5 = vrot.slane %v1961_v32, 4  ;;  %v2650_v59 = vpop.permute.xlu1 %2649  ;;  %v2929_v32 = vsel %vm314_vm0, %v9735_v13, %v10096_v44  ;;  %v3054_v39 = vsel %vm1545_vm8, %v2991_v7, %v9447_v53  ;;  %v10280_v7 = vld [vmem:[#allocation2 + $0xe8] sm:$0xff] }
 0x251   : > { %v2718_v17 = vpop.permute.xlu0 %2717  ;;  %v2993_v56 = vsel %vm1480_vm7, %v2929_v32, %v10133_v18  ;;  %v3087_v54 = vsel %vm1610_vm9, %v3054_v39, %v2648_v55  ;;  %v2931_v18 = vsel %vm314_vm0, %v9809_v26, %v10100_v14 }
 0x252   : > { %v1964_v2 = vor.u32 %v1963_v5, %v1960_v52  ;;  %1370 = vrot.lane.b32.xlu1 %v15500_v31, %s8476_s22  ;;  %v3055_v5 = vsel %vm1545_vm8, %v2993_v56, %v9461_v40  ;;  %v3151_v13 = vsel %vm1675_vm10, %v3087_v54, %v2718_v17 }
 0x253   : > { %1372 = vrot.lane.b32.xlu0 %v15629_v12, %s8476_s22  ;;  %v3089_v44 = vsel %vm1610_vm9, %v3055_v5, %v2650_v59  ;;  %v3214_v17 = vsel %vm1740_vm11, %v3151_v13, %v9956_v8  ;;  %v2933_v59 = vsel %vm314_vm0, %v9812_v37, %v10119_v45  ;;  %v15632_v13 = vld [vmem:[#allocation36_spill] sm:$0xff] }
 0x254   : > { %v2654_v51 = vpop.permute.xlu1 %2653  ;;  %v1965_v60 = vsel %vm1935_vm14, %v1957_v23, %v1964_v2  ;;  %v2995_v2 = vsel %vm1480_vm7, %v2931_v18, %v10159_v15  ;;  %v2997_v14 = vsel %vm1480_vm7, %v2933_v59, %v10192_v3  ;;  %v10283_v3 = vrot.slane %v10280_v7, 2 }
 0x255   : > { %v2722_v29 = vpop.permute.xlu0 %2721  ;;  %7873 = vmatmul.mubr.msk.bf16.vlgmr.msra.gmra.mrb[0].mxu0 %vm2219_vm15, %v1965_v60  ;;  %v3056_v8 = vsel %vm1545_vm8, %v2995_v2, %v15621_v58  ;;  %v3057_v39 = vsel %vm1545_vm8, %v2997_v14, %v15625_v49  ;;  %v8317_v14 = vld [vmem:[#allocation2 + $0xf0] sm:$0xff] }
 0x256   : > { %2605 = vrot.lane.b32.xlu1 %v9954_v24, %s8470_s10  ;;  %15631 = vst [vmem:[#allocation49_spill] sm:$0xff] %v10283_v3  ;;  %v3093_v5 = vsel %vm1610_vm9, %v3057_v39, %v2654_v51 }
 0x257   : > { %2663 = vrot.lane.b32.xlu0 %v15489_v50, %s8472_s12 }
 0x258   : > { %v2720_v9 = vpop.permute.xlu1 %2719 }
 0x259   : > { %v2791_v19 = vpop.permute.xlu0 %2790  ;;  %v3153_v55 = vsel %vm1675_vm10, %v3089_v44, %v2720_v9  ;;  %v10277_v9 = vld [vmem:[#allocation2 + $0xe0] sm:$0xff] }
 0x25a   : > { %1374 = vrot.lane.b32.xlu1 %v15630_v46, %s8476_s22  ;;  %v3249_v30 = vsel %vm1805_vm12, %v3214_v17, %v2791_v19  ;;  %v3215_v26 = vsel %vm1740_vm11, %v3153_v55, %v9976_v0  ;;  %v2559_v19 = vrot.slane %v10277_v9, 2  ;;  %v3091_v0 = vsel %vm1610_vm9, %v3056_v8, %v10205_v1 }
 0x25b   : > { %2667 = vrot.lane.b32.xlu0 %v15493_v11, %s8472_s12 }
 0x25c   : > { %v2724_v4 = vpop.permute.xlu1 %2723  ;;  %v10302_v55 = vsel %vm2534_vm5, %v2559_v19, %v10283_v3 }
 0x25d   : > { %v2795_v10 = vpop.permute.xlu0 %2794  ;;  %v3157_v1 = vsel %vm1675_vm10, %v3093_v5, %v2724_v4  ;;  %15633 = vst [vmem:[#allocation46_spill] sm:$0xff] %v10302_v55 }
 0x25e   : > { %2665 = vrot.lane.b32.xlu1 %v15496_v25, %s8472_s12  ;;  %v3217_v4 = vsel %vm1740_vm11, %v3157_v1, %v9984_v16 }
 0x25f   : > { %2733 = vrot.lane.b32.xlu0 %v10090_v41, %s8473_s13 }
 0x260   : > { %v2793_v48 = vpop.permute.xlu1 %2792 }
 0x261   : > { %v2861_v52 = vpop.permute.xlu0 %2860  ;;  %v3251_v37 = vsel %vm1805_vm12, %v3215_v26, %v2793_v48  ;;  %v3155_v48 = vsel %vm1675_vm10, %v3091_v0, %v2722_v29  ;;  %v2562_v26 = vrot.slane %v8317_v14, 2  ;;  %v15635_v0 = vld [vmem:[#allocation35_spill] sm:$0xff] }
 0x262   : > { %2669 = vrot.lane.b32.xlu1 %v15500_v31, %s8472_s12  ;;  %v3313_v15 = vsel %vm1870_vm13, %v3249_v30, %v2861_v52  ;;  %v3216_v29 = vsel %vm1740_vm11, %v3155_v48, %v9970_v61  ;;  %v15637_v48 = vld [vmem:[#allocation54_spill] sm:$0xff] }
 0x263   : > { %2737 = vrot.lane.b32.xlu0 %v10108_v34, %s8473_s13  ;;  %v3409_v54 = vrot.slane %v3313_v15, 3  ;;  %v3253_v51 = vsel %vm1805_vm12, %v3216_v29, %v2795_v10  ;;  %v8318_v15 = vld [vmem:[#allocation2 + $0xf8] sm:$0xff] }
 0x264   : > { %v2797_v23 = vpop.permute.xlu1 %2796  ;;  %v10316_v8 = vrot.slane %v8318_v15, 2 }
 0x265   : > { %v10259_v60 = vpop.permute.xlu0 %2478  ;;  %v3255_v59 = vsel %vm1805_vm12, %v3217_v4, %v2797_v23 }
 0x266   : > { %2735 = vrot.lane.b32.xlu1 %v10078_v47, %s8473_s13  ;;  %15634 = vst [vmem:[#allocation5_spill] sm:$0xff] %v10316_v8 }
 0x267   : > { %2806 = vrot.lane.b32.xlu0 %v15629_v12, %s8475_s15 }
 0x268   : > { %v2863_v45 = vpop.permute.xlu1 %2862 }
 0x269   : > { %v3315_v32 = vsel %vm1870_vm13, %v3251_v37, %v2863_v45  ;;  %v2865_v56 = vpop.permute.xlu0 %2864 }
 0x26a   : > { %v3410_v52 = vrot.slane %v3315_v32, 3  ;;  %2739 = vrot.lane.b32.xlu1 %v10098_v22, %s8473_s13  ;;  %v3317_v17 = vsel %vm1870_vm13, %v3253_v51, %v2865_v56  ;;  %v10328_v56 = vsel %vm2534_vm5, %v2562_v26, %v10316_v8  ;;  %v15640_v51 = vld [vmem:[#allocation139_spill] sm:$0xff] }
 0x26b   : > { %2810 = vrot.lane.b32.xlu0 %v15632_v13, %s8475_s15  ;;  %v3412_v45 = vrot.slane %v3317_v17, 3  ;;  %15636 = vst [vmem:[#allocation52_spill] sm:$0xff] %v10328_v56  ;;  %v15641_v17 = vld [vmem:[#allocation7_spill] sm:$0xff] }
 0x26c   : > { %v10297_v44 = vpop.permute.xlu1 %2480  ;;  %v3411_v18 = vsel %vm3408_vm1, %v3409_v54, %v3410_v52  ;;  %v15638_v52 = vld [vmem:[#allocation82_spill] sm:$0xff]  ;;  %v15642_v26 = vld [vmem:[#allocation55_spill] sm:$0xff] }
 0x26d   : > { %v1294_v2 = vpop.permute.xlu0 %1293  ;;  %7914 = vmatprep.mubr.msk.bf16.mxu1 %vm2219_vm15, %v3411_v18  ;;  %v15639_v18 = vld [vmem:[#allocation114_spill] sm:$0xff]  ;;  %v1427_v15 = vsel %vm314_vm0, %v9635_v62, %v15642_v26 }
 0x26e   : > { %2808 = vrot.lane.b32.xlu1 %v15630_v46, %s8475_s15 }
 0x26f   : > { %2876 = vrot.lane.b32.xlu0 %v10302_v55, %s8476_s22 }
 0x270   : > { %v2867_v30 = vpop.permute.xlu1 %2866 }
 0x271   : > { %v3319_v10 = vsel %vm1870_vm13, %v3255_v59, %v2867_v30  ;;  %v10319_v37 = vpop.permute.xlu0 %2482 }
 0x272   : > { %v3413_v19 = vrot.slane %v3319_v10, 3  ;;  %2812 = vrot.lane.b32.xlu1 %v15635_v0, %s8475_s15  ;;  %v15643_v10 = vld [vmem:[#allocation56_spill] sm:$0xff] }
 0x273   : > { %2494 = vrot.lane.b32.xlu0 %v15489_v50, %s8469_s9  ;;  %v1425_v50 = vsel %vm314_vm0, %v9617_v63, %v15637_v48  ;;  %v15646_v48 = vld [vmem:[#allocation118_spill] sm:$0xff] }
 0x274   : > { %v1296_v32 = vpop.permute.xlu1 %1295  ;;  %v3414_v23 = vsel %vm3408_vm1, %v3412_v45, %v3413_v19  ;;  %v1490_v5 = vsel %vm1480_vm7, %v1425_v50, %v15638_v52  ;;  %v1429_v45 = vsel %vm314_vm0, %v9627_v28, %v15643_v10  ;;  %v15647_v52 = vld [vmem:[#allocation116_spill] sm:$0xff] }
 0x275   : > { %v10330_v39 = vpop.permute.xlu0 %2591  ;;  %7915 = vmatmul.mubr.msk.bf16.vlgmr.msra.gmra.mrb[0].mxu1 %vm2219_vm15, %v3414_v23  ;;  %v1555_v29 = vsel %vm1545_vm8, %v1490_v5, %v15639_v18 }
 0x276   : > { %2878 = vrot.lane.b32.xlu1 %v10283_v3, %s8476_s22  ;;  %v1620_v4 = vsel %vm1610_vm9, %v1555_v29, %v15640_v51  ;;  %v15648_v29 = vld [vmem:[#allocation142_spill] sm:$0xff] }
 0x277   : > { %2880 = vrot.lane.b32.xlu0 %v10328_v56, %s8476_s22  ;;  %v1685_v63 = vsel %vm1675_vm10, %v1620_v4, %v9754_v38  ;;  %v15644_v38 = vld [vmem:[#allocation85_spill] sm:$0xff] }
 0x278   : > { %v10340_v54 = vpop.permute.xlu1 %2484  ;;  %v1750_v30 = vsel %vm1740_vm11, %v1685_v63, %v9970_v61  ;;  %v1492_v19 = vsel %vm1480_vm7, %v1427_v15, %v15644_v38  ;;  %v15645_v61 = vld [vmem:[#allocation84_spill] sm:$0xff]  ;;  %v15649_v4 = vld [vmem:[#allocation141_spill] sm:$0xff] }
 0x279   : > { %v1298_v1 = vpop.permute.xlu0 %1297  ;;  %v1494_v62 = vsel %vm1480_vm7, %v1429_v45, %v15645_v61 }
 0x27a   : > { %2496 = vrot.lane.b32.xlu1 %v15496_v25, %s8469_s9  ;;  %v1815_v25 = vsel %vm1805_vm12, %v1750_v30, %v1294_v2  ;;  %v1557_v2 = vsel %vm1545_vm8, %v1492_v19, %v15646_v48  ;;  %v1559_v5 = vsel %vm1545_vm8, %v1494_v62, %v15647_v52  ;;  %v15652_v19 = vld [vmem:[#allocation87_spill] sm:$0xff] }
 0x27b   : > { %1309 = vrot.lane.b32.xlu0 %v15641_v17, %s8475_s15  ;;  %v1622_v28 = vsel %vm1610_vm9, %v1557_v2, %v15648_v29  ;;  %v1624_v17 = vsel %vm1610_vm9, %v1559_v5, %v15649_v4  ;;  %v15654_v4 = vld [vmem:[#allocation9_spill] sm:$0xff] }
 0x27c   : > { %v10354_v59 = vpop.permute.xlu1 %2593  ;;  %v1689_v26 = vsel %vm1675_vm10, %v1624_v17, %v9761_v36  ;;  %v15655_v17 = vld [vmem:[#allocation144_spill] sm:$0xff] }
 0x27d   : > { %v1361_v14 = vpop.permute.xlu0 %1360  ;;  %v1754_v45 = vsel %vm1740_vm11, %v1689_v26, %v9978_v35 }
 0x27e   : > { %2882 = vrot.lane.b32.xlu1 %v10316_v8, %s8476_s22  ;;  %v1880_v23 = vsel %vm1870_vm13, %v1815_v25, %v1361_v14  ;;  %v15650_v14 = vld [vmem:[#allocation10_spill] sm:$0xff]  ;;  %v15651_v25 = vld [vmem:[#allocation57_spill] sm:$0xff]  ;;  %v1819_v36 = vsel %vm1805_vm12, %v1754_v45, %v1298_v1 }
 0x27f   : > { %2498 = vrot.lane.b32.xlu0 %v15493_v11, %s8469_s9  ;;  %v1687_v11 = vsel %vm1675_vm10, %v1622_v28, %v9767_v21  ;;  %v1966_v63 = vshrl.u32 %v1880_v23, 16  ;;  %v1969_v30 = vshll.u32 %v1880_v23, 16  ;;  %v1431_v10 = vsel %vm314_vm0, %v9647_v27, %v15651_v25  ;;  %v15653_v27 = vld [vmem:[#allocation120_spill] sm:$0xff] }
 0x280   : > { %v1300_v50 = vpop.permute.xlu1 %1299  ;;  %v1752_v15 = vsel %vm1740_vm11, %v1687_v11, %v9984_v16  ;;  %v1496_v23 = vsel %vm1480_vm7, %v1431_v10, %v15652_v19 }
 0x281   : > { %v10380_v51 = vpop.permute.xlu0 %2595  ;;  %v1817_v21 = vsel %vm1805_vm12, %v1752_v15, %v1296_v32  ;;  %v1968_v62 = vrot.slane %v1966_v63, 3  ;;  %v1971_v2 = vrot.slane %v1969_v30, 4  ;;  %v1561_v32 = vsel %vm1545_vm8, %v1496_v23, %v15653_v27 }
 0x282   : > { %1311 = vrot.lane.b32.xlu1 %v15650_v14, %s8475_s15  ;;  %v1626_v1 = vsel %vm1610_vm9, %v1561_v32, %v15655_v17 }
 0x283   : > { %2607 = vrot.lane.b32.xlu0 %v10090_v41, %s8470_s10  ;;  %v1691_v30 = vsel %vm1675_vm10, %v1626_v1, %v9781_v42  ;;  %v15658_v1 = vld [vmem:[#allocation38_spill] sm:$0xff] }
 0x284   : > { %v1363_v38 = vpop.permute.xlu1 %1362 }
 0x285   : > { %v1882_v16 = vsel %vm1870_vm13, %v1817_v21, %v1363_v38  ;;  %v1365_v61 = vpop.permute.xlu0 %1364  ;;  %v15656_v21 = vld [vmem:[#allocation203_spill] sm:$0xff] }
 0x286   : > { %v1973_v5 = vshrl.u32 %v1882_v16, 16  ;;  %v1976_v29 = vshll.u32 %v1882_v16, 16  ;;  %2500 = vrot.lane.b32.xlu1 %v15500_v31, %s8469_s9  ;;  %v1884_v28 = vsel %vm1870_vm13, %v1819_v36, %v1365_v61  ;;  %v1972_v31 = vor.u32 %v1971_v2, %v1968_v62 }
 0x287   : > { %1313 = vrot.lane.b32.xlu0 %v15654_v4, %s8475_s15  ;;  %v1981_v25 = vshrl.u32 %v1884_v28, 16  ;;  %v1984_v10 = vshll.u32 %v1884_v28, 16  ;;  %v1756_v45 = vsel %vm1740_vm11, %v1691_v30, %v15656_v21 }
 0x288   : > { %v1975_v11 = vrot.slane %v1973_v5, 3  ;;  %v1978_v14 = vrot.slane %v1976_v29, 4  ;;  %v10413_v63 = vpop.permute.xlu1 %2597  ;;  %v1821_v38 = vsel %vm1805_vm12, %v1756_v45, %v1300_v50  ;;  %v15657_v5 = vld [vmem:[#allocation12_spill] sm:$0xff] }
 0x289   : > { %v2656_v26 = vpop.permute.xlu0 %2655  ;;  %v1983_v16 = vrot.slane %v1981_v25, 3  ;;  %v1986_v61 = vrot.slane %v1984_v10, 4  ;;  %v15659_v25 = vld [vmem:[#allocation37_spill] sm:$0xff]  ;;  %v2935_v10 = vsel %vm314_vm0, %v9861_v43, %v10259_v60 }
 0x28a   : > { %v1979_v15 = vor.u32 %v1978_v14, %v1975_v11  ;;  %2609 = vrot.lane.b32.xlu1 %v10078_v47, %s8470_s10 }
 0x28b   : > { %1376 = vrot.lane.b32.xlu0 %v15632_v13, %s8476_s22  ;;  %v1987_v4 = vor.u32 %v1986_v61, %v1983_v16 }
 0x28c   : > { %v1367_v19 = vpop.permute.xlu1 %1366  ;;  %v1980_v23 = vsel %vm1935_vm14, %v1972_v31, %v1979_v15 }
 0x28d   : > { %v1886_v42 = vsel %vm1870_vm13, %v1821_v38, %v1367_v19  ;;  %v10426_v36 = vpop.permute.xlu0 %2659  ;;  %7876 = vmatprep.mubr.msk.bf16.mxu0 %vm2219_vm15, %v1980_v23  ;;  %v2999_v38 = vsel %vm1480_vm7, %v2935_v10, %v10330_v39  ;;  %v2937_v23 = vsel %vm314_vm0, %v9864_v57, %v10297_v44 }
 0x28e   : > { %v1988_v62 = vshrl.u32 %v1886_v42, 16  ;;  %v1991_v2 = vshll.u32 %v1886_v42, 16  ;;  %1315 = vrot.lane.b32.xlu1 %v15657_v5, %s8475_s15  ;;  %v3001_v42 = vsel %vm1480_vm7, %v2937_v23, %v10354_v59  ;;  %v3058_v43 = vsel %vm1545_vm8, %v2999_v38, %v15639_v18  ;;  %v8319_v59 = vld [vmem:[#allocation2 + $0x90] sm:$0xff]  ;;  %v10499_v38 = vld [vmem:[#allocation2 + $0x108] sm:$0xff] }
 0x28f   : > { %2611 = vrot.lane.b32.xlu0 %v10108_v34, %s8470_s10  ;;  %v3095_v39 = vsel %vm1610_vm9, %v3058_v43, %v2656_v26  ;;  %v3059_v61 = vsel %vm1545_vm8, %v3001_v42, %v15646_v48 }
 0x290   : > { %v1990_v50 = vrot.slane %v1988_v62, 3  ;;  %v1993_v29 = vrot.slane %v1991_v2, 4  ;;  %v2658_v32 = vpop.permute.xlu1 %2657  ;;  %v2939_v62 = vsel %vm314_vm0, %v8319_v59, %v10319_v37 }
 0x291   : > { %v2726_v28 = vpop.permute.xlu0 %2725  ;;  %v3097_v44 = vsel %vm1610_vm9, %v3059_v61, %v2658_v32  ;;  %v3003_v5 = vsel %vm1480_vm7, %v2939_v62, %v10380_v51 }
 0x292   : > { %v1994_v17 = vor.u32 %v1993_v29, %v1990_v50  ;;  %1378 = vrot.lane.b32.xlu1 %v15635_v0, %s8476_s22  ;;  %v3159_v57 = vsel %vm1675_vm10, %v3095_v39, %v2726_v28  ;;  %v8320_v28 = vld [vmem:[#allocation2 + $0x98] sm:$0xff] }
 0x293   : > { %1380 = vrot.lane.b32.xlu0 %v15658_v1, %s8476_s22  ;;  %v3218_v50 = vsel %vm1740_vm11, %v3159_v57, %v9978_v35  ;;  %v2941_v32 = vsel %vm314_vm0, %v8320_v28, %v10340_v54 }
 0x294   : > { %v2662_v11 = vpop.permute.xlu1 %2661  ;;  %v1995_v14 = vsel %vm1935_vm14, %v1987_v4, %v1994_v17  ;;  %v3005_v37 = vsel %vm1480_vm7, %v2941_v32, %v10413_v63  ;;  %v10502_v63 = vrot.slane %v10499_v38, 2 }
 0x295   : > { %v2730_v30 = vpop.permute.xlu0 %2729  ;;  %7877 = vmatmul.mubr.msk.bf16.gmra.mrb[4].mxu0 %vm2219_vm15, %v1995_v14  ;;  %v3060_v14 = vsel %vm1545_vm8, %v3003_v5, %v15647_v52  ;;  %v3061_v39 = vsel %vm1545_vm8, %v3005_v37, %v15653_v27  ;;  %v15681_v27 = vld [vmem:[#allocation146_spill] sm:$0xff] }
 0x296   : > { %2613 = vrot.lane.b32.xlu1 %v10098_v22, %s8470_s10  ;;  %15660 = vst [vmem:[#allocation83_spill] sm:$0xff] %v10502_v63  ;;  %v3099_v23 = vsel %vm1610_vm9, %v3060_v14, %v10426_v36  ;;  %v3101_v57 = vsel %vm1610_vm9, %v3061_v39, %v2662_v11  ;;  %v8324_v14 = vld [vmem:[#allocation2 + $0x118] sm:$0xff] }
 0x297   : > { %2671 = vrot.lane.b32.xlu0 %v15629_v12, %s8472_s12 }
 0x298   : > { %v2728_v31 = vpop.permute.xlu1 %2727 }
 0x299   : > { %v2799_v15 = vpop.permute.xlu0 %2798  ;;  %v3161_v26 = vsel %vm1675_vm10, %v3097_v44, %v2728_v31  ;;  %v15661_v44 = vld [vmem:[#allocation40_spill] sm:$0xff] }
 0x29a   : > { %1382 = vrot.lane.b32.xlu1 %v15659_v25, %s8476_s22  ;;  %v3257_v4 = vsel %vm1805_vm12, %v3218_v50, %v2799_v15  ;;  %v3219_v51 = vsel %vm1740_vm11, %v3161_v26, %v15656_v21  ;;  %v10496_v15 = vld [vmem:[#allocation2 + $0x100] sm:$0xff] }
 0x29b   : > { %2675 = vrot.lane.b32.xlu0 %v15632_v13, %s8472_s12  ;;  %v2565_v10 = vrot.slane %v10496_v15, 2 }
 0x29c   : > { %v2732_v45 = vpop.permute.xlu1 %2731 }
 0x29d   : > { %v2803_v19 = vpop.permute.xlu0 %2802  ;;  %v3165_v36 = vsel %vm1675_vm10, %v3101_v57, %v2732_v45  ;;  %v10521_v26 = vsel %vm2534_vm5, %v2565_v10, %v10502_v63  ;;  %v15664_v45 = vld [vmem:[#allocation205_spill] sm:$0xff] }
 0x29e   : > { %2673 = vrot.lane.b32.xlu1 %v15630_v46, %s8472_s12  ;;  %15662 = vst [vmem:[#allocation6_spill] sm:$0xff] %v10521_v26  ;;  %v3221_v28 = vsel %vm1740_vm11, %v3165_v36, %v15664_v45  ;;  %v15669_v36 = vld [vmem:[#allocation86_spill] sm:$0xff] }
 0x29f   : > { %2741 = vrot.lane.b32.xlu0 %v10302_v55, %s8473_s13 }
 0x2a0   : > { %v2801_v60 = vpop.permute.xlu1 %2800 }
 0x2a1   : > { %v2869_v16 = vpop.permute.xlu0 %2868  ;;  %v3259_v54 = vsel %vm1805_vm12, %v3219_v51, %v2801_v60  ;;  %v3163_v60 = vsel %vm1675_vm10, %v3099_v23, %v2730_v30  ;;  %v15663_v30 = vld [vmem:[#allocation202_spill] sm:$0xff] }
 0x2a2   : > { %2677 = vrot.lane.b32.xlu1 %v15635_v0, %s8472_s12  ;;  %v3321_v17 = vsel %vm1870_vm13, %v3257_v4, %v2869_v16  ;;  %v3220_v5 = vsel %vm1740_vm11, %v3163_v60, %v15663_v30  ;;  %v8323_v51 = vld [vmem:[#allocation2 + $0x110] sm:$0xff] }
 0x2a3   : > { %2745 = vrot.lane.b32.xlu0 %v10328_v56, %s8473_s13  ;;  %v3415_v16 = vrot.slane %v3321_v17, 3  ;;  %v3261_v11 = vsel %vm1805_vm12, %v3220_v5, %v2803_v19  ;;  %v2568_v17 = vrot.slane %v8323_v51, 2  ;;  %v15673_v51 = vld [vmem:[#allocation169_spill] sm:$0xff] }
 0x2a4   : > { %v2805_v2 = vpop.permute.xlu1 %2804 }
 0x2a5   : > { %v10479_v29 = vpop.permute.xlu0 %2486  ;;  %v3263_v4 = vsel %vm1805_vm12, %v3221_v28, %v2805_v2 }
 0x2a6   : > { %2743 = vrot.lane.b32.xlu1 %v10283_v3, %s8473_s13 }
 0x2a7   : > { %2814 = vrot.lane.b32.xlu0 %v15658_v1, %s8475_s15 }
 0x2a8   : > { %v2871_v31 = vpop.permute.xlu1 %2870 }
 0x2a9   : > { %v3323_v42 = vsel %vm1870_vm13, %v3259_v54, %v2871_v31  ;;  %v2873_v43 = vpop.permute.xlu0 %2872  ;;  %v10535_v54 = vrot.slane %v8324_v14, 2 }
 0x2aa   : > { %v3416_v61 = vrot.slane %v3323_v42, 3  ;;  %2747 = vrot.lane.b32.xlu1 %v10316_v8, %s8473_s13  ;;  %v3325_v32 = vsel %vm1870_vm13, %v3261_v11, %v2873_v43  ;;  %v15666_v42 = vld [vmem:[#allocation39_spill] sm:$0xff] }
 0x2ab   : > { %2818 = vrot.lane.b32.xlu0 %v15661_v44, %s8475_s15  ;;  %15665 = vst [vmem:[#allocation140_spill] sm:$0xff] %v10535_v54  ;;  %v3418_v10 = vrot.slane %v3325_v32, 3  ;;  %v10547_v39 = vsel %vm2534_vm5, %v2568_v17, %v10535_v54  ;;  %v15670_v11 = vld [vmem:[#allocation119_spill] sm:$0xff] }
 0x2ac   : > { %v10516_v59 = vpop.permute.xlu1 %2488  ;;  %v3417_v62 = vsel %vm3408_vm1, %v3415_v16, %v3416_v61  ;;  %15667 = vst [vmem:[#allocation8_spill] sm:$0xff] %v10547_v39  ;;  %v10556_v16 = vld [vmem:[#allocation2 + $0xb0] sm:$0xff]  ;;  %v15671_v32 = vld [vmem:[#allocation143_spill] sm:$0xff] }
 0x2ad   : > { %v1302_v50 = vpop.permute.xlu0 %1301  ;;  %7918 = vmatprep.mubr.msk.bf16.mxu1 %vm2219_vm15, %v3417_v62 }
 0x2ae   : > { %2816 = vrot.lane.b32.xlu1 %v15659_v25, %s8475_s15 }
 0x2af   : > { %2884 = vrot.lane.b32.xlu0 %v10521_v26, %s8476_s22 }
 0x2b0   : > { %v2875_v37 = vpop.permute.xlu1 %2874 }
 0x2b1   : > { %v3327_v19 = vsel %vm1870_vm13, %v3263_v4, %v2875_v37  ;;  %v10538_v31 = vpop.permute.xlu0 %2490  ;;  %v15672_v37 = vld [vmem:[#allocation11_spill] sm:$0xff] }
 0x2b2   : > { %v3419_v23 = vrot.slane %v3327_v19, 3  ;;  %2820 = vrot.lane.b32.xlu1 %v15666_v42, %s8475_s15 }
 0x2b3   : > { %2502 = vrot.lane.b32.xlu0 %v15629_v12, %s8469_s9  ;;  %v15668_v12 = vld [vmem:[#allocation58_spill] sm:$0xff] }
 0x2b4   : > { %v1304_v43 = vpop.permute.xlu1 %1303  ;;  %v3420_v2 = vsel %vm3408_vm1, %v3418_v10, %v3419_v23  ;;  %v1433_v61 = vsel %vm314_vm0, %v10556_v16, %v15668_v12  ;;  %v10579_v23 = vld [vmem:[#allocation2 + $0xb8] sm:$0xff] }
 0x2b5   : > { %v10549_v60 = vpop.permute.xlu0 %2599  ;;  %7919 = vmatmul.mubr.msk.bf16.gmra.mrb[4].mxu1 %vm2219_vm15, %v3420_v2  ;;  %v1498_v62 = vsel %vm1480_vm7, %v1433_v61, %v15669_v36  ;;  %v15674_v2 = vld [vmem:[#allocation59_spill] sm:$0xff]  ;;  %v15675_v61 = vld [vmem:[#allocation60_spill] sm:$0xff] }
 0x2b6   : > { %2886 = vrot.lane.b32.xlu1 %v10502_v63, %s8476_s22  ;;  %v1563_v28 = vsel %vm1545_vm8, %v1498_v62, %v15670_v11  ;;  %v15676_v36 = vld [vmem:[#allocation224_spill] sm:$0xff] }
 0x2b7   : > { %2888 = vrot.lane.b32.xlu0 %v10547_v39, %s8476_s22  ;;  %v1628_v4 = vsel %vm1610_vm9, %v1563_v28, %v15671_v32  ;;  %v1437_v62 = vsel %vm314_vm0, %v15676_v36, %v15675_v61  ;;  %v15677_v28 = vld [vmem:[#allocation89_spill] sm:$0xff] }
 0x2b8   : > { %v10561_v57 = vpop.permute.xlu1 %2492  ;;  %v1693_v17 = vsel %vm1675_vm10, %v1628_v4, %v15673_v51 }
 0x2b9   : > { %v1306_v5 = vpop.permute.xlu0 %1305  ;;  %v1758_v19 = vsel %vm1740_vm11, %v1693_v17, %v15663_v30  ;;  %v15679_v17 = vld [vmem:[#allocation122_spill] sm:$0xff] }
 0x2ba   : > { %2504 = vrot.lane.b32.xlu1 %v15630_v46, %s8469_s9  ;;  %v1435_v46 = vsel %vm314_vm0, %v10579_v23, %v15674_v2  ;;  %v1823_v12 = vsel %vm1805_vm12, %v1758_v19, %v1302_v50  ;;  %v15680_v2 = vld [vmem:[#allocation121_spill] sm:$0xff] }
 0x2bb   : > { %1317 = vrot.lane.b32.xlu0 %v15672_v37, %s8475_s15  ;;  %v1500_v32 = vsel %vm1480_vm7, %v1435_v46, %v15677_v28  ;;  %v15678_v37 = vld [vmem:[#allocation88_spill] sm:$0xff]  ;;  %v15682_v46 = vld [vmem:[#allocation145_spill] sm:$0xff] }
 0x2bc   : > { %v10575_v14 = vpop.permute.xlu1 %2601  ;;  %v1502_v51 = vsel %vm1480_vm7, %v1437_v62, %v15678_v37  ;;  %v1565_v50 = vsel %vm1545_vm8, %v1500_v32, %v15679_v17  ;;  %v15684_v37 = vld [vmem:[#allocation14_spill] sm:$0xff] }
 0x2bd   : > { %v1369_v10 = vpop.permute.xlu0 %1368  ;;  %v1567_v52 = vsel %vm1545_vm8, %v1502_v51, %v15680_v2  ;;  %v1630_v61 = vsel %vm1610_vm9, %v1565_v50, %v15681_v27  ;;  %v15685_v32 = vld [vmem:[#allocation170_spill] sm:$0xff]  ;;  %v10617_v27 = vld [vmem:[#allocation2 + $0xc8] sm:$0xff] }
 0x2be   : > { %2890 = vrot.lane.b32.xlu1 %v10535_v54, %s8476_s22  ;;  %v1888_v4 = vsel %vm1870_vm13, %v1823_v12, %v1369_v10  ;;  %v1632_v10 = vsel %vm1610_vm9, %v1567_v52, %v15682_v46  ;;  %v15683_v12 = vld [vmem:[#allocation171_spill] sm:$0xff]  ;;  %v15686_v52 = vld [vmem:[#allocation61_spill] sm:$0xff] }
 0x2bf   : > { %2506 = vrot.lane.b32.xlu0 %v15632_v13, %s8469_s9  ;;  %v1695_v13 = vsel %vm1675_vm10, %v1630_v61, %v15683_v12  ;;  %v1996_v28 = vshrl.u32 %v1888_v4, 16  ;;  %v1999_v62 = vshll.u32 %v1888_v4, 16  ;;  %v1697_v48 = vsel %vm1675_vm10, %v1632_v10, %v15685_v32  ;;  %v15687_v61 = vld [vmem:[#allocation204_spill] sm:$0xff] }
 0x2c0   : > { %v1308_v19 = vpop.permute.xlu1 %1307  ;;  %v1760_v51 = vsel %vm1740_vm11, %v1695_v13, %v15664_v45  ;;  %v1439_v50 = vsel %vm314_vm0, %v10617_v27, %v15686_v52  ;;  %v1762_v46 = vsel %vm1740_vm11, %v1697_v48, %v15687_v61  ;;  %v15690_v52 = vld [vmem:[#allocation13_spill] sm:$0xff] }
 0x2c1   : > { %v10603_v36 = vpop.permute.xlu0 %2603  ;;  %v1825_v4 = vsel %vm1805_vm12, %v1760_v51, %v1304_v43  ;;  %v1827_v13 = vsel %vm1805_vm12, %v1762_v46, %v1306_v5  ;;  %v1998_v30 = vrot.slane %v1996_v28, 3  ;;  %v2001_v45 = vrot.slane %v1999_v62, 4  ;;  %v15689_v43 = vld [vmem:[#allocation28_spill] sm:$0xff]  ;;  %v15692_v62 = vld [vmem:[#allocation22_spill] sm:$0xff] }
 0x2c2   : > { %1319 = vrot.lane.b32.xlu1 %v15684_v37, %s8475_s15  ;;  %v15688_v37 = vld [vmem:[#allocation91_spill] sm:$0xff] }
 0x2c3   : > { %2615 = vrot.lane.b32.xlu0 %v10302_v55, %s8470_s10  ;;  %v1504_v10 = vsel %vm1480_vm7, %v1439_v50, %v15688_v37  ;;  %v15691_v50 = vld [vmem:[#allocation148_spill] sm:$0xff] }
 0x2c4   : > { %v1371_v12 = vpop.permute.xlu1 %1370  ;;  %v1569_v51 = vsel %vm1545_vm8, %v1504_v10, %v15689_v43 }
 0x2c5   : > { %v1890_v32 = vsel %vm1870_vm13, %v1825_v4, %v1371_v12  ;;  %v1373_v18 = vpop.permute.xlu0 %1372  ;;  %v1634_v5 = vsel %vm1610_vm9, %v1569_v51, %v15691_v50 }
 0x2c6   : > { %v2003_v58 = vshrl.u32 %v1890_v32, 16  ;;  %v2006_v49 = vshll.u32 %v1890_v32, 16  ;;  %2508 = vrot.lane.b32.xlu1 %v15635_v0, %s8469_s9  ;;  %v1892_v48 = vsel %vm1870_vm13, %v1827_v13, %v1373_v18  ;;  %v1699_v12 = vsel %vm1675_vm10, %v1634_v5, %v15692_v62  ;;  %v15693_v18 = vld [vmem:[#allocation207_spill] sm:$0xff] }
 0x2c7   : > { %1321 = vrot.lane.b32.xlu0 %v15690_v52, %s8475_s15  ;;  %v2002_v0 = vor.u32 %v2001_v45, %v1998_v30  ;;  %v2011_v21 = vshrl.u32 %v1892_v48, 16  ;;  %v2014_v10 = vshll.u32 %v1892_v48, 16  ;;  %v1764_v13 = vsel %vm1740_vm11, %v1699_v12, %v15693_v18 }
 0x2c8   : > { %v2005_v4 = vrot.slane %v2003_v58, 3  ;;  %v2008_v46 = vrot.slane %v2006_v49, 4  ;;  %v10638_v28 = vpop.permute.xlu1 %2605  ;;  %v1829_v58 = vsel %vm1805_vm12, %v1764_v13, %v1308_v19 }
 0x2c9   : > { %v2664_v37 = vpop.permute.xlu0 %2663  ;;  %v2013_v45 = vrot.slane %v2011_v21, 3  ;;  %v2016_v48 = vrot.slane %v2014_v10, 4  ;;  %v15695_v21 = vld [vmem:[#allocation42_spill] sm:$0xff] }
 0x2ca   : > { %v2009_v32 = vor.u32 %v2008_v46, %v2005_v4  ;;  %2617 = vrot.lane.b32.xlu1 %v10283_v3, %s8470_s10  ;;  %v15694_v4 = vld [vmem:[#allocation16_spill] sm:$0xff]  ;;  %v15807_v3 = vld [vmem:[#allocation102_spill] sm:$0xff] }
 0x2cb   : > { %1384 = vrot.lane.b32.xlu0 %v15661_v44, %s8476_s22 }
 0x2cc   : > { %v1375_v49 = vpop.permute.xlu1 %1374  ;;  %v2010_v51 = vsel %vm1935_vm14, %v2002_v0, %v2009_v32  ;;  %v2017_v0 = vor.u32 %v2016_v48, %v2013_v45  ;;  %v8328_v45 = vld [vmem:[#allocation2 + $0xa0] sm:$0xff] }
 0x2cd   : > { %v1894_v52 = vsel %vm1870_vm13, %v1829_v58, %v1375_v49  ;;  %v10651_v30 = vpop.permute.xlu0 %2667  ;;  %7880 = vmatprep.mubr.msk.bf16.mxu0 %vm2219_vm15, %v2010_v51  ;;  %v2943_v48 = vsel %vm314_vm0, %v8328_v45, %v10479_v29 }
 0x2ce   : > { %v2018_v50 = vshrl.u32 %v1894_v52, 16  ;;  %v2021_v5 = vshll.u32 %v1894_v52, 16  ;;  %1323 = vrot.lane.b32.xlu1 %v15694_v4, %s8475_s15  ;;  %v15696_v52 = vld [vmem:[#allocation41_spill] sm:$0xff] }
 0x2cf   : > { %2619 = vrot.lane.b32.xlu0 %v10328_v56, %s8470_s10  ;;  %v15805_v56 = vld [vmem:[#allocation184_spill] sm:$0xff] }
 0x2d0   : > { %v2020_v19 = vrot.slane %v2018_v50, 3  ;;  %v2023_v46 = vrot.slane %v2021_v5, 4  ;;  %v2666_v62 = vpop.permute.xlu1 %2665  ;;  %v3007_v5 = vsel %vm1480_vm7, %v2943_v48, %v10549_v60  ;;  %v2947_v48 = vsel %vm314_vm0, %v10556_v16, %v10538_v31 }
 0x2d1   : > { %v2734_v12 = vpop.permute.xlu0 %2733  ;;  %v3062_v29 = vsel %vm1545_vm8, %v3007_v5, %v15670_v11  ;;  %v15715_v11 = vld [vmem:[#allocation26_spill] sm:$0xff] }
 0x2d2   : > { %v2024_v32 = vor.u32 %v2023_v46, %v2020_v19  ;;  %1386 = vrot.lane.b32.xlu1 %v15666_v42, %s8476_s22  ;;  %v8329_v19 = vld [vmem:[#allocation2 + $0xa8] sm:$0xff]  ;;  %v3103_v60 = vsel %vm1610_vm9, %v3062_v29, %v2664_v37 }
 0x2d3   : > { %1388 = vrot.lane.b32.xlu0 %v15695_v21, %s8476_s22  ;;  %v2945_v46 = vsel %vm314_vm0, %v8329_v19, %v10516_v59  ;;  %v3167_v59 = vsel %vm1675_vm10, %v3103_v60, %v2734_v12  ;;  %v3011_v19 = vsel %vm1480_vm7, %v2947_v48, %v10603_v36  ;;  %v10724_v60 = vld [vmem:[#allocation2 + $0x128] sm:$0xff] }
 0x2d4   : > { %v2670_v10 = vpop.permute.xlu1 %2669  ;;  %v2025_v13 = vsel %vm1935_vm14, %v2017_v0, %v2024_v32  ;;  %v3009_v0 = vsel %vm1480_vm7, %v2945_v46, %v10575_v14  ;;  %v3222_v12 = vsel %vm1740_vm11, %v3167_v59, %v15687_v61  ;;  %v15717_v61 = vld [vmem:[#allocation150_spill] sm:$0xff] }
 0x2d5   : > { %v2738_v58 = vpop.permute.xlu0 %2737  ;;  %7881 = vmatmul.mubr.msk.bf16.gmra.mrb[8].mxu0 %vm2219_vm15, %v2025_v13  ;;  %v3063_v45 = vsel %vm1545_vm8, %v3009_v0, %v15679_v17  ;;  %v15714_v17 = vld [vmem:[#allocation92_spill] sm:$0xff] }
 0x2d6   : > { %2621 = vrot.lane.b32.xlu1 %v10316_v8, %s8470_s10  ;;  %v3105_v14 = vsel %vm1610_vm9, %v3063_v45, %v2666_v62  ;;  %v2949_v62 = vsel %vm314_vm0, %v10579_v23, %v10561_v57 }
 0x2d7   : > { %2679 = vrot.lane.b32.xlu0 %v15658_v1, %s8472_s12  ;;  %v3013_v31 = vsel %vm1480_vm7, %v2949_v62, %v10638_v28  ;;  %v10727_v28 = vrot.slane %v10724_v60, 2 }
 0x2d8   : > { %v2736_v49 = vpop.permute.xlu1 %2735 }
 0x2d9   : > { %v2807_v51 = vpop.permute.xlu0 %2806  ;;  %v3169_v37 = vsel %vm1675_vm10, %v3105_v14, %v2736_v49  ;;  %v3064_v49 = vsel %vm1545_vm8, %v3011_v19, %v15680_v2  ;;  %15697 = vst [vmem:[#allocation34_spill] sm:$0xff] %v10727_v28  ;;  %v3065_v14 = vsel %vm1545_vm8, %v3013_v31, %v15689_v43  ;;  %v10804_v43 = vld [vmem:[#allocation2 + $0xd8] sm:$0xff] }
 0x2da   : > { %1390 = vrot.lane.b32.xlu1 %v15696_v52, %s8476_s22  ;;  %v3265_v0 = vsel %vm1805_vm12, %v3222_v12, %v2807_v51  ;;  %v3223_v16 = vsel %vm1740_vm11, %v3169_v37, %v15693_v18  ;;  %v10721_v51 = vld [vmem:[#allocation2 + $0x120] sm:$0xff]  ;;  %v3109_v19 = vsel %vm1610_vm9, %v3065_v14, %v2670_v10  ;;  %v8333_v14 = vld [vmem:[#allocation2 + $0x138] sm:$0xff] }
 0x2db   : > { %2683 = vrot.lane.b32.xlu0 %v15661_v44, %s8472_s12  ;;  %v2571_v29 = vrot.slane %v10721_v51, 2  ;;  %v15698_v12 = vld [vmem:[#allocation44_spill] sm:$0xff] }
 0x2dc   : > { %v2740_v50 = vpop.permute.xlu1 %2739 }
 0x2dd   : > { %v2811_v4 = vpop.permute.xlu0 %2810  ;;  %v10746_v31 = vsel %vm2534_vm5, %v2571_v29, %v10727_v28 }
 0x2de   : > { %2681 = vrot.lane.b32.xlu1 %v15659_v25, %s8472_s12  ;;  %15699 = vst [vmem:[#allocation33_spill] sm:$0xff] %v10746_v31 }
 0x2df   : > { %2749 = vrot.lane.b32.xlu0 %v10521_v26, %s8473_s13 }
 0x2e0   : > { %v2809_v32 = vpop.permute.xlu1 %2808 }
 0x2e1   : > { %v2877_v13 = vpop.permute.xlu0 %2876  ;;  %v3267_v57 = vsel %vm1805_vm12, %v3223_v16, %v2809_v32 }
 0x2e2   : > { %2685 = vrot.lane.b32.xlu1 %v15666_v42, %s8472_s12  ;;  %v3329_v36 = vsel %vm1870_vm13, %v3265_v0, %v2877_v13  ;;  %v3107_v13 = vsel %vm1610_vm9, %v3064_v49, %v10651_v30  ;;  %v3173_v30 = vsel %vm1675_vm10, %v3109_v19, %v2740_v50  ;;  %v15701_v50 = vld [vmem:[#allocation209_spill] sm:$0xff] }
 0x2e3   : > { %2753 = vrot.lane.b32.xlu0 %v10547_v39, %s8473_s13  ;;  %v3171_v32 = vsel %vm1675_vm10, %v3107_v13, %v2738_v58  ;;  %v3421_v48 = vrot.slane %v3329_v36, 3  ;;  %v15700_v58 = vld [vmem:[#allocation206_spill] sm:$0xff]  ;;  %v3225_v49 = vsel %vm1740_vm11, %v3173_v30, %v15701_v50  ;;  %v15703_v30 = vld [vmem:[#allocation43_spill] sm:$0xff] }
 0x2e4   : > { %v2813_v5 = vpop.permute.xlu1 %2812  ;;  %v3224_v16 = vsel %vm1740_vm11, %v3171_v32, %v15700_v58  ;;  %v8332_v13 = vld [vmem:[#allocation2 + $0x130] sm:$0xff]  ;;  %v10760_v32 = vrot.slane %v8333_v14, 2 }
 0x2e5   : > { %v10703_v46 = vpop.permute.xlu0 %2494  ;;  %v3269_v10 = vsel %vm1805_vm12, %v3224_v16, %v2811_v4 }
 0x2e6   : > { %2751 = vrot.lane.b32.xlu1 %v10502_v63, %s8473_s13  ;;  %15702 = vst [vmem:[#allocation36_spill] sm:$0xff] %v10760_v32 }
 0x2e7   : > { %2822 = vrot.lane.b32.xlu0 %v15695_v21, %s8475_s15 }
 0x2e8   : > { %v2879_v23 = vpop.permute.xlu1 %2878 }
 0x2e9   : > { %v3331_v45 = vsel %vm1870_vm13, %v3267_v57, %v2879_v23  ;;  %v2881_v59 = vpop.permute.xlu0 %2880  ;;  %v3271_v23 = vsel %vm1805_vm12, %v3225_v49, %v2813_v5 }
 0x2ea   : > { %v3422_v37 = vrot.slane %v3331_v45, 3  ;;  %2755 = vrot.lane.b32.xlu1 %v10535_v54, %s8473_s13  ;;  %v3333_v57 = vsel %vm1870_vm13, %v3269_v10, %v2881_v59  ;;  %v2574_v45 = vrot.slane %v8332_v13, 2  ;;  %v10781_v10 = vld [vmem:[#allocation2 + $0xd0] sm:$0xff] }
 0x2eb   : > { %2826 = vrot.lane.b32.xlu0 %v15698_v12, %s8475_s15 }
 0x2ec   : > { %v10741_v62 = vpop.permute.xlu1 %2496  ;;  %v3423_v0 = vsel %vm3408_vm1, %v3421_v48, %v3422_v37  ;;  %v3424_v37 = vrot.slane %v3333_v57, 3 }
 0x2ed   : > { %v1310_v36 = vpop.permute.xlu0 %1309  ;;  %7922 = vmatprep.mubr.msk.bf16.mxu1 %vm2219_vm15, %v3423_v0  ;;  %v10772_v0 = vsel %vm2534_vm5, %v2574_v45, %v10760_v32  ;;  %v15707_v45 = vld [vmem:[#allocation123_spill] sm:$0xff] }
 0x2ee   : > { %2824 = vrot.lane.b32.xlu1 %v15696_v52, %s8475_s15  ;;  %15704 = vst [vmem:[#allocation35_spill] sm:$0xff] %v10772_v0 }
 0x2ef   : > { %2892 = vrot.lane.b32.xlu0 %v10746_v31, %s8476_s22 }
 0x2f0   : > { %v2883_v29 = vpop.permute.xlu1 %2882 }
 0x2f1   : > { %v3335_v4 = vsel %vm1870_vm13, %v3271_v23, %v2883_v29  ;;  %v10763_v48 = vpop.permute.xlu0 %2498  ;;  %v15706_v23 = vld [vmem:[#allocation90_spill] sm:$0xff] }
 0x2f2   : > { %v3425_v19 = vrot.slane %v3335_v4, 3  ;;  %2828 = vrot.lane.b32.xlu1 %v15703_v30, %s8475_s15  ;;  %v15708_v4 = vld [vmem:[#allocation147_spill] sm:$0xff] }
 0x2f3   : > { %2510 = vrot.lane.b32.xlu0 %v15658_v1, %s8469_s9  ;;  %v15705_v1 = vld [vmem:[#allocation62_spill] sm:$0xff] }
 0x2f4   : > { %v1312_v59 = vpop.permute.xlu1 %1311  ;;  %v3426_v5 = vsel %vm3408_vm1, %v3424_v37, %v3425_v19  ;;  %v1441_v49 = vsel %vm314_vm0, %v10781_v10, %v15705_v1  ;;  %v15709_v19 = vld [vmem:[#allocation15_spill] sm:$0xff] }
 0x2f5   : > { %v10774_v16 = vpop.permute.xlu0 %2607  ;;  %7923 = vmatmul.mubr.msk.bf16.gmra.mrb[8].mxu1 %vm2219_vm15, %v3426_v5  ;;  %v1506_v29 = vsel %vm1480_vm7, %v1441_v49, %v15706_v23  ;;  %v15710_v5 = vld [vmem:[#allocation172_spill] sm:$0xff] }
 0x2f6   : > { %2894 = vrot.lane.b32.xlu1 %v10727_v28, %s8476_s22  ;;  %v1571_v14 = vsel %vm1545_vm8, %v1506_v29, %v15707_v45  ;;  %v15711_v29 = vld [vmem:[#allocation63_spill] sm:$0xff] }
 0x2f7   : > { %2896 = vrot.lane.b32.xlu0 %v10772_v0, %s8476_s22  ;;  %v1636_v37 = vsel %vm1610_vm9, %v1571_v14, %v15708_v4  ;;  %v15712_v4 = vld [vmem:[#allocation64_spill] sm:$0xff] }
 0x2f8   : > { %v10786_v57 = vpop.permute.xlu1 %2500  ;;  %v1701_v1 = vsel %vm1675_vm10, %v1636_v37, %v15710_v5  ;;  %v1445_v37 = vsel %vm314_vm0, %v10277_v9, %v15712_v4 }
 0x2f9   : > { %v1314_v13 = vpop.permute.xlu0 %1313  ;;  %v1766_v49 = vsel %vm1740_vm11, %v1701_v1, %v15700_v58  ;;  %v15716_v58 = vld [vmem:[#allocation124_spill] sm:$0xff] }
 0x2fa   : > { %2512 = vrot.lane.b32.xlu1 %v15659_v25, %s8469_s9  ;;  %v1443_v25 = vsel %vm314_vm0, %v10804_v43, %v15711_v29  ;;  %v1831_v14 = vsel %vm1805_vm12, %v1766_v49, %v1310_v36  ;;  %v1510_v29 = vsel %vm1480_vm7, %v1445_v37, %v15714_v17  ;;  %v15720_v37 = vld [vmem:[#allocation18_spill] sm:$0xff] }
 0x2fb   : > { %1325 = vrot.lane.b32.xlu0 %v15709_v19, %s8475_s15  ;;  %v15713_v19 = vld [vmem:[#allocation93_spill] sm:$0xff]  ;;  %v1575_v18 = vsel %vm1545_vm8, %v1510_v29, %v15716_v58 }
 0x2fc   : > { %v10800_v2 = vpop.permute.xlu1 %2609  ;;  %v1508_v5 = vsel %vm1480_vm7, %v1443_v25, %v15713_v19  ;;  %v15718_v25 = vld [vmem:[#allocation149_spill] sm:$0xff] }
 0x2fd   : > { %v1377_v23 = vpop.permute.xlu0 %1376  ;;  %v1573_v36 = vsel %vm1545_vm8, %v1508_v5, %v15715_v11  ;;  %v15721_v5 = vld [vmem:[#allocation174_spill] sm:$0xff] }
 0x2fe   : > { %2898 = vrot.lane.b32.xlu1 %v10760_v32, %s8476_s22  ;;  %v1896_v1 = vsel %vm1870_vm13, %v1831_v14, %v1377_v23  ;;  %v1638_v9 = vsel %vm1610_vm9, %v1573_v36, %v15717_v61  ;;  %v1640_v23 = vsel %vm1610_vm9, %v1575_v18, %v15718_v25  ;;  %v15719_v14 = vld [vmem:[#allocation175_spill] sm:$0xff]  ;;  %v15722_v61 = vld [vmem:[#allocation66_spill] sm:$0xff] }
 0x2ff   : > { %2514 = vrot.lane.b32.xlu0 %v15661_v44, %s8469_s9  ;;  %v1703_v44 = vsel %vm1675_vm10, %v1638_v9, %v15719_v14  ;;  %v2026_v19 = vshrl.u32 %v1896_v1, 16  ;;  %v2029_v17 = vshll.u32 %v1896_v1, 16  ;;  %v1705_v35 = vsel %vm1675_vm10, %v1640_v23, %v15721_v5  ;;  %v15723_v9 = vld [vmem:[#allocation208_spill] sm:$0xff]  ;;  %v15724_v14 = vld [vmem:[#allocation95_spill] sm:$0xff] }
 0x300   : > { %v1316_v49 = vpop.permute.xlu1 %1315  ;;  %v1768_v29 = vsel %vm1740_vm11, %v1703_v44, %v15701_v50  ;;  %v1447_v18 = vsel %vm314_vm0, %v10280_v7, %v15722_v61  ;;  %v1770_v1 = vsel %vm1740_vm11, %v1705_v35, %v15723_v9  ;;  %v15725_v7 = vld [vmem:[#allocation27_spill] sm:$0xff]  ;;  %v15727_v61 = vld [vmem:[#allocation152_spill] sm:$0xff] }
 0x301   : > { %v10828_v4 = vpop.permute.xlu0 %2611  ;;  %v1833_v36 = vsel %vm1805_vm12, %v1768_v29, %v1312_v59  ;;  %v1835_v23 = vsel %vm1805_vm12, %v1770_v1, %v1314_v13  ;;  %v2028_v50 = vrot.slane %v2026_v19, 3  ;;  %v15726_v29 = vld [vmem:[#allocation17_spill] sm:$0xff] }
 0x302   : > { %1327 = vrot.lane.b32.xlu1 %v15720_v37, %s8475_s15  ;;  %v1512_v37 = vsel %vm1480_vm7, %v1447_v18, %v15724_v14 }
 0x303   : > { %2623 = vrot.lane.b32.xlu0 %v10521_v26, %s8470_s10  ;;  %v2031_v26 = vrot.slane %v2029_v17, 4  ;;  %v1577_v59 = vsel %vm1545_vm8, %v1512_v37, %v15725_v7  ;;  %v15728_v17 = vld [vmem:[#allocation178_spill] sm:$0xff] }
 0x304   : > { %v1379_v25 = vpop.permute.xlu1 %1378  ;;  %v1642_v13 = vsel %vm1610_vm9, %v1577_v59, %v15727_v61 }
 0x305   : > { %v1898_v44 = vsel %vm1870_vm13, %v1833_v36, %v1379_v25  ;;  %v1381_v5 = vpop.permute.xlu0 %1380  ;;  %v1707_v1 = vsel %vm1675_vm10, %v1642_v13, %v15728_v17 }
 0x306   : > { %v2033_v40 = vshrl.u32 %v1898_v44, 16  ;;  %v2036_v53 = vshll.u32 %v1898_v44, 16  ;;  %2516 = vrot.lane.b32.xlu1 %v15666_v42, %s8469_s9  ;;  %v1900_v35 = vsel %vm1870_vm13, %v1835_v23, %v1381_v5  ;;  %v2032_v42 = vor.u32 %v2031_v26, %v2028_v50  ;;  %v15729_v23 = vld [vmem:[#allocation211_spill] sm:$0xff] }
 0x307   : > { %1329 = vrot.lane.b32.xlu0 %v15726_v29, %s8475_s15  ;;  %v2041_v44 = vshrl.u32 %v1900_v35, 16  ;;  %v2044_v37 = vshll.u32 %v1900_v35, 16  ;;  %v1772_v5 = vsel %vm1740_vm11, %v1707_v1, %v15729_v23 }
 0x308   : > { %v2035_v18 = vrot.slane %v2033_v40, 3  ;;  %v2038_v36 = vrot.slane %v2036_v53, 4  ;;  %v10861_v19 = vpop.permute.xlu1 %2613  ;;  %v1837_v53 = vsel %vm1805_vm12, %v1772_v5, %v1316_v49 }
 0x309   : > { %v2672_v25 = vpop.permute.xlu0 %2671  ;;  %v2043_v50 = vrot.slane %v2041_v44, 3  ;;  %v2046_v35 = vrot.slane %v2044_v37, 4  ;;  %v15731_v44 = vld [vmem:[#allocation47_spill] sm:$0xff] }
 0x30a   : > { %v2039_v14 = vor.u32 %v2038_v36, %v2035_v18  ;;  %2625 = vrot.lane.b32.xlu1 %v10502_v63, %s8470_s10  ;;  %v15730_v18 = vld [vmem:[#allocation20_spill] sm:$0xff] }
 0x30b   : > { %1392 = vrot.lane.b32.xlu0 %v15698_v12, %s8476_s22 }
 0x30c   : > { %v1383_v40 = vpop.permute.xlu1 %1382  ;;  %v2040_v59 = vsel %vm1935_vm14, %v2032_v42, %v2039_v14  ;;  %v2047_v42 = vor.u32 %v2046_v35, %v2043_v50  ;;  %v8336_v50 = vld [vmem:[#allocation2 + $0xc0] sm:$0xff] }
 0x30d   : > { %v1902_v29 = vsel %vm1870_vm13, %v1837_v53, %v1383_v40  ;;  %v10874_v26 = vpop.permute.xlu0 %2675  ;;  %7884 = vmatprep.mubr.msk.bf16.mxu0 %vm2219_vm15, %v2040_v59  ;;  %v2951_v35 = vsel %vm314_vm0, %v8336_v50, %v10703_v46 }
 0x30e   : > { %v2048_v61 = vshrl.u32 %v1902_v29, 16  ;;  %v2051_v13 = vshll.u32 %v1902_v29, 16  ;;  %1331 = vrot.lane.b32.xlu1 %v15730_v18, %s8475_s15  ;;  %v15732_v29 = vld [vmem:[#allocation45_spill] sm:$0xff] }
 0x30f   : > { %2627 = vrot.lane.b32.xlu0 %v10547_v39, %s8470_s10 }
 0x310   : > { %v2050_v49 = vrot.slane %v2048_v61, 3  ;;  %v2053_v36 = vrot.slane %v2051_v13, 4  ;;  %v2674_v17 = vpop.permute.xlu1 %2673  ;;  %v3015_v13 = vsel %vm1480_vm7, %v2951_v35, %v10774_v16 }
 0x311   : > { %v2742_v1 = vpop.permute.xlu0 %2741  ;;  %v3066_v46 = vsel %vm1545_vm8, %v3015_v13, %v15707_v45  ;;  %v15756_v45 = vld [vmem:[#allocation32_spill] sm:$0xff] }
 0x312   : > { %v2054_v14 = vor.u32 %v2053_v36, %v2050_v49  ;;  %1394 = vrot.lane.b32.xlu1 %v15703_v30, %s8476_s22  ;;  %v2953_v49 = vsel %vm314_vm0, %v10617_v27, %v10741_v62  ;;  %v3111_v16 = vsel %vm1610_vm9, %v3066_v46, %v2672_v25  ;;  %v2955_v62 = vsel %vm314_vm0, %v10781_v10, %v10763_v48  ;;  %v10950_v46 = vld [vmem:[#allocation2 + $0x148] sm:$0xff] }
 0x313   : > { %1396 = vrot.lane.b32.xlu0 %v15731_v44, %s8476_s22  ;;  %v3017_v36 = vsel %vm1480_vm7, %v2953_v49, %v10800_v2  ;;  %v3175_v27 = vsel %vm1675_vm10, %v3111_v16, %v2742_v1  ;;  %v3019_v35 = vsel %vm1480_vm7, %v2955_v62, %v10828_v4  ;;  %v10953_v16 = vrot.slane %v10950_v46, 2 }
 0x314   : > { %v2678_v37 = vpop.permute.xlu1 %2677  ;;  %v2055_v5 = vsel %vm1935_vm14, %v2047_v42, %v2054_v14  ;;  %v3226_v1 = vsel %vm1740_vm11, %v3175_v27, %v15723_v9 }
 0x315   : > { %v2746_v53 = vpop.permute.xlu0 %2745  ;;  %7885 = vmatmul.mubr.msk.bf16.gmra.mrb[12].mxu0 %vm2219_vm15, %v2055_v5  ;;  %v3067_v5 = vsel %vm1545_vm8, %v3017_v36, %v15715_v11  ;;  %v10947_v36 = vld [vmem:[#allocation2 + $0x140] sm:$0xff]  ;;  %15734 = vst [vmem:[#allocation82_spill] sm:$0xff] %v10953_v16  ;;  %v15755_v11 = vld [vmem:[#allocation29_spill] sm:$0xff] }
 0x316   : > { %2629 = vrot.lane.b32.xlu1 %v10535_v54, %s8470_s10  ;;  %v3113_v2 = vsel %vm1610_vm9, %v3067_v5, %v2674_v17  ;;  %v2957_v17 = vsel %vm314_vm0, %v10804_v43, %v10786_v57 }
 0x317   : > { %2687 = vrot.lane.b32.xlu0 %v15695_v21, %s8472_s12  ;;  %v3021_v48 = vsel %vm1480_vm7, %v2957_v17, %v10861_v19  ;;  %v2577_v19 = vrot.slane %v10947_v36, 2 }
 0x318   : > { %v2744_v40 = vpop.permute.xlu1 %2743 }
 0x319   : > { %v2815_v59 = vpop.permute.xlu0 %2814  ;;  %v3177_v25 = vsel %vm1675_vm10, %v3113_v2, %v2744_v40  ;;  %v3068_v40 = vsel %vm1545_vm8, %v3019_v35, %v15716_v58  ;;  %v11036_v58 = vld [vmem:[#allocation2 + $0xf8] sm:$0xff] }
 0x31a   : > { %1398 = vrot.lane.b32.xlu1 %v15732_v29, %s8476_s22  ;;  %v3273_v49 = vsel %vm1805_vm12, %v3226_v1, %v2815_v59  ;;  %v3227_v10 = vsel %vm1740_vm11, %v3177_v25, %v15729_v23 }
 0x31b   : > { %2691 = vrot.lane.b32.xlu0 %v15698_v12, %s8472_s12 }
 0x31c   : > { %v2748_v61 = vpop.permute.xlu1 %2747 }
 0x31d   : > { %v2819_v18 = vpop.permute.xlu0 %2818 }
 0x31e   : > { %2689 = vrot.lane.b32.xlu1 %v15696_v52, %s8472_s12 }
 0x31f   : > { %2757 = vrot.lane.b32.xlu0 %v10746_v31, %s8473_s13 }
 0x320   : > { %v2817_v42 = vpop.permute.xlu1 %2816 }
 0x321   : > { %v2885_v14 = vpop.permute.xlu0 %2884  ;;  %v3275_v43 = vsel %vm1805_vm12, %v3227_v10, %v2817_v42  ;;  %v3069_v42 = vsel %vm1545_vm8, %v3021_v48, %v15725_v7  ;;  %v10978_v48 = vsel %vm2534_vm5, %v2577_v19, %v10953_v16  ;;  %v15754_v7 = vld [vmem:[#allocation96_spill] sm:$0xff] }
 0x322   : > { %2693 = vrot.lane.b32.xlu1 %v15703_v30, %s8472_s12  ;;  %v3337_v4 = vsel %vm1870_vm13, %v3273_v49, %v2885_v14  ;;  %v3115_v14 = vsel %vm1610_vm9, %v3068_v40, %v10874_v26  ;;  %v3117_v17 = vsel %vm1610_vm9, %v3069_v42, %v2678_v37  ;;  %v15737_v26 = vld [vmem:[#allocation50_spill] sm:$0xff]  ;;  %15739 = vst [vmem:[#allocation56_spill] sm:$0xff] %v10978_v48 }
 0x323   : > { %2761 = vrot.lane.b32.xlu0 %v10772_v0, %s8473_s13  ;;  %v3179_v62 = vsel %vm1675_vm10, %v3115_v14, %v2746_v53  ;;  %v3427_v25 = vrot.slane %v3337_v4, 3  ;;  %v3181_v10 = vsel %vm1675_vm10, %v3117_v17, %v2748_v61  ;;  %v15740_v4 = vld [vmem:[#allocation210_spill] sm:$0xff]  ;;  %v15741_v61 = vld [vmem:[#allocation213_spill] sm:$0xff] }
 0x324   : > { %v2821_v50 = vpop.permute.xlu1 %2820  ;;  %v3229_v14 = vsel %vm1740_vm11, %v3181_v10, %v15741_v61  ;;  %v15743_v10 = vld [vmem:[#allocation48_spill] sm:$0xff] }
 0x325   : > { %v10927_v13 = vpop.permute.xlu0 %2502  ;;  %v3279_v19 = vsel %vm1805_vm12, %v3229_v14, %v2821_v50 }
 0x326   : > { %2759 = vrot.lane.b32.xlu1 %v10727_v28, %s8473_s13 }
 0x327   : > { %2830 = vrot.lane.b32.xlu0 %v15731_v44, %s8475_s15 }
 0x328   : > { %v10945_v57 = vpop.f32.mrb[0].mxu0  ;;  %v2887_v59 = vpop.permute.xlu1 %2886 }
 0x329   : > { %15733 = vst [vmem:[#allocation54_spill] sm:$0xff] %v10945_v57  ;;  %v3339_v5 = vsel %vm1870_vm13, %v3275_v43, %v2887_v59  ;;  %v2889_v27 = vpop.permute.xlu0 %2888  ;;  %v10958_v2 = vpop.f32.mrb[1].mxu0  ;;  %v3228_v43 = vsel %vm1740_vm11, %v3179_v62, %v15740_v4  ;;  %v8339_v62 = vld [vmem:[#allocation2 + $0x150] sm:$0xff]  ;;  %v15749_v57 = vld [vmem:[#allocation19_spill] sm:$0xff] }
 0x32a   : > { %15735 = vst [vmem:[#allocation139_spill] sm:$0xff] %v10958_v2  ;;  %v3428_v35 = vrot.slane %v3339_v5, 3  ;;  %v10963_v1 = vpop.f32.mrb[2].mxu0  ;;  %2763 = vrot.lane.b32.xlu1 %v10760_v32, %s8473_s13  ;;  %v3277_v37 = vsel %vm1805_vm12, %v3228_v43, %v2819_v18 }
 0x32b   : > { %15736 = vst [vmem:[#allocation7_spill] sm:$0xff] %v10963_v1  ;;  %2834 = vrot.lane.b32.xlu0 %v15737_v26, %s8475_s15  ;;  %v10970_v49 = vpop.f32.mrb[3].mxu0  ;;  %v3341_v5 = vsel %vm1870_vm13, %v3277_v37, %v2889_v27 }
 0x32c   : > { %15738 = vst [vmem:[#allocation55_spill] sm:$0xff] %v10970_v49  ;;  %v10973_v40 = vpop.permute.xlu1 %2504  ;;  %v3429_v53 = vsel %vm3408_vm1, %v3427_v25, %v3428_v35  ;;  %v2580_v25 = vrot.slane %v8339_v62, 2  ;;  %v8340_v35 = vld [vmem:[#allocation2 + $0x158] sm:$0xff]  ;;  %v3430_v43 = vrot.slane %v3341_v5, 3  ;;  %v11013_v5 = vld [vmem:[#allocation2 + $0xf0] sm:$0xff] }
 0x32d   : > { %v1318_v59 = vpop.permute.xlu0 %1317  ;;  %7926 = vmatprep.mubr.msk.bf16.mxu1 %vm2219_vm15, %v3429_v53  ;;  %v10992_v17 = vrot.slane %v8340_v35, 2  ;;  %v15747_v35 = vld [vmem:[#allocation30_spill] sm:$0xff]  ;;  %v15750_v49 = vld [vmem:[#allocation177_spill] sm:$0xff] }
 0x32e   : > { %2832 = vrot.lane.b32.xlu1 %v15732_v29, %s8475_s15 }
 0x32f   : > { %2900 = vrot.lane.b32.xlu0 %v10978_v48, %s8476_s22  ;;  %15742 = vst [vmem:[#allocation85_spill] sm:$0xff] %v10992_v17  ;;  %v11004_v37 = vsel %vm2534_vm5, %v2580_v25, %v10992_v17 }
 0x330   : > { %v2891_v42 = vpop.permute.xlu1 %2890  ;;  %15744 = vst [vmem:[#allocation84_spill] sm:$0xff] %v11004_v37 }
 0x331   : > { %v3343_v18 = vsel %vm1870_vm13, %v3279_v19, %v2891_v42  ;;  %v10995_v53 = vpop.permute.xlu0 %2506  ;;  %v15746_v42 = vld [vmem:[#allocation94_spill] sm:$0xff] }
 0x332   : > { %v3431_v1 = vrot.slane %v3343_v18, 3  ;;  %2836 = vrot.lane.b32.xlu1 %v15743_v10, %s8475_s15 }
 0x333   : > { %2518 = vrot.lane.b32.xlu0 %v15695_v21, %s8469_s9  ;;  %v15745_v21 = vld [vmem:[#allocation65_spill] sm:$0xff] }
 0x334   : > { %v1320_v27 = vpop.permute.xlu1 %1319  ;;  %v3432_v50 = vsel %vm3408_vm1, %v3430_v43, %v3431_v1  ;;  %v1449_v1 = vsel %vm314_vm0, %v11013_v5, %v15745_v21  ;;  %v15748_v43 = vld [vmem:[#allocation151_spill] sm:$0xff] }
 0x335   : > { %v11006_v14 = vpop.permute.xlu0 %2615  ;;  %7927 = vmatmul.mubr.msk.bf16.gmra.mrb[12].mxu1 %vm2219_vm15, %v3432_v50  ;;  %v1514_v62 = vsel %vm1480_vm7, %v1449_v1, %v15746_v42 }
 0x336   : > { %2902 = vrot.lane.b32.xlu1 %v10953_v16, %s8476_s22  ;;  %v1579_v18 = vsel %vm1545_vm8, %v1514_v62, %v15747_v35  ;;  %v15751_v62 = vld [vmem:[#allocation68_spill] sm:$0xff] }
 0x337   : > { %2904 = vrot.lane.b32.xlu0 %v11004_v37, %s8476_s22  ;;  %v1644_v50 = vsel %vm1610_vm9, %v1579_v18, %v15748_v43  ;;  %v15753_v43 = vld [vmem:[#allocation4_spill] sm:$0xff] }
 0x338   : > { %v11018_v19 = vpop.permute.xlu1 %2508  ;;  %v1709_v21 = vsel %vm1675_vm10, %v1644_v50, %v15750_v49 }
 0x339   : > { %v1322_v25 = vpop.permute.xlu0 %1321  ;;  %v1774_v1 = vsel %vm1740_vm11, %v1709_v21, %v15740_v4  ;;  %v15757_v4 = vld [vmem:[#allocation154_spill] sm:$0xff] }
 0x33a   : > { %2520 = vrot.lane.b32.xlu1 %v15696_v52, %s8469_s9  ;;  %v1451_v52 = vsel %vm314_vm0, %v11036_v58, %v15751_v62  ;;  %v1839_v18 = vsel %vm1805_vm12, %v1774_v1, %v1318_v59 }
 0x33b   : > { %1333 = vrot.lane.b32.xlu0 %v15749_v57, %s8475_s15  ;;  %v15752_v57 = vld [vmem:[#allocation67_spill] sm:$0xff]  ;;  %v1516_v50 = vsel %vm1480_vm7, %v1451_v52, %v15753_v43  ;;  %v15758_v52 = vld [vmem:[#allocation153_spill] sm:$0xff] }
 0x33c   : > { %v11032_v2 = vpop.permute.xlu1 %2617  ;;  %v1453_v49 = vsel %vm314_vm0, %v10496_v15, %v15752_v57  ;;  %v1581_v59 = vsel %vm1545_vm8, %v1516_v50, %v15755_v11  ;;  %v15761_v50 = vld [vmem:[#allocation179_spill] sm:$0xff] }
 0x33d   : > { %v1385_v42 = vpop.permute.xlu0 %1384  ;;  %v1518_v62 = vsel %vm1480_vm7, %v1453_v49, %v15754_v7  ;;  %v1646_v15 = vsel %vm1610_vm9, %v1581_v59, %v15757_v4  ;;  %v15760_v49 = vld [vmem:[#allocation23_spill] sm:$0xff]  ;;  %v15762_v4 = vld [vmem:[#allocation70_spill] sm:$0xff] }
 0x33e   : > { %2906 = vrot.lane.b32.xlu1 %v10992_v17, %s8476_s22  ;;  %v1904_v21 = vsel %vm1870_vm13, %v1839_v18, %v1385_v42  ;;  %v1583_v23 = vsel %vm1545_vm8, %v1518_v62, %v15756_v45  ;;  %v15759_v18 = vld [vmem:[#allocation180_spill] sm:$0xff] }
 0x33f   : > { %2522 = vrot.lane.b32.xlu0 %v15698_v12, %s8469_s9  ;;  %v1648_v42 = vsel %vm1610_vm9, %v1583_v23, %v15758_v52  ;;  %v1711_v12 = vsel %vm1675_vm10, %v1646_v15, %v15759_v18  ;;  %v2056_v43 = vshrl.u32 %v1904_v21, 16  ;;  %v2059_v7 = vshll.u32 %v1904_v21, 16  ;;  %v15763_v15 = vld [vmem:[#allocation212_spill] sm:$0xff]  ;;  %v15764_v18 = vld [vmem:[#allocation98_spill] sm:$0xff] }
 0x340   : > { %v1324_v1 = vpop.permute.xlu1 %1323  ;;  %v1713_v9 = vsel %vm1675_vm10, %v1648_v42, %v15761_v50  ;;  %v1776_v62 = vsel %vm1740_vm11, %v1711_v12, %v15741_v61  ;;  %v1455_v23 = vsel %vm314_vm0, %v10499_v38, %v15762_v4  ;;  %v15765_v38 = vld [vmem:[#allocation31_spill] sm:$0xff]  ;;  %v15767_v4 = vld [vmem:[#allocation156_spill] sm:$0xff] }
 0x341   : > { %v11060_v57 = vpop.permute.xlu0 %2619  ;;  %v1841_v59 = vsel %vm1805_vm12, %v1776_v62, %v1320_v27  ;;  %v1778_v21 = vsel %vm1740_vm11, %v1713_v9, %v15763_v15  ;;  %v2058_v61 = vrot.slane %v2056_v43, 3  ;;  %v15766_v62 = vld [vmem:[#allocation21_spill] sm:$0xff] }
 0x342   : > { %1335 = vrot.lane.b32.xlu1 %v15760_v49, %s8475_s15  ;;  %v1520_v49 = vsel %vm1480_vm7, %v1455_v23, %v15764_v18  ;;  %v1843_v42 = vsel %vm1805_vm12, %v1778_v21, %v1322_v25  ;;  %v15769_v21 = vld [vmem:[#allocation182_spill] sm:$0xff] }
 0x343   : > { %2631 = vrot.lane.b32.xlu0 %v10746_v31, %s8470_s10  ;;  %v2061_v31 = vrot.slane %v2059_v7, 4  ;;  %v1585_v27 = vsel %vm1545_vm8, %v1520_v49, %v15765_v38 }
 0x344   : > { %v1387_v52 = vpop.permute.xlu1 %1386  ;;  %v1650_v25 = vsel %vm1610_vm9, %v1585_v27, %v15767_v4 }
 0x345   : > { %v1906_v12 = vsel %vm1870_vm13, %v1841_v59, %v1387_v52  ;;  %v1389_v50 = vpop.permute.xlu0 %1388  ;;  %v2062_v49 = vor.u32 %v2061_v31, %v2058_v61 }
 0x346   : > { %v2063_v54 = vshrl.u32 %v1906_v12, 16  ;;  %v2066_v39 = vshll.u32 %v1906_v12, 16  ;;  %2524 = vrot.lane.b32.xlu1 %v15703_v30, %s8469_s9  ;;  %v1908_v9 = vsel %vm1870_vm13, %v1843_v42, %v1389_v50  ;;  %v1715_v30 = vsel %vm1675_vm10, %v1650_v25, %v15769_v21 }
 0x347   : > { %1337 = vrot.lane.b32.xlu0 %v15766_v62, %s8475_s15  ;;  %v2071_v12 = vshrl.u32 %v1908_v9, 16  ;;  %v2074_v50 = vshll.u32 %v1908_v9, 16 }
 0x348   : > { %v2065_v23 = vrot.slane %v2063_v54, 3  ;;  %v2068_v59 = vrot.slane %v2066_v39, 4  ;;  %v11093_v43 = vpop.f32.mrb[0].mxu1  ;;  %v11095_v7 = vpop.permute.xlu1 %2621  ;;  %v15772_v54 = vld [vmem:[#allocation215_spill] sm:$0xff] }
 0x349   : > { %15768 = vst [vmem:[#allocation142_spill] sm:$0xff] %v11093_v43  ;;  %v2680_v52 = vpop.permute.xlu0 %2679  ;;  %v11099_v18 = vpop.f32.mrb[1].mxu1  ;;  %v1780_v39 = vsel %vm1740_vm11, %v1715_v30, %v15772_v54 }
 0x34a   : > { %15770 = vst [vmem:[#allocation141_spill] sm:$0xff] %v11099_v18  ;;  %v2069_v42 = vor.u32 %v2068_v59, %v2065_v23  ;;  %v11101_v62 = vpop.f32.mrb[2].mxu1  ;;  %2633 = vrot.lane.b32.xlu1 %v10727_v28, %s8470_s10  ;;  %v1845_v4 = vsel %vm1805_vm12, %v1780_v39, %v1324_v1  ;;  %v2073_v23 = vrot.slane %v2071_v12, 3  ;;  %v2076_v59 = vrot.slane %v2074_v50, 4  ;;  %v15775_v12 = vld [vmem:[#allocation53_spill] sm:$0xff] }
 0x34b   : > { %15771 = vst [vmem:[#allocation10_spill] sm:$0xff] %v11101_v62  ;;  %1400 = vrot.lane.b32.xlu0 %v15737_v26, %s8476_s22  ;;  %v11109_v27 = vpop.f32.mrb[3].mxu1  ;;  %v15774_v62 = vld [vmem:[#allocation25_spill] sm:$0xff] }
 0x34c   : > { %15773 = vst [vmem:[#allocation57_spill] sm:$0xff] %v11109_v27  ;;  %v1391_v25 = vpop.permute.xlu1 %1390  ;;  %v2070_v31 = vsel %vm1935_vm14, %v2062_v49, %v2069_v42  ;;  %v2077_v42 = vor.u32 %v2076_v59, %v2073_v23  ;;  %v15776_v23 = vld [vmem:[#allocation51_spill] sm:$0xff]  ;;  %v15803_v28 = vld [vmem:[#allocation185_spill] sm:$0xff] }
 0x34d   : > { %v1910_v61 = vsel %vm1870_vm13, %v1845_v4, %v1391_v25  ;;  %v11114_v9 = vpop.permute.xlu0 %2683  ;;  %7888 = vmatprep.mubr.msk.bf16.mxu0 %vm2219_vm15, %v2070_v31  ;;  %v8343_v59 = vld [vmem:[#allocation2 + $0xe0] sm:$0xff] }
 0x34e   : > { %v2078_v21 = vshrl.u32 %v1910_v61, 16  ;;  %v2081_v30 = vshll.u32 %v1910_v61, 16  ;;  %1339 = vrot.lane.b32.xlu1 %v15774_v62, %s8475_s15 }
 0x34f   : > { %2635 = vrot.lane.b32.xlu0 %v10772_v0, %s8470_s10 }
 0x350   : > { %v2080_v1 = vrot.slane %v2078_v21, 3  ;;  %v2083_v39 = vrot.slane %v2081_v30, 4  ;;  %v2682_v43 = vpop.permute.xlu1 %2681  ;;  %v2959_v21 = vsel %vm314_vm0, %v8343_v59, %v10927_v13 }
 0x351   : > { %v2750_v49 = vpop.permute.xlu0 %2749 }
 0x352   : > { %v2084_v4 = vor.u32 %v2083_v39, %v2080_v1  ;;  %1402 = vrot.lane.b32.xlu1 %v15743_v10, %s8476_s22  ;;  %v3023_v1 = vsel %vm1480_vm7, %v2959_v21, %v11006_v14 }
 0x353   : > { %1404 = vrot.lane.b32.xlu0 %v15775_v12, %s8476_s22  ;;  %v3070_v13 = vsel %vm1545_vm8, %v3023_v1, %v15747_v35  ;;  %v2963_v1 = vsel %vm314_vm0, %v11013_v5, %v10995_v53 }
 0x354   : > { %v2686_v50 = vpop.permute.xlu1 %2685  ;;  %v2085_v25 = vsel %vm1935_vm14, %v2077_v42, %v2084_v4  ;;  %v8344_v42 = vld [vmem:[#allocation2 + $0xe8] sm:$0xff]  ;;  %v3119_v14 = vsel %vm1610_vm9, %v3070_v13, %v2680_v52  ;;  %v11186_v13 = vld [vmem:[#allocation2 + $0x160] sm:$0xff] }
 0x355   : > { %v2754_v31 = vpop.permute.xlu0 %2753  ;;  %7889 = vmatmul.mubr.msk.bf16.gmra.mrb[16].mxu0 %vm2219_vm15, %v2085_v25  ;;  %v2961_v4 = vsel %vm314_vm0, %v8344_v42, %v10973_v40  ;;  %v3183_v40 = vsel %vm1675_vm10, %v3119_v14, %v2750_v49  ;;  %v11189_v14 = vld [vmem:[#allocation2 + $0x168] sm:$0xff] }
 0x356   : > { %2637 = vrot.lane.b32.xlu1 %v10760_v32, %s8470_s10  ;;  %v3025_v25 = vsel %vm1480_vm7, %v2961_v4, %v11032_v2  ;;  %v3027_v4 = vsel %vm1480_vm7, %v2963_v1, %v11060_v57  ;;  %v3230_v49 = vsel %vm1740_vm11, %v3183_v40, %v15763_v15  ;;  %v11192_v40 = vrot.slane %v11189_v14, 2  ;;  %v15799_v15 = vld [vmem:[#allocation127_spill] sm:$0xff] }
 0x357   : > { %2695 = vrot.lane.b32.xlu0 %v15731_v44, %s8472_s12  ;;  %v3071_v27 = vsel %vm1545_vm8, %v3025_v25, %v15755_v11  ;;  %v11281_v11 = vld [vmem:[#allocation2 + $0x118] sm:$0xff] }
 0x358   : > { %v2752_v62 = vpop.permute.xlu1 %2751  ;;  %v3121_v2 = vsel %vm1610_vm9, %v3071_v27, %v2682_v43  ;;  %v2965_v43 = vsel %vm314_vm0, %v11036_v58, %v11018_v19  ;;  %15778 = vst [vmem:[#allocation9_spill] sm:$0xff] %v11192_v40 }
 0x359   : > { %v2823_v61 = vpop.permute.xlu0 %2822  ;;  %v3185_v52 = vsel %vm1675_vm10, %v3121_v2, %v2752_v62  ;;  %v3029_v53 = vsel %vm1480_vm7, %v2965_v43, %v11095_v7  ;;  %v3072_v62 = vsel %vm1545_vm8, %v3027_v4, %v15756_v45  ;;  %v2711_v7 = vrot.slane %v11186_v13, 2 }
 0x35a   : > { %1406 = vrot.lane.b32.xlu1 %v15776_v23, %s8476_s22  ;;  %v3281_v27 = vsel %vm1805_vm12, %v3230_v49, %v2823_v61  ;;  %v3231_v5 = vsel %vm1740_vm11, %v3185_v52, %v15772_v54 }
 0x35b   : > { %2699 = vrot.lane.b32.xlu0 %v15737_v26, %s8472_s12 }
 0x35c   : > { %v2756_v30 = vpop.permute.xlu1 %2755 }
 0x35d   : > { %v2827_v39 = vpop.permute.xlu0 %2826 }
 0x35e   : > { %2697 = vrot.lane.b32.xlu1 %v15732_v29, %s8472_s12 }
 0x35f   : > { %2765 = vrot.lane.b32.xlu0 %v10978_v48, %s8473_s13 }
 0x360   : > { %v2825_v59 = vpop.permute.xlu1 %2824 }
 0x361   : > { %v2893_v21 = vpop.permute.xlu0 %2892  ;;  %v3283_v58 = vsel %vm1805_vm12, %v3231_v5, %v2825_v59  ;;  %v3073_v59 = vsel %vm1545_vm8, %v3029_v53, %v15765_v38  ;;  %v11217_v53 = vsel %vm2534_vm5, %v2711_v7, %v11192_v40  ;;  %v15794_v38 = vld [vmem:[#allocation71_spill] sm:$0xff] }
 0x362   : > { %2701 = vrot.lane.b32.xlu1 %v15743_v10, %s8472_s12  ;;  %v3345_v57 = vsel %vm1870_vm13, %v3281_v27, %v2893_v21  ;;  %v3123_v21 = vsel %vm1610_vm9, %v3072_v62, %v11114_v9  ;;  %v3125_v5 = vsel %vm1610_vm9, %v3073_v59, %v2686_v50  ;;  %v15781_v9 = vld [vmem:[#allocation138_spill] sm:$0xff]  ;;  %15783 = vst [vmem:[#allocation37_spill] sm:$0xff] %v11217_v53 }
 0x363   : > { %2769 = vrot.lane.b32.xlu0 %v11004_v37, %s8473_s13  ;;  %v3187_v4 = vsel %vm1675_vm10, %v3123_v21, %v2754_v31  ;;  %v3433_v49 = vrot.slane %v3345_v57, 3  ;;  %v15784_v57 = vld [vmem:[#allocation214_spill] sm:$0xff] }
 0x364   : > { %v2829_v42 = vpop.permute.xlu1 %2828  ;;  %v3232_v21 = vsel %vm1740_vm11, %v3187_v4, %v15784_v57  ;;  %v8347_v4 = vld [vmem:[#allocation2 + $0x170] sm:$0xff] }
 0x365   : > { %v11166_v25 = vpop.permute.xlu0 %2510  ;;  %v3285_v50 = vsel %vm1805_vm12, %v3232_v21, %v2827_v39 }
 0x366   : > { %2767 = vrot.lane.b32.xlu1 %v10953_v16, %s8473_s13 }
 0x367   : > { %2838 = vrot.lane.b32.xlu0 %v15775_v12, %s8475_s15 }
 0x368   : > { %v11184_v19 = vpop.f32.mrb[4].mxu0  ;;  %v2895_v61 = vpop.permute.xlu1 %2894 }
 0x369   : > { %15777 = vst [vmem:[#allocation87_spill] sm:$0xff] %v11184_v19  ;;  %v3347_v2 = vsel %vm1870_vm13, %v3283_v58, %v2895_v61  ;;  %v2897_v1 = vpop.permute.xlu0 %2896  ;;  %v11197_v52 = vpop.f32.mrb[5].mxu0  ;;  %v3189_v58 = vsel %vm1675_vm10, %v3125_v5, %v2756_v30  ;;  %v15785_v30 = vld [vmem:[#allocation217_spill] sm:$0xff]  ;;  %v2714_v5 = vrot.slane %v8347_v4, 2 }
 0x36a   : > { %15779 = vst [vmem:[#allocation144_spill] sm:$0xff] %v11197_v52  ;;  %v3434_v43 = vrot.slane %v3347_v2, 3  ;;  %v11202_v27 = vpop.f32.mrb[6].mxu0  ;;  %2771 = vrot.lane.b32.xlu1 %v10992_v17, %s8473_s13  ;;  %v3233_v59 = vsel %vm1740_vm11, %v3189_v58, %v15785_v30  ;;  %v15787_v58 = vld [vmem:[#allocation137_spill] sm:$0xff] }
 0x36b   : > { %15780 = vst [vmem:[#allocation12_spill] sm:$0xff] %v11202_v27  ;;  %2842 = vrot.lane.b32.xlu0 %v15781_v9, %s8475_s15  ;;  %v11209_v62 = vpop.f32.mrb[7].mxu0  ;;  %v3287_v7 = vsel %vm1805_vm12, %v3233_v59, %v2829_v42  ;;  %v8348_v27 = vld [vmem:[#allocation2 + $0x178] sm:$0xff]  ;;  %v11252_v59 = vld [vmem:[#allocation2 + $0x110] sm:$0xff] }
 0x36c   : > { %15782 = vst [vmem:[#allocation38_spill] sm:$0xff] %v11209_v62  ;;  %v11212_v61 = vpop.permute.xlu1 %2512  ;;  %v3435_v31 = vsel %vm3408_vm1, %v3433_v49, %v3434_v43  ;;  %v3349_v49 = vsel %vm1870_vm13, %v3285_v50, %v2897_v1 }
 0x36d   : > { %v1326_v2 = vpop.permute.xlu0 %1325  ;;  %7930 = vmatprep.mubr.msk.bf16.mxu1 %vm2219_vm15, %v3435_v31  ;;  %v11231_v31 = vrot.slane %v8348_v27, 2  ;;  %v3436_v19 = vrot.slane %v3349_v49, 3  ;;  %v11259_v49 = vld [vmem:[#allocation2 + $0x180] sm:$0xff] }
 0x36e   : > { %2840 = vrot.lane.b32.xlu1 %v15776_v23, %s8475_s15 }
 0x36f   : > { %2908 = vrot.lane.b32.xlu0 %v11217_v53, %s8476_s22  ;;  %15786 = vst [vmem:[#allocation40_spill] sm:$0xff] %v11231_v31  ;;  %v11243_v50 = vsel %vm2534_vm5, %v2714_v5, %v11231_v31  ;;  %v15791_v5 = vld [vmem:[#allocation125_spill] sm:$0xff] }
 0x370   : > { %v2899_v43 = vpop.permute.xlu1 %2898  ;;  %15788 = vst [vmem:[#allocation39_spill] sm:$0xff] %v11243_v50 }
 0x371   : > { %v3351_v39 = vsel %vm1870_vm13, %v3287_v7, %v2899_v43  ;;  %v11234_v21 = vpop.permute.xlu0 %2514  ;;  %v15790_v7 = vld [vmem:[#allocation97_spill] sm:$0xff] }
 0x372   : > { %v3437_v62 = vrot.slane %v3351_v39, 3  ;;  %2844 = vrot.lane.b32.xlu1 %v15787_v58, %s8475_s15 }
 0x373   : > { %2526 = vrot.lane.b32.xlu0 %v15731_v44, %s8469_s9  ;;  %v15789_v44 = vld [vmem:[#allocation69_spill] sm:$0xff] }
 0x374   : > { %v1328_v1 = vpop.permute.xlu1 %1327  ;;  %v3438_v42 = vsel %vm3408_vm1, %v3436_v19, %v3437_v62  ;;  %v1457_v19 = vsel %vm314_vm0, %v11252_v59, %v15789_v44  ;;  %v15793_v44 = vld [vmem:[#allocation181_spill] sm:$0xff] }
 0x375   : > { %v11245_v27 = vpop.permute.xlu0 %2623  ;;  %7931 = vmatmul.mubr.msk.bf16.gmra.mrb[16].mxu1 %vm2219_vm15, %v3438_v42  ;;  %v1522_v43 = vsel %vm1480_vm7, %v1457_v19, %v15790_v7  ;;  %v15792_v42 = vld [vmem:[#allocation155_spill] sm:$0xff]  ;;  %v1273_v19 = vshll.u32 %v11259_v49, 16 }
 0x376   : > { %2910 = vrot.lane.b32.xlu1 %v11192_v40, %s8476_s22  ;;  %v1587_v39 = vsel %vm1545_vm8, %v1522_v43, %v15791_v5 }
 0x377   : > { %2912 = vrot.lane.b32.xlu0 %v11243_v50, %s8476_s22  ;;  %v1652_v52 = vsel %vm1610_vm9, %v1587_v39, %v15792_v42  ;;  %v15795_v39 = vld [vmem:[#allocation72_spill] sm:$0xff]  ;;  %v1275_v32 = vrot.slane %v1273_v19, 1  ;;  %v15804_v19 = vld [vmem:[#allocation74_spill] sm:$0xff] }
 0x378   : > { %v11257_v62 = vpop.permute.xlu1 %2516  ;;  %v1717_v18 = vsel %vm1675_vm10, %v1652_v52, %v15793_v44  ;;  %v1459_v42 = vsel %vm314_vm0, %v11281_v11, %v15795_v39  ;;  %v15796_v44 = vld [vmem:[#allocation99_spill] sm:$0xff] }
 0x379   : > { %v1330_v4 = vpop.permute.xlu0 %1329  ;;  %v1782_v7 = vsel %vm1740_vm11, %v1717_v18, %v15784_v57  ;;  %v15797_v18 = vld [vmem:[#allocation100_spill] sm:$0xff] }
 0x37a   : > { %2528 = vrot.lane.b32.xlu1 %v15732_v29, %s8469_s9  ;;  %v1461_v29 = vsel %vm314_vm0, %v10721_v51, %v15794_v38  ;;  %v1847_v52 = vsel %vm1805_vm12, %v1782_v7, %v1326_v2  ;;  %v1524_v54 = vsel %vm1480_vm7, %v1459_v42, %v15797_v18  ;;  %v15798_v51 = vld [vmem:[#allocation113_spill] sm:$0xff]  ;;  %v1271_v7 = vshrl.u32 %v11259_v49, 16  ;;  %v15801_v42 = vld [vmem:[#allocation158_spill] sm:$0xff] }
 0x37b   : > { %1266 = vrot.lane.b32.xlu0 %v11259_v49, %s8474_s14  ;;  %v1526_v35 = vsel %vm1480_vm7, %v1461_v29, %v15796_v44  ;;  %v11296_v38 = vld [vmem:[#allocation2 + $0x188] sm:$0xff]  ;;  %v1589_v39 = vsel %vm1545_vm8, %v1524_v54, %v15799_v15  ;;  %v15800_v29 = vld [vmem:[#allocation126_spill] sm:$0xff] }
 0x37c   : > { %v11273_v45 = vpop.permute.xlu1 %2625  ;;  %v1278_v0 = vshll.u32 %v11296_v38, 16  ;;  %v1591_v44 = vsel %vm1545_vm8, %v1526_v35, %v15800_v29  ;;  %v15802_v18 = vld [vmem:[#allocation157_spill] sm:$0xff]  ;;  %v1463_v35 = vsel %vm314_vm0, %v10724_v60, %v15804_v19 }
 0x37d   : > { %v1393_v43 = vpop.permute.xlu0 %1392  ;;  %v1528_v60 = vsel %vm1480_vm7, %v1463_v35, %v15807_v3  ;;  %v15810_v3 = vld [vmem:[#allocation160_spill] sm:$0xff] }
 0x37e   : > { %2914 = vrot.lane.b32.xlu1 %v11231_v31, %s8476_s22  ;;  %v1912_v57 = vsel %vm1870_vm13, %v1847_v52, %v1393_v43  ;;  %v1654_v43 = vsel %vm1610_vm9, %v1589_v39, %v15801_v42  ;;  %v1280_v55 = vrot.slane %v1278_v0, 1 }
 0x37f   : > { %1341 = vrot.lane.b32.xlu0 %v15798_v51, %s8475_s15  ;;  %v1656_v51 = vsel %vm1610_vm9, %v1591_v44, %v15802_v18  ;;  %v1719_v54 = vsel %vm1675_vm10, %v1654_v43, %v15803_v28  ;;  %v2086_v63 = vshrl.u32 %v1912_v57, 16  ;;  %v2089_v8 = vshll.u32 %v1912_v57, 16  ;;  %v15806_v44 = vld [vmem:[#allocation216_spill] sm:$0xff] }
 0x380   : > { %v1332_v2 = vpop.permute.xlu1 %1331  ;;  %v1721_v39 = vsel %vm1675_vm10, %v1656_v51, %v15805_v56  ;;  %v1784_v42 = vsel %vm1740_vm11, %v1719_v54, %v15785_v30  ;;  %v1276_v18 = vor.u32 %v1275_v32, %v1271_v7 }
 0x381   : > { %v11306_v52 = vpop.permute.xlu0 %2627  ;;  %v1849_v28 = vsel %vm1805_vm12, %v1784_v42, %v1328_v1  ;;  %v1786_v57 = vsel %vm1740_vm11, %v1721_v39, %v15806_v44  ;;  %v2088_v54 = vrot.slane %v2086_v63, 3  ;;  %v2091_v30 = vrot.slane %v2089_v8, 4  ;;  %v15808_v1 = vld [vmem:[#allocation117_spill] sm:$0xff] }
 0x382   : > { %1268 = vrot.lane.b32.xlu1 %v11296_v38, %s8474_s14  ;;  %v1851_v19 = vsel %vm1805_vm12, %v1786_v57, %v1330_v4  ;;  %v15809_v42 = vld [vmem:[#allocation129_spill] sm:$0xff]  ;;  %v1281_v35 = vsel %vm542_vm3, %v1276_v18, %v1280_v55 }
 0x383   : > { %2530 = vrot.lane.b32.xlu0 %v15737_v26, %s8469_s9  ;;  %v1593_v39 = vsel %vm1545_vm8, %v1528_v60, %v15809_v42 }
 0x384   : > { %v1395_v43 = vpop.permute.xlu1 %1394  ;;  %v1658_v0 = vsel %vm1610_vm9, %v1593_v39, %v15810_v3 }
 0x385   : > { %v1914_v56 = vsel %vm1870_vm13, %v1849_v28, %v1395_v43  ;;  %v1397_v51 = vpop.permute.xlu0 %1396  ;;  %v15812_v28 = vld [vmem:[#allocation189_spill] sm:$0xff] }
 0x386   : > { %v2093_v20 = vshrl.u32 %v1914_v56, 16  ;;  %v2096_v26 = vshll.u32 %v1914_v56, 16  ;;  %1343 = vrot.lane.b32.xlu1 %v15808_v1, %s8475_s15  ;;  %v1916_v32 = vsel %vm1870_vm13, %v1851_v19, %v1397_v51  ;;  %v1723_v57 = vsel %vm1675_vm10, %v1658_v0, %v15812_v28 }
 0x387   : > { %2639 = vrot.lane.b32.xlu0 %v10978_v48, %s8470_s10  ;;  %v1282_v19 = vshrl.u32 %v11296_v38, 16  ;;  %v2092_v56 = vor.u32 %v2091_v30, %v2088_v54  ;;  %v2101_v1 = vshrl.u32 %v1916_v32, 16  ;;  %v2104_v39 = vshll.u32 %v1916_v32, 16  ;;  %v11688_v48 = vld [vmem:[#allocation2 + $0x128] sm:$0xff] }
 0x388   : > { %v2095_v4 = vrot.slane %v2093_v20, 3  ;;  %v2098_v7 = vrot.slane %v2096_v26, 4  ;;  %v11339_v63 = vpop.f32.mrb[4].mxu1  ;;  %v11341_v8 = vpop.permute.xlu1 %2629  ;;  %v15815_v26 = vld [vmem:[#allocation219_spill] sm:$0xff] }
 0x389   : > { %15811 = vst [vmem:[#allocation58_spill] sm:$0xff] %v11339_v63  ;;  %v2688_v43 = vpop.permute.xlu0 %2687  ;;  %v11346_v60 = vpop.f32.mrb[5].mxu1  ;;  %v1788_v18 = vsel %vm1740_vm11, %v1723_v57, %v15815_v26  ;;  %v15833_v63 = vld [vmem:[#allocation75_spill] sm:$0xff] }
 0x38a   : > { %15813 = vst [vmem:[#allocation86_spill] sm:$0xff] %v11346_v60  ;;  %v2099_v51 = vor.u32 %v2098_v7, %v2095_v4  ;;  %v11349_v20 = vpop.f32.mrb[6].mxu1  ;;  %2532 = vrot.lane.b32.xlu1 %v15743_v10, %s8469_s9  ;;  %v1853_v0 = vsel %vm1805_vm12, %v1788_v18, %v1332_v2  ;;  %v1284_v4 = vor.u32 %v1282_v19, %v1280_v55  ;;  %v2103_v10 = vrot.slane %v2101_v1, 3  ;;  %v15836_v60 = vld [vmem:[#allocation104_spill] sm:$0xff] }
 0x38b   : > { %15814 = vst [vmem:[#allocation143_spill] sm:$0xff] %v11349_v20  ;;  %1345 = vrot.lane.b32.xlu0 %v1281_v35, %s8475_s15  ;;  %v11356_v3 = vpop.f32.mrb[7].mxu1  ;;  %v2106_v7 = vrot.slane %v2104_v39, 4  ;;  %v11370_v18 = vrot.slane %v11296_v38, 1 }
 0x38c   : > { %15816 = vst [vmem:[#allocation11_spill] sm:$0xff] %v11356_v3  ;;  %v1399_v28 = vpop.permute.xlu1 %1398  ;;  %v2100_v30 = vsel %vm1935_vm14, %v2092_v56, %v2099_v51  ;;  %v1349_v51 = vrot.slane %v11259_v49, 1 }
 0x38d   : > { %v1918_v54 = vsel %vm1870_vm13, %v1853_v0, %v1399_v28  ;;  %v11361_v32 = vpop.permute.xlu0 %2691  ;;  %7892 = vmatprep.mubr.msk.bf16.mxu0 %vm2219_vm15, %v2100_v30  ;;  %v2107_v55 = vor.u32 %v2106_v7, %v2103_v10 }
 0x38e   : > { %v2108_v20 = vshrl.u32 %v1918_v54, 16  ;;  %v2111_v57 = vshll.u32 %v1918_v54, 16  ;;  %2641 = vrot.lane.b32.xlu1 %v10953_v16, %s8470_s10 }
 0x38f   : > { %1408 = vrot.lane.b32.xlu0 %v15781_v9, %s8476_s22 }
 0x390   : > { %v2110_v2 = vrot.slane %v2108_v20, 3  ;;  %v2113_v35 = vrot.slane %v2111_v57, 4  ;;  %v2690_v56 = vpop.permute.xlu1 %2689  ;;  %v11378_v20 = vsel %vm879_vm4, %v1349_v51, %v11370_v18 }
 0x391   : > { %v2758_v0 = vpop.permute.xlu0 %2757 }
 0x392   : > { %v2114_v19 = vor.u32 %v2113_v35, %v2110_v2  ;;  %1347 = vrot.lane.b32.xlu1 %v1284_v4, %s8475_s15  ;;  %v11389_v4 = vld [vmem:[#allocation2 + $0x100] sm:$0xff]  ;;  %v11396_v35 = vld [vmem:[#allocation2 + $0x108] sm:$0xff] }
 0x393   : > { %2643 = vrot.lane.b32.xlu0 %v11004_v37, %s8470_s10  ;;  %v2967_v10 = vsel %vm314_vm0, %v11389_v4, %v11166_v25  ;;  %v2969_v51 = vsel %vm314_vm0, %v11396_v35, %v11212_v61 }
 0x394   : > { %v2694_v1 = vpop.permute.xlu1 %2693  ;;  %v2115_v39 = vsel %vm1935_vm14, %v2107_v55, %v2114_v19  ;;  %v3031_v57 = vsel %vm1480_vm7, %v2967_v10, %v11245_v27 }
 0x395   : > { %v2762_v28 = vpop.permute.xlu0 %2761  ;;  %7893 = vmatmul.mubr.msk.bf16.gmra.mrb[20].mxu0 %vm2219_vm15, %v2115_v39  ;;  %v3074_v25 = vsel %vm1545_vm8, %v3031_v57, %v15791_v5 }
 0x396   : > { %1410 = vrot.lane.b32.xlu1 %v15787_v58, %s8476_s22  ;;  %v3127_v55 = vsel %vm1610_vm9, %v3074_v25, %v2688_v43 }
 0x397   : > { %1412 = vrot.lane.b32.xlu0 %v11378_v20, %s8476_s22  ;;  %v3191_v61 = vsel %vm1675_vm10, %v3127_v55, %v2758_v0 }
 0x398   : > { %v2760_v30 = vpop.permute.xlu1 %2759  ;;  %v3234_v0 = vsel %vm1740_vm11, %v3191_v61, %v15806_v44 }
 0x399   : > { %v2831_v54 = vpop.permute.xlu0 %2830 }
 0x39a   : > { %2645 = vrot.lane.b32.xlu1 %v10992_v17, %s8470_s10  ;;  %v11682_v17 = vld [vmem:[#allocation2 + $0x18] sm:$0xff] }
 0x39b   : > { %2703 = vrot.lane.b32.xlu0 %v15775_v12, %s8472_s12  ;;  %v3033_v12 = vsel %vm1480_vm7, %v2969_v51, %v11273_v45  ;;  %v5068_v16 = vrot.slane %v11682_v17, 4 }
 0x39c   : > { %v2764_v7 = vpop.permute.xlu1 %2763  ;;  %v3075_v39 = vsel %vm1545_vm8, %v3033_v12, %v15799_v15  ;;  %v15839_v15 = vld [vmem:[#allocation161_spill] sm:$0xff] }
 0x39d   : > { %v2835_v2 = vpop.permute.xlu0 %2834  ;;  %v3129_v45 = vsel %vm1610_vm9, %v3075_v39, %v2690_v56  ;;  %v3289_v56 = vsel %vm1805_vm12, %v3234_v0, %v2831_v54  ;;  %v529_v39 = vld [vmem:[#allocation2 + $0x198] sm:$0xff] }
 0x39e   : > { %1414 = vrot.lane.b32.xlu1 %v11370_v18, %s8476_s22  ;;  %v3193_v43 = vsel %vm1675_vm10, %v3129_v45, %v2760_v30 }
 0x39f   : > { %2707 = vrot.lane.b32.xlu0 %v15781_v9, %s8472_s12  ;;  %v2971_v9 = vsel %vm314_vm0, %v11252_v59, %v11234_v21  ;;  %v3235_v59 = vsel %vm1740_vm11, %v3193_v43, %v15815_v26 }
 0x3a0   : > { %v2833_v27 = vpop.permute.xlu1 %2832  ;;  %v3035_v57 = vsel %vm1480_vm7, %v2971_v9, %v11306_v52 }
 0x3a1   : > { %v2901_v19 = vpop.permute.xlu0 %2900  ;;  %v3076_v30 = vsel %vm1545_vm8, %v3035_v57, %v15800_v29 }
 0x3a2   : > { %2705 = vrot.lane.b32.xlu1 %v15776_v23, %s8472_s12  ;;  %v2973_v23 = vsel %vm314_vm0, %v11281_v11, %v11257_v62  ;;  %v3353_v52 = vsel %vm1870_vm13, %v3289_v56, %v2901_v19  ;;  %v3291_v62 = vsel %vm1805_vm12, %v3235_v59, %v2833_v27  ;;  %v15821_v59 = vld [vmem:[#allocation218_spill] sm:$0xff] }
 0x3a3   : > { %2773 = vrot.lane.b32.xlu0 %v11217_v53, %s8473_s13  ;;  %v3037_v21 = vsel %vm1480_vm7, %v2973_v23, %v11341_v8  ;;  %v3131_v8 = vsel %vm1610_vm9, %v3076_v30, %v11361_v32  ;;  %v3439_v27 = vrot.slane %v3353_v52, 3 }
 0x3a4   : > { %v2837_v10 = vpop.permute.xlu1 %2836  ;;  %v3077_v61 = vsel %vm1545_vm8, %v3037_v21, %v15809_v42  ;;  %v3195_v45 = vsel %vm1675_vm10, %v3131_v8, %v2762_v28  ;;  %v2788_v21 = vrot.slane %v529_v39, 1 }
 0x3a5   : > { %v11426_v51 = vpop.permute.xlu0 %2518  ;;  %v3133_v32 = vsel %vm1610_vm9, %v3077_v61, %v2694_v1  ;;  %v3236_v52 = vsel %vm1740_vm11, %v3195_v45, %v15821_v59  ;;  %v2854_v45 = vrot.slane %v11259_v49, 2 }
 0x3a6   : > { %2709 = vrot.lane.b32.xlu1 %v15787_v58, %s8472_s12  ;;  %v11446_v58 = vld [vmem:[#allocation2 + $0x190] sm:$0xff]  ;;  %v3197_v0 = vsel %vm1675_vm10, %v3133_v32, %v2764_v7  ;;  %v3293_v1 = vsel %vm1805_vm12, %v3236_v52, %v2835_v2  ;;  %v11485_v2 = vrot.slane %v11296_v38, 2  ;;  %v11490_v32 = vld [vmem:[#allocation2 + $0x40] sm:$0xff] }
 0x3a7   : > { %2777 = vrot.lane.b32.xlu0 %v11243_v50, %s8473_s13  ;;  %v2787_v23 = vrot.slane %v11446_v58, 1 }
 0x3a8   : > { %v11444_v54 = vpop.f32.mrb[8].mxu0  ;;  %v2903_v12 = vpop.permute.xlu1 %2902  ;;  %15823 = vst [vmem:[#allocation89_spill] sm:$0xff] %v11485_v2  ;;  %v11499_v38 = vsel %vm2534_vm5, %v2854_v45, %v11485_v2  ;;  %v11519_v45 = vrot.slane %v529_v39, 2 }
 0x3a9   : > { %15817 = vst [vmem:[#allocation169_spill] sm:$0xff] %v11444_v54  ;;  %v3355_v25 = vsel %vm1870_vm13, %v3291_v62, %v2903_v12  ;;  %v2905_v55 = vpop.permute.xlu0 %2904  ;;  %v11451_v19 = vpop.f32.mrb[9].mxu0  ;;  %v15822_v62 = vld [vmem:[#allocation221_spill] sm:$0xff]  ;;  %v2789_v61 = vsel %vm879_vm4, %v2787_v23, %v2788_v21  ;;  %15824 = vst [vmem:[#allocation88_spill] sm:$0xff] %v11499_v38  ;;  %v3750_v23 = vrot.slane %v11490_v32, 2 }
 0x3aa   : > { %15818 = vst [vmem:[#allocation59_spill] sm:$0xff] %v11451_v19  ;;  %v3440_v9 = vrot.slane %v3355_v25, 3  ;;  %v11456_v43 = vpop.f32.mrb[10].mxu0  ;;  %2775 = vrot.lane.b32.xlu1 %v11192_v40, %s8473_s13  ;;  %v3237_v7 = vsel %vm1740_vm11, %v3197_v0, %v15822_v62  ;;  %v3357_v12 = vsel %vm1870_vm13, %v3293_v1, %v2905_v55  ;;  %v11492_v55 = vld [vmem:[#allocation2 + $0x48] sm:$0xff]  ;;  %v11510_v1 = vld [vmem:[#allocation2 + $0x130] sm:$0xff]  ;;  %15826 = vst [vmem:[#allocation146_spill] sm:$0xff] %v11519_v45 }
 0x3ab   : > { %15819 = vst [vmem:[#allocation60_spill] sm:$0xff] %v11456_v43  ;;  %2783 = vrot.lane.b32.xlu0 %v11446_v58, %s8474_s14  ;;  %v11463_v57 = vpop.f32.mrb[11].mxu0  ;;  %v3295_v8 = vsel %vm1805_vm12, %v3237_v7, %v2837_v10  ;;  %v3442_v0 = vrot.slane %v3357_v12, 3  ;;  %v15825_v7 = vld [vmem:[#allocation73_spill] sm:$0xff]  ;;  %v15829_v43 = vld [vmem:[#allocation128_spill] sm:$0xff] }
 0x3ac   : > { %15820 = vst [vmem:[#allocation224_spill] sm:$0xff] %v11463_v57  ;;  %v11467_v56 = vpop.permute.xlu1 %2520  ;;  %v3441_v28 = vsel %vm3408_vm1, %v3439_v27, %v3440_v9  ;;  %v1465_v12 = vsel %vm314_vm0, %v11510_v1, %v15825_v7 }
 0x3ad   : > { %v1334_v30 = vpop.permute.xlu0 %1333  ;;  %7934 = vmatprep.mubr.msk.bf16.mxu1 %vm2219_vm15, %v3441_v28  ;;  %v3751_v28 = vrot.slane %v11492_v55, 2 }
 0x3ae   : > { %2779 = vrot.lane.b32.xlu1 %v11231_v31, %s8473_s13 }
 0x3af   : > { %2846 = vrot.lane.b32.xlu0 %v11378_v20, %s8475_s15 }
 0x3b0   : > { %v2907_v25 = vpop.permute.xlu1 %2906 }
 0x3b1   : > { %v3359_v27 = vsel %vm1870_vm13, %v3295_v8, %v2907_v25  ;;  %v11488_v9 = vpop.permute.xlu0 %2522  ;;  %v2857_v8 = vrot.slane %v11446_v58, 2  ;;  %v15830_v58 = vld [vmem:[#allocation159_spill] sm:$0xff] }
 0x3b2   : > { %v3443_v20 = vrot.slane %v3359_v27, 3  ;;  %2785 = vrot.lane.b32.xlu1 %v529_v39, %s8474_s14  ;;  %v15827_v27 = vld [vmem:[#allocation101_spill] sm:$0xff]  ;;  %v15831_v39 = vld [vmem:[#allocation188_spill] sm:$0xff] }
 0x3b3   : > { %2850 = vrot.lane.b32.xlu0 %v2789_v61, %s8475_s15  ;;  %v3752_v61 = vsel %vm2534_vm5, %v3750_v23, %v3751_v28 }
 0x3b4   : > { %v1336_v10 = vpop.permute.xlu1 %1335  ;;  %v3444_v49 = vsel %vm3408_vm1, %v3442_v0, %v3443_v20  ;;  %v11523_v20 = vld [vmem:[#allocation2 + $0x50] sm:$0xff] }
 0x3b5   : > { %v11503_v52 = vpop.permute.xlu0 %2631  ;;  %7935 = vmatmul.mubr.msk.bf16.gmra.mrb[20].mxu1 %vm2219_vm15, %v3444_v49  ;;  %15828 = vst [vmem:[#allocation145_spill] sm:$0xff] %v11523_v20  ;;  %v11525_v49 = vld [vmem:[#allocation2 + $0x58] sm:$0xff] }
 0x3b6   : > { %2848 = vrot.lane.b32.xlu1 %v11370_v18, %s8475_s15  ;;  %v1530_v18 = vsel %vm1480_vm7, %v1465_v12, %v15827_v27  ;;  %v11539_v12 = vsel %vm2534_vm5, %v2857_v8, %v11519_v45  ;;  %v3753_v27 = vrot.slane %v11523_v20, 2  ;;  %v15835_v8 = vld [vmem:[#allocation103_spill] sm:$0xff] }
 0x3b7   : > { %2916 = vrot.lane.b32.xlu0 %v11499_v38, %s8476_s22  ;;  %v1595_v54 = vsel %vm1545_vm8, %v1530_v18, %v15829_v43  ;;  %15832 = vst [vmem:[#allocation171_spill] sm:$0xff] %v11539_v12  ;;  %v3754_v18 = vrot.slane %v11525_v49, 2 }
 0x3b8   : > { %v11516_v25 = vpop.permute.xlu1 %2524  ;;  %v1660_v7 = vsel %vm1610_vm9, %v1595_v54, %v15830_v58  ;;  %v11548_v58 = vld [vmem:[#allocation2 + $0x138] sm:$0xff] }
 0x3b9   : > { %v1338_v0 = vpop.permute.xlu0 %1337  ;;  %v1725_v23 = vsel %vm1675_vm10, %v1660_v7, %v15831_v39  ;;  %v15834_v7 = vld [vmem:[#allocation76_spill] sm:$0xff] }
 0x3ba   : > { %2852 = vrot.lane.b32.xlu1 %v2788_v21, %s8475_s15  ;;  %v1469_v21 = vsel %vm314_vm0, %v10947_v36, %v15833_v63  ;;  %v1790_v54 = vsel %vm1740_vm11, %v1725_v23, %v15821_v59  ;;  %v1467_v39 = vsel %vm314_vm0, %v11548_v58, %v15834_v7  ;;  %v15837_v63 = vld [vmem:[#allocation130_spill] sm:$0xff]  ;;  %v15838_v7 = vld [vmem:[#allocation131_spill] sm:$0xff] }
 0x3bb   : > { %3756 = vrot.lane.b32.xlu0 %v3752_v61, %s8469_s9  ;;  %v1534_v19 = vsel %vm1480_vm7, %v1469_v21, %v15835_v8  ;;  %v1855_v3 = vsel %vm1805_vm12, %v1790_v54, %v1334_v30  ;;  %v1532_v36 = vsel %vm1480_vm7, %v1467_v39, %v15836_v60  ;;  %v3755_v30 = vsel %vm2534_vm5, %v3753_v27, %v3754_v18  ;;  %v15840_v39 = vld [vmem:[#allocation162_spill] sm:$0xff]  ;;  %v11673_v59 = vld [vmem:[#allocation2 + $0x120] sm:$0xff] }
 0x3bc   : > { %v11535_v57 = vpop.permute.xlu1 %2633  ;;  %v1599_v23 = vsel %vm1545_vm8, %v1534_v19, %v15837_v63  ;;  %v1597_v42 = vsel %vm1545_vm8, %v1532_v36, %v15838_v7  ;;  %v3821_v54 = vrot.slane %v11490_v32, 4  ;;  %v3822_v8 = vrot.slane %v11492_v55, 4 }
 0x3bd   : > { %v1401_v61 = vpop.permute.xlu0 %1400  ;;  %v1664_v60 = vsel %vm1610_vm9, %v1599_v23, %v15839_v15  ;;  %v1662_v19 = vsel %vm1610_vm9, %v1597_v42, %v15840_v39  ;;  %v15844_v42 = vld [vmem:[#allocation220_spill] sm:$0xff]  ;;  %v2975_v44 = vsel %vm314_vm0, %v11673_v59, %v11426_v51 }
 0x3be   : > { %2918 = vrot.lane.b32.xlu1 %v11485_v2, %s8476_s22  ;;  %v1920_v29 = vsel %vm1870_vm13, %v1855_v3, %v1401_v61  ;;  %v15841_v61 = vld [vmem:[#allocation191_spill] sm:$0xff]  ;;  %v15843_v2 = vld [vmem:[#allocation78_spill] sm:$0xff] }
 0x3bf   : > { %2920 = vrot.lane.b32.xlu0 %v11539_v12, %s8476_s22  ;;  %v1729_v5 = vsel %vm1675_vm10, %v1664_v60, %v15841_v61  ;;  %v15842_v12 = vld [vmem:[#allocation192_spill] sm:$0xff]  ;;  %v2116_v38 = vshrl.u32 %v1920_v29, 16  ;;  %v2119_v27 = vshll.u32 %v1920_v29, 16  ;;  %v1471_v26 = vsel %vm314_vm0, %v10950_v46, %v15843_v2 }
 0x3c0   : > { %v1340_v21 = vpop.permute.xlu1 %1339  ;;  %v1727_v36 = vsel %vm1675_vm10, %v1662_v19, %v15842_v12  ;;  %v1794_v23 = vsel %vm1740_vm11, %v1729_v5, %v15844_v42  ;;  %v11591_v12 = vsel %vm2268_vm6, %v3821_v54, %v3822_v8  ;;  %v3824_v29 = vrot.slane %v11523_v20, 4  ;;  %v15846_v19 = vld [vmem:[#allocation106_spill] sm:$0xff]  ;;  %v15847_v54 = vld [vmem:[#allocation133_spill] sm:$0xff] }
 0x3c1   : > { %v11574_v3 = vpop.permute.xlu0 %2635  ;;  %v1792_v15 = vsel %vm1740_vm11, %v1727_v36, %v15822_v62  ;;  %15845 = vst [vmem:[#allocation14_spill] sm:$0xff] %v11591_v12  ;;  %v1536_v46 = vsel %vm1480_vm7, %v1471_v26, %v15846_v19  ;;  %v1859_v2 = vsel %vm1805_vm12, %v1794_v23, %v1338_v0  ;;  %v2118_v36 = vrot.slane %v2116_v38, 3  ;;  %v15848_v26 = vld [vmem:[#allocation164_spill] sm:$0xff]  ;;  %v15851_v19 = vld [vmem:[#allocation194_spill] sm:$0xff] }
 0x3c2   : > { %3758 = vrot.lane.b32.xlu1 %v3751_v28, %s8469_s9  ;;  %v1857_v60 = vsel %vm1805_vm12, %v1792_v15, %v1336_v10  ;;  %v3825_v28 = vrot.slane %v11525_v49, 4  ;;  %v1601_v15 = vsel %vm1545_vm8, %v1536_v46, %v15847_v54 }
 0x3c3   : > { %3760 = vrot.lane.b32.xlu0 %v3755_v30, %s8469_s9  ;;  %v2121_v30 = vrot.slane %v2119_v27, 4  ;;  %v1666_v0 = vsel %vm1610_vm9, %v1601_v15, %v15848_v26 }
 0x3c4   : > { %v1403_v39 = vpop.permute.xlu1 %1402  ;;  %v1731_v46 = vsel %vm1675_vm10, %v1666_v0, %v15851_v19 }
 0x3c5   : > { %v1922_v61 = vsel %vm1870_vm13, %v1857_v60, %v1403_v39  ;;  %v1405_v5 = vpop.permute.xlu0 %1404  ;;  %v11613_v39 = vsel %vm2268_vm6, %v3824_v29, %v3825_v28 }
 0x3c6   : > { %v2123_v62 = vshrl.u32 %v1922_v61, 16  ;;  %v2126_v10 = vshll.u32 %v1922_v61, 16  ;;  %2922 = vrot.lane.b32.xlu1 %v11519_v45, %s8476_s22  ;;  %v1924_v31 = vsel %vm1870_vm13, %v1859_v2, %v1405_v5  ;;  %15850 = vst [vmem:[#allocation61_spill] sm:$0xff] %v11613_v39  ;;  %v2122_v5 = vor.u32 %v2121_v30, %v2118_v36 }
 0x3c7   : > { %3869 = vrot.lane.b32.xlu0 %v11591_v12, %s8470_s10  ;;  %v2131_v50 = vshrl.u32 %v1924_v31, 16  ;;  %v2134_v15 = vshll.u32 %v1924_v31, 16 }
 0x3c8   : > { %v2125_v23 = vrot.slane %v2123_v62, 3  ;;  %v2128_v60 = vrot.slane %v2126_v10, 4  ;;  %v11608_v38 = vpop.f32.mrb[8].mxu1  ;;  %v11610_v27 = vpop.permute.xlu1 %2637  ;;  %v15854_v10 = vld [vmem:[#allocation223_spill] sm:$0xff] }
 0x3c9   : > { %15849 = vst [vmem:[#allocation170_spill] sm:$0xff] %v11608_v38  ;;  %v11617_v61 = vpop.permute.xlu0 %2695  ;;  %v11619_v2 = vpop.f32.mrb[9].mxu1  ;;  %v1796_v26 = vsel %vm1740_vm11, %v1731_v46, %v15854_v10 }
 0x3ca   : > { %15852 = vst [vmem:[#allocation91_spill] sm:$0xff] %v11619_v2  ;;  %v2129_v45 = vor.u32 %v2128_v60, %v2125_v23  ;;  %v11621_v62 = vpop.f32.mrb[10].mxu1  ;;  %3762 = vrot.lane.b32.xlu1 %v3754_v18, %s8469_s9  ;;  %v1861_v0 = vsel %vm1805_vm12, %v1796_v26, %v1340_v21  ;;  %v2133_v18 = vrot.slane %v2131_v50, 3  ;;  %v2136_v23 = vrot.slane %v2134_v15, 4  ;;  %v11644_v50 = vld [vmem:[#allocation2] sm:$0xff]  ;;  %v479_v15 = vld [vmem:[#allocation2 + $0x8] sm:$0xff] }
 0x3cb   : > { %15853 = vst [vmem:[#allocation13_spill] sm:$0xff] %v11621_v62  ;;  %3873 = vrot.lane.b32.xlu0 %v11613_v39, %s8470_s10  ;;  %v11628_v29 = vpop.f32.mrb[11].mxu1  ;;  %v15856_v62 = vld [vmem:[#allocation186_spill] sm:$0xff]  ;;  %15857 = vst [vmem:[#allocation22_spill] sm:$0xff] %v11644_v50  ;;  %v5064_v2 = vrot.slane %v11644_v50, 4  ;;  %v5065_v53 = vrot.slane %v479_v15, 4 }
 0x3cc   : > { %15855 = vst [vmem:[#allocation148_spill] sm:$0xff] %v11628_v29  ;;  %v1407_v19 = vpop.permute.xlu1 %1406  ;;  %v2130_v36 = vsel %vm1935_vm14, %v2122_v5, %v2129_v45  ;;  %v8355_v29 = vld [vmem:[#allocation2 + $0x80] sm:$0xff]  ;;  %v11639_v5 = vld [vmem:[#allocation2 + $0x88] sm:$0xff] }
 0x3cd   : > { %v1926_v30 = vsel %vm1870_vm13, %v1861_v0, %v1407_v19  ;;  %v11633_v31 = vpop.permute.xlu0 %2699  ;;  %7896 = vmatprep.mubr.msk.bf16.mxu0 %vm2219_vm15, %v2130_v36  ;;  %v3833_v45 = vrot.slane %v8355_v29, 4  ;;  %v11642_v0 = vrot.slane %v11639_v5, 4  ;;  %v2137_v36 = vor.u32 %v2136_v23, %v2133_v18 }
 0x3ce   : > { %v2138_v60 = vshrl.u32 %v1926_v30, 16  ;;  %v2141_v46 = vshll.u32 %v1926_v30, 16  ;;  %3871 = vrot.lane.b32.xlu1 %v3822_v8, %s8470_s10  ;;  %v15858_v8 = vld [vmem:[#allocation190_spill] sm:$0xff]  ;;  %v5066_v18 = vsel %vm2268_vm6, %v5064_v2, %v5065_v53 }
 0x3cf   : > { %3933 = vrot.lane.b32.xlu0 %v15856_v62, %s8472_s12  ;;  %v11680_v2 = vld [vmem:[#allocation2 + $0x10] sm:$0xff] }
 0x3d0   : > { %v2140_v38 = vrot.slane %v2138_v60, 3  ;;  %v2143_v21 = vrot.slane %v2141_v46, 4  ;;  %v2698_v26 = vpop.permute.xlu1 %2697  ;;  %v11654_v46 = vsel %vm2268_vm6, %v3833_v45, %v11642_v0  ;;  %v11668_v45 = vld [vmem:[#allocation2 + $0x98] sm:$0xff]  ;;  %15861 = vst [vmem:[#allocation16_spill] sm:$0xff] %v11680_v2 }
 0x3d1   : > { %v2766_v19 = vpop.permute.xlu0 %2765 }
 0x3d2   : > { %v2144_v30 = vor.u32 %v2143_v21, %v2140_v38  ;;  %3875 = vrot.lane.b32.xlu1 %v3825_v28, %s8470_s10  ;;  %v15859_v28 = vld [vmem:[#allocation183_spill] sm:$0xff] }
 0x3d3   : > { %3937 = vrot.lane.b32.xlu0 %v15858_v8, %s8472_s12  ;;  %v15860_v21 = vld [vmem:[#allocation187_spill] sm:$0xff] }
 0x3d4   : > { %v11649_v60 = vpop.permute.xlu1 %2701  ;;  %v2145_v29 = vsel %vm1935_vm14, %v2137_v36, %v2144_v30  ;;  %v11671_v36 = vrot.slane %v11668_v45, 4  ;;  %v8358_v30 = vld [vmem:[#allocation2 + $0x90] sm:$0xff] }
 0x3d5   : > { %v11657_v40 = vpop.permute.xlu0 %2769  ;;  %7897 = vmatmul.mubr.msk.bf16.gmra.mrb[24].mxu0 %vm2219_vm15, %v2145_v29  ;;  %v3836_v29 = vrot.slane %v8358_v30, 4  ;;  %v2977_v30 = vsel %vm314_vm0, %v11688_v48, %v11467_v56  ;;  %v8268_v56 = vld [vmem:[%s15013_s1 + $0x48] sm:$0xff]  }
 0x3d6   : > { %3935 = vrot.lane.b32.xlu1 %v15859_v28, %s8472_s12  ;;  %v3041_v51 = vsel %vm1480_vm7, %v2977_v30, %v11535_v57  ;;  %7946 = vmatprep.subr.bf16.mxu0 %v8268_v56 }
 0x3d7   : > { %4009 = vrot.lane.b32.xlu0 %v11654_v46, %s8473_s13  ;;  %7947 = vmatpush3.bf16.msra.mxu0 %v8268_v56 }
 0x3d8   : > { %v2768_v38 = vpop.permute.xlu1 %2767 }
 0x3d9   : > { %v2839_v23 = vpop.permute.xlu0 %2838 }
 0x3da   : > { %3939 = vrot.lane.b32.xlu1 %v15860_v21, %s8472_s12 }
 0x3db   : > { %5076 = vrot.lane.b32.xlu0 %v5066_v18, %s8469_s9  ;;  %v3039_v18 = vsel %vm1480_vm7, %v2975_v44, %v11503_v52  ;;  %v11701_v44 = vsel %vm2268_vm6, %v3836_v29, %v11671_v36  ;;  %v5067_v52 = vrot.slane %v11680_v2, 4  ;;  %v3079_v29 = vsel %vm1545_vm8, %v3041_v51, %v15838_v7 }
 0x3dc   : > { %v11678_v53 = vpop.permute.xlu1 %2771  ;;  %15862 = vst [vmem:[#allocation42_spill] sm:$0xff] %v11701_v44  ;;  %v3078_v50 = vsel %vm1545_vm8, %v3039_v18, %v15829_v43  ;;  %v3137_v12 = vsel %vm1610_vm9, %v3079_v29, %v2698_v26  ;;  %v15887_v43 = vld [vmem:[#allocation108_spill] sm:$0xff] }
 0x3dd   : > { %v11686_v37 = vpop.permute.xlu0 %2842  ;;  %v3135_v57 = vsel %vm1610_vm9, %v3078_v50, %v11617_v61  ;;  %v5069_v18 = vsel %vm2268_vm6, %v5067_v52, %v5068_v16  ;;  %v8269_v61 = vld [vmem:[%s15013_s1 + $0x50] sm:$0xff]   ;;  %v2979_v50 = vsel %vm314_vm0, %v11510_v1, %v11488_v9  ;;  %v2981_v16 = vsel %vm314_vm0, %v11548_v58, %v11516_v25  ;;  %v8270_v25 = vld [vmem:[%s15013_s1 + $0x58] sm:$0xff]  }
 0x3de   : > { %4011 = vrot.lane.b32.xlu1 %v11642_v0, %s8473_s13  ;;  %v3199_v2 = vsel %vm1675_vm10, %v3135_v57, %v2766_v19  ;;  %v3201_v19 = vsel %vm1675_vm10, %v3137_v12, %v2768_v38  ;;  %v3043_v56 = vsel %vm1480_vm7, %v2979_v50, %v11574_v3  ;;  %7948 = vmatprep.subr.bf16.mxu0 %v8269_v61  ;;  %v8361_v57 = vld [vmem:[#allocation2 + $0xc0] sm:$0xff] }
 0x3df   : > { %4015 = vrot.lane.b32.xlu0 %v11671_v36, %s8473_s13  ;;  %v3238_v26 = vsel %vm1740_vm11, %v3199_v2, %v15844_v42  ;;  %7949 = vmatpush3.bf16.msra.mxu0 %v8269_v61  ;;  %v3045_v9 = vsel %vm1480_vm7, %v2981_v16, %v11610_v27  ;;  %v3239_v3 = vsel %vm1740_vm11, %v3201_v19, %v15854_v10  ;;  %v3845_v29 = vrot.slane %v8361_v57, 4  ;;  %v11886_v42 = vld [vmem:[#allocation2 + $0x60] sm:$0xff] }
 0x3e0   : > { %v2841_v39 = vpop.permute.xlu1 %2840  ;;  %v3297_v52 = vsel %vm1805_vm12, %v3238_v26, %v2839_v23  ;;  %v3080_v38 = vsel %vm1545_vm8, %v3043_v56, %v15837_v63  ;;  %7950 = vmatprep.subr.bf16.mxu0 %v8270_v25  ;;  %15890 = vst [vmem:[#allocation149_spill] sm:$0xff] %v11886_v42 }
 0x3e1   : > { %v2909_v30 = vpop.permute.xlu0 %2908  ;;  %v3299_v23 = vsel %vm1805_vm12, %v3239_v3, %v2841_v39  ;;  %v3139_v61 = vsel %vm1610_vm9, %v3080_v38, %v11633_v31  ;;  %v3081_v39 = vsel %vm1545_vm8, %v3045_v9, %v15847_v54  ;;  %v15884_v54 = vld [vmem:[#allocation79_spill] sm:$0xff] }
 0x3e2   : > { %4013 = vrot.lane.b32.xlu1 %v11701_v44, %s8473_s13  ;;  %v3361_v12 = vsel %vm1870_vm13, %v3297_v52, %v2909_v30  ;;  %v3203_v56 = vsel %vm1675_vm10, %v3139_v61, %v11657_v40  ;;  %v3141_v31 = vsel %vm1610_vm9, %v3081_v39, %v11649_v60  ;;  %v8271_v40 = vld [vmem:[%s15013_s1 + $0x60] sm:$0xff]   ;;  %v15870_v60 = vld [vmem:[#allocation222_spill] sm:$0xff]  ;;  %v8272_v39 = vld [vmem:[%s15013_s1 + $0x68] ss:$0 sps:$4 sm:$0xff]  }
 0x3e3   : > { %5108 = vrot.lane.b32.xlu0 %v479_v15, %s8470_s10  ;;  %v3445_v16 = vrot.slane %v3361_v12, 3  ;;  %7951 = vmatpush3.bf16.msra.mxu0 %v8270_v25  ;;  %v3205_v9 = vsel %vm1675_vm10, %v3141_v31, %v11678_v53  ;;  %v15872_v53 = vld [vmem:[#allocation225_spill] sm:$0xff] }
 0x3e4   : > { %v2845_v51 = vpop.permute.xlu1 %2844  ;;  %7952 = vmatprep.subr.bf16.mxu0 %v8271_v40 }
 0x3e5   : > { %v11731_v15 = vpop.permute.xlu0 %2526 }
 0x3e6   : > { %5078 = vrot.lane.b32.xlu1 %v5069_v18, %s8469_s9  ;;  %v11753_v18 = vld [vmem:[#allocation2 + $0xc8] sm:$0xff] }
 0x3e7   : > { %4093 = vrot.lane.b32.xlu0 %v10078_v47, %s8475_s15  ;;  %15864 = vst [vmem:[#allocation44_spill] sm:$0xff] %v11753_v18  ;;  %v11756_v30 = vrot.slane %v11753_v18, 4  ;;  %7953 = vmatpush3.bf16.msra.mxu0 %v8271_v40  ;;  %v15896_v18 = vld [vmem:[#allocation165_spill] sm:$0xff] }
 0x3e8   : > { %v11751_v2 = vpop.f32.mrb[12].mxu0  ;;  %v2911_v27 = vpop.permute.xlu1 %2910  ;;  %8178 = vmatprep.subr.msk.bf16.mxu0 %vm2268_vm6, %v8272_v39 }
 0x3e9   : > { %15863 = vst [vmem:[#allocation41_spill] sm:$0xff] %v11751_v2  ;;  %15865 = vst [vmem:[#allocation43_spill] sm:$0xff] %v11756_v30  ;;  %v3363_v50 = vsel %vm1870_vm13, %v3299_v23, %v2911_v27  ;;  %v2913_v19 = vpop.permute.xlu0 %2912  ;;  %v11761_v26 = vpop.f32.mrb[13].mxu0  ;;  %v11787_v25 = vsel %vm2268_vm6, %v3845_v29, %v11756_v30  ;;  %v3240_v27 = vsel %vm1740_vm11, %v3203_v56, %v15870_v60 }
 0x3ea   : > { %15866 = vst [vmem:[#allocation62_spill] sm:$0xff] %v11761_v26  ;;  %v3446_v52 = vrot.slane %v3363_v50, 3  ;;  %v11767_v3 = vpop.f32.mrb[14].mxu0  ;;  %4091 = vrot.lane.b32.xlu1 %v10090_v41, %s8475_s15  ;;  %15869 = vst [vmem:[#allocation15_spill] sm:$0xff] %v11787_v25  ;;  %v3301_v61 = vsel %vm1805_vm12, %v3240_v27, %v11686_v37  ;;  %v3241_v50 = vsel %vm1740_vm11, %v3205_v9, %v15872_v53  ;;  %v11824_v27 = vld [vmem:[#allocation2 + $0xd8] sm:$0xff]  ;;  %v15883_v26 = vld [vmem:[#allocation193_spill] sm:$0xff] }
 0x3eb   : > { %15867 = vst [vmem:[#allocation90_spill] sm:$0xff] %v11767_v3  ;;  %4095 = vrot.lane.b32.xlu0 %v10108_v34, %s8475_s15  ;;  %v11775_v38 = vpop.f32.mrb[15].mxu0  ;;  %v3365_v29 = vsel %vm1870_vm13, %v3301_v61, %v2913_v19  ;;  %v3303_v56 = vsel %vm1805_vm12, %v3241_v50, %v2845_v51  ;;  %15875 = vst [vmem:[#allocation64_spill] sm:$0xff] %v11824_v27  ;;  %v11827_v61 = vrot.slane %v11824_v27, 4  ;;  %v8364_v50 = vld [vmem:[#allocation2 + $0xd0] sm:$0xff] }
 0x3ec   : > { %15868 = vst [vmem:[#allocation147_spill] sm:$0xff] %v11775_v38  ;;  %v11782_v12 = vpop.permute.xlu1 %2528  ;;  %v3447_v23 = vsel %vm3408_vm1, %v3445_v16, %v3446_v52  ;;  %v3448_v31 = vrot.slane %v3365_v29, 3  ;;  %v3848_v29 = vrot.slane %v8364_v50, 4  ;;  %v15895_v27 = vld [vmem:[#allocation81_spill] sm:$0xff] }
 0x3ed   : > { %v11791_v57 = vpop.permute.xlu0 %1266  ;;  %7938 = vmatprep.mubr.msk.bf16.mxu1 %vm2219_vm15, %v3447_v23  ;;  %v15874_v23 = vld [vmem:[#allocation168_spill] sm:$0xff]  ;;  %15876 = vst [vmem:[#allocation93_spill] sm:$0xff] %v11827_v61 }
 0x3ee   : > { %15871 = vst [vmem:[#allocation172_spill] sm:$0xff] %v11791_v57  ;;  %5110 = vrot.lane.b32.xlu1 %v11682_v17, %s8470_s10  ;;  %v4861_v17 = vsel %vm2268_vm6, %v8272_v39, 0 }
 0x3ef   : > { %4167 = vrot.lane.b32.xlu0 %v11787_v25, %s8476_s22  ;;  %7955 = vmatpush3.bf16.msra.mxu0 %v4861_v17  ;;  %v11839_v17 = vld [vmem:[#allocation2 + $0x150] sm:$0xff]  ;;  %v15898_v25 = vld [vmem:[#allocation195_spill] sm:$0xff] }
 0x3f0   : > { %v2915_v16 = vpop.permute.xlu1 %2914 }
 0x3f1   : > { %v3367_v37 = vsel %vm1870_vm13, %v3303_v56, %v2915_v16  ;;  %v1342_v52 = vpop.permute.xlu0 %1341  ;;  %v15877_v16 = vld [vmem:[#allocation24_spill] sm:$0xff] }
 0x3f2   : > { %v3449_v40 = vrot.slane %v3367_v37, 3  ;;  %4097 = vrot.lane.b32.xlu1 %v10098_v22, %s8475_s15  ;;  %v11837_v37 = vsel %vm2268_vm6, %v3848_v29, %v11827_v61  ;;  %v15882_v29 = vld [vmem:[#allocation163_spill] sm:$0xff] }
 0x3f3   : > { %5140 = vrot.lane.b32.xlu0 %v11654_v46, %s8472_s12  ;;  %15878 = vst [vmem:[#allocation92_spill] sm:$0xff] %v11837_v37 }
 0x3f4   : > { %v11814_v19 = vpop.permute.xlu1 %1268  ;;  %v3450_v51 = vsel %vm3408_vm1, %v3448_v31, %v3449_v40  ;;  %v15879_v31 = vld [vmem:[#allocation77_spill] sm:$0xff] }
 0x3f5   : > { %15873 = vst [vmem:[#allocation63_spill] sm:$0xff] %v11814_v19  ;;  %v11817_v9 = vpop.permute.xlu0 %2530  ;;  %7939 = vmatmul.mubr.msk.bf16.gmra.mrb[24].mxu1 %vm2219_vm15, %v3450_v51  ;;  %v1473_v40 = vsel %vm314_vm0, %v11839_v17, %v15879_v31 }
 0x3f6   : > { %4169 = vrot.lane.b32.xlu1 %v11756_v30, %s8476_s22 }
 0x3f7   : > { %3766 = vrot.lane.b32.xlu0 %v15874_v23, %s8469_s9  ;;  %v15880_v23 = vld [vmem:[#allocation105_spill] sm:$0xff] }
 0x3f8   : > { %v1344_v39 = vpop.permute.xlu1 %1343  ;;  %v1538_v50 = vsel %vm1480_vm7, %v1473_v40, %v15880_v23  ;;  %v1477_v40 = vsel %vm314_vm0, %v11186_v13, %v15884_v54  ;;  %v11863_v23 = vld [vmem:[#allocation2 + $0x158] sm:$0xff] }
 0x3f9   : > { %v11829_v56 = vpop.permute.xlu0 %2639 }
 0x3fa   : > { %3764 = vrot.lane.b32.xlu1 %v15877_v16, %s8469_s9  ;;  %v15881_v16 = vld [vmem:[#allocation132_spill] sm:$0xff] }
 0x3fb   : > { %4173 = vrot.lane.b32.xlu0 %v11827_v61, %s8476_s22  ;;  %v1603_v2 = vsel %vm1545_vm8, %v1538_v50, %v15881_v16  ;;  %v15885_v50 = vld [vmem:[#allocation80_spill] sm:$0xff] }
 0x3fc   : > { %v11844_v51 = vpop.permute.xlu1 %2532  ;;  %v1668_v38 = vsel %vm1610_vm9, %v1603_v2, %v15882_v29  ;;  %v1475_v7 = vsel %vm314_vm0, %v11863_v23, %v15885_v50  ;;  %v11880_v50 = vld [vmem:[#allocation2 + $0x68] sm:$0xff] }
 0x3fd   : > { %v1346_v3 = vpop.permute.xlu0 %1345  ;;  %v1733_v31 = vsel %vm1675_vm10, %v1668_v38, %v15883_v26  ;;  %v15886_v26 = vld [vmem:[#allocation107_spill] sm:$0xff]  ;;  %v1540_v13 = vsel %vm1480_vm7, %v1475_v7, %v15887_v43  ;;  %15888 = vst [vmem:[#allocation150_spill] sm:$0xff] %v11880_v50 }
 0x3fe   : > { %4171 = vrot.lane.b32.xlu1 %v11837_v37, %s8476_s22  ;;  %v1798_v2 = vsel %vm1740_vm11, %v1733_v31, %v15870_v60  ;;  %v1542_v38 = vsel %vm1480_vm7, %v1477_v40, %v15886_v26  ;;  %v3828_v31 = vrot.slane %v11880_v50, 4  ;;  %v15889_v60 = vld [vmem:[#allocation173_spill] sm:$0xff]  ;;  %v3827_v40 = vrot.slane %v11886_v42, 4  ;;  %v11892_v7 = vld [vmem:[#allocation2 + $0x78] sm:$0xff] }
 0x3ff   : > { %5172 = vrot.lane.b32.xlu0 %v11639_v5, %s8473_s13  ;;  %v8273_v5 = vld [vmem:[%s15013_s1 + $0x6c] sm:$0xff]   ;;  %v1863_v54 = vsel %vm1805_vm12, %v1798_v2, %v1342_v52  ;;  %15892 = vst [vmem:[#allocation18_spill] sm:$0xff] %v11892_v7  ;;  %v1479_v42 = vsel %vm314_vm0, %v11189_v14, %v15895_v27  ;;  %v15900_v27 = vld [vmem:[#allocation176_spill] sm:$0xff] }
 0x400   : > { %v11858_v63 = vpop.permute.xlu1 %2641  ;;  %v11889_v26 = vld [vmem:[#allocation2 + $0x70] sm:$0xff]  ;;  %7988 = vmatprep.subr.bf16.mxu1 %v8273_v5 }
 0x401   : > { %v1409_v29 = vpop.permute.xlu0 %1408  ;;  %15891 = vst [vmem:[#allocation175_spill] sm:$0xff] %v11889_v26  ;;  %v3830_v43 = vrot.slane %v11889_v26, 4  ;;  %v15893_v2 = vld [vmem:[#allocation134_spill] sm:$0xff]  ;;  %7989 = vmatpush3.bf16.msra.mxu1 %v8273_v5  ;;  %v15899_v5 = vld [vmem:[#allocation196_spill] sm:$0xff] }
 0x402   : > { %5142 = vrot.lane.b32.xlu1 %v11701_v44, %s8472_s12  ;;  %v1928_v10 = vsel %vm1870_vm13, %v1863_v54, %v1409_v29  ;;  %v1607_v50 = vsel %vm1545_vm8, %v1542_v38, %v15893_v2  ;;  %v15894_v29 = vld [vmem:[#allocation135_spill] sm:$0xff]  ;;  %v15897_v37 = vld [vmem:[#allocation166_spill] sm:$0xff] }
 0x403   : > { %3770 = vrot.lane.b32.xlu0 %v15889_v60, %s8469_s9  ;;  %v1605_v54 = vsel %vm1545_vm8, %v1540_v13, %v15894_v29  ;;  %v1672_v26 = vsel %vm1610_vm9, %v1607_v50, %v15896_v18  ;;  %v8274_v38 = vld [vmem:[%s15013_s1 + $0x74] sm:$0xff]   ;;  %v2146_v34 = vshrl.u32 %v1928_v10, 16  ;;  %v2149_v14 = vshll.u32 %v1928_v10, 16 }
 0x404   : > { %v1348_v60 = vpop.permute.xlu1 %1347  ;;  %v1670_v61 = vsel %vm1610_vm9, %v1605_v54, %v15897_v37  ;;  %v1737_v13 = vsel %vm1675_vm10, %v1672_v26, %v15898_v25  ;;  %v11921_v37 = vsel %vm2268_vm6, %v3827_v40, %v3828_v31  ;;  %v15902_v50 = vrot.slane %v11892_v7, 4  ;;  %7990 = vmatprep.subr.bf16.mxu1 %v8274_v38 }
 0x405   : > { %v11906_v52 = vpop.permute.xlu0 %2643  ;;  %v1735_v30 = vsel %vm1675_vm10, %v1670_v61, %v15899_v5  ;;  %15901 = vst [vmem:[#allocation174_spill] sm:$0xff] %v11921_v37  ;;  %v1802_v10 = vsel %vm1740_vm11, %v1737_v13, %v11791_v57  ;;  %v11935_v5 = vrot.slane %v11396_v35, 4  ;;  %7991 = vmatpush3.bf16.msra.mxu1 %v8274_v38  ;;  %v8275_v13 = vld [vmem:[%s15013_s1 + $0x7c] sm:$0xff]  }
 0x406   : > { %3768 = vrot.lane.b32.xlu1 %v15900_v27, %s8469_s9  ;;  %v1800_v18 = vsel %vm1740_vm11, %v1735_v30, %v15872_v53  ;;  %v11926_v25 = vsel %vm2268_vm6, %v3830_v43, %v15902_v50  ;;  %v3857_v30 = vrot.slane %v11389_v4, 4  ;;  %v1867_v43 = vsel %vm1805_vm12, %v1802_v10, %v1346_v3  ;;  %7992 = vmatprep.subr.bf16.mxu1 %v8275_v13 }
 0x407   : > { %3879 = vrot.lane.b32.xlu0 %v3828_v31, %s8470_s10  ;;  %15903 = vst [vmem:[#allocation66_spill] sm:$0xff] %v11926_v25  ;;  %v1865_v61 = vsel %vm1805_vm12, %v1800_v18, %v1344_v39  ;;  %v15905_v31 = vld [vmem:[#allocation110_spill] sm:$0xff]  ;;  %v2148_v50 = vrot.slane %v2146_v34, 3  ;;  %v2151_v4 = vrot.slane %v2149_v14, 4  ;;  %v15910_v34 = vld [vmem:[#allocation167_spill] sm:$0xff] }
 0x408   : > { %v11931_v26 = vpop.f32.mrb[12].mxu1  ;;  %v1411_v54 = vpop.permute.xlu1 %1410  ;;  %v1544_v40 = vsel %vm1480_vm7, %v1479_v42, %v15905_v31  ;;  %v15908_v42 = vld [vmem:[#allocation136_spill] sm:$0xff] }
 0x409   : > { %15904 = vst [vmem:[#allocation95_spill] sm:$0xff] %v11931_v26  ;;  %v1930_v27 = vsel %vm1870_vm13, %v1865_v61, %v1411_v54  ;;  %v1413_v39 = vpop.permute.xlu0 %1412  ;;  %v11941_v18 = vpop.f32.mrb[13].mxu1  ;;  %v1609_v3 = vsel %vm1545_vm8, %v1544_v40, %v15908_v42  ;;  %7993 = vmatpush3.bf16.msra.mxu1 %v8275_v13  ;;  %v15911_v40 = vld [vmem:[#allocation198_spill] sm:$0xff] }
 0x40a   : > { %15906 = vst [vmem:[#allocation17_spill] sm:$0xff] %v11941_v18  ;;  %v2153_v26 = vshrl.u32 %v1930_v27, 16  ;;  %v2156_v53 = vshll.u32 %v1930_v27, 16  ;;  %v11946_v20 = vpop.f32.mrb[14].mxu1  ;;  %3877 = vrot.lane.b32.xlu1 %v11921_v37, %s8470_s10  ;;  %v1932_v38 = vsel %vm1870_vm13, %v1867_v43, %v1413_v39  ;;  %v1674_v14 = vsel %vm1610_vm9, %v1609_v3, %v15910_v34  ;;  %v8374_v18 = vld [vmem:[#allocation2 + $0x118] sm:$0xff] }
 0x40b   : > { %15907 = vst [vmem:[#allocation152_spill] sm:$0xff] %v11946_v20  ;;  %3881 = vrot.lane.b32.xlu0 %v11926_v25, %s8470_s10  ;;  %v11955_v61 = vpop.f32.mrb[15].mxu1  ;;  %v11963_v27 = vsel %vm2268_vm6, %v3857_v30, %v11935_v5  ;;  %v1739_v43 = vsel %vm1675_vm10, %v1674_v14, %v15911_v40  ;;  %v8276_v20 = vld [vmem:[%s15013_s1 + $0x84] sm:$0xff]   ;;  %v12041_v37 = vld [vmem:[#allocation2 + $0xb8] sm:$0xff] }
 0x40c   : > { %15909 = vst [vmem:[#allocation178_spill] sm:$0xff] %v11955_v61  ;;  %v2155_v10 = vrot.slane %v2153_v26, 3  ;;  %v2158_v54 = vrot.slane %v2156_v53, 4  ;;  %v11959_v31 = vpop.permute.xlu1 %2645  ;;  %v2152_v61 = vor.u32 %v2151_v4, %v2148_v50  ;;  %v2161_v26 = vshrl.u32 %v1932_v38, 16  ;;  %7994 = vmatprep.subr.bf16.mxu1 %v8276_v20 }
 0x40d   : > { %v11967_v39 = vpop.permute.xlu0 %2703  ;;  %v2164_v53 = vshll.u32 %v1932_v38, 16  ;;  %v1804_v30 = vsel %vm1740_vm11, %v1739_v43, %v11814_v19  ;;  %7995 = vmatpush3.bf16.msra.mxu1 %v8276_v20  ;;  %v8371_v20 = vld [vmem:[#allocation2 + $0x110] sm:$0xff]  ;;  %v11993_v43 = vrot.slane %v11281_v11, 4 }
 0x40e   : > { %v2159_v3 = vor.u32 %v2158_v54, %v2155_v10  ;;  %5174 = vrot.lane.b32.xlu1 %v11668_v45, %s8473_s13  ;;  %v1869_v13 = vsel %vm1805_vm12, %v1804_v30, %v1348_v60  ;;  %v8277_v45 = vld [vmem:[%s15013_s1 + $0x8c] ss:$0 sps:$4 sm:$0xff]   ;;  %v2163_v38 = vrot.slane %v2161_v26, 3  ;;  %v15912_v60 = vrot.slane %v11892_v7, 4 }
 0x40f   : > { %5232 = vrot.lane.b32.xlu0 %v11963_v27, %s8475_s15  ;;  %v2166_v10 = vrot.slane %v2164_v53, 4  ;;  %15913 = vst [vmem:[#allocation20_spill] sm:$0xff] %v11993_v43  ;;  %8179 = vmatprep.subr.msk.bf16.mxu1 %vm2268_vm6, %v8277_v45  ;;  %v12044_v7 = vrot.slane %v12041_v37, 4 }
 0x410   : > { %v1415_v34 = vpop.permute.xlu1 %1414  ;;  %v2160_v14 = vsel %vm1935_vm14, %v2152_v61, %v2159_v3  ;;  %v3860_v61 = vrot.slane %v8371_v20, 4  ;;  %v5606_v3 = vsel %vm2268_vm6, %v8277_v45, 0  ;;  %v12022_v20 = vld [vmem:[#allocation2 + $0x20] sm:$0xff] }
 0x411   : > { %v1934_v50 = vsel %vm1870_vm13, %v1869_v13, %v1415_v34  ;;  %v11981_v4 = vpop.permute.xlu0 %2707  ;;  %7900 = vmatprep.mubr.msk.bf16.mxu0 %vm2219_vm15, %v2160_v14  ;;  %7997 = vmatpush3.bf16.msra.mxu1 %v5606_v3  ;;  %v2167_v34 = vor.u32 %v2166_v10, %v2163_v38  ;;  %v12017_v38 = vld [vmem:[#allocation2 + $0xa8] sm:$0xff]  ;;  %v8373_v10 = vld [vmem:[#allocation2 + $0xa0] sm:$0xff]  ;;  %15916 = vst [vmem:[#allocation50_spill] sm:$0xff] %v12022_v20  ;;  %15920 = vst [vmem:[#allocation94_spill] sm:$0xff] %v12044_v7 }
 0x412   : > { %v2168_v54 = vshrl.u32 %v1934_v50, 16  ;;  %v2171_v40 = vshll.u32 %v1934_v50, 16  ;;  %3883 = vrot.lane.b32.xlu1 %v15912_v60, %s8470_s10  ;;  %v12005_v11 = vsel %vm2268_vm6, %v3860_v61, %v11993_v43  ;;  %v483_v61 = vld [vmem:[#allocation2 + $0x28] sm:$0xff] }
 0x413   : > { %3943 = vrot.lane.b32.xlu0 %v9924_v6, %s8472_s12  ;;  %15914 = vst [vmem:[#allocation47_spill] sm:$0xff] %v12005_v11  ;;  %v12059_v43 = vld [vmem:[#allocation2 + $0x148] sm:$0xff] }
 0x414   : > { %v2170_v26 = vrot.slane %v2168_v54, 3  ;;  %v2173_v53 = vrot.slane %v2171_v40, 4  ;;  %v11997_v30 = vpop.permute.xlu1 %2705  ;;  %v3839_v40 = vrot.slane %v8373_v10, 4  ;;  %15924 = vst [vmem:[#allocation68_spill] sm:$0xff] %v12059_v43 }
 0x415   : > { %v2774_v13 = vpop.permute.xlu0 %2773 }
 0x416   : > { %v2174_v14 = vor.u32 %v2173_v53, %v2170_v26  ;;  %3941 = vrot.lane.b32.xlu1 %v9939_v33, %s8472_s12  ;;  %v15918_v26 = vld [vmem:[#allocation200_spill] sm:$0xff] }
 0x417   : > { %5264 = vrot.lane.b32.xlu0 %v11396_v35, %s8476_s22  ;;  %v12020_v35 = vrot.slane %v12017_v38, 4 }
 0x418   : > { %v12007_v50 = vpop.permute.xlu1 %2709  ;;  %v2175_v45 = vsel %vm1935_vm14, %v2167_v34, %v2174_v14  ;;  %v5070_v34 = vrot.slane %v12022_v20, 4  ;;  %v5071_v14 = vrot.slane %v483_v61, 4  ;;  %v12046_v20 = vld [vmem:[#allocation2 + $0x140] sm:$0xff] }
 0x419   : > { %v12010_v54 = vpop.permute.xlu0 %2777  ;;  %7901 = vmatmul.mubr.msk.bf16.gmra.mrb[28].mxu0 %vm2219_vm15, %v2175_v45  ;;  %15915 = vst [vmem:[#allocation45_spill] sm:$0xff] %v12020_v35  ;;  %v12032_v53 = vsel %vm2268_vm6, %v3839_v40, %v12020_v35  ;;  %v8376_v40 = vld [vmem:[#allocation2 + $0xb0] sm:$0xff]  ;;  %15921 = vst [vmem:[#allocation151_spill] sm:$0xff] %v12046_v20 }
 0x41a   : > { %5234 = vrot.lane.b32.xlu1 %v12005_v11, %s8475_s15  ;;  %15919 = vst [vmem:[#allocation65_spill] sm:$0xff] %v12032_v53  ;;  %v5072_v25 = vsel %vm2268_vm6, %v5070_v34, %v5071_v14  ;;  %v12053_v11 = vld [vmem:[#allocation2 + $0x30] sm:$0xff] }
 0x41b   : > { %3947 = vrot.lane.b32.xlu0 %v9954_v24, %s8472_s12  ;;  %15923 = vst [vmem:[#allocation177_spill] sm:$0xff] %v12053_v11 }
 0x41c   : > { %v2776_v60 = vpop.permute.xlu1 %2775 }
 0x41d   : > { %v12024_v3 = vpop.permute.xlu0 %2783 }
 0x41e   : > { %15917 = vst [vmem:[#allocation48_spill] sm:$0xff] %v12024_v3  ;;  %3945 = vrot.lane.b32.xlu1 %v15918_v26, %s8472_s12  ;;  %v2983_v26 = vsel %vm314_vm0, %v12046_v20, %v11731_v15 }
 0x41f   : > { %4019 = vrot.lane.b32.xlu0 %v12020_v35, %s8473_s13  ;;  %v3842_v35 = vrot.slane %v8376_v40, 4  ;;  %v3047_v34 = vsel %vm1480_vm7, %v2983_v26, %v11829_v56  ;;  %v2985_v40 = vsel %vm314_vm0, %v12059_v43, %v11782_v12  ;;  %v5073_v56 = vrot.slane %v12053_v11, 4 }
 0x420   : > { %v12035_v45 = vpop.permute.xlu1 %2779  ;;  %v3049_v15 = vsel %vm1480_vm7, %v2985_v40, %v11858_v63  ;;  %v3082_v33 = vsel %vm1545_vm8, %v3047_v34, %v15881_v16 }
 0x421   : > { %v2847_v10 = vpop.permute.xlu0 %2846  ;;  %v12071_v20 = vsel %vm2268_vm6, %v3842_v35, %v12044_v7  ;;  %v3143_v63 = vsel %vm1610_vm9, %v3082_v33, %v11967_v39  ;;  %v3083_v35 = vsel %vm1545_vm8, %v3049_v15, %v15894_v29 }
 0x422   : > { %4017 = vrot.lane.b32.xlu1 %v12032_v53, %s8473_s13  ;;  %15925 = vst [vmem:[#allocation67_spill] sm:$0xff] %v12071_v20  ;;  %v3145_v34 = vsel %vm1610_vm9, %v3083_v35, %v11997_v30  ;;  %v8379_v35 = vld [vmem:[#allocation2 + $0xe0] sm:$0xff] }
 0x423   : > { %5266 = vrot.lane.b32.xlu0 %v8374_v18, %s8476_s22  ;;  %v12055_v18 = vld [vmem:[#allocation2 + $0x38] sm:$0xff]  ;;  %v3209_v39 = vsel %vm1675_vm10, %v3145_v34, %v2776_v60  ;;  %v3851_v34 = vrot.slane %v8379_v35, 4  ;;  %v15932_v35 = vld [vmem:[#allocation52_spill] sm:$0xff] }
 0x424   : > { %v12051_v24 = vpop.permute.xlu1 %2785  ;;  %v5074_v26 = vrot.slane %v12055_v18, 4  ;;  %v3243_v60 = vsel %vm1740_vm11, %v3209_v39, %v11814_v19  ;;  %v15941_v19 = vld [vmem:[#allocation112_spill] sm:$0xff] }
 0x425   : > { %15922 = vst [vmem:[#allocation19_spill] sm:$0xff] %v12051_v24  ;;  %v2851_v14 = vpop.permute.xlu0 %2850 }
 0x426   : > { %5080 = vrot.lane.b32.xlu1 %v5072_v25, %s8469_s9  ;;  %v5075_v33 = vsel %vm2268_vm6, %v5073_v56, %v5074_v26  ;;  %v2989_v26 = vsel %vm314_vm0, %v11863_v23, %v11844_v51 }
 0x427   : > { %4023 = vrot.lane.b32.xlu0 %v12044_v7, %s8473_s13  ;;  %v3207_v7 = vsel %vm1675_vm10, %v3143_v63, %v2774_v13  ;;  %v2987_v63 = vsel %vm314_vm0, %v11839_v17, %v11817_v9 }
 0x428   : > { %v12077_v12 = vpop.f32.mrb[16].mxu0  ;;  %v2849_v25 = vpop.permute.xlu1 %2848  ;;  %v3242_v13 = vsel %vm1740_vm11, %v3207_v7, %v11791_v57  ;;  %v15930_v7 = vld [vmem:[#allocation49_spill] sm:$0xff]  ;;  %v15980_v57 = vld [vmem:[#allocation68_spill] sm:$0xff] }
 0x429   : > { %15926 = vst [vmem:[#allocation4_spill] sm:$0xff] %v12077_v12  ;;  %v2917_v40 = vpop.permute.xlu0 %2916  ;;  %v12081_v43 = vpop.f32.mrb[17].mxu0  ;;  %v3305_v30 = vsel %vm1805_vm12, %v3242_v13, %v2847_v10  ;;  %v3307_v9 = vsel %vm1805_vm12, %v3243_v60, %v2849_v25  ;;  %v15931_v25 = vld [vmem:[#allocation46_spill] sm:$0xff] }
 0x42a   : > { %15927 = vst [vmem:[#allocation96_spill] sm:$0xff] %v12081_v43  ;;  %v12086_v11 = vpop.f32.mrb[18].mxu0  ;;  %4021 = vrot.lane.b32.xlu1 %v12071_v20, %s8473_s13  ;;  %v3369_v56 = vsel %vm1870_vm13, %v3305_v30, %v2917_v40  ;;  %v3053_v40 = vsel %vm1480_vm7, %v2989_v26, %v11959_v31 }
 0x42b   : > { %15928 = vst [vmem:[#allocation154_spill] sm:$0xff] %v12086_v11  ;;  %5112 = vrot.lane.b32.xlu0 %v483_v61, %s8470_s10  ;;  %v12093_v16 = vpop.f32.mrb[19].mxu0  ;;  %v3051_v61 = vsel %vm1480_vm7, %v2987_v63, %v11906_v52  ;;  %v3451_v51 = vrot.slane %v3369_v56, 3  ;;  %v3085_v31 = vsel %vm1545_vm8, %v3053_v40, %v15908_v42 }
 0x42c   : > { %15929 = vst [vmem:[#allocation153_spill] sm:$0xff] %v12093_v16  ;;  %v2853_v12 = vpop.permute.xlu1 %2852  ;;  %v3084_v63 = vsel %vm1545_vm8, %v3051_v61, %v15893_v2  ;;  %v12238_v2 = vrot.slane %v11548_v58, 4 }
 0x42d   : > { %v12099_v15 = vpop.permute.xlu0 %3756  ;;  %v3147_v60 = vsel %vm1610_vm9, %v3084_v63, %v11981_v4  ;;  %v3149_v4 = vsel %vm1610_vm9, %v3085_v31, %v12007_v50 }
 0x42e   : > { %5082 = vrot.lane.b32.xlu1 %v5075_v33, %s8469_s9  ;;  %v12117_v33 = vld [vmem:[#allocation2 + $0xe8] sm:$0xff]  ;;  %v3211_v26 = vsel %vm1675_vm10, %v3147_v60, %v12010_v54  ;;  %v3213_v54 = vsel %vm1675_vm10, %v3149_v4, %v12035_v45  ;;  %v8382_v4 = vld [vmem:[#allocation2 + $0xf0] sm:$0xff] }
 0x42f   : > { %4101 = vrot.lane.b32.xlu0 %v15930_v7, %s8475_s15  ;;  %v12120_v52 = vrot.slane %v12117_v33, 4 }
 0x430   : > { %v2919_v10 = vpop.permute.xlu1 %2918 }
 0x431   : > { %v3371_v39 = vsel %vm1870_vm13, %v3307_v9, %v2919_v10  ;;  %v2921_v13 = vpop.permute.xlu0 %2920  ;;  %v12142_v56 = vsel %vm2268_vm6, %v3851_v34, %v12120_v52  ;;  %v3245_v10 = vsel %vm1740_vm11, %v3211_v26, %v12024_v3  ;;  %v3247_v34 = vsel %vm1740_vm11, %v3213_v54, %v12051_v24 }
 0x432   : > { %v3452_v30 = vrot.slane %v3371_v39, 3  ;;  %4099 = vrot.lane.b32.xlu1 %v15931_v25, %s8475_s15  ;;  %15933 = vst [vmem:[#allocation180_spill] sm:$0xff] %v12142_v56  ;;  %v3309_v40 = vsel %vm1805_vm12, %v3245_v10, %v2851_v14  ;;  %v3311_v63 = vsel %vm1805_vm12, %v3247_v34, %v2853_v12  ;;  %v15934_v14 = vld [vmem:[#allocation5_spill] sm:$0xff]  ;;  %v12175_v12 = vld [vmem:[#allocation2 + $0xf8] sm:$0xff]  ;;  %v3854_v10 = vrot.slane %v8382_v4, 4 }
 0x433   : > { %4103 = vrot.lane.b32.xlu0 %v15932_v35, %s8475_s15  ;;  %v3373_v50 = vsel %vm1870_vm13, %v3309_v40, %v2921_v13 }
 0x434   : > { %v12137_v9 = vpop.permute.xlu1 %3758  ;;  %v3453_v61 = vsel %vm3408_vm1, %v3451_v51, %v3452_v30  ;;  %v3454_v45 = vrot.slane %v3373_v50, 3 }
 0x435   : > { %v12148_v39 = vpop.permute.xlu0 %3760  ;;  %7942 = vmatprep.mubr.msk.bf16.mxu1 %vm2219_vm15, %v3453_v61  ;;  %v12178_v61 = vrot.slane %v12175_v12, 4 }
 0x436   : > { %5114 = vrot.lane.b32.xlu1 %v12055_v18, %s8470_s10 }
 0x437   : > { %4175 = vrot.lane.b32.xlu0 %v12142_v56, %s8476_s22  ;;  %v12186_v34 = vsel %vm2268_vm6, %v3854_v10, %v12178_v61  ;;  %v3863_v10 = vrot.slane %v11673_v59, 4 }
 0x438   : > { %v2923_v51 = vpop.permute.xlu1 %2922  ;;  %15935 = vst [vmem:[#allocation23_spill] sm:$0xff] %v12186_v34 }
 0x439   : > { %v3375_v30 = vsel %vm1870_vm13, %v3311_v63, %v2923_v51  ;;  %v3870_v60 = vpop.permute.xlu0 %3869 }
 0x43a   : > { %v3455_v31 = vrot.slane %v3375_v30, 3  ;;  %4105 = vrot.lane.b32.xlu1 %v15934_v14, %s8475_s15 }
 0x43b   : > { %5144 = vrot.lane.b32.xlu0 %v12032_v53, %s8472_s12 }
 0x43c   : > { %v3763_v18 = vpop.permute.xlu1 %3762  ;;  %v3456_v13 = vsel %vm3408_vm1, %v3454_v45, %v3455_v31 }
 0x43d   : > { %v12168_v26 = vpop.permute.xlu0 %3873  ;;  %7943 = vmatmul.mubr.msk.bf16.gmra.mrb[28].mxu1 %vm2219_vm15, %v3456_v13 }
 0x43e   : > { %4177 = vrot.lane.b32.xlu1 %v12120_v52, %s8476_s22 }
 0x43f   : > { %3774 = vrot.lane.b32.xlu0 %v15859_v28, %s8469_s9 }
 0x440   : > { %v3872_v54 = vpop.permute.xlu1 %3871 }
 0x441   : > { %v3934_v40 = vpop.permute.xlu0 %3933 }
 0x442   : > { %3772 = vrot.lane.b32.xlu1 %v15856_v62, %s8469_s9 }
 0x443   : > { %4181 = vrot.lane.b32.xlu0 %v12178_v61, %s8476_s22 }
 0x444   : > { %v3876_v28 = vpop.permute.xlu1 %3875 }
 0x445   : > { %v12188_v50 = vpop.permute.xlu0 %3937 }
 0x446   : > { %4179 = vrot.lane.b32.xlu1 %v12186_v34, %s8476_s22 }
 0x447   : > { %5176 = vrot.lane.b32.xlu0 %v12017_v38, %s8473_s13 }
 0x448   : > { %v12194_v63 = vpop.f32.mrb[16].mxu1  ;;  %v3936_v51 = vpop.permute.xlu1 %3935 }
 0x449   : > { %15936 = vst [vmem:[#allocation179_spill] sm:$0xff] %v12194_v63  ;;  %v4010_v62 = vpop.permute.xlu0 %4009  ;;  %v12196_v30 = vpop.f32.mrb[17].mxu1 }
 0x44a   : > { %15937 = vst [vmem:[#allocation70_spill] sm:$0xff] %v12196_v30  ;;  %v12198_v45 = vpop.f32.mrb[18].mxu1  ;;  %5146 = vrot.lane.b32.xlu1 %v12071_v20, %s8472_s12 }
 0x44b   : > { %15938 = vst [vmem:[#allocation98_spill] sm:$0xff] %v12198_v45  ;;  %3778 = vrot.lane.b32.xlu0 %v15860_v21, %s8469_s9  ;;  %v12204_v31 = vpop.f32.mrb[19].mxu1  ;;  %v12214_v45 = vrot.slane %v11688_v48, 4 }
 0x44c   : > { %15939 = vst [vmem:[#allocation21_spill] sm:$0xff] %v12204_v31  ;;  %v3940_v13 = vpop.permute.xlu1 %3939 }
 0x44d   : > { %v12206_v4 = vpop.permute.xlu0 %5076 }
 0x44e   : > { %3776 = vrot.lane.b32.xlu1 %v15858_v8, %s8469_s9  ;;  %v12222_v8 = vsel %vm2268_vm6, %v3863_v10, %v12214_v45  ;;  %v3866_v10 = vrot.slane %v11510_v1, 4 }
 0x44f   : > { %3887 = vrot.lane.b32.xlu0 %v11642_v0, %s8470_s10 }
 0x450   : > { %v4012_v38 = vpop.permute.xlu1 %4011  ;;  %v12254_v24 = vsel %vm2268_vm6, %v3866_v10, %v12238_v2 }
 0x451   : > { %v4016_v63 = vpop.permute.xlu0 %4015 }
 0x452   : > { %3885 = vrot.lane.b32.xlu1 %v11654_v46, %s8470_s10 }
 0x453   : > { %3889 = vrot.lane.b32.xlu0 %v11701_v44, %s8470_s10 }
 0x454   : > { %v4014_v21 = vpop.permute.xlu1 %4013 }
 0x455   : > { %v12224_v11 = vpop.permute.xlu0 %5108 }
 0x456   : > { %5178 = vrot.lane.b32.xlu1 %v12041_v37, %s8473_s13  ;;  %v4233_v37 = vsel %vm314_vm0, %v11490_v32, %v12099_v15  ;;  %v15940_v32 = vld [vmem:[#allocation109_spill] sm:$0xff] }
 0x457   : > { %5236 = vrot.lane.b32.xlu0 %v12222_v8, %s8475_s15  ;;  %v4300_v29 = vsel %vm1480_vm7, %v4233_v37, %v3870_v60 }
 0x458   : > { %v12230_v59 = vpop.permute.xlu1 %5078  ;;  %v4363_v15 = vsel %vm1545_vm8, %v4300_v29, %v15940_v32 }
 0x459   : > { %v4094_v0 = vpop.permute.xlu0 %4093  ;;  %v4396_v37 = vsel %vm1610_vm9, %v4363_v15, %v3934_v40  ;;  %v15942_v15 = vld [vmem:[#allocation201_spill] sm:$0xff] }
 0x45a   : > { %3891 = vrot.lane.b32.xlu1 %v11671_v36, %s8470_s10  ;;  %v4236_v36 = vsel %vm314_vm0, %v11492_v55, %v12137_v9  ;;  %v4242_v9 = vsel %vm314_vm0, %v11525_v49, %v3763_v18 }
 0x45b   : > { %3951 = vrot.lane.b32.xlu0 %v10078_v47, %s8472_s12  ;;  %v4302_v1 = vsel %vm1480_vm7, %v4236_v36, %v3872_v54  ;;  %v4306_v36 = vsel %vm1480_vm7, %v4242_v9, %v3876_v28 }
 0x45c   : > { %v4092_v42 = vpop.permute.xlu1 %4091  ;;  %v4364_v54 = vsel %vm1545_vm8, %v4302_v1, %v15941_v19  ;;  %v15943_v19 = vld [vmem:[#allocation145_spill] sm:$0xff] }
 0x45d   : > { %v4096_v31 = vpop.permute.xlu0 %4095  ;;  %v4398_v10 = vsel %vm1610_vm9, %v4364_v54, %v3936_v51  ;;  %v15944_v51 = vld [vmem:[#allocation226_spill] sm:$0xff]  ;;  %v15946_v54 = vld [vmem:[#allocation43_spill] sm:$0xff] }
 0x45e   : > { %3949 = vrot.lane.b32.xlu1 %v10090_v41, %s8472_s12  ;;  %v4462_v29 = vsel %vm1675_vm10, %v4398_v10, %v4012_v38 }
 0x45f   : > { %5268 = vrot.lane.b32.xlu0 %v11688_v48, %s8476_s22  ;;  %v4460_v48 = vsel %vm1675_vm10, %v4396_v37, %v4010_v62  ;;  %v4239_v62 = vsel %vm314_vm0, %v15943_v19, %v12148_v39  ;;  %v15945_v37 = vld [vmem:[#allocation203_spill] sm:$0xff] }
 0x460   : > { %v12258_v60 = vpop.permute.xlu1 %5110  ;;  %v4523_v49 = vsel %vm1740_vm11, %v4460_v48, %v15942_v15  ;;  %v4304_v38 = vsel %vm1480_vm7, %v4239_v62, %v12168_v26  ;;  %v4524_v28 = vsel %vm1740_vm11, %v4462_v29, %v15945_v37  ;;  %v15947_v48 = vld [vmem:[#allocation115_spill] sm:$0xff] }
 0x461   : > { %v4168_v55 = vpop.permute.xlu0 %4167  ;;  %v4560_v1 = vsel %vm1805_vm12, %v4523_v49, %v4092_v42  ;;  %v4366_v10 = vsel %vm1545_vm8, %v4306_v36, %v15947_v48  ;;  %v4562_v39 = vsel %vm1805_vm12, %v4524_v28, %v4094_v0  ;;  %v15952_v0 = vld [vmem:[#allocation15_spill] sm:$0xff] }
 0x462   : > { %5238 = vrot.lane.b32.xlu1 %v12254_v24, %s8475_s15  ;;  %v4624_v9 = vsel %vm1870_vm13, %v4560_v1, %v4168_v55  ;;  %v4402_v49 = vsel %vm1610_vm9, %v4366_v10, %v3940_v13  ;;  %v15950_v55 = vld [vmem:[#allocation111_spill] sm:$0xff] }
 0x463   : > { %3955 = vrot.lane.b32.xlu0 %v10098_v22, %s8472_s12  ;;  %v4365_v62 = vsel %vm1545_vm8, %v4304_v38, %v15950_v55  ;;  %v4466_v1 = vsel %vm1675_vm10, %v4402_v49, %v4016_v63  ;;  %v4719_v37 = vrot.slane %v4624_v9, 2  ;;  %v15954_v9 = vld [vmem:[#allocation205_spill] sm:$0xff] }
 0x464   : > { %v4098_v40 = vpop.permute.xlu1 %4097  ;;  %v4400_v13 = vsel %vm1610_vm9, %v4365_v62, %v12188_v50  ;;  %v15955_v50 = vld [vmem:[#allocation14_spill] sm:$0xff]  ;;  %v15957_v62 = vld [vmem:[#allocation93_spill] sm:$0xff] }
 0x465   : > { %v12275_v18 = vpop.permute.xlu0 %5140  ;;  %v4464_v10 = vsel %vm1675_vm10, %v4400_v13, %v4014_v21 }
 0x466   : > { %3953 = vrot.lane.b32.xlu1 %v15944_v51, %s8472_s12 }
 0x467   : > { %4027 = vrot.lane.b32.xlu0 %v15946_v54, %s8473_s13 }
 0x468   : > { %v12293_v42 = vpop.f32.mrb[20].mxu0  ;;  %v4170_v15 = vpop.permute.xlu1 %4169 }
 0x469   : > { %15948 = vst [vmem:[#allocation156_spill] sm:$0xff] %v12293_v42  ;;  %v4626_v26 = vsel %vm1870_vm13, %v4562_v39, %v4170_v15  ;;  %v12297_v19 = vpop.permute.xlu0 %3766  ;;  %v12299_v29 = vpop.f32.mrb[21].mxu0  ;;  %v4526_v39 = vsel %vm1740_vm11, %v4466_v1, %v15954_v9  ;;  %v15964_v42 = vld [vmem:[#allocation140_spill] sm:$0xff] }
 0x46a   : > { %15949 = vst [vmem:[#allocation182_spill] sm:$0xff] %v12299_v29  ;;  %v4720_v36 = vrot.slane %v4626_v26, 2  ;;  %v12304_v48 = vpop.f32.mrb[22].mxu0  ;;  %4025 = vrot.lane.b32.xlu1 %v15952_v0, %s8473_s13  ;;  %v4566_v49 = vsel %vm1805_vm12, %v4526_v39, %v4098_v40  ;;  %v15958_v40 = vld [vmem:[#allocation92_spill] sm:$0xff] }
 0x46b   : > { %15951 = vst [vmem:[#allocation25_spill] sm:$0xff] %v12304_v48  ;;  %5270 = vrot.lane.b32.xlu0 %v11548_v58, %s8476_s22  ;;  %v12312_v28 = vpop.f32.mrb[23].mxu0  ;;  %v15956_v58 = vld [vmem:[#allocation202_spill] sm:$0xff]  ;;  %v8383_v39 = vld [vmem:[#allocation2 + $0x48] sm:$0xff] }
 0x46c   : > { %15953 = vst [vmem:[#allocation53_spill] sm:$0xff] %v12312_v28  ;;  %v12315_v38 = vpop.permute.xlu1 %3764  ;;  %v4721_v63 = vsel %vm2534_vm5, %v4719_v37, %v4720_v36  ;;  %v4525_v26 = vsel %vm1740_vm11, %v4464_v10, %v15956_v58 }
 0x46d   : > { %v4174_v15 = vpop.permute.xlu0 %4173  ;;  %7956 = vmatprep.mubr.msk.bf16.mxu0 %vm2219_vm15, %v4721_v63  ;;  %v4564_v37 = vsel %vm1805_vm12, %v4525_v26, %v4096_v31  ;;  %v15959_v31 = vld [vmem:[#allocation61_spill] sm:$0xff] }
 0x46e   : > { %5084 = vrot.lane.b32.xlu1 %v15955_v50, %s8469_s9  ;;  %v4630_v21 = vsel %vm1870_vm13, %v4566_v49, %v4174_v15  ;;  %v15960_v50 = vld [vmem:[#allocation83_spill] sm:$0xff] }
 0x46f   : > { %4031 = vrot.lane.b32.xlu0 %v15957_v62, %s8473_s13  ;;  %v4723_v63 = vrot.slane %v4630_v21, 2  ;;  %v15961_v21 = vld [vmem:[#allocation6_spill] sm:$0xff] }
 0x470   : > { %v4172_v36 = vpop.permute.xlu1 %4171 }
 0x471   : > { %v4628_v1 = vsel %vm1870_vm13, %v4564_v37, %v4172_v36  ;;  %v5173_v13 = vpop.permute.xlu0 %5172  ;;  %v15962_v37 = vld [vmem:[#allocation8_spill] sm:$0xff] }
 0x472   : > { %v4722_v9 = vrot.slane %v4628_v1, 2  ;;  %4029 = vrot.lane.b32.xlu1 %v15958_v40, %s8473_s13 }
 0x473   : > { %5116 = vrot.lane.b32.xlu0 %v8383_v39, %s8470_s10 }
 0x474   : > { %v4724_v10 = vsel %vm2534_vm5, %v4722_v9, %v4723_v63  ;;  %v5143_v15 = vpop.permute.xlu1 %5142  ;;  %v8384_v63 = vld [vmem:[#allocation2 + $0x58] sm:$0xff] }
 0x475   : > { %v12335_v49 = vpop.permute.xlu0 %3770  ;;  %7957 = vmatmul.mubr.msk.bf16.vlgmr.msra.gmra.mrb[32].mxu0 %vm2219_vm15, %v4724_v10  ;;  %v15963_v9 = vld [vmem:[#allocation22_spill] sm:$0xff] }
 0x476   : > { %5086 = vrot.lane.b32.xlu1 %v15959_v31, %s8469_s9  ;;  %v5298_v39 = vsel %vm314_vm0, %v15963_v9, %v12206_v4 }
 0x477   : > { %4109 = vrot.lane.b32.xlu0 %v15960_v50, %s8475_s15  ;;  %v5333_v10 = vsel %vm1480_vm7, %v5298_v39, %v12224_v11  ;;  %v15965_v11 = vld [vmem:[#allocation208_spill] sm:$0xff] }
 0x478   : > { %v12342_v58 = vpop.permute.xlu1 %3768  ;;  %v5364_v28 = vsel %vm1545_vm8, %v5333_v10, %v15940_v32 }
 0x479   : > { %v12344_v26 = vpop.permute.xlu0 %3879  ;;  %v5381_v4 = vsel %vm1610_vm9, %v5364_v28, %v12275_v18  ;;  %v15967_v18 = vld [vmem:[#allocation16_spill] sm:$0xff] }
 0x47a   : > { %4107 = vrot.lane.b32.xlu1 %v15961_v21, %s8475_s15  ;;  %v5413_v9 = vsel %vm1675_vm10, %v5381_v4, %v5173_v13  ;;  %v5301_v28 = vsel %vm314_vm0, %v15967_v18, %v12230_v59  ;;  %v15973_v18 = vld [vmem:[#allocation47_spill] sm:$0xff] }
 0x47b   : > { %4111 = vrot.lane.b32.xlu0 %v15962_v37, %s8475_s15  ;;  %v5444_v32 = vsel %vm1740_vm11, %v5413_v9, %v15965_v11  ;;  %v15971_v9 = vld [vmem:[#allocation20_spill] sm:$0xff]  ;;  %v5335_v59 = vsel %vm1480_vm7, %v5301_v28, %v12258_v60  ;;  %v15975_v60 = vld [vmem:[#allocation199_spill] sm:$0xff]  ;;  %v15976_v28 = vld [vmem:[#allocation210_spill] sm:$0xff] }
 0x47c   : > { %v12350_v36 = vpop.permute.xlu1 %3877 }
 0x47d   : > { %v12352_v1 = vpop.permute.xlu0 %3881 }
 0x47e   : > { %5118 = vrot.lane.b32.xlu1 %v8384_v63, %s8470_s10 }
 0x47f   : > { %4183 = vrot.lane.b32.xlu0 %v11963_v27, %s8476_s22 }
 0x480   : > { %v5175_v31 = vpop.permute.xlu1 %5174 }
 0x481   : > { %v5233_v48 = vpop.permute.xlu0 %5232 }
 0x482   : > { %4113 = vrot.lane.b32.xlu1 %v15964_v42, %s8475_s15  ;;  %v5465_v13 = vsel %vm1805_vm12, %v5444_v32, %v5233_v48 }
 0x483   : > { %5148 = vrot.lane.b32.xlu0 %v15952_v0, %s8472_s12 }
 0x484   : > { %v12370_v63 = vpop.permute.xlu1 %3883 }
 0x485   : > { %v12373_v29 = vpop.permute.xlu0 %3943 }
 0x486   : > { %4185 = vrot.lane.b32.xlu1 %v11935_v5, %s8476_s22 }
 0x487   : > { %3782 = vrot.lane.b32.xlu0 %v9924_v6, %s8469_s9  ;;  %v15970_v6 = vld [vmem:[#allocation197_spill] sm:$0xff] }
 0x488   : > { %v12381_v39 = vpop.f32.mrb[20].mxu1  ;;  %v3942_v10 = vpop.permute.xlu1 %3941 }
 0x489   : > { %15966 = vst [vmem:[#allocation51_spill] sm:$0xff] %v12381_v39  ;;  %v5265_v4 = vpop.permute.xlu0 %5264  ;;  %v12387_v16 = vpop.f32.mrb[21].mxu1 }
 0x48a   : > { %15968 = vst [vmem:[#allocation138_spill] sm:$0xff] %v12387_v16  ;;  %v5497_v30 = vsel %vm1870_vm13, %v5465_v13, %v5265_v4  ;;  %v12390_v43 = vpop.f32.mrb[22].mxu1  ;;  %3780 = vrot.lane.b32.xlu1 %v15970_v6, %s8469_s9  ;;  %v5365_v13 = vsel %vm1545_vm8, %v5335_v59, %v15950_v55  ;;  %v15974_v4 = vld [vmem:[#allocation44_spill] sm:$0xff] }
 0x48b   : > { %15969 = vst [vmem:[#allocation137_spill] sm:$0xff] %v12390_v43  ;;  %4189 = vrot.lane.b32.xlu0 %v15971_v9, %s8476_s22  ;;  %v12396_v39 = vpop.f32.mrb[23].mxu1  ;;  %7998 = vmatprep.mubr.msk.bf16.mxu1 %vm2219_vm15, %v5497_v30  ;;  %v5383_v6 = vsel %vm1610_vm9, %v5365_v13, %v5143_v15  ;;  %v15977_v13 = vld [vmem:[#allocation200_spill] sm:$0xff] }
 0x48c   : > { %15972 = vst [vmem:[#allocation69_spill] sm:$0xff] %v12396_v39  ;;  %v5235_v48 = vpop.permute.xlu1 %5234  ;;  %v5415_v30 = vsel %vm1675_vm10, %v5383_v6, %v5175_v31  ;;  %v15978_v31 = vld [vmem:[#allocation45_spill] sm:$0xff] }
 0x48d   : > { %v12401_v32 = vpop.permute.xlu0 %3947  ;;  %v5445_v16 = vsel %vm1740_vm11, %v5415_v30, %v15976_v28  ;;  %v12430_v30 = vrot.slane %v15980_v57, 4 }
 0x48e   : > { %4187 = vrot.lane.b32.xlu1 %v15973_v18, %s8476_s22  ;;  %v5467_v59 = vsel %vm1805_vm12, %v5445_v16, %v5235_v48  ;;  %v15986_v18 = vld [vmem:[#allocation150_spill] sm:$0xff] }
 0x48f   : > { %5180 = vrot.lane.b32.xlu0 %v15974_v4, %s8473_s13  ;;  %15981 = vst [vmem:[#allocation97_spill] sm:$0xff] %v12430_v30 }
 0x490   : > { %v12410_v43 = vpop.permute.xlu1 %3945 }
 0x491   : > { %v4020_v39 = vpop.permute.xlu0 %4019 }
 0x492   : > { %5150 = vrot.lane.b32.xlu1 %v15958_v40, %s8472_s12 }
 0x493   : > { %3786 = vrot.lane.b32.xlu0 %v15975_v60, %s8469_s9  ;;  %v15979_v60 = vld [vmem:[#allocation151_spill] sm:$0xff] }
 0x494   : > { %v4018_v55 = vpop.permute.xlu1 %4017  ;;  %v3997_v3 = vrot.slane %v15979_v60, 4  ;;  %v12454_v60 = vrot.slane %v11863_v23, 4 }
 0x495   : > { %v5267_v4 = vpop.permute.xlu0 %5266 }
 0x496   : > { %v5499_v15 = vsel %vm1870_vm13, %v5467_v59, %v5267_v4  ;;  %3784 = vrot.lane.b32.xlu1 %v15977_v13, %s8469_s9  ;;  %v12438_v48 = vsel %vm2268_vm6, %v3997_v3, %v12430_v30  ;;  %v15983_v4 = vld [vmem:[#allocation64_spill] sm:$0xff]  ;;  %v4000_v3 = vrot.slane %v11839_v17, 4 }
 0x497   : > { %3895 = vrot.lane.b32.xlu0 %v15978_v31, %s8470_s10  ;;  %7999 = vmatmul.mubr.msk.bf16.vlgmr.msra.gmra.mrb[32].mxu1 %vm2219_vm15, %v5499_v15  ;;  %15982 = vst [vmem:[#allocation155_spill] sm:$0xff] %v12438_v48  ;;  %v15984_v31 = vld [vmem:[#allocation94_spill] sm:$0xff] }
 0x498   : > { %v12426_v6 = vpop.permute.xlu1 %5080 }
 0x499   : > { %v4024_v44 = vpop.permute.xlu0 %4023 }
 0x49a   : > { %3893 = vrot.lane.b32.xlu1 %v12032_v53, %s8470_s10 }
 0x49b   : > { %3897 = vrot.lane.b32.xlu0 %v12071_v20, %s8470_s10  ;;  %v15985_v20 = vld [vmem:[#allocation149_spill] sm:$0xff] }
 0x49c   : > { %v4022_v16 = vpop.permute.xlu1 %4021 }
 0x49d   : > { %v12440_v59 = vpop.permute.xlu0 %5112 }
 0x49e   : > { %5182 = vrot.lane.b32.xlu1 %v15983_v4, %s8473_s13  ;;  %v4244_v4 = vsel %vm314_vm0, %v15985_v20, %v12315_v38  ;;  %v12472_v20 = vsel %vm2268_vm6, %v4000_v3, %v12454_v60  ;;  %v15988_v38 = vld [vmem:[#allocation114_spill] sm:$0xff] }
 0x49f   : > { %5240 = vrot.lane.b32.xlu0 %v12438_v48, %s8475_s15  ;;  %v4308_v30 = vsel %vm1480_vm7, %v4244_v4, %v12350_v36  ;;  %15987 = vst [vmem:[#allocation181_spill] sm:$0xff] %v12472_v20  ;;  %v15994_v3 = vld [vmem:[#allocation18_spill] sm:$0xff] }
 0x4a0   : > { %v12446_v15 = vpop.permute.xlu1 %5082  ;;  %v4367_v36 = vsel %vm1545_vm8, %v4308_v30, %v15988_v38 }
 0x4a1   : > { %v4102_v13 = vpop.permute.xlu0 %4101 }
 0x4a2   : > { %3899 = vrot.lane.b32.xlu1 %v15984_v31, %s8470_s10  ;;  %v4246_v31 = vsel %vm314_vm0, %v15986_v18, %v12297_v19  ;;  %v4404_v19 = vsel %vm1610_vm9, %v4367_v36, %v3942_v10  ;;  %v4250_v36 = vsel %vm314_vm0, %v15994_v3, %v12335_v49 }
 0x4a3   : > { %3959 = vrot.lane.b32.xlu0 %v15930_v7, %s8472_s12  ;;  %v4310_v17 = vsel %vm1480_vm7, %v4246_v31, %v12344_v26  ;;  %v15991_v26 = vld [vmem:[#allocation118_spill] sm:$0xff] }
 0x4a4   : > { %v4100_v53 = vpop.permute.xlu1 %4099  ;;  %v4368_v31 = vsel %vm1545_vm8, %v4310_v17, %v15991_v26  ;;  %v15995_v17 = vld [vmem:[#allocation175_spill] sm:$0xff] }
 0x4a5   : > { %v4104_v48 = vpop.permute.xlu0 %4103  ;;  %v4406_v30 = vsel %vm1610_vm9, %v4368_v31, %v12373_v29  ;;  %v15996_v29 = vld [vmem:[#allocation204_spill] sm:$0xff] }
 0x4a6   : > { %3957 = vrot.lane.b32.xlu1 %v15931_v25, %s8472_s12 }
 0x4a7   : > { %5272 = vrot.lane.b32.xlu0 %v15980_v57, %s8476_s22  ;;  %v4468_v57 = vsel %vm1675_vm10, %v4404_v19, %v4018_v55  ;;  %v4248_v55 = vsel %vm314_vm0, %v15995_v17, %v12342_v58  ;;  %v4470_v19 = vsel %vm1675_vm10, %v4406_v30, %v4020_v39  ;;  %v15997_v58 = vld [vmem:[#allocation207_spill] sm:$0xff] }
 0x4a8   : > { %v12476_v4 = vpop.f32.mrb[24].mxu0  ;;  %v12478_v7 = vpop.permute.xlu1 %5114  ;;  %v4527_v31 = vsel %vm1740_vm11, %v4468_v57, %v15996_v29  ;;  %v4312_v49 = vsel %vm1480_vm7, %v4248_v55, %v12352_v1  ;;  %v4528_v39 = vsel %vm1740_vm11, %v4470_v19, %v15997_v58  ;;  %v15999_v55 = vld [vmem:[#allocation116_spill] sm:$0xff] }
 0x4a9   : > { %15989 = vst [vmem:[#allocation71_spill] sm:$0xff] %v12476_v4  ;;  %v4176_v25 = vpop.permute.xlu0 %4175  ;;  %v12481_v9 = vpop.f32.mrb[25].mxu0  ;;  %v4369_v19 = vsel %vm1545_vm8, %v4312_v49, %v15999_v55  ;;  %v16000_v49 = vld [vmem:[#allocation209_spill] sm:$0xff] }
 0x4aa   : > { %15990 = vst [vmem:[#allocation72_spill] sm:$0xff] %v12481_v9  ;;  %v12486_v28 = vpop.f32.mrb[26].mxu0  ;;  %5242 = vrot.lane.b32.xlu1 %v12472_v20, %s8475_s15 }
 0x4ab   : > { %15992 = vst [vmem:[#allocation99_spill] sm:$0xff] %v12486_v28  ;;  %3963 = vrot.lane.b32.xlu0 %v15934_v14, %s8472_s12  ;;  %v12494_v10 = vpop.f32.mrb[27].mxu0  ;;  %v4314_v28 = vsel %vm1480_vm7, %v4250_v36, %v12370_v63  ;;  %v15998_v63 = vld [vmem:[#allocation120_spill] sm:$0xff]  ;;  %v4570_v36 = vsel %vm1805_vm12, %v4528_v39, %v4102_v13 }
 0x4ac   : > { %15993 = vst [vmem:[#allocation100_spill] sm:$0xff] %v12494_v10  ;;  %v4106_v26 = vpop.permute.xlu1 %4105  ;;  %v4568_v10 = vsel %vm1805_vm12, %v4527_v31, %v4100_v53  ;;  %v4370_v57 = vsel %vm1545_vm8, %v4314_v28, %v15998_v63  ;;  %v4408_v28 = vsel %vm1610_vm9, %v4369_v19, %v12410_v43  ;;  %v16001_v63 = vld [vmem:[#allocation174_spill] sm:$0xff] }
 0x4ad   : > { %v12507_v4 = vpop.permute.xlu0 %5144  ;;  %v4632_v30 = vsel %vm1870_vm13, %v4568_v10, %v4176_v25  ;;  %v4410_v17 = vsel %vm1610_vm9, %v4370_v57, %v12401_v32  ;;  %v4472_v32 = vsel %vm1675_vm10, %v4408_v28, %v4022_v16  ;;  %v16002_v43 = vld [vmem:[#allocation206_spill] sm:$0xff] }
 0x4ae   : > { %3961 = vrot.lane.b32.xlu1 %v15932_v35, %s8472_s12  ;;  %v4474_v25 = vsel %vm1675_vm10, %v4410_v17, %v4024_v44  ;;  %v4725_v10 = vrot.slane %v4632_v30, 2 }
 0x4af   : > { %4035 = vrot.lane.b32.xlu0 %v12120_v52, %s8473_s13  ;;  %v4530_v44 = vsel %vm1740_vm11, %v4474_v25, %v16000_v49 }
 0x4b0   : > { %v4178_v53 = vpop.permute.xlu1 %4177  ;;  %v4574_v30 = vsel %vm1805_vm12, %v4530_v44, %v4106_v26  ;;  %v16007_v44 = vld [vmem:[#allocation50_spill] sm:$0xff] }
 0x4b1   : > { %v4634_v29 = vsel %vm1870_vm13, %v4570_v36, %v4178_v53  ;;  %v12525_v1 = vpop.permute.xlu0 %3774 }
 0x4b2   : > { %v4726_v31 = vrot.slane %v4634_v29, 2  ;;  %4033 = vrot.lane.b32.xlu1 %v12142_v56, %s8473_s13 }
 0x4b3   : > { %5274 = vrot.lane.b32.xlu0 %v11863_v23, %s8476_s22  ;;  %v4529_v23 = vsel %vm1740_vm11, %v4472_v32, %v16002_v43 }
 0x4b4   : > { %v12537_v13 = vpop.permute.xlu1 %3772  ;;  %v4727_v58 = vsel %vm2534_vm5, %v4725_v10, %v4726_v31  ;;  %v4572_v57 = vsel %vm1805_vm12, %v4529_v23, %v4104_v48  ;;  %v16003_v48 = vld [vmem:[#allocation66_spill] sm:$0xff] }
 0x4b5   : > { %v4182_v39 = vpop.permute.xlu0 %4181  ;;  %7960 = vmatprep.mubr.msk.bf16.mxu0 %vm2219_vm15, %v4727_v58  ;;  %v16004_v31 = vld [vmem:[#allocation34_spill] sm:$0xff]  ;;  %v16005_v58 = vld [vmem:[#allocation33_spill] sm:$0xff] }
 0x4b6   : > { %5088 = vrot.lane.b32.xlu1 %v16001_v63, %s8469_s9  ;;  %v4638_v16 = vsel %vm1870_vm13, %v4574_v30, %v4182_v39  ;;  %v5304_v39 = vsel %vm314_vm0, %v16007_v44, %v12426_v6  ;;  %v16011_v6 = vld [vmem:[#allocation36_spill] sm:$0xff] }
 0x4b7   : > { %4039 = vrot.lane.b32.xlu0 %v12178_v61, %s8473_s13  ;;  %v4729_v29 = vrot.slane %v4638_v16, 2  ;;  %v5337_v63 = vsel %vm1480_vm7, %v5304_v39, %v12440_v59  ;;  %v16014_v39 = vld [vmem:[#allocation177_spill] sm:$0xff] }
 0x4b8   : > { %v4180_v36 = vpop.permute.xlu1 %4179 }
 0x4b9   : > { %v4636_v53 = vsel %vm1870_vm13, %v4572_v57, %v4180_v36  ;;  %v5177_v17 = vpop.permute.xlu0 %5176 }
 0x4ba   : > { %v4728_v19 = vrot.slane %v4636_v53, 2  ;;  %4037 = vrot.lane.b32.xlu1 %v12186_v34, %s8473_s13 }
 0x4bb   : > { %5120 = vrot.lane.b32.xlu0 %v15986_v18, %s8470_s10  ;;  %v16006_v18 = vld [vmem:[#allocation35_spill] sm:$0xff] }
 0x4bc   : > { %v5147_v26 = vpop.permute.xlu1 %5146  ;;  %v4730_v25 = vsel %vm2534_vm5, %v4728_v19, %v4729_v29 }
 0x4bd   : > { %v12558_v10 = vpop.permute.xlu0 %3778  ;;  %7961 = vmatmul.mubr.msk.bf16.gmra.mrb[36].mxu0 %vm2219_vm15, %v4730_v25 }
 0x4be   : > { %5090 = vrot.lane.b32.xlu1 %v16003_v48, %s8469_s9 }
 0x4bf   : > { %4117 = vrot.lane.b32.xlu0 %v16004_v31, %s8475_s15 }
 0x4c0   : > { %v12565_v28 = vpop.permute.xlu1 %3776 }
 0x4c1   : > { %v12567_v32 = vpop.permute.xlu0 %3887 }
 0x4c2   : > { %4115 = vrot.lane.b32.xlu1 %v16005_v58, %s8475_s15 }
 0x4c3   : > { %4119 = vrot.lane.b32.xlu0 %v16006_v18, %s8475_s15 }
 0x4c4   : > { %v12573_v49 = vpop.permute.xlu1 %3885 }
 0x4c5   : > { %v12578_v30 = vpop.permute.xlu0 %3889 }
 0x4c6   : > { %5122 = vrot.lane.b32.xlu1 %v15994_v3, %s8470_s10  ;;  %v5366_v3 = vsel %vm1545_vm8, %v5337_v63, %v15988_v38  ;;  %v16013_v38 = vld [vmem:[#allocation212_spill] sm:$0xff] }
 0x4c7   : > { %4191 = vrot.lane.b32.xlu0 %v12222_v8, %s8476_s22  ;;  %v5385_v59 = vsel %vm1610_vm9, %v5366_v3, %v12507_v4  ;;  %v5307_v4 = vsel %vm314_vm0, %v16014_v39, %v12446_v15 }
 0x4c8   : > { %v12586_v43 = vpop.f32.mrb[24].mxu1  ;;  %v5179_v23 = vpop.permute.xlu1 %5178  ;;  %v5417_v19 = vsel %vm1675_vm10, %v5385_v59, %v5177_v17 }
 0x4c9   : > { %16008 = vst [vmem:[#allocation113_spill] sm:$0xff] %v12586_v43  ;;  %v5237_v16 = vpop.permute.xlu0 %5236  ;;  %v12588_v57 = vpop.f32.mrb[25].mxu1  ;;  %v5446_v48 = vsel %vm1740_vm11, %v5417_v19, %v16013_v38 }
 0x4ca   : > { %16009 = vst [vmem:[#allocation158_spill] sm:$0xff] %v12588_v57  ;;  %v12590_v36 = vpop.f32.mrb[26].mxu1  ;;  %4121 = vrot.lane.b32.xlu1 %v16011_v6, %s8475_s15  ;;  %v5469_v63 = vsel %vm1805_vm12, %v5446_v48, %v5237_v16  ;;  %v8390_v57 = vld [vmem:[#allocation2 + $0x88] sm:$0xff] }
 0x4cb   : > { %16010 = vst [vmem:[#allocation157_spill] sm:$0xff] %v12590_v36  ;;  %5152 = vrot.lane.b32.xlu0 %v12142_v56, %s8472_s12  ;;  %v12598_v53 = vpop.f32.mrb[27].mxu1 }
 0x4cc   : > { %16012 = vst [vmem:[#allocation185_spill] sm:$0xff] %v12598_v53  ;;  %v12602_v29 = vpop.permute.xlu1 %3891 }
 0x4cd   : > { %v12605_v25 = vpop.permute.xlu0 %3951 }
 0x4ce   : > { %4193 = vrot.lane.b32.xlu1 %v12214_v45, %s8476_s22 }
 0x4cf   : > { %3790 = vrot.lane.b32.xlu0 %v10078_v47, %s8469_s9  ;;  %v5339_v47 = vsel %vm1480_vm7, %v5307_v4, %v12478_v7  ;;  %v16015_v7 = vld [vmem:[#allocation214_spill] sm:$0xff] }
 0x4d0   : > { %v12613_v44 = vpop.permute.xlu1 %3949  ;;  %v5367_v15 = vsel %vm1545_vm8, %v5339_v47, %v15999_v55 }
 0x4d1   : > { %v5269_v17 = vpop.permute.xlu0 %5268 }
 0x4d2   : > { %v5501_v3 = vsel %vm1870_vm13, %v5469_v63, %v5269_v17  ;;  %3788 = vrot.lane.b32.xlu1 %v10090_v41, %s8469_s9  ;;  %v5387_v41 = vsel %vm1610_vm9, %v5367_v15, %v5147_v26 }
 0x4d3   : > { %4197 = vrot.lane.b32.xlu0 %v12238_v2, %s8476_s22  ;;  %8002 = vmatprep.mubr.msk.bf16.mxu1 %vm2219_vm15, %v5501_v3  ;;  %v5419_v48 = vsel %vm1675_vm10, %v5387_v41, %v5179_v23  ;;  %v8386_v3 = vld [vmem:[#allocation2 + $0x168] sm:$0xff] }
 0x4d4   : > { %v5239_v59 = vpop.permute.xlu1 %5238  ;;  %v5447_v4 = vsel %vm1740_vm11, %v5419_v48, %v16015_v7  ;;  %v12654_v47 = vrot.slane %v8386_v3, 4 }
 0x4d5   : > { %v12627_v19 = vpop.permute.xlu0 %3955  ;;  %v5471_v63 = vsel %vm1805_vm12, %v5447_v4, %v5239_v59  ;;  %v8387_v4 = vld [vmem:[#allocation2 + $0x170] sm:$0xff] }
 0x4d6   : > { %4195 = vrot.lane.b32.xlu1 %v12254_v24, %s8476_s22 }
 0x4d7   : > { %5184 = vrot.lane.b32.xlu0 %v12117_v33, %s8473_s13 }
 0x4d8   : > { %v12636_v16 = vpop.permute.xlu1 %3953 }
 0x4d9   : > { %v4028_v39 = vpop.permute.xlu0 %4027 }
 0x4da   : > { %5154 = vrot.lane.b32.xlu1 %v12186_v34, %s8472_s12 }
 0x4db   : > { %3794 = vrot.lane.b32.xlu0 %v10098_v22, %s8469_s9  ;;  %v8385_v22 = vld [vmem:[#allocation2 + $0x160] sm:$0xff] }
 0x4dc   : > { %v4026_v55 = vpop.permute.xlu1 %4025  ;;  %v4003_v17 = vrot.slane %v8385_v22, 4  ;;  %v12682_v22 = vld [vmem:[#allocation2 + $0x80] sm:$0xff] }
 0x4dd   : > { %v5271_v33 = vpop.permute.xlu0 %5270  ;;  %16016 = vst [vmem:[#allocation74_spill] sm:$0xff] %v12682_v22 }
 0x4de   : > { %v5503_v26 = vsel %vm1870_vm13, %v5471_v63, %v5271_v33  ;;  %3792 = vrot.lane.b32.xlu1 %v15944_v51, %s8469_s9  ;;  %v4006_v63 = vrot.slane %v8387_v4, 4  ;;  %v8388_v33 = vld [vmem:[#allocation2 + $0x178] sm:$0xff]  ;;  %v4254_v4 = vsel %vm314_vm0, %v8390_v57, %v12525_v1 }
 0x4df   : > { %3903 = vrot.lane.b32.xlu0 %v15946_v54, %s8470_s10  ;;  %8003 = vmatmul.mubr.msk.bf16.gmra.mrb[36].mxu1 %vm2219_vm15, %v5503_v26  ;;  %v12666_v54 = vsel %vm2268_vm6, %v4003_v17, %v12654_v47  ;;  %v12680_v26 = vrot.slane %v8388_v33, 4 }
 0x4e0   : > { %v12652_v23 = vpop.permute.xlu1 %5084 }
 0x4e1   : > { %v12656_v15 = vpop.permute.xlu0 %4031 }
 0x4e2   : > { %3901 = vrot.lane.b32.xlu1 %v15952_v0, %s8470_s10 }
 0x4e3   : > { %3905 = vrot.lane.b32.xlu0 %v15958_v40, %s8470_s10  ;;  %v16022_v40 = vld [vmem:[#allocation122_spill] sm:$0xff] }
 0x4e4   : > { %v12662_v51 = vpop.permute.xlu1 %4029 }
 0x4e5   : > { %v12668_v59 = vpop.permute.xlu0 %5116 }
 0x4e6   : > { %5186 = vrot.lane.b32.xlu1 %v12175_v12, %s8473_s13  ;;  %v4252_v12 = vsel %vm314_vm0, %v12682_v22, %v12537_v13  ;;  %v4318_v13 = vsel %vm1480_vm7, %v4254_v4, %v12567_v32 }
 0x4e7   : > { %5244 = vrot.lane.b32.xlu0 %v12666_v54, %s8475_s15  ;;  %v4372_v32 = vsel %vm1545_vm8, %v4318_v13, %v16022_v40 }
 0x4e8   : > { %v12674_v41 = vpop.permute.xlu1 %5086 }
 0x4e9   : > { %v4110_v48 = vpop.permute.xlu0 %4109 }
 0x4ea   : > { %3907 = vrot.lane.b32.xlu1 %v15957_v62, %s8470_s10  ;;  %v4316_v62 = vsel %vm1480_vm7, %v4252_v12, %v12573_v49  ;;  %v12706_v49 = vsel %vm2268_vm6, %v4006_v63, %v12680_v26  ;;  %v16021_v12 = vld [vmem:[#allocation119_spill] sm:$0xff]  ;;  %v4414_v63 = vsel %vm1610_vm9, %v4372_v32, %v12605_v25 }
 0x4eb   : > { %3967 = vrot.lane.b32.xlu0 %v15960_v50, %s8472_s12 }
 0x4ec   : > { %v12687_v17 = vpop.f32.mrb[28].mxu0  ;;  %v4108_v36 = vpop.permute.xlu1 %4107 }
 0x4ed   : > { %16017 = vst [vmem:[#allocation184_spill] sm:$0xff] %v12687_v17  ;;  %v4112_v43 = vpop.permute.xlu0 %4111  ;;  %v12691_v53 = vpop.f32.mrb[29].mxu0 }
 0x4ee   : > { %16018 = vst [vmem:[#allocation102_spill] sm:$0xff] %v12691_v53  ;;  %v12695_v9 = vpop.f32.mrb[30].mxu0  ;;  %3965 = vrot.lane.b32.xlu1 %v15961_v21, %s8472_s12  ;;  %v4371_v53 = vsel %vm1545_vm8, %v4316_v62, %v16021_v12  ;;  %v8391_v62 = vld [vmem:[#allocation2 + $0x98] sm:$0xff] }
 0x4ef   : > { %16019 = vst [vmem:[#allocation117_spill] sm:$0xff] %v12695_v9  ;;  %5276 = vrot.lane.b32.xlu0 %v8386_v3, %s8476_s22  ;;  %v12702_v17 = vpop.f32.mrb[31].mxu0  ;;  %v4412_v9 = vsel %vm1610_vm9, %v4371_v53, %v12613_v44  ;;  %v4258_v4 = vsel %vm314_vm0, %v8391_v62, %v12558_v10  ;;  %v12725_v53 = vld [vmem:[#allocation2 + $0x90] sm:$0xff] }
 0x4f0   : > { %16020 = vst [vmem:[#allocation160_spill] sm:$0xff] %v12702_v17  ;;  %v12710_v1 = vpop.permute.xlu1 %5118  ;;  %v4476_v3 = vsel %vm1675_vm10, %v4412_v9, %v4026_v55  ;;  %16023 = vst [vmem:[#allocation189_spill] sm:$0xff] %v12725_v53  ;;  %v4256_v40 = vsel %vm314_vm0, %v12725_v53, %v12565_v28  ;;  %v4478_v9 = vsel %vm1675_vm10, %v4414_v63, %v4028_v39  ;;  %v16024_v28 = vld [vmem:[#allocation211_spill] sm:$0xff]  ;;  %v16044_v17 = vld [vmem:[#allocation46_spill] sm:$0xff] }
 0x4f1   : > { %v4184_v22 = vpop.permute.xlu0 %4183  ;;  %v4322_v55 = vsel %vm1480_vm7, %v4258_v4, %v12602_v29  ;;  %v4531_v25 = vsel %vm1740_vm11, %v4476_v3, %v15965_v11  ;;  %v4320_v10 = vsel %vm1480_vm7, %v4256_v40, %v12578_v30  ;;  %v4532_v39 = vsel %vm1740_vm11, %v4478_v9, %v16024_v28  ;;  %v16025_v29 = vld [vmem:[#allocation28_spill] sm:$0xff]  ;;  %v16026_v40 = vld [vmem:[#allocation121_spill] sm:$0xff] }
 0x4f2   : > { %5246 = vrot.lane.b32.xlu1 %v12706_v49, %s8475_s15  ;;  %v4576_v32 = vsel %vm1805_vm12, %v4531_v25, %v4108_v36  ;;  %v4374_v11 = vsel %vm1545_vm8, %v4322_v55, %v16025_v29  ;;  %v4578_v3 = vsel %vm1805_vm12, %v4532_v39, %v4110_v48  ;;  %v4373_v9 = vsel %vm1545_vm8, %v4320_v10, %v16026_v40  ;;  %v16027_v39 = vld [vmem:[#allocation213_spill] sm:$0xff] }
 0x4f3   : > { %3971 = vrot.lane.b32.xlu0 %v15964_v42, %s8472_s12  ;;  %v4640_v63 = vsel %vm1870_vm13, %v4576_v32, %v4184_v22  ;;  %v4418_v4 = vsel %vm1610_vm9, %v4374_v11, %v12627_v19  ;;  %v4416_v48 = vsel %vm1610_vm9, %v4373_v9, %v12636_v16  ;;  %v16028_v16 = vld [vmem:[#allocation210_spill] sm:$0xff]  ;;  %v16029_v11 = vld [vmem:[#allocation20_spill] sm:$0xff] }
 0x4f4   : > { %v4114_v44 = vpop.permute.xlu1 %4113  ;;  %v4482_v22 = vsel %vm1675_vm10, %v4418_v4, %v12656_v15  ;;  %v4731_v32 = vrot.slane %v4640_v63, 2  ;;  %v4480_v19 = vsel %vm1675_vm10, %v4416_v48, %v12662_v51  ;;  %v16032_v48 = vld [vmem:[#allocation82_spill] sm:$0xff] }
 0x4f5   : > { %v12735_v13 = vpop.permute.xlu0 %5148  ;;  %v4534_v15 = vsel %vm1740_vm11, %v4482_v22, %v16027_v39  ;;  %v16033_v39 = vld [vmem:[#allocation56_spill] sm:$0xff] }
 0x4f6   : > { %3969 = vrot.lane.b32.xlu1 %v15962_v37, %s8472_s12  ;;  %v4582_v29 = vsel %vm1805_vm12, %v4534_v15, %v4114_v44  ;;  %v16030_v44 = vld [vmem:[#allocation47_spill] sm:$0xff] }
 0x4f7   : > { %4043 = vrot.lane.b32.xlu0 %v11935_v5, %s8473_s13 }
 0x4f8   : > { %v4186_v36 = vpop.permute.xlu1 %4185 }
 0x4f9   : > { %v4642_v25 = vsel %vm1870_vm13, %v4578_v3, %v4186_v36  ;;  %v12753_v30 = vpop.permute.xlu0 %3782 }
 0x4fa   : > { %v4732_v28 = vrot.slane %v4642_v25, 2  ;;  %4041 = vrot.lane.b32.xlu1 %v11963_v27, %s8473_s13 }
 0x4fb   : > { %5278 = vrot.lane.b32.xlu0 %v8388_v33, %s8476_s22  ;;  %v4533_v33 = vsel %vm1740_vm11, %v4480_v19, %v16028_v16 }
 0x4fc   : > { %v12766_v55 = vpop.permute.xlu1 %3780  ;;  %v4733_v10 = vsel %vm2534_vm5, %v4731_v32, %v4732_v28  ;;  %v4580_v3 = vsel %vm1805_vm12, %v4533_v33, %v4112_v43  ;;  %v16031_v43 = vld [vmem:[#allocation42_spill] sm:$0xff]  ;;  %v16035_v33 = vld [vmem:[#allocation155_spill] sm:$0xff] }
 0x4fd   : > { %v4190_v63 = vpop.permute.xlu0 %4189  ;;  %7964 = vmatprep.mubr.msk.bf16.mxu0 %vm2219_vm15, %v4733_v10 }
 0x4fe   : > { %5092 = vrot.lane.b32.xlu1 %v11654_v46, %s8469_s9  ;;  %v4646_v51 = vsel %vm1870_vm13, %v4582_v29, %v4190_v63  ;;  %v8393_v63 = vld [vmem:[#allocation2 + $0x40] sm:$0xff] }
 0x4ff   : > { %4047 = vrot.lane.b32.xlu0 %v16029_v11, %s8473_s13  ;;  %v4735_v9 = vrot.slane %v4646_v51, 2  ;;  %v5309_v29 = vsel %vm314_vm0, %v8393_v63, %v12652_v23  ;;  %v16039_v23 = vld [vmem:[#allocation85_spill] sm:$0xff] }
 0x500   : > { %v4188_v36 = vpop.permute.xlu1 %4187  ;;  %v5341_v51 = vsel %vm1480_vm7, %v5309_v29, %v12668_v59 }
 0x501   : > { %v4644_v4 = vsel %vm1870_vm13, %v4580_v3, %v4188_v36  ;;  %v5181_v25 = vpop.permute.xlu0 %5180 }
 0x502   : > { %v4734_v22 = vrot.slane %v4644_v4, 2  ;;  %4045 = vrot.lane.b32.xlu1 %v16030_v44, %s8473_s13 }
 0x503   : > { %5124 = vrot.lane.b32.xlu0 %v8390_v57, %s8470_s10  ;;  %v16034_v57 = vld [vmem:[#allocation84_spill] sm:$0xff] }
 0x504   : > { %v5151_v46 = vpop.permute.xlu1 %5150  ;;  %v4736_v32 = vsel %vm2534_vm5, %v4734_v22, %v4735_v9 }
 0x505   : > { %v12786_v28 = vpop.permute.xlu0 %3786  ;;  %7965 = vmatmul.mubr.msk.bf16.gmra.mrb[40].mxu0 %vm2219_vm15, %v4736_v32 }
 0x506   : > { %5094 = vrot.lane.b32.xlu1 %v16031_v43, %s8469_s9 }
 0x507   : > { %4125 = vrot.lane.b32.xlu0 %v16032_v48, %s8475_s15 }
 0x508   : > { %v12793_v19 = vpop.permute.xlu1 %3784 }
 0x509   : > { %v12795_v10 = vpop.permute.xlu0 %3895 }
 0x50a   : > { %4123 = vrot.lane.b32.xlu1 %v16033_v39, %s8475_s15 }
 0x50b   : > { %4127 = vrot.lane.b32.xlu0 %v16034_v57, %s8475_s15 }
 0x50c   : > { %v12801_v15 = vpop.permute.xlu1 %3893 }
 0x50d   : > { %v12805_v16 = vpop.permute.xlu0 %3897 }
 0x50e   : > { %5126 = vrot.lane.b32.xlu1 %v8391_v62, %s8470_s10  ;;  %v5368_v62 = vsel %vm1545_vm8, %v5341_v51, %v16021_v12  ;;  %v16043_v12 = vld [vmem:[#allocation216_spill] sm:$0xff] }
 0x50f   : > { %4199 = vrot.lane.b32.xlu0 %v16035_v33, %s8476_s22  ;;  %v5389_v59 = vsel %vm1610_vm9, %v5368_v62, %v12735_v13 }
 0x510   : > { %v12812_v3 = vpop.f32.mrb[28].mxu1  ;;  %v5183_v36 = vpop.permute.xlu1 %5182  ;;  %v5421_v63 = vsel %vm1675_vm10, %v5389_v59, %v5181_v25 }
 0x511   : > { %16036 = vst [vmem:[#allocation73_spill] sm:$0xff] %v12812_v3  ;;  %v5241_v4 = vpop.permute.xlu0 %5240  ;;  %v12814_v9 = vpop.f32.mrb[29].mxu1  ;;  %v16042_v3 = vld [vmem:[#allocation49_spill] sm:$0xff]  ;;  %v5448_v51 = vsel %vm1740_vm11, %v5421_v63, %v16043_v12 }
 0x512   : > { %16037 = vst [vmem:[#allocation101_spill] sm:$0xff] %v12814_v9  ;;  %v12816_v22 = vpop.f32.mrb[30].mxu1  ;;  %4129 = vrot.lane.b32.xlu1 %v16039_v23, %s8475_s15  ;;  %v5473_v62 = vsel %vm1805_vm12, %v5448_v51, %v5241_v4  ;;  %v12858_v4 = vld [vmem:[#allocation2 + $0x108] sm:$0xff] }
 0x513   : > { %16038 = vst [vmem:[#allocation159_spill] sm:$0xff] %v12816_v22  ;;  %5156 = vrot.lane.b32.xlu0 %v11963_v27, %s8472_s12  ;;  %v12824_v32 = vpop.f32.mrb[31].mxu1  ;;  %v16041_v22 = vld [vmem:[#allocation97_spill] sm:$0xff]  ;;  %16045 = vst [vmem:[#allocation75_spill] sm:$0xff] %v12858_v4 }
 0x514   : > { %16040 = vst [vmem:[#allocation188_spill] sm:$0xff] %v12824_v32  ;;  %v12828_v43 = vpop.permute.xlu1 %3899  ;;  %v8394_v32 = vld [vmem:[#allocation2 + $0x50] sm:$0xff] }
 0x515   : > { %v12831_v29 = vpop.permute.xlu0 %3959  ;;  %v5311_v13 = vsel %vm314_vm0, %v8394_v32, %v12674_v41 }
 0x516   : > { %4201 = vrot.lane.b32.xlu1 %v16041_v22, %s8476_s22 }
 0x517   : > { %3798 = vrot.lane.b32.xlu0 %v16042_v3, %s8469_s9  ;;  %v5343_v3 = vsel %vm1480_vm7, %v5311_v13, %v12710_v1  ;;  %v16046_v13 = vld [vmem:[#allocation218_spill] sm:$0xff] }
 0x518   : > { %v12839_v9 = vpop.permute.xlu1 %3957  ;;  %v5369_v41 = vsel %vm1545_vm8, %v5343_v3, %v16026_v40 }
 0x519   : > { %v5273_v25 = vpop.permute.xlu0 %5272 }
 0x51a   : > { %v5505_v59 = vsel %vm1870_vm13, %v5473_v62, %v5273_v25  ;;  %3796 = vrot.lane.b32.xlu1 %v16044_v17, %s8469_s9  ;;  %v5391_v17 = vsel %vm1610_vm9, %v5369_v41, %v5151_v46  ;;  %v12881_v41 = vld [vmem:[#allocation2 + $0x188] sm:$0xff] }
 0x51b   : > { %4205 = vrot.lane.b32.xlu0 %v12454_v60, %s8476_s22  ;;  %8006 = vmatprep.mubr.msk.bf16.mxu1 %vm2219_vm15, %v5505_v59  ;;  %v5423_v1 = vsel %vm1675_vm10, %v5391_v17, %v5183_v36  ;;  %v15334_v17 = vrot.slane %v12881_v41, 4 }
 0x51c   : > { %v5243_v63 = vpop.permute.xlu1 %5242  ;;  %v5449_v40 = vsel %vm1740_vm11, %v5423_v1, %v16046_v13 }
 0x51d   : > { %v12852_v53 = vpop.permute.xlu0 %3963  ;;  %v5475_v25 = vsel %vm1805_vm12, %v5449_v40, %v5243_v63  ;;  %v12897_v40 = vld [vmem:[#allocation2 + $0x118] sm:$0xff] }
 0x51e   : > { %4203 = vrot.lane.b32.xlu1 %v12472_v20, %s8476_s22  ;;  %16048 = vst [vmem:[#allocation103_spill] sm:$0xff] %v12897_v40  ;;  %v16052_v20 = vld [vmem:[#allocation26_spill] sm:$0xff] }
 0x51f   : > { %5188 = vrot.lane.b32.xlu0 %v12858_v4, %s8473_s13  ;;  %v12912_v4 = vld [vmem:[#allocation2 + $0xa0] sm:$0xff] }
 0x520   : > { %v12863_v32 = vpop.permute.xlu1 %3961  ;;  %16049 = vst [vmem:[#allocation104_spill] sm:$0xff] %v12912_v4 }
 0x521   : > { %v4036_v51 = vpop.permute.xlu0 %4035 }
 0x522   : > { %5158 = vrot.lane.b32.xlu1 %v16030_v44, %s8472_s12 }
 0x523   : > { %3802 = vrot.lane.b32.xlu0 %v15934_v14, %s8469_s9  ;;  %v8396_v14 = vld [vmem:[#allocation2 + $0x180] sm:$0xff] }
 0x524   : > { %v4034_v62 = vpop.permute.xlu1 %4033  ;;  %v4155_v3 = vrot.slane %v8396_v14, 4 }
 0x525   : > { %v5275_v59 = vpop.permute.xlu0 %5274 }
 0x526   : > { %v5507_v46 = vsel %vm1870_vm13, %v5475_v25, %v5275_v59  ;;  %3800 = vrot.lane.b32.xlu1 %v15932_v35, %s8469_s9 }
 0x527   : > { %3911 = vrot.lane.b32.xlu0 %v12120_v52, %s8470_s10  ;;  %8007 = vmatmul.mubr.msk.bf16.gmra.mrb[40].mxu1 %vm2219_vm15, %v5507_v46  ;;  %v12893_v52 = vsel %vm2268_vm6, %v4155_v3, %v15334_v17  ;;  %v8399_v46 = vld [vmem:[#allocation2 + $0x190] sm:$0xff]  ;;  %v12909_v3 = vld [vmem:[#allocation2 + $0x198] sm:$0xff] }
 0x528   : > { %v12879_v36 = vpop.permute.xlu1 %5088  ;;  %16047 = vst [vmem:[#allocation76_spill] sm:$0xff] %v12893_v52  ;;  %v4158_v14 = vrot.slane %v8399_v46, 4 }
 0x529   : > { %v4040_v63 = vpop.permute.xlu0 %4039 }
 0x52a   : > { %3909 = vrot.lane.b32.xlu1 %v12142_v56, %s8470_s10 }
 0x52b   : > { %3913 = vrot.lane.b32.xlu0 %v12186_v34, %s8470_s10 }
 0x52c   : > { %v12888_v35 = vpop.permute.xlu1 %4037 }
 0x52d   : > { %v12895_v1 = vpop.permute.xlu0 %5120 }
 0x52e   : > { %5190 = vrot.lane.b32.xlu1 %v12897_v40, %s8473_s13  ;;  %v4260_v40 = vsel %vm314_vm0, %v12912_v4, %v12766_v55  ;;  %v16050_v55 = vrot.slane %v12909_v3, 4 }
 0x52f   : > { %5248 = vrot.lane.b32.xlu0 %v12893_v52, %s8475_s15  ;;  %v4324_v56 = vsel %vm1480_vm7, %v4260_v40, %v12801_v15  ;;  %v12919_v52 = vld [vmem:[#allocation2 + $0xa8] sm:$0xff]  ;;  %v16051_v40 = vld [vmem:[#allocation123_spill] sm:$0xff] }
 0x530   : > { %v12903_v25 = vpop.permute.xlu1 %5090  ;;  %v4262_v46 = vsel %vm314_vm0, %v12919_v52, %v12753_v30  ;;  %v12933_v15 = vsel %vm2268_vm6, %v4158_v14, %v16050_v55  ;;  %v4375_v4 = vsel %vm1545_vm8, %v4324_v56, %v16051_v40  ;;  %v12950_v56 = vld [vmem:[#allocation2 + $0xb8] sm:$0xff] }
 0x531   : > { %v4118_v59 = vpop.permute.xlu0 %4117  ;;  %v4326_v17 = vsel %vm1480_vm7, %v4262_v46, %v12795_v10  ;;  %v4420_v30 = vsel %vm1610_vm9, %v4375_v4, %v12839_v9  ;;  %v4266_v9 = vsel %vm314_vm0, %v12950_v56, %v12786_v28  ;;  %v12955_v4 = vld [vmem:[#allocation2 + $0xb0] sm:$0xff] }
 0x532   : > { %3915 = vrot.lane.b32.xlu1 %v12178_v61, %s8470_s10  ;;  %v4376_v10 = vsel %vm1545_vm8, %v4326_v17, %v16052_v20  ;;  %v4484_v46 = vsel %vm1675_vm10, %v4420_v30, %v4034_v62  ;;  %16053 = vst [vmem:[#allocation161_spill] sm:$0xff] %v12955_v4  ;;  %v4264_v20 = vsel %vm314_vm0, %v12955_v4, %v12793_v19  ;;  %v16054_v19 = vld [vmem:[#allocation215_spill] sm:$0xff] }
 0x533   : > { %3975 = vrot.lane.b32.xlu0 %v16004_v31, %s8472_s12  ;;  %v4422_v14 = vsel %vm1610_vm9, %v4376_v10, %v12831_v29  ;;  %v4330_v29 = vsel %vm1480_vm7, %v4266_v9, %v12828_v43  ;;  %v4535_v55 = vsel %vm1740_vm11, %v4484_v46, %v16013_v38  ;;  %v4328_v28 = vsel %vm1480_vm7, %v4264_v20, %v12805_v16  ;;  %v16055_v43 = vld [vmem:[#allocation27_spill] sm:$0xff]  ;;  %v16056_v20 = vld [vmem:[#allocation124_spill] sm:$0xff] }
 0x534   : > { %v4116_v34 = vpop.permute.xlu1 %4115  ;;  %v4486_v62 = vsel %vm1675_vm10, %v4422_v14, %v4036_v51  ;;  %v4378_v38 = vsel %vm1545_vm8, %v4330_v29, %v16055_v43 }
 0x535   : > { %v4120_v61 = vpop.permute.xlu0 %4119  ;;  %v4584_v10 = vsel %vm1805_vm12, %v4535_v55, %v4116_v34  ;;  %v4536_v51 = vsel %vm1740_vm11, %v4486_v62, %v16054_v19  ;;  %v4426_v9 = vsel %vm1610_vm9, %v4378_v38, %v12852_v53  ;;  %v4377_v62 = vsel %vm1545_vm8, %v4328_v28, %v16056_v20 }
 0x536   : > { %3973 = vrot.lane.b32.xlu1 %v16005_v58, %s8472_s12  ;;  %v4586_v46 = vsel %vm1805_vm12, %v4536_v51, %v4118_v59  ;;  %v4424_v59 = vsel %vm1610_vm9, %v4377_v62, %v12863_v32  ;;  %v16057_v51 = vld [vmem:[#allocation217_spill] sm:$0xff] }
 0x537   : > { %5280 = vrot.lane.b32.xlu0 %v12881_v41, %s8476_s22  ;;  %v4488_v53 = vsel %vm1675_vm10, %v4424_v59, %v12888_v35  ;;  %v16058_v32 = vld [vmem:[#allocation65_spill] sm:$0xff] }
 0x538   : > { %v12937_v31 = vpop.permute.xlu1 %5122  ;;  %v4537_v38 = vsel %vm1740_vm11, %v4488_v53, %v16015_v7 }
 0x539   : > { %v4192_v58 = vpop.permute.xlu0 %4191 }
 0x53a   : > { %5250 = vrot.lane.b32.xlu1 %v12933_v15, %s8475_s15  ;;  %v4648_v14 = vsel %vm1870_vm13, %v4584_v10, %v4192_v58  ;;  %v4490_v58 = vsel %vm1675_vm10, %v4426_v9, %v4040_v63 }
 0x53b   : > { %3979 = vrot.lane.b32.xlu0 %v16011_v6, %s8472_s12  ;;  %v4737_v10 = vrot.slane %v4648_v14, 2  ;;  %v4538_v63 = vsel %vm1740_vm11, %v4490_v58, %v16057_v51  ;;  %v16064_v51 = vld [vmem:[#allocation9_spill] sm:$0xff] }
 0x53c   : > { %v4122_v17 = vpop.permute.xlu1 %4121 }
 0x53d   : > { %v12965_v30 = vpop.permute.xlu0 %5152  ;;  %v4590_v43 = vsel %vm1805_vm12, %v4538_v63, %v4122_v17 }
 0x53e   : > { %3977 = vrot.lane.b32.xlu1 %v16006_v18, %s8472_s12 }
 0x53f   : > { %4051 = vrot.lane.b32.xlu0 %v12214_v45, %s8473_s13 }
 0x540   : > { %v4194_v34 = vpop.permute.xlu1 %4193 }
 0x541   : > { %v4650_v55 = vsel %vm1870_vm13, %v4586_v46, %v4194_v34  ;;  %v12983_v16 = vpop.permute.xlu0 %3790  ;;  %v4588_v46 = vsel %vm1805_vm12, %v4537_v38, %v4120_v61  ;;  %v8405_v38 = vld [vmem:[#allocation2 + $0x60] sm:$0xff] }
 0x542   : > { %v4738_v19 = vrot.slane %v4650_v55, 2  ;;  %4049 = vrot.lane.b32.xlu1 %v12222_v8, %s8473_s13 }
 0x543   : > { %5282 = vrot.lane.b32.xlu0 %v12909_v3, %s8476_s22 }
 0x544   : > { %v12996_v29 = vpop.permute.xlu1 %3788  ;;  %v4739_v28 = vsel %vm2534_vm5, %v4737_v10, %v4738_v19 }
 0x545   : > { %v4198_v14 = vpop.permute.xlu0 %4197  ;;  %7968 = vmatprep.mubr.msk.bf16.mxu0 %vm2219_vm15, %v4739_v28  ;;  %v16063_v28 = vld [vmem:[#allocation67_spill] sm:$0xff] }
 0x546   : > { %5096 = vrot.lane.b32.xlu1 %v16058_v32, %s8469_s9  ;;  %v4654_v35 = vsel %vm1870_vm13, %v4590_v43, %v4198_v14  ;;  %v16066_v43 = vld [vmem:[#allocation39_spill] sm:$0xff] }
 0x547   : > { %4055 = vrot.lane.b32.xlu0 %v12238_v2, %s8473_s13  ;;  %v4741_v58 = vrot.slane %v4654_v35, 2  ;;  %v5313_v35 = vsel %vm314_vm0, %v8405_v38, %v12879_v36 }
 0x548   : > { %v13011_v34 = vpop.f32.mrb[32].mxu0  ;;  %v4196_v9 = vpop.permute.xlu1 %4195 }
 0x549   : > { %16059 = vst [vmem:[#allocation162_spill] sm:$0xff] %v13011_v34  ;;  %v4652_v55 = vsel %vm1870_vm13, %v4588_v46, %v4196_v9  ;;  %v5185_v62 = vpop.permute.xlu0 %5184  ;;  %v13014_v17 = vpop.f32.mrb[33].mxu0  ;;  %v5345_v9 = vsel %vm1480_vm7, %v5313_v35, %v12895_v1  ;;  %v16068_v1 = vld [vmem:[#allocation220_spill] sm:$0xff] }
 0x54a   : > { %16060 = vst [vmem:[#allocation191_spill] sm:$0xff] %v13014_v17  ;;  %v4740_v10 = vrot.slane %v4652_v55, 2  ;;  %v13016_v19 = vpop.f32.mrb[34].mxu0  ;;  %4053 = vrot.lane.b32.xlu1 %v12254_v24, %s8473_s13 }
 0x54b   : > { %16061 = vst [vmem:[#allocation192_spill] sm:$0xff] %v13016_v19  ;;  %5128 = vrot.lane.b32.xlu0 %v12919_v52, %s8470_s10  ;;  %v13022_v7 = vpop.f32.mrb[35].mxu0  ;;  %v16065_v52 = vld [vmem:[#allocation37_spill] sm:$0xff] }
 0x54c   : > { %16062 = vst [vmem:[#allocation78_spill] sm:$0xff] %v13022_v7  ;;  %v5155_v61 = vpop.permute.xlu1 %5154  ;;  %v4742_v59 = vsel %vm2534_vm5, %v4740_v10, %v4741_v58  ;;  %v16067_v10 = vld [vmem:[#allocation40_spill] sm:$0xff]  ;;  %v13161_v7 = vld [vmem:[#allocation2 + $0x1b8] sm:$0xff] }
 0x54d   : > { %v13025_v53 = vpop.permute.xlu0 %3794  ;;  %7969 = vmatmul.mubr.msk.bf16.gmra.mrb[44].mxu0 %vm2219_vm15, %v4742_v59  ;;  %v5370_v59 = vsel %vm1545_vm8, %v5345_v9, %v16051_v40  ;;  %v8406_v9 = vld [vmem:[#allocation2 + $0x70] sm:$0xff] }
 0x54e   : > { %5098 = vrot.lane.b32.xlu1 %v16063_v28, %s8469_s9  ;;  %v5393_v36 = vsel %vm1610_vm9, %v5370_v59, %v12965_v30  ;;  %v5315_v30 = vsel %vm314_vm0, %v8406_v9, %v12903_v25 }
 0x54f   : > { %4133 = vrot.lane.b32.xlu0 %v16064_v51, %s8475_s15  ;;  %v5425_v28 = vsel %vm1675_vm10, %v5393_v36, %v5185_v62 }
 0x550   : > { %v13032_v63 = vpop.permute.xlu1 %3792  ;;  %v5450_v40 = vsel %vm1740_vm11, %v5425_v28, %v16068_v1 }
 0x551   : > { %v13034_v14 = vpop.permute.xlu0 %3903 }
 0x552   : > { %4131 = vrot.lane.b32.xlu1 %v16065_v52, %s8475_s15 }
 0x553   : > { %4135 = vrot.lane.b32.xlu0 %v16066_v43, %s8475_s15 }
 0x554   : > { %v13040_v32 = vpop.permute.xlu1 %3901 }
 0x555   : > { %v13044_v46 = vpop.permute.xlu0 %3905 }
 0x556   : > { %5130 = vrot.lane.b32.xlu1 %v12950_v56, %s8470_s10 }
 0x557   : > { %4207 = vrot.lane.b32.xlu0 %v12666_v54, %s8476_s22 }
 0x558   : > { %v5187_v55 = vpop.permute.xlu1 %5186 }
 0x559   : > { %v5245_v58 = vpop.permute.xlu0 %5244 }
 0x55a   : > { %4137 = vrot.lane.b32.xlu1 %v16067_v10, %s8475_s15  ;;  %v5477_v59 = vsel %vm1805_vm12, %v5450_v40, %v5245_v58  ;;  %v13090_v58 = vld [vmem:[#allocation2 + $0x128] sm:$0xff] }
 0x55b   : > { %5160 = vrot.lane.b32.xlu0 %v12222_v8, %s8472_s12  ;;  %16069 = vst [vmem:[#allocation106_spill] sm:$0xff] %v13090_v58 }
 0x55c   : > { %v13060_v56 = vpop.permute.xlu1 %3907 }
 0x55d   : > { %v13063_v38 = vpop.permute.xlu0 %3967 }
 0x55e   : > { %4209 = vrot.lane.b32.xlu1 %v12654_v47, %s8476_s22 }
 0x55f   : > { %3806 = vrot.lane.b32.xlu0 %v15960_v50, %s8469_s9  ;;  %v5347_v50 = vsel %vm1480_vm7, %v5315_v30, %v12937_v31 }
 0x560   : > { %v13071_v35 = vpop.permute.xlu1 %3965  ;;  %v5371_v25 = vsel %vm1545_vm8, %v5347_v50, %v16056_v20 }
 0x561   : > { %v5277_v62 = vpop.permute.xlu0 %5276 }
 0x562   : > { %v5509_v36 = vsel %vm1870_vm13, %v5477_v59, %v5277_v62  ;;  %3804 = vrot.lane.b32.xlu1 %v15961_v21, %s8469_s9  ;;  %v5395_v21 = vsel %vm1610_vm9, %v5371_v25, %v5155_v61  ;;  %v16072_v59 = vld [vmem:[#allocation222_spill] sm:$0xff] }
 0x563   : > { %4213 = vrot.lane.b32.xlu0 %v12680_v26, %s8476_s22  ;;  %8010 = vmatprep.mubr.msk.bf16.mxu1 %vm2219_vm15, %v5509_v36  ;;  %v5427_v31 = vsel %vm1675_vm10, %v5395_v21, %v5187_v55 }
 0x564   : > { %v5247_v28 = vpop.permute.xlu1 %5246  ;;  %v5451_v62 = vsel %vm1740_vm11, %v5427_v31, %v16072_v59 }
 0x565   : > { %v13084_v19 = vpop.permute.xlu0 %3971  ;;  %v5479_v50 = vsel %vm1805_vm12, %v5451_v62, %v5247_v28  ;;  %v13127_v28 = vld [vmem:[#allocation2 + $0x138] sm:$0xff] }
 0x566   : > { %4211 = vrot.lane.b32.xlu1 %v12706_v49, %s8476_s22  ;;  %16075 = vst [vmem:[#allocation183_spill] sm:$0xff] %v13127_v28 }
 0x567   : > { %5192 = vrot.lane.b32.xlu0 %v13090_v58, %s8473_s13 }
 0x568   : > { %v13095_v40 = vpop.permute.xlu1 %3969 }
 0x569   : > { %v4044_v9 = vpop.permute.xlu0 %4043 }
 0x56a   : > { %v13098_v30 = vpop.f32.mrb[32].mxu1  ;;  %5162 = vrot.lane.b32.xlu1 %v12254_v24, %s8472_s12 }
 0x56b   : > { %16070 = vst [vmem:[#allocation164_spill] sm:$0xff] %v13098_v30  ;;  %3810 = vrot.lane.b32.xlu0 %v15964_v42, %s8469_s9  ;;  %v13104_v20 = vpop.f32.mrb[33].mxu1 }
 0x56c   : > { %16071 = vst [vmem:[#allocation194_spill] sm:$0xff] %v13104_v20  ;;  %v13108_v36 = vpop.f32.mrb[34].mxu1  ;;  %v4042_v61 = vpop.permute.xlu1 %4041  ;;  %v13156_v20 = vld [vmem:[#allocation2 + $0xc0] sm:$0xff] }
 0x56d   : > { %16073 = vst [vmem:[#allocation186_spill] sm:$0xff] %v13108_v36  ;;  %v5279_v55 = vpop.permute.xlu0 %5278  ;;  %v13111_v25 = vpop.f32.mrb[35].mxu1  ;;  %v13123_v36 = vld [vmem:[#allocation2 + $0x1a8] sm:$0xff]  ;;  %16078 = vst [vmem:[#allocation24_spill] sm:$0xff] %v13156_v20 }
 0x56e   : > { %16074 = vst [vmem:[#allocation190_spill] sm:$0xff] %v13111_v25  ;;  %v5511_v21 = vsel %vm1870_vm13, %v5479_v50, %v5279_v55  ;;  %3808 = vrot.lane.b32.xlu1 %v15962_v37, %s8469_s9  ;;  %v13131_v37 = vld [vmem:[#allocation2 + $0x1a0] sm:$0xff]  ;;  %v15345_v50 = vrot.slane %v13123_v36, 4  ;;  %v13154_v25 = vld [vmem:[#allocation2 + $0x1b0] sm:$0xff] }
 0x56f   : > { %3919 = vrot.lane.b32.xlu0 %v11935_v5, %s8470_s10  ;;  %8011 = vmatmul.mubr.msk.bf16.gmra.mrb[44].mxu1 %vm2219_vm15, %v5511_v21  ;;  %16076 = vst [vmem:[#allocation187_spill] sm:$0xff] %v13131_v37  ;;  %v4161_v5 = vrot.slane %v13131_v37, 4 }
 0x570   : > { %v13119_v42 = vpop.permute.xlu1 %5092 }
 0x571   : > { %v13121_v31 = vpop.permute.xlu0 %4047  ;;  %v13148_v21 = vsel %vm2268_vm6, %v4161_v5, %v15345_v50 }
 0x572   : > { %3917 = vrot.lane.b32.xlu1 %v11963_v27, %s8470_s10  ;;  %16077 = vst [vmem:[#allocation168_spill] sm:$0xff] %v13148_v21 }
 0x573   : > { %5194 = vrot.lane.b32.xlu0 %v13127_v28, %s8473_s13  ;;  %v13165_v28 = vld [vmem:[#allocation2 + $0xc8] sm:$0xff] }
 0x574   : > { %v13133_v62 = vpop.permute.xlu1 %4045 }
 0x575   : > { %v13137_v55 = vpop.permute.xlu0 %5124 }
 0x576   : > { %4077 = vrot.lane.b32.xlu1 %v13131_v37, %s8474_s14 }
 0x577   : > { %3923 = vrot.lane.b32.xlu0 %v16029_v11, %s8470_s10  ;;  %v4268_v11 = vsel %vm314_vm0, %v13156_v20, %v12996_v29  ;;  %v4164_v29 = vrot.slane %v13154_v25, 4 }
 0x578   : > { %v13143_v27 = vpop.permute.xlu1 %5094  ;;  %v4332_v5 = vsel %vm1480_vm7, %v4268_v11, %v13040_v32  ;;  %v4165_v32 = vrot.slane %v13161_v7, 4  ;;  %v16079_v11 = vld [vmem:[#allocation30_spill] sm:$0xff] }
 0x579   : > { %v4126_v30 = vpop.permute.xlu0 %4125  ;;  %v4379_v20 = vsel %vm1545_vm8, %v4332_v5, %v16079_v11 }
 0x57a   : > { %3921 = vrot.lane.b32.xlu1 %v16030_v44, %s8470_s10  ;;  %v4270_v44 = vsel %vm314_vm0, %v13165_v28, %v12983_v16  ;;  %v4428_v16 = vsel %vm1610_vm9, %v4379_v20, %v13071_v35  ;;  %v13196_v5 = vsel %vm2268_vm6, %v4164_v29, %v4165_v32  ;;  %v13198_v35 = vld [vmem:[#allocation2 + $0xd8] sm:$0xff]  ;;  %v13203_v20 = vld [vmem:[#allocation2 + $0xd0] sm:$0xff] }
 0x57b   : > { %5252 = vrot.lane.b32.xlu0 %v13148_v21, %s8475_s15  ;;  %v4334_v58 = vsel %vm1480_vm7, %v4270_v44, %v13034_v14  ;;  %v16080_v21 = vld [vmem:[#allocation29_spill] sm:$0xff]  ;;  %v4492_v14 = vsel %vm1675_vm10, %v4428_v16, %v4042_v61 }
 0x57c   : > { %v4124_v34 = vpop.permute.xlu1 %4123  ;;  %v4380_v37 = vsel %vm1545_vm8, %v4334_v58, %v16080_v21  ;;  %v4274_v58 = vsel %vm314_vm0, %v13198_v35, %v13025_v53  ;;  %v4539_v21 = vsel %vm1740_vm11, %v4492_v14, %v16043_v12 }
 0x57d   : > { %v4128_v50 = vpop.permute.xlu0 %4127  ;;  %v4592_v29 = vsel %vm1805_vm12, %v4539_v21, %v4124_v34 }
 0x57e   : > { %4081 = vrot.lane.b32.xlu1 %v13154_v25, %s8474_s14 }
 0x57f   : > { %3983 = vrot.lane.b32.xlu0 %v16032_v48, %s8472_s12  ;;  %v4430_v48 = vsel %vm1610_vm9, %v4380_v37, %v13063_v38  ;;  %v4338_v37 = vsel %vm1480_vm7, %v4274_v58, %v13060_v56  ;;  %v16082_v56 = vld [vmem:[#allocation31_spill] sm:$0xff] }
 0x580   : > { %v13180_v17 = vpop.permute.xlu1 %5126  ;;  %v4494_v38 = vsel %vm1675_vm10, %v4430_v48, %v4044_v9  ;;  %v4382_v12 = vsel %vm1545_vm8, %v4338_v37, %v16082_v56 }
 0x581   : > { %v4200_v4 = vpop.permute.xlu0 %4199  ;;  %v4434_v48 = vsel %vm1610_vm9, %v4382_v12, %v13084_v19 }
 0x582   : > { %3981 = vrot.lane.b32.xlu1 %v16033_v39, %s8472_s12  ;;  %v4272_v39 = vsel %vm314_vm0, %v13203_v20, %v13032_v63  ;;  %v16081_v63 = vld [vmem:[#allocation219_spill] sm:$0xff]  ;;  %v4656_v16 = vsel %vm1870_vm13, %v4592_v29, %v4200_v4  ;;  %v4498_v4 = vsel %vm1675_vm10, %v4434_v48, %v13121_v31 }
 0x583   : > { %5284 = vrot.lane.b32.xlu0 %v13123_v36, %s8476_s22  ;;  %v4336_v53 = vsel %vm1480_vm7, %v4272_v39, %v13044_v46  ;;  %v4540_v9 = vsel %vm1740_vm11, %v4494_v38, %v16081_v63  ;;  %v16083_v39 = vld [vmem:[#allocation32_spill] sm:$0xff] }
 0x584   : > { %v4130_v61 = vpop.permute.xlu1 %4129  ;;  %v4594_v14 = vsel %vm1805_vm12, %v4540_v9, %v4126_v30  ;;  %v4381_v38 = vsel %vm1545_vm8, %v4336_v53, %v16083_v39  ;;  %v16084_v53 = vld [vmem:[#allocation221_spill] sm:$0xff] }
 0x585   : > { %v13213_v44 = vpop.permute.xlu0 %5156  ;;  %v4432_v30 = vsel %vm1610_vm9, %v4381_v38, %v13095_v40  ;;  %v4542_v31 = vsel %vm1740_vm11, %v4498_v4, %v16084_v53  ;;  %v16085_v4 = vld [vmem:[#allocation181_spill] sm:$0xff] }
 0x586   : > { %5254 = vrot.lane.b32.xlu1 %v13196_v5, %s8475_s15  ;;  %v4496_v19 = vsel %vm1675_vm10, %v4432_v30, %v13133_v62 }
 0x587   : > { %3987 = vrot.lane.b32.xlu0 %v16039_v23, %s8472_s12  ;;  %v4743_v23 = vrot.slane %v4656_v16, 2 }
 0x588   : > { %v4202_v34 = vpop.permute.xlu1 %4201 }
 0x589   : > { %v4658_v58 = vsel %vm1870_vm13, %v4594_v14, %v4202_v34  ;;  %v13231_v46 = vpop.permute.xlu0 %3798 }
 0x58a   : > { %v4744_v21 = vrot.slane %v4658_v58, 2  ;;  %3985 = vrot.lane.b32.xlu1 %v16034_v57, %s8472_s12  ;;  %v4598_v57 = vsel %vm1805_vm12, %v4542_v31, %v4130_v61  ;;  %v16090_v31 = vld [vmem:[#allocation171_spill] sm:$0xff] }
 0x58b   : > { %4059 = vrot.lane.b32.xlu0 %v16041_v22, %s8473_s13  ;;  %v4541_v22 = vsel %vm1740_vm11, %v4496_v19, %v16046_v13  ;;  %v16088_v19 = vld [vmem:[#allocation74_spill] sm:$0xff] }
 0x58c   : > { %v13245_v37 = vpop.permute.xlu1 %3796  ;;  %v4745_v29 = vsel %vm2534_vm5, %v4743_v23, %v4744_v21  ;;  %v4596_v62 = vsel %vm1805_vm12, %v4541_v22, %v4128_v50  ;;  %v16087_v21 = vld [vmem:[#allocation89_spill] sm:$0xff] }
 0x58d   : > { %v4206_v63 = vpop.permute.xlu0 %4205  ;;  %7972 = vmatprep.mubr.msk.bf16.mxu0 %vm2219_vm15, %v4745_v29  ;;  %v5317_v29 = vsel %vm314_vm0, %v16088_v19, %v13119_v42  ;;  %v16091_v42 = vld [vmem:[#allocation76_spill] sm:$0xff]  ;;  %v16095_v19 = vrot.slane %v12881_v41, 4  ;;  %v16098_v41 = vrot.slane %v12909_v3, 4 }
 0x58e   : > { %4057 = vrot.lane.b32.xlu1 %v16035_v33, %s8473_s13  ;;  %v4662_v40 = vsel %vm1870_vm13, %v4598_v57, %v4206_v63  ;;  %v5349_v63 = vsel %vm1480_vm7, %v5317_v29, %v13137_v55  ;;  %v16092_v55 = vld [vmem:[#allocation146_spill] sm:$0xff] }
 0x58f   : > { %5286 = vrot.lane.b32.xlu0 %v13161_v7, %s8476_s22  ;;  %v4747_v14 = vrot.slane %v4662_v40, 2  ;;  %v5372_v40 = vsel %vm1545_vm8, %v5349_v63, %v16079_v11 }
 0x590   : > { %v13260_v9 = vpop.f32.mrb[36].mxu0  ;;  %v4204_v16 = vpop.permute.xlu1 %4203 }
 0x591   : > { %v4660_v56 = vsel %vm1870_vm13, %v4596_v62, %v4204_v16  ;;  %v5189_v12 = vpop.permute.xlu0 %5188  ;;  %v13263_v61 = vpop.f32.mrb[37].mxu0  ;;  %v5397_v62 = vsel %vm1610_vm9, %v5372_v40, %v13213_v44 }
 0x592   : > { %v4746_v34 = vrot.slane %v4660_v56, 2  ;;  %v13265_v48 = vpop.f32.mrb[38].mxu0  ;;  %5100 = vrot.lane.b32.xlu1 %v15952_v0, %s8469_s9  ;;  %v5429_v56 = vsel %vm1675_vm10, %v5397_v62, %v5189_v12 }
 0x593   : > { %4063 = vrot.lane.b32.xlu0 %v12454_v60, %s8473_s13  ;;  %v13271_v13 = vpop.f32.mrb[39].mxu0  ;;  %v16086_v60 = vld [vmem:[#allocation92_spill] sm:$0xff] }
 0x594   : > { %v5159_v50 = vpop.permute.xlu1 %5158  ;;  %v4748_v58 = vsel %vm2534_vm5, %v4746_v34, %v4747_v14 }
 0x595   : > { %v13274_v38 = vpop.permute.xlu0 %3802  ;;  %7973 = vmatmul.mubr.msk.bf16.gmra.mrb[48].mxu0 %vm2219_vm15, %v4748_v58  ;;  %v16094_v58 = vld [vmem:[#allocation189_spill] sm:$0xff] }
 0x596   : > { %4061 = vrot.lane.b32.xlu1 %v16085_v4, %s8473_s13  ;;  %v5319_v44 = vsel %vm314_vm0, %v16094_v58, %v13143_v27  ;;  %v16097_v27 = vld [vmem:[#allocation33_spill] sm:$0xff] }
 0x597   : > { %5132 = vrot.lane.b32.xlu0 %v13165_v28, %s8470_s10  ;;  %v16089_v28 = vld [vmem:[#allocation88_spill] sm:$0xff]  ;;  %v5351_v29 = vsel %vm1480_vm7, %v5319_v44, %v13180_v17 }
 0x598   : > { %v13281_v23 = vpop.permute.xlu1 %3800  ;;  %v5373_v63 = vsel %vm1545_vm8, %v5351_v29, %v16083_v39 }
 0x599   : > { %v13283_v0 = vpop.permute.xlu0 %3911 }
 0x59a   : > { %5102 = vrot.lane.b32.xlu1 %v16086_v60, %s8469_s9 }
 0x59b   : > { %4141 = vrot.lane.b32.xlu0 %v16087_v21, %s8475_s15 }
 0x59c   : > { %v13289_v30 = vpop.permute.xlu1 %3909 }
 0x59d   : > { %v13294_v53 = vpop.permute.xlu0 %3913 }
 0x59e   : > { %4139 = vrot.lane.b32.xlu1 %v16089_v28, %s8475_s15 }
 0x59f   : > { %4143 = vrot.lane.b32.xlu0 %v16090_v31, %s8475_s15 }
 0x5a0   : > { %v5191_v57 = vpop.permute.xlu1 %5190 }
 0x5a1   : > { %v5249_v22 = vpop.permute.xlu0 %5248 }
 0x5a2   : > { %5134 = vrot.lane.b32.xlu1 %v13198_v35, %s8470_s10  ;;  %v16093_v35 = vld [vmem:[#allocation172_spill] sm:$0xff] }
 0x5a3   : > { %4215 = vrot.lane.b32.xlu0 %v16091_v42, %s8476_s22  ;;  %v5452_v11 = vsel %vm1740_vm11, %v5429_v56, %v16093_v35  ;;  %v8413_v56 = vld [vmem:[#allocation2 + $0x148] sm:$0xff] }
 0x5a4   : > { %v13310_v16 = vpop.permute.xlu1 %3915  ;;  %v5481_v60 = vsel %vm1805_vm12, %v5452_v11, %v5249_v22  ;;  %v5399_v22 = vsel %vm1610_vm9, %v5373_v63, %v5159_v50 }
 0x5a5   : > { %v13313_v14 = vpop.permute.xlu0 %3975  ;;  %v5431_v42 = vsel %vm1675_vm10, %v5399_v22, %v5191_v57 }
 0x5a6   : > { %4145 = vrot.lane.b32.xlu1 %v16092_v55, %s8475_s15  ;;  %v16099_v55 = vld [vmem:[#allocation48_spill] sm:$0xff] }
 0x5a7   : > { %5164 = vrot.lane.b32.xlu0 %v16035_v33, %s8472_s12  ;;  %v16096_v33 = vld [vmem:[#allocation34_spill] sm:$0xff]  ;;  %v5453_v3 = vsel %vm1740_vm11, %v5431_v42, %v16099_v55 }
 0x5a8   : > { %v13321_v34 = vpop.permute.xlu1 %3973 }
 0x5a9   : > { %v5281_v12 = vpop.permute.xlu0 %5280 }
 0x5aa   : > { %v5513_v21 = vsel %vm1870_vm13, %v5481_v60, %v5281_v12  ;;  %4217 = vrot.lane.b32.xlu1 %v16095_v19, %s8476_s22  ;;  %v534_v19 = vld [vmem:[#allocation2 + $0x1c0] sm:$0xff] }
 0x5ab   : > { %3814 = vrot.lane.b32.xlu0 %v16096_v33, %s8469_s9  ;;  %8014 = vmatprep.mubr.msk.bf16.mxu1 %vm2219_vm15, %v5513_v21 }
 0x5ac   : > { %v5251_v28 = vpop.permute.xlu1 %5250 }
 0x5ad   : > { %v13336_v31 = vpop.permute.xlu0 %3979  ;;  %v5483_v58 = vsel %vm1805_vm12, %v5453_v3, %v5251_v28 }
 0x5ae   : > { %3812 = vrot.lane.b32.xlu1 %v16097_v27, %s8469_s9 }
 0x5af   : > { %4221 = vrot.lane.b32.xlu0 %v16098_v41, %s8476_s22 }
 0x5b0   : > { %v13346_v40 = vpop.permute.xlu1 %3977 }
 0x5b1   : > { %v4052_v17 = vpop.permute.xlu0 %4051 }
 0x5b2   : > { %v13349_v62 = vpop.f32.mrb[36].mxu1  ;;  %4219 = vrot.lane.b32.xlu1 %v12933_v15, %s8476_s22 }
 0x5b3   : > { %5196 = vrot.lane.b32.xlu0 %v8413_v56, %s8473_s13  ;;  %v13354_v39 = vpop.f32.mrb[37].mxu1  ;;  %v13397_v56 = vld [vmem:[#allocation2 + $0xe8] sm:$0xff] }
 0x5b4   : > { %v13358_v11 = vpop.f32.mrb[38].mxu1  ;;  %v4050_v50 = vpop.permute.xlu1 %4049  ;;  %v4278_v3 = vsel %vm314_vm0, %v13397_v56, %v13231_v46  ;;  %v16101_v46 = vld [vmem:[#allocation127_spill] sm:$0xff] }
 0x5b5   : > { %v5283_v57 = vpop.permute.xlu0 %5282  ;;  %v13361_v44 = vpop.f32.mrb[39].mxu1 }
 0x5b6   : > { %v5515_v60 = vsel %vm1870_vm13, %v5483_v58, %v5283_v57  ;;  %5166 = vrot.lane.b32.xlu1 %v16085_v4, %s8472_s12  ;;  %v535_v4 = vld [vmem:[#allocation2 + $0x1c8] sm:$0xff] }
 0x5b7   : > { %3818 = vrot.lane.b32.xlu0 %v16011_v6, %s8469_s9  ;;  %8015 = vmatmul.mubr.msk.bf16.gmra.mrb[48].mxu1 %vm2219_vm15, %v5515_v60  ;;  %v5220_v6 = vrot.slane %v534_v19, 4  ;;  %v5221_v28 = vrot.slane %v535_v4, 4  ;;  %v16100_v58 = vld [vmem:[#allocation125_spill] sm:$0xff]  ;;  %v537_v60 = vld [vmem:[#allocation2 + $0x1d8] sm:$0xff] }
 0x5b8   : > { %v13369_v15 = vpop.permute.xlu1 %5096 }
 0x5b9   : > { %v13371_v12 = vpop.permute.xlu0 %4055  ;;  %v5222_v41 = vsel %vm2268_vm6, %v5220_v6, %v5221_v28 }
 0x5ba   : > { %3816 = vrot.lane.b32.xlu1 %v16006_v18, %s8469_s9  ;;  %v8414_v18 = vld [vmem:[#allocation2 + $0x158] sm:$0xff] }
 0x5bb   : > { %3927 = vrot.lane.b32.xlu0 %v12214_v45, %s8470_s10  ;;  %v13389_v45 = vld [vmem:[#allocation2 + $0xe0] sm:$0xff] }
 0x5bc   : > { %v13377_v21 = vpop.permute.xlu1 %4053  ;;  %v4276_v63 = vsel %vm314_vm0, %v13389_v45, %v13245_v37  ;;  %v536_v37 = vld [vmem:[#allocation2 + $0x1d0] sm:$0xff] }
 0x5bd   : > { %v13379_v33 = vpop.permute.xlu0 %5128  ;;  %v4340_v22 = vsel %vm1480_vm7, %v4276_v63, %v13289_v30  ;;  %v5224_v63 = vrot.slane %v537_v60, 4 }
 0x5be   : > { %3925 = vrot.lane.b32.xlu1 %v12222_v8, %s8470_s10  ;;  %v4383_v57 = vsel %vm1545_vm8, %v4340_v22, %v16100_v58  ;;  %v13426_v22 = vld [vmem:[#allocation2 + $0xf0] sm:$0xff] }
 0x5bf   : > { %5208 = vrot.lane.b32.xlu0 %v534_v19, %s8474_s14  ;;  %v4436_v19 = vsel %vm1610_vm9, %v4383_v57, %v13321_v34 }
 0x5c0   : > { %v13384_v29 = vpop.permute.xlu1 %5098 }
 0x5c1   : > { %v4134_v27 = vpop.permute.xlu0 %4133 }
 0x5c2   : > { %5198 = vrot.lane.b32.xlu1 %v8414_v18, %s8473_s13  ;;  %v5223_v18 = vrot.slane %v536_v37, 4 }
 0x5c3   : > { %3931 = vrot.lane.b32.xlu0 %v12238_v2, %s8470_s10  ;;  %v4342_v2 = vsel %vm1480_vm7, %v4278_v3, %v13283_v0 }
 0x5c4   : > { %v4132_v8 = vpop.permute.xlu1 %4131  ;;  %v4384_v28 = vsel %vm1545_vm8, %v4342_v2, %v16101_v46 }
 0x5c5   : > { %v4136_v42 = vpop.permute.xlu0 %4135  ;;  %v4438_v0 = vsel %vm1610_vm9, %v4384_v28, %v13313_v14 }
 0x5c6   : > { %3929 = vrot.lane.b32.xlu1 %v12254_v24, %s8470_s10  ;;  %v4500_v24 = vsel %vm1675_vm10, %v4436_v19, %v4050_v50  ;;  %v4280_v50 = vsel %vm314_vm0, %v13426_v22, %v13281_v23  ;;  %v4502_v3 = vsel %vm1675_vm10, %v4438_v0, %v4052_v17  ;;  %v16102_v23 = vld [vmem:[#allocation223_spill] sm:$0xff]  ;;  %v16104_v0 = vld [vmem:[#allocation126_spill] sm:$0xff] }
 0x5c7   : > { %5256 = vrot.lane.b32.xlu0 %v5222_v41, %s8475_s15  ;;  %v13421_v41 = vld [vmem:[#allocation2 + $0xf8] sm:$0xff]  ;;  %v4544_v17 = vsel %vm1740_vm11, %v4502_v3, %v16102_v23  ;;  %v16105_v3 = vld [vmem:[#allocation225_spill] sm:$0xff] }
 0x5c8   : > { %v13409_v30 = vpop.permute.xlu1 %5130  ;;  %v4282_v34 = vsel %vm314_vm0, %v13421_v41, %v13274_v38  ;;  %v4344_v38 = vsel %vm1480_vm7, %v4280_v50, %v13294_v53 }
 0x5c9   : > { %v4208_v6 = vpop.permute.xlu0 %4207  ;;  %v4346_v2 = vsel %vm1480_vm7, %v4282_v34, %v13310_v16  ;;  %v5225_v16 = vsel %vm2268_vm6, %v5223_v18, %v5224_v63 }
 0x5ca   : > { %5210 = vrot.lane.b32.xlu1 %v536_v37, %s8474_s14 }
 0x5cb   : > { %3991 = vrot.lane.b32.xlu0 %v16064_v51, %s8472_s12  ;;  %v4543_v51 = vsel %vm1740_vm11, %v4500_v24, %v16068_v1  ;;  %v16103_v1 = vld [vmem:[#allocation129_spill] sm:$0xff] }
 0x5cc   : > { %v4138_v14 = vpop.permute.xlu1 %4137  ;;  %v4600_v57 = vsel %vm1805_vm12, %v4543_v51, %v4132_v8  ;;  %v4386_v46 = vsel %vm1545_vm8, %v4346_v2, %v16103_v1  ;;  %v4602_v8 = vsel %vm1805_vm12, %v4544_v17, %v4134_v27 }
 0x5cd   : > { %v13436_v37 = vpop.permute.xlu0 %5160  ;;  %v4664_v19 = vsel %vm1870_vm13, %v4600_v57, %v4208_v6  ;;  %v4385_v6 = vsel %vm1545_vm8, %v4344_v38, %v16104_v0 }
 0x5ce   : > { %3989 = vrot.lane.b32.xlu1 %v16065_v52, %s8472_s12  ;;  %v4442_v52 = vsel %vm1610_vm9, %v4386_v46, %v13336_v31  ;;  %v4749_v18 = vrot.slane %v4664_v19, 2  ;;  %v4440_v27 = vsel %vm1610_vm9, %v4385_v6, %v13346_v40  ;;  %v16106_v46 = vld [vmem:[#allocation180_spill] sm:$0xff]  ;;  %v16108_v6 = vld [vmem:[#allocation187_spill] sm:$0xff] }
 0x5cf   : > { %5288 = vrot.lane.b32.xlu0 %v535_v4, %s8476_s22  ;;  %v4506_v4 = vsel %vm1675_vm10, %v4442_v52, %v13371_v12  ;;  %v4504_v31 = vsel %vm1675_vm10, %v4440_v27, %v13377_v21  ;;  %v4089_v27 = vrot.slane %v13161_v7, 2 }
 0x5d0   : > { %v4210_v28 = vpop.permute.xlu1 %4209  ;;  %v4546_v12 = vsel %vm1740_vm11, %v4506_v4, %v16105_v3  ;;  %v4085_v4 = vrot.slane %v16108_v6, 2 }
 0x5d1   : > { %v4666_v53 = vsel %vm1870_vm13, %v4602_v8, %v4210_v28  ;;  %v13454_v24 = vpop.permute.xlu0 %3806  ;;  %v4606_v51 = vsel %vm1805_vm12, %v4546_v12, %v4138_v14 }
 0x5d2   : > { %v4750_v63 = vrot.slane %v4666_v53, 2  ;;  %5258 = vrot.lane.b32.xlu1 %v5225_v16, %s8475_s15 }
 0x5d3   : > { %3995 = vrot.lane.b32.xlu0 %v16067_v10, %s8472_s12  ;;  %v4545_v10 = vsel %vm1740_vm11, %v4504_v31, %v16072_v59 }
 0x5d4   : > { %v13467_v34 = vpop.permute.xlu1 %3804  ;;  %v4751_v50 = vsel %vm2534_vm5, %v4749_v18, %v4750_v63  ;;  %v4604_v21 = vsel %vm1805_vm12, %v4545_v10, %v4136_v42  ;;  %v4088_v18 = vrot.slane %v13154_v25, 2 }
 0x5d5   : > { %v4214_v2 = vpop.permute.xlu0 %4213  ;;  %7976 = vmatprep.mubr.msk.bf16.mxu0 %vm2219_vm15, %v4751_v50  ;;  %v16109_v50 = vld [vmem:[#allocation104_spill] sm:$0xff] }
 0x5d6   : > { %3993 = vrot.lane.b32.xlu1 %v16066_v43, %s8472_s12  ;;  %v4670_v40 = vsel %vm1870_vm13, %v4606_v51, %v4214_v2  ;;  %v5321_v3 = vsel %vm314_vm0, %v16109_v50, %v13369_v15  ;;  %v4090_v25 = vsel %vm2534_vm5, %v4088_v18, %v4089_v27  ;;  %v538_v50 = vld [vmem:[#allocation2 + $0x1e0] sm:$0xff] }
 0x5d7   : > { %4067 = vrot.lane.b32.xlu0 %v12654_v47, %s8473_s13  ;;  %v4753_v19 = vrot.slane %v4670_v40, 2  ;;  %v5353_v10 = vsel %vm1480_vm7, %v5321_v3, %v13379_v33  ;;  %v16110_v33 = vld [vmem:[#allocation168_spill] sm:$0xff] }
 0x5d8   : > { %v13482_v57 = vpop.f32.mrb[40].mxu0  ;;  %v4212_v38 = vpop.permute.xlu1 %4211  ;;  %v5374_v15 = vsel %vm1545_vm8, %v5353_v10, %v16100_v58 }
 0x5d9   : > { %v4668_v23 = vsel %vm1870_vm13, %v4604_v21, %v4212_v38  ;;  %v5193_v17 = vpop.permute.xlu0 %5192  ;;  %v13485_v14 = vpop.f32.mrb[41].mxu0  ;;  %v5401_v21 = vsel %vm1610_vm9, %v5374_v15, %v13436_v37  ;;  %v16111_v37 = vld [vmem:[#allocation161_spill] sm:$0xff] }
 0x5da   : > { %v4752_v43 = vrot.slane %v4668_v23, 2  ;;  %v13487_v16 = vpop.f32.mrb[42].mxu0  ;;  %4065 = vrot.lane.b32.xlu1 %v12666_v54, %s8473_s13  ;;  %v5433_v38 = vsel %vm1675_vm10, %v5401_v21, %v5193_v17 }
 0x5db   : > { %5290 = vrot.lane.b32.xlu0 %v537_v60, %s8476_s22  ;;  %v13492_v47 = vpop.f32.mrb[43].mxu0  ;;  %v16107_v60 = vld [vmem:[#allocation23_spill] sm:$0xff] }
 0x5dc   : > { %v5163_v59 = vpop.permute.xlu1 %5162  ;;  %v4754_v42 = vsel %vm2534_vm5, %v4752_v43, %v4753_v19 }
 0x5dd   : > { %v13495_v1 = vpop.permute.xlu0 %3810  ;;  %7977 = vmatmul.mubr.msk.bf16.gmra.mrb[52].mxu0 %vm2219_vm15, %v4754_v42 }
 0x5de   : > { %5104 = vrot.lane.b32.xlu1 %v16106_v46, %s8469_s9 }
 0x5df   : > { %4071 = vrot.lane.b32.xlu0 %v12680_v26, %s8473_s13  ;;  %v4086_v26 = vrot.slane %v13123_v36, 2 }
 0x5e0   : > { %v13502_v8 = vpop.permute.xlu1 %3808 }
 0x5e1   : > { %v13504_v28 = vpop.permute.xlu0 %3919  ;;  %v4087_v12 = vsel %vm2534_vm5, %v4085_v4, %v4086_v26  ;;  %v16112_v4 = vrot.slane %v13123_v36, 4 }
 0x5e2   : > { %4069 = vrot.lane.b32.xlu1 %v12706_v49, %s8473_s13 }
 0x5e3   : > { %5106 = vrot.lane.b32.xlu0 %v16107_v60, %s8469_s9 }
 0x5e4   : > { %v13510_v52 = vpop.permute.xlu1 %3917 }
 0x5e5   : > { %v5195_v53 = vpop.permute.xlu0 %5194 }
 0x5e6   : > { %4079 = vrot.lane.b32.xlu1 %v13123_v36, %s8474_s14  ;;  %v539_v36 = vld [vmem:[#allocation2 + $0x1e8] sm:$0xff] }
 0x5e7   : > { %4083 = vrot.lane.b32.xlu0 %v13161_v7, %s8474_s14 }
 0x5e8   : > { %v13519_v63 = vpop.permute.xlu1 %4077 }
 0x5e9   : > { %v13522_v31 = vpop.permute.xlu0 %3923  ;;  %v5454_v23 = vsel %vm1740_vm11, %v5433_v38, %v13519_v63  ;;  %v541_v38 = vld [vmem:[#allocation2 + $0x1f8] sm:$0xff] }
 0x5ea   : > { %5136 = vrot.lane.b32.xlu1 %v13397_v56, %s8470_s10 }
 0x5eb   : > { %4149 = vrot.lane.b32.xlu0 %v4086_v26, %s8475_s15 }
 0x5ec   : > { %v13531_v2 = vpop.permute.xlu1 %3921 }
 0x5ed   : > { %v5253_v51 = vpop.permute.xlu0 %5252 }
 0x5ee   : > { %4147 = vrot.lane.b32.xlu1 %v4087_v12, %s8475_s15  ;;  %v5485_v58 = vsel %vm1805_vm12, %v5454_v23, %v5253_v51  ;;  %v5227_v51 = vrot.slane %v539_v36, 4  ;;  %v8420_v23 = vld [vmem:[#allocation2 + $0x178] sm:$0xff] }
 0x5ef   : > { %4151 = vrot.lane.b32.xlu0 %v4090_v25, %s8475_s15  ;;  %v5226_v25 = vrot.slane %v538_v50, 4 }
 0x5f0   : > { %v13538_v56 = vpop.permute.xlu1 %4081 }
 0x5f1   : > { %v13542_v40 = vpop.permute.xlu0 %3983 }
 0x5f2   : > { %5138 = vrot.lane.b32.xlu1 %v13421_v41, %s8470_s10  ;;  %v5323_v41 = vsel %vm314_vm0, %v16111_v37, %v13384_v29  ;;  %v16113_v37 = vld [vmem:[#allocation96_spill] sm:$0xff] }
 0x5f3   : > { %4223 = vrot.lane.b32.xlu0 %v16110_v33, %s8476_s22  ;;  %v5355_v60 = vsel %vm1480_vm7, %v5323_v41, %v13409_v30 }
 0x5f4   : > { %v13553_v19 = vpop.permute.xlu1 %3981  ;;  %v5375_v18 = vsel %vm1545_vm8, %v5355_v60, %v16104_v0 }
 0x5f5   : > { %v5285_v43 = vpop.permute.xlu0 %5284  ;;  %v5403_v3 = vsel %vm1610_vm9, %v5375_v18, %v5163_v59  ;;  %v5228_v59 = vsel %vm2268_vm6, %v5226_v25, %v5227_v51  ;;  %v8421_v25 = vld [vmem:[#allocation2 + $0x100] sm:$0xff] }
 0x5f6   : > { %v5517_v42 = vsel %vm1870_vm13, %v5485_v58, %v5285_v43  ;;  %4153 = vrot.lane.b32.xlu1 %v4089_v27, %s8475_s15  ;;  %v5435_v7 = vsel %vm1675_vm10, %v5403_v3, %v5195_v53  ;;  %v540_v53 = vld [vmem:[#allocation2 + $0x1f0] sm:$0xff]  ;;  %v5230_v43 = vrot.slane %v541_v38, 4  ;;  %v4284_v51 = vsel %vm314_vm0, %v8421_v25, %v13467_v34 }
 0x5f7   : > { %5168 = vrot.lane.b32.xlu0 %v12666_v54, %s8472_s12  ;;  %8018 = vmatprep.mubr.msk.bf16.mxu1 %vm2219_vm15, %v5517_v42  ;;  %v5455_v12 = vsel %vm1740_vm11, %v5435_v7, %v13538_v56  ;;  %v5229_v58 = vrot.slane %v540_v53, 4  ;;  %v16114_v3 = vld [vmem:[#allocation70_spill] sm:$0xff] }
 0x5f8   : > { %v5255_v17 = vpop.permute.xlu1 %5254 }
 0x5f9   : > { %v13564_v46 = vpop.permute.xlu0 %3987  ;;  %v5487_v10 = vsel %vm1805_vm12, %v5455_v12, %v5255_v17  ;;  %v5231_v60 = vsel %vm2268_vm6, %v5229_v58, %v5230_v43  ;;  %v16115_v12 = vld [vmem:[#allocation139_spill] sm:$0xff] }
 0x5fa   : > { %v13568_v6 = vpop.f32.mrb[40].mxu1  ;;  %4225 = vrot.lane.b32.xlu1 %v16112_v4, %s8476_s22  ;;  %v13625_v4 = vld [vmem:[%s15014_s2 + $0x1] ss:$0 sm:$0xff]  ;;  %v16117_v58 = vld [vmem:[#allocation75_spill] sm:$0xff] }
 0x5fb   : > { %4229 = vrot.lane.b32.xlu0 %v4165_v32, %s8476_s22  ;;  %v13576_v29 = vpop.f32.mrb[41].mxu1  ;;  %v8419_v32 = vld [vmem:[#allocation2 + $0x168] sm:$0xff]  ;;  %v3652_v7 = vadd.f32 %v13625_v4, %v16114_v3  ;;  %v4286_v43 = vsel %vm314_vm0, %v16117_v58, %v13454_v24 }
 0x5fc   : > { %v13578_v54 = vpop.f32.mrb[42].mxu1  ;;  %v13580_v26 = vpop.permute.xlu1 %3985 }
 0x5fd   : > { %v13584_v30 = vpop.permute.xlu0 %4059  ;;  %v13586_v27 = vpop.f32.mrb[43].mxu1 }
 0x5fe   : > { %4227 = vrot.lane.b32.xlu1 %v13196_v5, %s8476_s22 }
 0x5ff   : > { %5200 = vrot.lane.b32.xlu0 %v8419_v32, %s8473_s13 }
 0x600   : > { %v4058_v0 = vpop.permute.xlu1 %4057 }
 0x601   : > { %v5287_v15 = vpop.permute.xlu0 %5286 }
 0x602   : > { %v5519_v21 = vsel %vm1870_vm13, %v5487_v10, %v5287_v15  ;;  %5170 = vrot.lane.b32.xlu1 %v12706_v49, %s8472_s12  ;;  %v13611_v49 = vld [vmem:[%s15014_s2] ss:$0 sm:$0xff]  ;;  %v16116_v15 = vld [vmem:[#allocation141_spill] sm:$0xff] }
 0x603   : > { %5212 = vrot.lane.b32.xlu0 %v538_v50, %s8474_s14  ;;  %8019 = vmatmul.mubr.msk.bf16.gmra.mrb[52].mxu1 %vm2219_vm15, %v5519_v21  ;;  %v2371_v41 = vadd.f32 %v13611_v49, %v16113_v37  ;;  %v3588_v21 = vadd.f32 %v13625_v4, %v16116_v15  ;;  %v4350_v37 = vsel %vm1480_vm7, %v4286_v43, %v13504_v28  ;;  %v13663_v28 = vld [vmem:[%s15014_s2 + $0x2] ss:$0 sm:$0xff] }
 0x604   : > { %v13601_v5 = vpop.permute.xlu1 %5100 }
 0x605   : > { %v13604_v33 = vpop.permute.xlu0 %4063  ;;  %v2449_v50 = vmax.f32 %v2371_v41, 0.0  ;;  %v16118_v41 = vld [vmem:[#allocation153_spill] sm:$0xff]  ;;  %v3714_v24 = vmax.f32 %v3588_v21, 0.0 }
 0x606   : > { %5202 = vrot.lane.b32.xlu1 %v8420_v23, %s8473_s13 }
 0x607   : > { %5260 = vrot.lane.b32.xlu0 %v5228_v59, %s8475_s15  ;;  %v3730_v59 = vmax.f32 %v3652_v7, 0.0  ;;  %v16120_v7 = vld [vmem:[#allocation55_spill] sm:$0xff] }
 0x608   : > { %v13613_v42 = vpop.permute.xlu1 %4061 }
 0x609   : > { %v13617_v17 = vpop.permute.xlu0 %5132 }
 0x60a   : > { %5214 = vrot.lane.b32.xlu1 %v540_v53, %s8474_s14  ;;  %v4348_v53 = vsel %vm1480_vm7, %v4284_v51, %v13510_v52 }
 0x60b   : > { %5292 = vrot.lane.b32.xlu0 %v539_v36, %s8476_s22  ;;  %v2307_v36 = vadd.f32 %v13611_v49, %v16115_v12  ;;  %v2310_v12 = vadd.f32 %v13611_v49, %v16120_v7 }
 0x60c   : > { %v13627_v18 = vpop.permute.xlu1 %5102 }
 0x60d   : > { %v4142_v32 = vpop.permute.xlu0 %4141  ;;  %v2433_v34 = vmax.f32 %v2307_v36, 0.0  ;;  %v16121_v36 = vld [vmem:[#allocation131_spill] sm:$0xff] }
 0x60e   : > { %5262 = vrot.lane.b32.xlu1 %v5231_v60, %s8475_s15  ;;  %v2374_v60 = vadd.f32 %v13611_v49, %v16118_v41  ;;  %v4388_v51 = vsel %vm1545_vm8, %v4350_v37, %v16121_v36  ;;  %v2434_v41 = vmax.f32 %v2310_v12, 0.0  ;;  %v16123_v37 = vld [vmem:[#allocation191_spill] sm:$0xff] }
 0x60f   : > { %5865 = vrot.lane.b32.xlu0 %v2449_v50, %s8469_s9  ;;  %v16119_v50 = vld [vmem:[#allocation128_spill] sm:$0xff]  ;;  %v16124_v12 = vld [vmem:[#allocation63_spill] sm:$0xff] }
 0x610   : > { %v4140_v10 = vpop.permute.xlu1 %4139  ;;  %v4387_v52 = vsel %vm1545_vm8, %v4348_v53, %v16119_v50  ;;  %v2450_v21 = vmax.f32 %v2374_v60, 0.0  ;;  %v8422_v60 = vld [vmem:[#allocation2 + $0x110] sm:$0xff] }
 0x611   : > { %v13641_v23 = vpop.permute.xlu0 %4143  ;;  %v4288_v7 = vsel %vm314_vm0, %v8422_v60, %v13502_v8  ;;  %v16129_v60 = vld [vmem:[#allocation19_spill] sm:$0xff] }
 0x612   : > { %5294 = vrot.lane.b32.xlu1 %v541_v38, %s8476_s22  ;;  %v4444_v38 = vsel %vm1610_vm9, %v4387_v52, %v13553_v19  ;;  %v16122_v19 = vld [vmem:[#allocation103_spill] sm:$0xff]  ;;  %s14880_s22 = scalar_lea.vmem %s15019_s7, %s7673_s28 }
 0x613   : > { %5993 = vrot.lane.b32.xlu0 %v3730_v59, %s8470_s10  ;;  %v4508_v15 = vsel %vm1675_vm10, %v4444_v38, %v4058_v0  ;;  %v4446_v59 = vsel %vm1610_vm9, %v4388_v51, %v13542_v40  ;;  %v4290_v53 = vsel %vm314_vm0, %v16122_v19, %v13495_v1  ;;  %v4898_v0 = vadd.f32 %v13663_v28, %v16123_v37 }
 0x614   : > { %v13654_v3 = vpop.permute.xlu1 %5134  ;;  %v4510_v58 = vsel %vm1675_vm10, %v4446_v59, %v13584_v30  ;;  %v4547_v40 = vsel %vm1740_vm11, %v4508_v15, %v16093_v35  ;;  %v4352_v30 = vsel %vm1480_vm7, %v4288_v7, %v13531_v2  ;;  %v16125_v35 = vld [vmem:[#allocation133_spill] sm:$0xff] }
 0x615   : > { %v4216_v25 = vpop.permute.xlu0 %4215  ;;  %v4608_v1 = vsel %vm1805_vm12, %v4547_v40, %v4140_v10  ;;  %v16126_v10 = vld [vmem:[#allocation4_spill] sm:$0xff]  ;;  %v5024_v15 = vmax.f32 %v4898_v0, 0.0 }
 0x616   : > { %5833 = vrot.lane.b32.xlu1 %v2433_v34, %s8469_s9  ;;  %v4354_v34 = vsel %vm1480_vm7, %v4290_v53, %v13522_v31  ;;  %v4672_v31 = vsel %vm1870_vm13, %v4608_v1, %v4216_v25  ;;  %v2379_v51 = vadd.f32 %v16126_v10, %v13611_v49  ;;  %v16127_v25 = vld [vmem:[#allocation130_spill] sm:$0xff] }
 0x617   : > { %5961 = vrot.lane.b32.xlu0 %v3714_v24, %s8470_s10  ;;  %v4548_v24 = vsel %vm1740_vm11, %v4510_v58, %v16124_v12  ;;  %v4390_v38 = vsel %vm1545_vm8, %v4354_v34, %v16125_v35  ;;  %v4389_v19 = vsel %vm1545_vm8, %v4352_v30, %v16127_v25  ;;  %v4755_v58 = vrot.slane %v4672_v31, 2 }
 0x618   : > { %v4146_v43 = vpop.permute.xlu1 %4145  ;;  %v4610_v36 = vsel %vm1805_vm12, %v4548_v24, %v4142_v32  ;;  %v4450_v2 = vsel %vm1610_vm9, %v4390_v38, %v13564_v46  ;;  %v2451_v40 = vmax.f32 %v2379_v51, 0.0 }
 0x619   : > { %v5165_v52 = vpop.permute.xlu0 %5164  ;;  %v4514_v53 = vsel %vm1675_vm10, %v4450_v2, %v13604_v33 }
 0x61a   : > { %5867 = vrot.lane.b32.xlu1 %v2450_v21, %s8469_s9  ;;  %v4550_v33 = vsel %vm1740_vm11, %v4514_v53, %v16129_v60 }
 0x61b   : > { %5835 = vrot.lane.b32.xlu0 %v2434_v41, %s8469_s9  ;;  %v4448_v41 = vsel %vm1610_vm9, %v4389_v19, %v13580_v26  ;;  %v4614_v26 = vsel %vm1805_vm12, %v4550_v33, %v4146_v43 }
 0x61c   : > { %v4218_v8 = vpop.permute.xlu1 %4217  ;;  %v4512_v46 = vsel %vm1675_vm10, %v4448_v41, %v13613_v42 }
 0x61d   : > { %v4674_v59 = vsel %vm1870_vm13, %v4610_v36, %v4218_v8  ;;  %v13701_v21 = vpop.permute.xlu0 %3814  ;;  %v4549_v42 = vsel %vm1740_vm11, %v4512_v46, %v16099_v55 }
 0x61e   : > { %v4756_v32 = vrot.slane %v4674_v59, 2  ;;  %v4612_v31 = vsel %vm1805_vm12, %v4549_v42, %v13641_v23  ;;  %v16131_v23 = vld [vmem:[#allocation24_spill] sm:$0xff] }
 0x61f   : > { %6089 = vrot.lane.b32.xlu0 %v5024_v15, %s8471_s11 }
 0x620   : > { %v13712_v37 = vpop.f32.mrb[44].mxu0  ;;  %v13714_v0 = vpop.permute.xlu1 %3812  ;;  %v4757_v34 = vsel %vm2534_vm5, %v4755_v58, %v4756_v32  ;;  %v5325_v32 = vsel %vm314_vm0, %v16131_v23, %v13601_v5 }
 0x621   : > { %16128 = vst [vmem:[#allocation77_spill] sm:$0xff] %v13712_v37  ;;  %v4222_v7 = vpop.permute.xlu0 %4221  ;;  %v13719_v1 = vpop.f32.mrb[45].mxu0  ;;  %7980 = vmatprep.mubr.msk.bf16.mxu0 %vm2219_vm15, %v4757_v34  ;;  %v5357_v34 = vsel %vm1480_vm7, %v5325_v32, %v13617_v17  ;;  %v5327_v17 = vsel %vm314_vm0, %v13203_v20, %v13627_v18  ;;  %v16139_v37 = vld [vmem:[#allocation135_spill] sm:$0xff] }
 0x622   : > { %v13723_v30 = vpop.f32.mrb[46].mxu0  ;;  %v4678_v12 = vsel %vm1870_vm13, %v4614_v26, %v4222_v7  ;;  %v5376_v60 = vsel %vm1545_vm8, %v5357_v34, %v16119_v50 }
 0x623   : > { %16130 = vst [vmem:[#allocation105_spill] sm:$0xff] %v13723_v30  ;;  %5869 = vrot.lane.b32.xlu0 %v2451_v40, %s8469_s9  ;;  %v13729_v24 = vpop.f32.mrb[47].mxu0  ;;  %v4759_v8 = vrot.slane %v4678_v12, 2  ;;  %v5405_v7 = vsel %vm1610_vm9, %v5376_v60, %v5165_v52  ;;  %v8424_v30 = vld [vmem:[#allocation2 + $0x130] sm:$0xff] }
 0x624   : > { %v4220_v35 = vpop.permute.xlu1 %4219 }
 0x625   : > { %v4676_v38 = vsel %vm1870_vm13, %v4612_v31, %v4220_v35  ;;  %v5197_v36 = vpop.permute.xlu0 %5196 }
 0x626   : > { %v4758_v43 = vrot.slane %v4676_v38, 2  ;;  %v5437_v26 = vsel %vm1675_vm10, %v5405_v7, %v5197_v36 }
 0x628   : > { %v5167_v10 = vpop.permute.xlu1 %5166  ;;  %v4760_v51 = vsel %vm2534_vm5, %v4758_v43, %v4759_v8 }
 0x629   : > { %v3819_v15 = vpop.permute.xlu0 %3818  ;;  %7981 = vmatmul.mubr.msk.bf16.gmra.mrb[56].mxu0 %vm2219_vm15, %v4760_v51  ;;  %v5359_v51 = vsel %vm1480_vm7, %v5327_v17, %v13654_v3 }
 0x62a   : > { %v5377_v23 = vsel %vm1545_vm8, %v5359_v51, %v16127_v25 }
 0x62b   : > { %v5407_v20 = vsel %vm1610_vm9, %v5377_v23, %v5167_v10 }
 0x62c   : > { %v3817_v55 = vpop.permute.xlu1 %3816 }
 0x62d   : > { %v3928_v2 = vpop.permute.xlu0 %3927 }
 0x630   : > { %v3926_v59 = vpop.permute.xlu1 %3925 }
 0x631   : > { %v5209_v19 = vpop.permute.xlu0 %5208 }
 0x632   : > { %v5457_v42 = vsel %vm1740_vm11, %v5437_v26, %v5209_v19 }
 0x634   : > { %v5199_v53 = vpop.permute.xlu1 %5198 }
 0x635   : > { %v3932_v58 = vpop.permute.xlu0 %3931  ;;  %v5439_v18 = vsel %vm1675_vm10, %v5407_v20, %v5199_v53  ;;  %v16135_v20 = vld [vmem:[#allocation106_spill] sm:$0xff] }
 0x638   : > { %v3930_v41 = vpop.permute.xlu1 %3929 }
 0x639   : > { %v5257_v46 = vpop.permute.xlu0 %5256 }
 0x63a   : > { %v5489_v31 = vsel %vm1805_vm12, %v5457_v42, %v5257_v46 }
 0x63c   : > { %v5211_v40 = vpop.permute.xlu1 %5210 }
 0x63d   : > { %v3992_v33 = vpop.permute.xlu0 %3991  ;;  %v5459_v46 = vsel %vm1740_vm11, %v5439_v18, %v5211_v40  ;;  %v8423_v40 = vld [vmem:[#allocation2 + $0x120] sm:$0xff]  ;;  %v4294_v18 = vsel %vm314_vm0, %v16135_v20, %v13701_v21 }
 0x63e   : > { %v4292_v17 = vsel %vm314_vm0, %v8423_v40, %v13714_v0  ;;  %v4358_v0 = vsel %vm1480_vm7, %v4294_v18, %v3928_v2  ;;  %v16140_v2 = vld [vmem:[#allocation136_spill] sm:$0xff]  ;;  %v16141_v18 = vld [vmem:[#allocation134_spill] sm:$0xff] }
 0x63f   : > { %v4356_v51 = vsel %vm1480_vm7, %v4292_v17, %v3926_v59 }
 0x640   : > { %v3990_v12 = vpop.permute.xlu1 %3989 }
 0x641   : > { %v5289_v5 = vpop.permute.xlu0 %5288 }
 0x642   : > { %v5521_v35 = vsel %vm1870_vm13, %v5489_v31, %v5289_v5  ;;  %v13748_v38 = vpop.f32.mrb[44].mxu1 }
 0x643   : > { %16132 = vst [vmem:[#allocation163_spill] sm:$0xff] %v13748_v38  ;;  %v13753_v50 = vpop.f32.mrb[45].mxu1  ;;  %8022 = vmatprep.mubr.msk.bf16.mxu1 %vm2219_vm15, %v5521_v35 }
 0x644   : > { %v13756_v52 = vpop.f32.mrb[46].mxu1  ;;  %v5259_v36 = vpop.permute.xlu1 %5258 }
 0x645   : > { %16133 = vst [vmem:[#allocation193_spill] sm:$0xff] %v13756_v52  ;;  %v3996_v8 = vpop.permute.xlu0 %3995  ;;  %v13758_v43 = vpop.f32.mrb[47].mxu1  ;;  %v5491_v60 = vsel %vm1805_vm12, %v5459_v46, %v5259_v36  ;;  %v16136_v46 = vld [vmem:[#allocation132_spill] sm:$0xff] }
 0x646   : > { %16134 = vst [vmem:[#allocation79_spill] sm:$0xff] %v13758_v43  ;;  %v4296_v43 = vsel %vm314_vm0, %v8424_v30, %v3817_v55 }
 0x647   : > { %v4360_v21 = vsel %vm1480_vm7, %v4296_v43, %v3930_v41 }
 0x648   : > { %v3994_v19 = vpop.permute.xlu1 %3993 }
 0x649   : > { %v4068_v32 = vpop.permute.xlu0 %4067 }
 0x64c   : > { %v4066_v34 = vpop.permute.xlu1 %4065 }
 0x64d   : > { %v5291_v7 = vpop.permute.xlu0 %5290 }
 0x64e   : > { %v5523_v26 = vsel %vm1870_vm13, %v5491_v60, %v5291_v7  ;;  %v4391_v60 = vsel %vm1545_vm8, %v4356_v51, %v16136_v46  ;;  %v16138_v51 = vld [vmem:[#allocation21_spill] sm:$0xff] }
 0x64f   : > { %8023 = vmatmul.mubr.msk.bf16.gmra.mrb[56].mxu1 %vm2219_vm15, %v5523_v26  ;;  %v16137_v26 = vld [vmem:[#allocation183_spill] sm:$0xff]  ;;  %v4452_v59 = vsel %vm1610_vm9, %v4391_v60, %v3990_v12  ;;  %v3655_v38 = vadd.f32 %v13625_v4, %v16138_v51 }
 0x650   : > { %v13770_v3 = vpop.permute.xlu1 %5104  ;;  %v4298_v52 = vsel %vm314_vm0, %v16137_v26, %v3819_v15  ;;  %v4516_v20 = vsel %vm1675_vm10, %v4452_v59, %v4066_v34  ;;  %v4392_v15 = vsel %vm1545_vm8, %v4358_v0, %v16139_v37 }
 0x651   : > { %v4072_v42 = vpop.permute.xlu0 %4071  ;;  %v4362_v17 = vsel %vm1480_vm7, %v4298_v52, %v3932_v58  ;;  %v4454_v55 = vsel %vm1610_vm9, %v4392_v15, %v3992_v33  ;;  %v4393_v58 = vsel %vm1545_vm8, %v4360_v21, %v16141_v18  ;;  %v4552_v41 = vsel %vm1740_vm11, %v4516_v20, %v13519_v63 }
 0x652   : > { %v4394_v12 = vsel %vm1545_vm8, %v4362_v17, %v16140_v2  ;;  %v4518_v37 = vsel %vm1675_vm10, %v4454_v55, %v4068_v32  ;;  %v4456_v59 = vsel %vm1610_vm9, %v4393_v58, %v3994_v19  ;;  %v16142_v55 = vld [vmem:[#allocation54_spill] sm:$0xff] }
 0x653   : > { %v4458_v34 = vsel %vm1610_vm9, %v4394_v12, %v3996_v8  ;;  %v2315_v2 = vadd.f32 %v16142_v55, %v13611_v49 }
 0x654   : > { %v4070_v31 = vpop.permute.xlu1 %4069  ;;  %v4522_v17 = vsel %vm1675_vm10, %v4458_v34, %v4072_v42 }
 0x655   : > { %v13772_v25 = vpop.permute.xlu0 %5106  ;;  %v4520_v51 = vsel %vm1675_vm10, %v4456_v59, %v4070_v31  ;;  %v16143_v59 = vld [vmem:[#allocation78_spill] sm:$0xff] }
 0x656   : > { %v4556_v31 = vsel %vm1740_vm11, %v4520_v51, %v13538_v56  ;;  %v16144_v51 = vld [vmem:[#allocation154_spill] sm:$0xff] }
 0x658   : > { %v4080_v5 = vpop.permute.xlu1 %4079 }
 0x659   : > { %v4084_v10 = vpop.permute.xlu0 %4083  ;;  %v4554_v21 = vsel %vm1740_vm11, %v4518_v37, %v4080_v5 }
 0x65a   : > { %v4558_v19 = vsel %vm1740_vm11, %v4522_v17, %v4084_v10  ;;  %v4901_v17 = vadd.f32 %v13663_v28, %v16143_v59 }
 0x65c   : > { %v13774_v35 = vpop.permute.xlu1 %5136 }
 0x65d   : > { %v4150_v53 = vpop.permute.xlu0 %4149 }
 0x65e   : > { %v4618_v8 = vsel %vm1805_vm12, %v4554_v21, %v4150_v53 }
 0x660   : > { %v4148_v36 = vpop.permute.xlu1 %4147 }
 0x661   : > { %v4152_v23 = vpop.permute.xlu0 %4151  ;;  %v4616_v60 = vsel %vm1805_vm12, %v4552_v41, %v4148_v36 }
 0x662   : > { %v4620_v34 = vsel %vm1805_vm12, %v4556_v31, %v4152_v23 }
 0x664   : > { %v13784_v7 = vpop.permute.xlu1 %5138 }
 0x665   : > { %v4224_v40 = vpop.permute.xlu0 %4223 }
 0x666   : > { %v4680_v63 = vsel %vm1870_vm13, %v4616_v60, %v4224_v40 }
 0x667   : > { %v4761_v5 = vrot.slane %v4680_v63, 2  ;;  %v5329_v63 = vsel %vm314_vm0, %v13389_v45, %v13770_v3  ;;  %v5331_v45 = vsel %vm314_vm0, %v13426_v22, %v13772_v25  ;;  %v16145_v22 = vld [vmem:[#allocation7_spill] sm:$0xff] }
 0x668   : > { %v13798_v26 = vpop.f32.mrb[48].mxu0  ;;  %v4154_v30 = vpop.permute.xlu1 %4153  ;;  %v2318_v25 = vadd.f32 %v16145_v22, %v13611_v49 }
 0x669   : > { %v5169_v52 = vpop.permute.xlu0 %5168  ;;  %v4961_v43 = vpop.f32.mrb[49].mxu0  ;;  %v4622_v40 = vsel %vm1805_vm12, %v4558_v19, %v4154_v30  ;;  %v4970_v3 = vadd.f32 %v13798_v26, %v13663_v28 }
 0x66a   : > { %v4962_v0 = vadd.f32 %v13663_v28, %v4961_v43  ;;  %v13811_v33 = vpop.f32.mrb[50].mxu0  ;;  %v3731_v43 = vmax.f32 %v3655_v38, 0.0 }
 0x66b   : > { %v4964_v20 = vpop.f32.mrb[51].mxu0 }
 0x66c   : > { %v5040_v32 = vmax.f32 %v4962_v0, 0.0  ;;  %v4965_v36 = vadd.f32 %v13663_v28, %v4964_v20  ;;  %v4226_v15 = vpop.permute.xlu1 %4225  ;;  %v2435_v0 = vmax.f32 %v2315_v2, 0.0 }
 0x66d   : > { %v4682_v42 = vsel %vm1870_vm13, %v4618_v8, %v4226_v15  ;;  %v4230_v12 = vpop.permute.xlu0 %4229  ;;  %v2382_v8 = vadd.f32 %v16144_v51, %v13611_v49 }
 0x66e   : > { %v5041_v58 = vmax.f32 %v4965_v36, 0.0  ;;  %v4762_v41 = vrot.slane %v4682_v42, 2  ;;  %6121 = vrot.lane.b32.xlu1 %v5040_v32, %s8471_s11  ;;  %v4686_v53 = vsel %vm1870_vm13, %v4622_v40, %v4230_v12  ;;  %v5025_v32 = vmax.f32 %v4901_v17, 0.0 }
 0x66f   : > { %v4765_v56 = vrot.slane %v4686_v53, 2  ;;  %v5361_v36 = vsel %vm1480_vm7, %v5329_v63, %v13774_v35  ;;  %v2452_v19 = vmax.f32 %v2382_v8, 0.0 }
 0x670   : > { %6123 = vrot.lane.b32.xlu0 %v5041_v58, %s8471_s11  ;;  %v4228_v10 = vpop.permute.xlu1 %4227  ;;  %v4763_v37 = vsel %vm2534_vm5, %v4761_v5, %v4762_v41  ;;  %v5378_v55 = vsel %vm1545_vm8, %v5361_v36, %v16136_v46  ;;  %v5363_v46 = vsel %vm1480_vm7, %v5331_v45, %v13784_v7  ;;  %v5042_v41 = vmax.f32 %v4970_v3, 0.0  ;;  %v16150_v3 = vld [vmem:[#allocation192_spill] sm:$0xff] }
 0x671   : > { %v4684_v60 = vsel %vm1870_vm13, %v4620_v34, %v4228_v10  ;;  %v5201_v30 = vpop.permute.xlu0 %5200  ;;  %7984 = vmatprep.mubr.msk.bf16.mxu0 %vm2219_vm15, %v4763_v37  ;;  %v5409_v42 = vsel %vm1610_vm9, %v5378_v55, %v5169_v52  ;;  %v5379_v52 = vsel %vm1545_vm8, %v5363_v46, %v16141_v18  ;;  %v2436_v7 = vmax.f32 %v2318_v25, 0.0 }
 0x672   : > { %v4764_v21 = vrot.slane %v4684_v60, 2  ;;  %5995 = vrot.lane.b32.xlu1 %v3731_v43, %s8470_s10  ;;  %v5441_v12 = vsel %vm1675_vm10, %v5409_v42, %v5201_v30  ;;  %v16146_v43 = vld [vmem:[#allocation162_spill] sm:$0xff]  ;;  %v4909_v42 = vadd.f32 %v16150_v3, %v13663_v28 }
 0x673   : > { %v4906_v34 = vadd.f32 %v16146_v43, %v13663_v28 }
 0x674   : > { %5837 = vrot.lane.b32.xlu0 %v2435_v0, %s8469_s9  ;;  %v5171_v38 = vpop.permute.xlu1 %5170  ;;  %v4766_v23 = vsel %vm2534_vm5, %v4764_v21, %v4765_v56  ;;  %v16147_v0 = vld [vmem:[#allocation182_spill] sm:$0xff]  ;;  %v4973_v21 = vadd.f32 %v13811_v33, %v13663_v28  ;;  %v5027_v22 = vmax.f32 %v4909_v42, 0.0 }
 0x675   : > { %v5213_v20 = vpop.permute.xlu0 %5212  ;;  %7985 = vmatmul.mubr.msk.bf16.gmra.mrb[60].mxu0 %vm2219_vm15, %v4766_v23  ;;  %v5411_v53 = vsel %vm1610_vm9, %v5379_v52, %v5171_v38  ;;  %v2387_v59 = vadd.f32 %v13611_v49, %v16147_v0  ;;  %v5026_v17 = vmax.f32 %v4906_v34, 0.0  ;;  %v13886_v23 = vld [vmem:[%s15014_s2 + $0x3] ss:$0 sm:$0xff]  ;;  %v16155_v34 = vld [vmem:[#allocation190_spill] sm:$0xff] }
 0x676   : > { %v5461_v35 = vsel %vm1740_vm11, %v5441_v12, %v5213_v20  ;;  %v5043_v33 = vmax.f32 %v4973_v21, 0.0  ;;  %v16151_v12 = vld [vmem:[#allocation194_spill] sm:$0xff] }
 0x677   : > { %v2453_v56 = vmax.f32 %v2387_v59, 0.0  ;;  %v16157_v59 = vld [vmem:[#allocation10_spill] sm:$0xff] }
 0x678   : > { %6091 = vrot.lane.b32.xlu0 %v5025_v32, %s8471_s11  ;;  %v5203_v15 = vpop.permute.xlu1 %5202  ;;  %v16148_v32 = vld [vmem:[#allocation57_spill] sm:$0xff] }
 0x679   : > { %v5261_v2 = vpop.permute.xlu0 %5260  ;;  %v5443_v10 = vsel %vm1675_vm10, %v5411_v53, %v5203_v15  ;;  %v3591_v36 = vadd.f32 %v13625_v4, %v16148_v32  ;;  %v16149_v15 = vld [vmem:[#allocation144_spill] sm:$0xff] }
 0x67a   : > { %v5493_v40 = vsel %vm1805_vm12, %v5461_v35, %v5261_v2  ;;  %v2323_v55 = vadd.f32 %v13611_v49, %v16149_v15  ;;  %v5643_v35 = vadd.f32 %v13886_v23, %v16151_v12  ;;  %v4914_v12 = vadd.f32 %v13663_v28, %v13263_v61 }
 0x67c   : > { %5871 = vrot.lane.b32.xlu0 %v2452_v19, %s8469_s9  ;;  %v5215_v5 = vpop.permute.xlu1 %5214  ;;  %v3715_v19 = vmax.f32 %v3591_v36, 0.0  ;;  %v2437_v45 = vmax.f32 %v2323_v55, 0.0  ;;  %v5769_v25 = vmax.f32 %v5643_v35, 0.0 }
 0x67d   : > { %v5293_v58 = vpop.permute.xlu0 %5292  ;;  %v5463_v37 = vsel %vm1740_vm11, %v5443_v10, %v5215_v5  ;;  %v16152_v5 = vld [vmem:[#allocation179_spill] sm:$0xff]  ;;  %v5646_v10 = vadd.f32 %v13886_v23, %v16155_v34 }
 0x67e   : > { %v5525_v26 = vsel %vm1870_vm13, %v5493_v40, %v5293_v58  ;;  %v3660_v46 = vadd.f32 %v16152_v5, %v13625_v4  ;;  %v16153_v40 = vld [vmem:[#allocation53_spill] sm:$0xff] }
 0x67f   : > { %8026 = vmatprep.mubr.msk.bf16.mxu1 %vm2219_vm15, %v5525_v26  ;;  %v2390_v58 = vadd.f32 %v13611_v49, %v16153_v40 }
 0x680   : > { %6125 = vrot.lane.b32.xlu0 %v5042_v41, %s8471_s11  ;;  %v5263_v31 = vpop.permute.xlu1 %5262  ;;  %v3732_v41 = vmax.f32 %v3660_v46, 0.0  ;;  %v16161_v46 = vld [vmem:[#allocation156_spill] sm:$0xff] }
 0x681   : > { %v5495_v60 = vsel %vm1805_vm12, %v5463_v37, %v5263_v31  ;;  %v2454_v26 = vmax.f32 %v2390_v58, 0.0  ;;  %v16154_v31 = vld [vmem:[#allocation142_spill] sm:$0xff]  ;;  %v2395_v40 = vadd.f32 %v16161_v46, %v13611_v49  ;;  %v5028_v58 = vmax.f32 %v4914_v12, 0.0 }
 0x682   : > { %v3596_v53 = vadd.f32 %v16154_v31, %v13625_v4  ;;  %v16156_v37 = vld [vmem:[#allocation98_spill] sm:$0xff] }
 0x683   : > { %v2455_v61 = vmax.f32 %v2395_v40, 0.0  ;;  %v16163_v31 = vld [vmem:[#allocation186_spill] sm:$0xff]  ;;  %v16169_v40 = vld [vmem:[#allocation72_spill] sm:$0xff] }
 0x684   : > { %5839 = vrot.lane.b32.xlu0 %v2436_v7, %s8469_s9  ;;  %v5295_v30 = vpop.permute.xlu1 %5294  ;;  %v3716_v43 = vmax.f32 %v3596_v53, 0.0  ;;  %v5654_v53 = vadd.f32 %v16163_v31, %v13886_v23 }
 0x685   : > { %v5527_v18 = vsel %vm1870_vm13, %v5495_v60, %v5295_v30  ;;  %v3663_v60 = vadd.f32 %v16156_v37, %v13625_v4  ;;  %v5770_v30 = vmax.f32 %v5646_v10, 0.0  ;;  %v16165_v10 = vld [vmem:[#allocation69_spill] sm:$0xff] }
 0x686   : > { %8027 = vmatmul.mubr.msk.bf16.gmra.mrb[60].mxu1 %vm2219_vm15, %v5527_v18  ;;  %v3671_v37 = vadd.f32 %v13625_v4, %v16165_v10 }
 0x687   : > { %v3733_v18 = vmax.f32 %v3663_v60, 0.0  ;;  %v5772_v60 = vmax.f32 %v5654_v53, 0.0 }
 0x688   : > { %6093 = vrot.lane.b32.xlu0 %v5026_v17, %s8471_s11  ;;  %v3599_v17 = vadd.f32 %v16157_v59, %v13625_v4  ;;  %v3735_v59 = vmax.f32 %v3671_v37, 0.0 }
 0x68a   : > { %v8016_v38 = vpop.f32.mrb[48].mxu1 }
 0x68b   : > { %v5706_v63 = vpop.f32.mrb[49].mxu1  ;;  %v5715_v0 = vadd.f32 %v8016_v38, %v13886_v23  ;;  %v16159_v38 = vld [vmem:[#allocation38_spill] sm:$0xff] }
 0x68c   : > { %v5707_v20 = vadd.f32 %v13886_v23, %v5706_v63  ;;  %5873 = vrot.lane.b32.xlu0 %v2453_v56, %s8469_s9  ;;  %v8017_v51 = vpop.f32.mrb[50].mxu1 }
 0x68d   : > { %v5709_v8 = vpop.f32.mrb[51].mxu1  ;;  %v5787_v56 = vmax.f32 %v5715_v0, 0.0  ;;  %v5718_v5 = vadd.f32 %v8017_v51, %v13886_v23  ;;  %v4917_v0 = vadd.f32 %v13663_v28, %v13271_v13  ;;  %v16167_v13 = vld [vmem:[#allocation12_spill] sm:$0xff] }
 0x68e   : > { %v5785_v2 = vmax.f32 %v5707_v20, 0.0  ;;  %v5710_v52 = vadd.f32 %v13886_v23, %v5709_v8  ;;  %v3717_v20 = vmax.f32 %v3599_v17, 0.0  ;;  %v16158_v8 = vld [vmem:[#allocation164_spill] sm:$0xff]  ;;  %v16166_v17 = vld [vmem:[#allocation25_spill] sm:$0xff] }
 0x68f   : > { %v5651_v32 = vadd.f32 %v16158_v8, %v13886_v23 }
 0x690   : > { %6127 = vrot.lane.b32.xlu0 %v5043_v33, %s8471_s11  ;;  %6249 = vrot.lane.b32.xlu1 %v5785_v2, %s8472_s12  ;;  %v5786_v7 = vmax.f32 %v5710_v52, 0.0  ;;  %v2326_v33 = vadd.f32 %v13611_v49, %v16159_v38 }
 0x691   : > { %v5771_v3 = vmax.f32 %v5651_v32, 0.0 }
 0x692   : > { %v2438_v42 = vmax.f32 %v2326_v33, 0.0 }
 0x694   : > { %5841 = vrot.lane.b32.xlu0 %v2437_v45, %s8469_s9  ;;  %5963 = vrot.lane.b32.xlu1 %v3715_v19, %s8470_s10  ;;  %v16160_v19 = vld [vmem:[#allocation138_spill] sm:$0xff] }
 0x695   : > { %v3668_v45 = vadd.f32 %v13625_v4, %v16160_v19 }
 0x697   : > { %v3734_v35 = vmax.f32 %v3668_v45, 0.0  ;;  %v4922_v45 = vadd.f32 %v13260_v9, %v13663_v28 }
 0x698   : > { %6095 = vrot.lane.b32.xlu0 %v5027_v22, %s8471_s11  ;;  %6217 = vrot.lane.b32.xlu1 %v5769_v25, %s8472_s12  ;;  %v16162_v22 = vld [vmem:[#allocation86_spill] sm:$0xff] }
 0x699   : > { %v3604_v25 = vadd.f32 %v13625_v4, %v16162_v22  ;;  %v5030_v22 = vmax.f32 %v4922_v45, 0.0 }
 0x69b   : > { %v3718_v51 = vmax.f32 %v3604_v25, 0.0  ;;  %v5659_v25 = vadd.f32 %v13886_v23, %v13354_v39 }
 0x69c   : > { %5875 = vrot.lane.b32.xlu0 %v2454_v26, %s8469_s9  ;;  %5997 = vrot.lane.b32.xlu1 %v3732_v41, %s8470_s10  ;;  %v5788_v41 = vmax.f32 %v5718_v5, 0.0  ;;  %v13947_v26 = vpop.permute.xlu0 %5865 }
 0x69d   : > { %v5773_v53 = vmax.f32 %v5659_v25, 0.0 }
 0x6a0   : > { %6251 = vrot.lane.b32.xlu1 %v5786_v7, %s8472_s12  ;;  %v16164_v7 = vld [vmem:[#allocation87_spill] sm:$0xff] }
 0x6a4   : > { %5965 = vrot.lane.b32.xlu1 %v3716_v43, %s8470_s10  ;;  %v2331_v43 = vadd.f32 %v16164_v7, %v13611_v49 }
 0x6a8   : > { %6219 = vrot.lane.b32.xlu1 %v5770_v30, %s8472_s12  ;;  %v13959_v30 = vpop.permute.xlu0 %5993 }
 0x6ac   : > { %5999 = vrot.lane.b32.xlu1 %v3733_v18, %s8470_s10  ;;  %v2439_v18 = vmax.f32 %v2331_v43, 0.0  ;;  %v16171_v43 = vld [vmem:[#allocation59_spill] sm:$0xff] }
 0x6ad   : > { %v2339_v39 = vadd.f32 %v13611_v49, %v16171_v43  ;;  %v16176_v43 = vld [vmem:[#allocation224_spill] sm:$0xff] }
 0x6b0   : > { %v7978_v21 = vpop.f32.mrb[52].mxu0  ;;  %6253 = vrot.lane.b32.xlu1 %v5787_v56, %s8472_s12  ;;  %v2398_v56 = vadd.f32 %v16166_v17, %v13611_v49 }
 0x6b1   : > { %v4977_v63 = vpop.f32.mrb[53].mxu0  ;;  %v4986_v32 = vadd.f32 %v7978_v21, %v13663_v28 }
 0x6b2   : > { %v4978_v36 = vadd.f32 %v13663_v28, %v4977_v63  ;;  %v13928_v15 = vpop.f32.mrb[54].mxu0  ;;  %v5029_v63 = vmax.f32 %v4917_v0, 0.0  ;;  %v2456_v8 = vmax.f32 %v2398_v56, 0.0  ;;  %v16172_v0 = vld [vmem:[#allocation58_spill] sm:$0xff]  ;;  %v16173_v56 = vld [vmem:[#allocation100_spill] sm:$0xff] }
 0x6b3   : > { %v4980_v55 = vpop.f32.mrb[55].mxu0  ;;  %v5046_v38 = vmax.f32 %v4986_v32, 0.0 }
 0x6b4   : > { %v5044_v2 = vmax.f32 %v4978_v36, 0.0  ;;  %5967 = vrot.lane.b32.xlu1 %v3717_v20, %s8470_s10  ;;  %v4981_v52 = vadd.f32 %v13663_v28, %v4980_v55  ;;  %v13968_v20 = vpop.permute.xlu0 %5961  ;;  %v2334_v55 = vadd.f32 %v16167_v13, %v13611_v49  ;;  %v5834_v13 = vpop.permute.xlu1 %5833 }
 0x6b6   : > { %6129 = vrot.lane.b32.xlu0 %v5044_v2, %s8471_s11  ;;  %v5045_v34 = vmax.f32 %v4981_v52, 0.0  ;;  %v2440_v19 = vmax.f32 %v2334_v55, 0.0  ;;  %v4989_v52 = vadd.f32 %v13928_v15, %v13663_v28  ;;  %v2441_v15 = vmax.f32 %v2339_v39, 0.0 }
 0x6b7   : > { %v2342_v39 = vadd.f32 %v13611_v49, %v16176_v43 }
 0x6b8   : > { %6221 = vrot.lane.b32.xlu1 %v5771_v3, %s8472_s12  ;;  %v13973_v36 = vpop.permute.xlu0 %5835 }
 0x6ba   : > { %5843 = vrot.lane.b32.xlu0 %v2438_v42, %s8469_s9 }
 0x6bc   : > { %6001 = vrot.lane.b32.xlu1 %v3734_v35, %s8470_s10  ;;  %v13981_v3 = vpop.permute.xlu0 %6089  ;;  %v16168_v35 = vld [vmem:[#allocation11_spill] sm:$0xff] }
 0x6bd   : > { %v3607_v5 = vadd.f32 %v13625_v4, %v16168_v35 }
 0x6be   : > { %6097 = vrot.lane.b32.xlu0 %v5028_v58, %s8471_s11  ;;  %v2403_v58 = vadd.f32 %v13611_v49, %v16169_v40 }
 0x6bf   : > { %v3719_v9 = vmax.f32 %v3607_v5, 0.0 }
 0x6c0   : > { %6255 = vrot.lane.b32.xlu1 %v5788_v41, %s8472_s12  ;;  %v13994_v41 = vpop.permute.xlu0 %5869 }
 0x6c2   : > { %5877 = vrot.lane.b32.xlu0 %v2455_v61, %s8469_s9  ;;  %v2457_v61 = vmax.f32 %v2403_v58, 0.0 }
 0x6c4   : > { %5969 = vrot.lane.b32.xlu1 %v3718_v51, %s8470_s10  ;;  %v16170_v51 = vld [vmem:[#allocation51_spill] sm:$0xff] }
 0x6c5   : > { %v3676_v31 = vadd.f32 %v16170_v51, %v13625_v4 }
 0x6c6   : > { %6131 = vrot.lane.b32.xlu0 %v5045_v34, %s8471_s11  ;;  %v5047_v34 = vmax.f32 %v4989_v52, 0.0  ;;  %v5667_v52 = vadd.f32 %v13349_v62, %v13886_v23 }
 0x6c7   : > { %v3736_v10 = vmax.f32 %v3676_v31, 0.0 }
 0x6c8   : > { %6223 = vrot.lane.b32.xlu1 %v5772_v60, %s8472_s12  ;;  %v4925_v60 = vadd.f32 %v13265_v48, %v13663_v28  ;;  %v5662_v48 = vadd.f32 %v13886_v23, %v13361_v44 }
 0x6ca   : > { %5845 = vrot.lane.b32.xlu0 %v2439_v18, %s8469_s9  ;;  %v5774_v45 = vmax.f32 %v5662_v48, 0.0 }
 0x6cc   : > { %6003 = vrot.lane.b32.xlu1 %v3735_v59, %s8470_s10  ;;  %v3612_v59 = vadd.f32 %v16172_v0, %v13625_v4  ;;  %v2442_v0 = vmax.f32 %v2342_v39, 0.0 }
 0x6ce   : > { %6099 = vrot.lane.b32.xlu0 %v5029_v63, %s8471_s11  ;;  %v2406_v63 = vadd.f32 %v13611_v49, %v16173_v56  ;;  %v3720_v32 = vmax.f32 %v3612_v59, 0.0  ;;  %v4930_v59 = vadd.f32 %v13663_v28, %v13485_v14  ;;  %v8425_v56 = vld [vmem:[%s8674_s8] sm:$0xff] }
 0x6d2   : > { %5879 = vrot.lane.b32.xlu0 %v2456_v8, %s8469_s9  ;;  %v5031_v8 = vmax.f32 %v4925_v60, 0.0  ;;  %v5775_v60 = vmax.f32 %v5667_v52, 0.0 }
 0x6d6   : > { %6133 = vrot.lane.b32.xlu0 %v5046_v38, %s8471_s11  ;;  %v8020_v33 = vpop.f32.mrb[52].mxu1  ;;  %v2458_v38 = vmax.f32 %v2406_v63, 0.0  ;;  %v6313_v63 = vsel %vm314_vm0, %v8425_v56, %v5834_v13 }
 0x6d7   : > { %v5722_v2 = vpop.f32.mrb[53].mxu1  ;;  %v5731_v35 = vadd.f32 %v8020_v33, %v13886_v23  ;;  %v6345_v14 = vsel %vm1480_vm7, %v6313_v63, %v13968_v20 }
 0x6d8   : > { %v5723_v21 = vadd.f32 %v13886_v23, %v5722_v2  ;;  %v13984_v42 = vpop.f32.mrb[54].mxu1  ;;  %v16174_v2 = vld [vmem:[#allocation137_spill] sm:$0xff] }
 0x6d9   : > { %v5725_v12 = vpop.f32.mrb[55].mxu1  ;;  %v5791_v58 = vmax.f32 %v5731_v35, 0.0 }
 0x6da   : > { %v5789_v46 = vmax.f32 %v5723_v21, 0.0  ;;  %5847 = vrot.lane.b32.xlu0 %v2440_v19, %s8469_s9  ;;  %v5726_v37 = vadd.f32 %v13886_v23, %v5725_v12  ;;  %v3679_v19 = vadd.f32 %v16174_v2, %v13625_v4  ;;  %v5868_v21 = vpop.permute.xlu1 %5867 }
 0x6dc   : > { %6257 = vrot.lane.b32.xlu1 %v5789_v46, %s8472_s12  ;;  %v5790_v17 = vmax.f32 %v5726_v37, 0.0  ;;  %v3737_v44 = vmax.f32 %v3679_v19, 0.0  ;;  %v16175_v46 = vld [vmem:[#allocation143_spill] sm:$0xff]  ;;  %v16177_v37 = vld [vmem:[#allocation158_spill] sm:$0xff]  ;;  %v5032_v19 = vmax.f32 %v4930_v59, 0.0 }
 0x6dd   : > { %v3615_v40 = vadd.f32 %v16175_v46, %v13625_v4 }
 0x6de   : > { %6101 = vrot.lane.b32.xlu0 %v5030_v22, %s8471_s11 }
 0x6e0   : > { %5971 = vrot.lane.b32.xlu1 %v3719_v9, %s8470_s10  ;;  %v14034_v5 = vpop.permute.xlu1 %6121 }
 0x6e2   : > { %v14002_v7 = vpop.permute.xlu0 %6123  ;;  %5881 = vrot.lane.b32.xlu0 %v2457_v61, %s8469_s9  ;;  %v3721_v61 = vmax.f32 %v3615_v40, 0.0 }
 0x6e4   : > { %6225 = vrot.lane.b32.xlu1 %v5773_v53, %s8472_s12  ;;  %v5996_v33 = vpop.permute.xlu1 %5995 }
 0x6e6   : > { %6135 = vrot.lane.b32.xlu0 %v5047_v34, %s8471_s11  ;;  %v14012_v18 = vpop.permute.xlu0 %5837 }
 0x6e8   : > { %6005 = vrot.lane.b32.xlu1 %v3736_v10, %s8470_s10 }
 0x6ea   : > { %5849 = vrot.lane.b32.xlu0 %v2441_v15, %s8469_s9  ;;  %v14023_v55 = vpop.permute.xlu0 %6091  ;;  %v3684_v15 = vadd.f32 %v13625_v4, %v16177_v37 }
 0x6ec   : > { %6259 = vrot.lane.b32.xlu1 %v5790_v17, %s8472_s12  ;;  %v3738_v17 = vmax.f32 %v3684_v15, 0.0 }
 0x6ee   : > { %6103 = vrot.lane.b32.xlu0 %v5031_v8, %s8471_s11  ;;  %v14030_v12 = vpop.permute.xlu0 %5871  ;;  %v5734_v8 = vadd.f32 %v13984_v42, %v13886_v23  ;;  %v6377_v42 = vsel %vm1545_vm8, %v6345_v14, %v13981_v3  ;;  %v5670_v3 = vadd.f32 %v13358_v11, %v13886_v23  ;;  %v16182_v14 = vld [vmem:[#allocation99_spill] sm:$0xff] }
 0x6f0   : > { %5973 = vrot.lane.b32.xlu1 %v3720_v32, %s8470_s10 }
 0x6f2   : > { %5883 = vrot.lane.b32.xlu0 %v2458_v38, %s8469_s9  ;;  %v14039_v22 = vpop.permute.xlu0 %6125  ;;  %v16178_v38 = vld [vmem:[#allocation71_spill] sm:$0xff] }
 0x6f3   : > { %v2411_v2 = vadd.f32 %v16178_v38, %v13611_v49 }
 0x6f4   : > { %6227 = vrot.lane.b32.xlu1 %v5774_v45, %s8472_s12  ;;  %v16179_v45 = vld [vmem:[#allocation91_spill] sm:$0xff] }
 0x6f5   : > { %v3620_v13 = vadd.f32 %v13625_v4, %v16179_v45  ;;  %v2459_v40 = vmax.f32 %v2411_v2, 0.0  ;;  %v8428_v2 = vld [vmem:[%s8674_s8 + $0x8] sm:$0xff] }
 0x6f6   : > { %v14051_v34 = vpop.permute.xlu0 %5839 }
 0x6f7   : > { %v3722_v20 = vmax.f32 %v3620_v13, 0.0 }
 0x6f8   : > { %6007 = vrot.lane.b32.xlu1 %v3737_v44, %s8470_s10  ;;  %v5792_v44 = vmax.f32 %v5734_v8, 0.0  ;;  %v4933_v8 = vadd.f32 %v13663_v28, %v13492_v47  ;;  %v2414_v47 = vadd.f32 %v16182_v14, %v13611_v49  ;;  %v16186_v14 = vld [vmem:[#allocation113_spill] sm:$0xff] }
 0x6fa   : > { %v14064_v32 = vpop.permute.xlu0 %6093  ;;  %v5033_v45 = vmax.f32 %v4933_v8, 0.0  ;;  %v5675_v8 = vadd.f32 %v13886_v23, %v13576_v29 }
 0x6fc   : > { %v14041_v9 = vpop.f32.mrb[56].mxu0  ;;  %6261 = vrot.lane.b32.xlu1 %v5791_v58, %s8472_s12  ;;  %v5777_v29 = vmax.f32 %v5675_v8, 0.0 }
 0x6fd   : > { %v4993_v25 = vpop.f32.mrb[57].mxu0 }
 0x6fe   : > { %v4994_v51 = vadd.f32 %v13663_v28, %v4993_v25  ;;  %v14047_v31 = vpop.f32.mrb[58].mxu0  ;;  %v14080_v58 = vpop.permute.xlu0 %5873 }
 0x6ff   : > { %v4996_v53 = vpop.f32.mrb[59].mxu0 }
 0x700   : > { %v5048_v10 = vmax.f32 %v4994_v51, 0.0  ;;  %5975 = vrot.lane.b32.xlu1 %v3721_v61, %s8470_s10  ;;  %v4997_v25 = vadd.f32 %v13663_v28, %v4996_v53  ;;  %v8426_v61 = vld [vmem:[%s8674_s8 + $0x88] sm:$0xff] }
 0x701   : > { %v6330_v52 = vsel %vm314_vm0, %v8426_v61, %v5868_v21  ;;  %v16180_v53 = vld [vmem:[#allocation169_spill] sm:$0xff] }
 0x702   : > { %6137 = vrot.lane.b32.xlu0 %v5048_v10, %s8471_s11  ;;  %v6250_v62 = vpop.permute.xlu1 %6249  ;;  %v6362_v43 = vsel %vm1480_vm7, %v6330_v52, %v5996_v33  ;;  %v2347_v39 = vadd.f32 %v16180_v53, %v13611_v49  ;;  %v8427_v10 = vld [vmem:[%s8674_s8 + $0x80] sm:$0xff]  ;;  %v5049_v15 = vmax.f32 %v4997_v25, 0.0  ;;  %v16181_v21 = vld [vmem:[#allocation185_spill] sm:$0xff]  ;;  %v14106_v59 = vpop.permute.xlu0 %6127 }
 0x703   : > { %v6329_v37 = vsel %vm314_vm0, %v8427_v10, %v13947_v26  ;;  %v6394_v26 = vsel %vm1545_vm8, %v6362_v43, %v14002_v7  ;;  %v6314_v7 = vsel %vm314_vm0, %v8428_v2, %v13973_v36  ;;  %v5005_v2 = vadd.f32 %v14047_v31, %v13663_v28 }
 0x704   : > { %6229 = vrot.lane.b32.xlu1 %v5775_v60, %s8472_s12  ;;  %v6361_v11 = vsel %vm1480_vm7, %v6329_v37, %v13959_v30  ;;  %v3687_v60 = vadd.f32 %v13625_v4, %v16181_v21  ;;  %v2443_v63 = vmax.f32 %v2347_v39, 0.0  ;;  %v4938_v39 = vadd.f32 %v13482_v57, %v13663_v28  ;;  %v16184_v21 = vld [vmem:[#allocation148_spill] sm:$0xff]  ;;  %v16185_v57 = vld [vmem:[#allocation102_spill] sm:$0xff] }
 0x705   : > { %v6393_v33 = vsel %vm1545_vm8, %v6361_v11, %v14034_v5 }
 0x706   : > { %5851 = vrot.lane.b32.xlu0 %v2442_v0, %s8469_s9  ;;  %v5964_v48 = vpop.permute.xlu1 %5963  ;;  %v5776_v0 = vmax.f32 %v5670_v3, 0.0  ;;  %v14112_v56 = vsel %vm1610_vm9, %v6393_v33, %v6250_v62  ;;  %v3739_v38 = vmax.f32 %v3687_v60, 0.0  ;;  %v14131_v13 = vpop.permute.xlu0 %5841  ;;  %v16183_v3 = vld [vmem:[#allocation60_spill] sm:$0xff]  ;;  %v14165_v33 = vld [vmem:[%s15014_s2] ss:$0 sm:$0xff] }
 0x708   : > { %6009 = vrot.lane.b32.xlu1 %v3738_v17, %s8470_s10 }
 0x70a   : > { %6105 = vrot.lane.b32.xlu0 %v5032_v19, %s8471_s11  ;;  %v6218_v35 = vpop.permute.xlu1 %6217  ;;  %v6346_v19 = vsel %vm1480_vm7, %v6314_v7, %v5964_v48  ;;  %v5002_v48 = vadd.f32 %v14041_v9, %v13663_v28  ;;  %v14144_v25 = vpop.permute.xlu0 %6095 }
 0x70b   : > { %v14078_v46 = vsel %vm1610_vm9, %v6377_v42, %v6218_v35  ;;  %v6378_v36 = vsel %vm1545_vm8, %v6346_v19, %v14023_v55  ;;  %v2460_v35 = vmax.f32 %v2414_v47, 0.0  ;;  %v2350_v55 = vadd.f32 %v16183_v3, %v13611_v49  ;;  %v14183_v19 = vld [vmem:[%s15014_s2 + $0x1] ss:$0 sm:$0xff] }
 0x70c   : > { %6263 = vrot.lane.b32.xlu1 %v5792_v44, %s8472_s12  ;;  %8040 = vmatprep.mubr.msk.f32.mxu1 %vm1675_vm10, %v14078_v46  ;;  %v5050_v61 = vmax.f32 %v5002_v48, 0.0  ;;  %v3623_v49 = vadd.f32 %v13625_v4, %v16184_v21  ;;  %v3692_v47 = vadd.f32 %v14183_v19, %v16186_v14 }
 0x70d   : > { %v2444_v9 = vmax.f32 %v2350_v55, 0.0  ;;  %v5051_v55 = vmax.f32 %v5005_v2, 0.0  ;;  %v16189_v2 = vld [vmem:[#allocation160_spill] sm:$0xff] }
 0x70e   : > { %5885 = vrot.lane.b32.xlu0 %v2459_v40, %s8469_s9  ;;  %v14091_v51 = vpop.permute.xlu1 %5997  ;;  %v14154_v10 = vpop.permute.xlu0 %5875  ;;  %v3723_v4 = vmax.f32 %v3623_v49, 0.0  ;;  %v2422_v14 = vadd.f32 %v14165_v33, %v16189_v2 }
 0x710   : > { %5977 = vrot.lane.b32.xlu1 %v3722_v20, %s8470_s10 }
 0x712   : > { %6139 = vrot.lane.b32.xlu0 %v5049_v15, %s8471_s11  ;;  %v6252_v17 = vpop.permute.xlu1 %6251 }
 0x713   : > { %v14115_v30 = vsel %vm1610_vm9, %v6394_v26, %v6252_v17  ;;  %v2419_v26 = vadd.f32 %v14165_v33, %v16185_v57  ;;  %v5034_v17 = vmax.f32 %v4938_v39, 0.0 }
 0x714   : > { %6231 = vrot.lane.b32.xlu1 %v5776_v0, %s8472_s12  ;;  %v8126_v5 = vpack.c.bf16 %v14115_v30, %v14112_v56 }
 0x716   : > { %5853 = vrot.lane.b32.xlu0 %v2443_v63, %s8469_s9  ;;  %8127 = vmatprep.subr.bf16.mxu0 %v8126_v5  ;;  %v14126_v62 = vpop.permute.xlu1 %5965 }
 0x718   : > { %6011 = vrot.lane.b32.xlu1 %v3739_v38, %s8470_s10  ;;  %v2461_v38 = vmax.f32 %v2419_v26, 0.0  ;;  %v8435_v26 = vld [vmem:[%s8674_s8 + $0x18] sm:$0xff] }
 0x71a   : > { %6107 = vrot.lane.b32.xlu0 %v5033_v45, %s8471_s11  ;;  %v6220_v42 = vpop.permute.xlu1 %6219  ;;  %v8431_v45 = vld [vmem:[%s8674_s8 + $0x90] sm:$0xff] }
 0x71b   : > { %v14138_v44 = vsel %vm1610_vm9, %v6378_v36, %v6220_v42  ;;  %v6331_v36 = vsel %vm314_vm0, %v8431_v45, %v13994_v41  ;;  %v8432_v42 = vld [vmem:[%s8674_s8 + $0x98] sm:$0xff]  ;;  %v3740_v41 = vmax.f32 %v3692_v47, 0.0 }
 0x71c   : > { %v8128_v40 = vpack.c.bf16 %v14138_v44, %v14078_v46  ;;  %v6332_v28 = vsel %vm314_vm0, %v8432_v42, %v14030_v12 }
 0x71e   : > { %5887 = vrot.lane.b32.xlu0 %v2460_v35, %s8469_s9  ;;  %8129 = vmatpush3.bf16.msra.mxu0 %v8128_v40  ;;  %v6000_v20 = vpop.permute.xlu1 %5999  ;;  %v6363_v35 = vsel %vm1480_vm7, %v6331_v36, %v14091_v51  ;;  %v16187_v40 = vld [vmem:[#allocation62_spill] sm:$0xff] }
 0x71f   : > { %v6364_v48 = vsel %vm1480_vm7, %v6332_v28, %v6000_v20  ;;  %v2355_v3 = vadd.f32 %v14165_v33, %v16187_v40  ;;  %v6395_v12 = vsel %vm1545_vm8, %v6363_v35, %v14039_v22  ;;  %v14219_v22 = vld [vmem:[%s15014_s2 + $0x2] ss:$0 sm:$0xff]  ;;  %v2462_v28 = vmax.f32 %v2422_v14, 0.0 }
 0x720   : > { %v6396_v51 = vsel %vm1545_vm8, %v6364_v48, %v14106_v59 }
 0x722   : > { %6141 = vrot.lane.b32.xlu0 %v5050_v61, %s8471_s11  ;;  %v14150_v52 = vpop.f32.mrb[56].mxu1  ;;  %v6254_v43 = vpop.permute.xlu1 %6253 }
 0x723   : > { %v5738_v53 = vpop.f32.mrb[57].mxu1 }
 0x724   : > { %v5739_v37 = vadd.f32 %v13886_v23, %v5738_v53  ;;  %v14157_v15 = vpop.f32.mrb[58].mxu1 }
 0x725   : > { %v5741_v11 = vpop.f32.mrb[59].mxu1 }
 0x726   : > { %v5793_v60 = vmax.f32 %v5739_v37, 0.0  ;;  %5855 = vrot.lane.b32.xlu0 %v2444_v9, %s8469_s9  ;;  %v5968_v0 = vpop.permute.xlu1 %5967  ;;  %v5742_v53 = vadd.f32 %v13886_v23, %v5741_v11  ;;  %v14211_v9 = vsel %vm1610_vm9, %v6395_v12, %v6254_v43  ;;  %v2445_v37 = vmax.f32 %v2355_v3, 0.0  ;;  %v16188_v43 = vld [vmem:[#allocation170_spill] sm:$0xff] }
 0x727   : > { %v4941_v11 = vadd.f32 %v14219_v22, %v13487_v16  ;;  %v3628_v49 = vadd.f32 %v14183_v19, %v16188_v43  ;;  %v5747_v3 = vadd.f32 %v14150_v52, %v13886_v23 }
 0x728   : > { %v14169_v63 = vpop.permute.xlu0 %6129  ;;  %6265 = vrot.lane.b32.xlu1 %v5793_v60, %s8472_s12  ;;  %v8434_v60 = vld [vmem:[%s8674_s8 + $0x10] sm:$0xff] }
 0x729   : > { %v6315_v57 = vsel %vm314_vm0, %v8434_v60, %v14012_v18  ;;  %v5035_v47 = vmax.f32 %v4941_v11, 0.0 }
 0x72a   : > { %6109 = vrot.lane.b32.xlu0 %v5034_v17, %s8471_s11  ;;  %v6222_v5 = vpop.permute.xlu1 %6221  ;;  %v6316_v17 = vsel %vm314_vm0, %v8435_v26, %v14051_v34  ;;  %v6347_v8 = vsel %vm1480_vm7, %v6315_v57, %v14126_v62  ;;  %v3724_v34 = vmax.f32 %v3628_v49, 0.0  ;;  %v16192_v57 = vld [vmem:[#allocation147_spill] sm:$0xff] }
 0x72b   : > { %v6379_v45 = vsel %vm1545_vm8, %v6347_v8, %v14064_v32  ;;  %v16190_v32 = vld [vmem:[#allocation157_spill] sm:$0xff]  ;;  %v2358_v26 = vadd.f32 %v14165_v33, %v16192_v57 }
 0x72c   : > { %v14177_v7 = vpop.permute.xlu0 %5843  ;;  %5979 = vrot.lane.b32.xlu1 %v3723_v4, %s8470_s10  ;;  %v5794_v4 = vmax.f32 %v5742_v53, 0.0  ;;  %v14255_v36 = vsel %vm1610_vm9, %v6379_v45, %v6222_v5  ;;  %v3695_v48 = vadd.f32 %v14183_v19, %v16190_v32  ;;  %v5795_v53 = vmax.f32 %v5747_v3, 0.0  ;;  %v16193_v8 = vld [vmem:[#allocation101_spill] sm:$0xff] }
 0x72d   : > { %v2446_v14 = vmax.f32 %v2358_v26, 0.0 }
 0x72e   : > { %5889 = vrot.lane.b32.xlu0 %v2461_v38, %s8469_s9  ;;  %v14194_v31 = vpop.permute.xlu1 %6001  ;;  %v6348_v38 = vsel %vm1480_vm7, %v6316_v17, %v5968_v0  ;;  %v3741_v5 = vmax.f32 %v3695_v48, 0.0 }
 0x72f   : > { %v6380_v62 = vsel %vm1545_vm8, %v6348_v38, %v14144_v25  ;;  %v3700_v38 = vadd.f32 %v14183_v19, %v16193_v8 }
 0x730   : > { %v14201_v61 = vpop.permute.xlu0 %6097  ;;  %6233 = vrot.lane.b32.xlu1 %v5777_v29, %s8472_s12  ;;  %v5678_v29 = vadd.f32 %v13886_v23, %v13586_v27 }
 0x732   : > { %6143 = vrot.lane.b32.xlu0 %v5051_v55, %s8471_s11  ;;  %v6256_v20 = vpop.permute.xlu1 %6255  ;;  %v5778_v40 = vmax.f32 %v5678_v29, 0.0  ;;  %v5750_v29 = vadd.f32 %v14157_v15, %v13886_v23 }
 0x733   : > { %v14214_v39 = vsel %vm1610_vm9, %v6396_v51, %v6256_v20 }
 0x734   : > { %v14223_v21 = vpop.permute.xlu0 %5877  ;;  %6013 = vrot.lane.b32.xlu1 %v3740_v41, %s8470_s10  ;;  %v8130_v59 = vpack.c.bf16 %v14214_v39, %v14211_v9  ;;  %v16191_v41 = vld [vmem:[#allocation13_spill] sm:$0xff]  ;;  %v5796_v48 = vmax.f32 %v5750_v29, 0.0 }
 0x735   : > { %v3631_v12 = vadd.f32 %v14183_v19, %v16191_v41 }
 0x736   : > { %5857 = vrot.lane.b32.xlu0 %v2445_v37, %s8469_s9  ;;  %8131 = vmatprep.subr.bf16.mxu0 %v8130_v59  ;;  %v14237_v16 = vpop.permute.xlu1 %5969  ;;  %v5683_v59 = vadd.f32 %v13568_v6, %v13886_v23 }
 0x737   : > { %v3725_v11 = vmax.f32 %v3631_v12, 0.0 }
 0x738   : > { %v14244_v18 = vpop.permute.xlu0 %6131  ;;  %6267 = vrot.lane.b32.xlu1 %v5794_v4, %s8472_s12  ;;  %v5779_v2 = vmax.f32 %v5683_v59, 0.0  ;;  %v8437_v59 = vld [vmem:[%s8674_s8 + $0xa8] sm:$0xff] }
 0x73a   : > { %6111 = vrot.lane.b32.xlu0 %v5035_v47, %s8471_s11  ;;  %v6224_v0 = vpop.permute.xlu1 %6223  ;;  %v4946_v47 = vadd.f32 %v14219_v22, %v13719_v1  ;;  %v16195_v1 = vld [vmem:[#allocation17_spill] sm:$0xff] }
 0x73b   : > { %v14258_v42 = vsel %vm1610_vm9, %v6380_v62, %v6224_v0  ;;  %v16194_v0 = vld [vmem:[#allocation184_spill] sm:$0xff]  ;;  %v3636_v32 = vadd.f32 %v14183_v19, %v16195_v1  ;;  %v4949_v1 = vadd.f32 %v14219_v22, %v13729_v24 }
 0x73c   : > { %v8132_v35 = vpack.c.bf16 %v14258_v42, %v14255_v36  ;;  %v14262_v27 = vpop.permute.xlu0 %5845  ;;  %5981 = vrot.lane.b32.xlu1 %v3724_v34, %s8470_s10  ;;  %v3742_v34 = vmax.f32 %v3700_v38, 0.0 }
 0x73d   : > { %v3726_v12 = vmax.f32 %v3636_v32, 0.0 }
 0x73e   : > { %5891 = vrot.lane.b32.xlu0 %v2462_v28, %s8469_s9  ;;  %8133 = vmatpush3.bf16.msra.mxu0 %v8132_v35  ;;  %v6004_v52 = vpop.permute.xlu1 %6003  ;;  %v2427_v28 = vadd.f32 %v14165_v33, %v16194_v0  ;;  %v5036_v35 = vmax.f32 %v4946_v47, 0.0 }
 0x740   : > { %v14268_v25 = vpop.permute.xlu0 %6099  ;;  %6235 = vrot.lane.b32.xlu1 %v5778_v40, %s8472_s12  ;;  %v2463_v40 = vmax.f32 %v2427_v28, 0.0 }
 0x744   : > { %v14273_v55 = vpop.permute.xlu0 %5879  ;;  %6015 = vrot.lane.b32.xlu1 %v3741_v5, %s8470_s10 }
 0x748   : > { %v14278_v51 = vpop.permute.xlu0 %6133  ;;  %v14280_v20 = vpop.f32.mrb[60].mxu0  ;;  %6269 = vrot.lane.b32.xlu1 %v5795_v53, %s8472_s12  ;;  %v5686_v53 = vadd.f32 %v13578_v54, %v13886_v23  ;;  %v16196_v54 = vld [vmem:[#allocation41_spill] sm:$0xff] }
 0x749   : > { %v5009_v37 = vpop.f32.mrb[61].mxu0  ;;  %v2363_v38 = vadd.f32 %v14165_v33, %v16196_v54 }
 0x74a   : > { %v5010_v43 = vadd.f32 %v14219_v22, %v5009_v37  ;;  %v14286_v49 = vpop.f32.mrb[62].mxu0  ;;  %v8436_v37 = vld [vmem:[%s8674_s8 + $0xa0] sm:$0xff]  ;;  %v5780_v47 = vmax.f32 %v5686_v53, 0.0 }
 0x74b   : > { %v5012_v60 = vpop.f32.mrb[63].mxu0 }
 0x74c   : > { %v5052_v17 = vmax.f32 %v5010_v43, 0.0  ;;  %v14290_v4 = vpop.permute.xlu0 %5847  ;;  %5983 = vrot.lane.b32.xlu1 %v3725_v11, %s8470_s10  ;;  %v5013_v5 = vadd.f32 %v14219_v22, %v5012_v60  ;;  %v6333_v11 = vsel %vm314_vm0, %v8436_v37, %v14080_v58  ;;  %v6334_v43 = vsel %vm314_vm0, %v8437_v59, %v14154_v10  ;;  %v16197_v10 = vld [vmem:[#allocation188_spill] sm:$0xff]  ;;  %v16198_v37 = vld [vmem:[#allocation117_spill] sm:$0xff] }
 0x74d   : > { %v6365_v26 = vsel %vm1480_vm7, %v6333_v11, %v14194_v31  ;;  %v2430_v11 = vadd.f32 %v14165_v33, %v16198_v37  ;;  %v16204_v37 = vld [vmem:[#allocation95_spill] sm:$0xff] }
 0x74e   : > { %6145 = vrot.lane.b32.xlu0 %v5052_v17, %s8471_s11  ;;  %v6258_v6 = vpop.permute.xlu1 %6257  ;;  %v6366_v17 = vsel %vm1480_vm7, %v6334_v43, %v6004_v52  ;;  %v5053_v58 = vmax.f32 %v5013_v5, 0.0  ;;  %v6397_v31 = vsel %vm1545_vm8, %v6365_v26, %v14169_v63 }
 0x74f   : > { %v6398_v52 = vsel %vm1545_vm8, %v6366_v17, %v14244_v18  ;;  %v14345_v0 = vsel %vm1610_vm9, %v6397_v31, %v6258_v6 }
 0x750   : > { %6237 = vrot.lane.b32.xlu1 %v5779_v2, %s8472_s12  ;;  %v14301_v45 = vpop.permute.xlu0 %6101 }
 0x752   : > { %5859 = vrot.lane.b32.xlu0 %v2446_v14, %s8469_s9  ;;  %v5972_v62 = vpop.permute.xlu1 %5971  ;;  %v3703_v14 = vadd.f32 %v14183_v19, %v16197_v10 }
 0x754   : > { %6017 = vrot.lane.b32.xlu1 %v3742_v34, %s8470_s10  ;;  %v14311_v3 = vpop.permute.xlu0 %5881  ;;  %v3743_v32 = vmax.f32 %v3703_v14, 0.0 }
 0x756   : > { %6113 = vrot.lane.b32.xlu0 %v5036_v35, %s8471_s11  ;;  %v6226_v15 = vpop.permute.xlu1 %6225  ;;  %v2447_v35 = vmax.f32 %v2363_v38, 0.0  ;;  %v2464_v38 = vmax.f32 %v2430_v11, 0.0  ;;  %v3644_v11 = vadd.f32 %v14183_v19, %v16204_v37 }
 0x758   : > { %6271 = vrot.lane.b32.xlu1 %v5796_v48, %s8472_s12  ;;  %v14339_v34 = vpop.permute.xlu0 %6135  ;;  %v8438_v48 = vld [vmem:[%s8674_s8 + $0x20] sm:$0xff] }
 0x759   : > { %v14314_v41 = vpop.f32.mrb[60].mxu1  ;;  %v6317_v18 = vsel %vm314_vm0, %v8438_v48, %v14131_v13  ;;  %v5037_v13 = vmax.f32 %v4949_v1, 0.0 }
 0x75a   : > { %5893 = vrot.lane.b32.xlu0 %v2463_v40, %s8469_s9  ;;  %v5754_v60 = vpop.f32.mrb[61].mxu1  ;;  %v14325_v57 = vpop.permute.xlu1 %6005  ;;  %v8439_v40 = vld [vmem:[%s8674_s8 + $0x28] sm:$0xff] }
 0x75b   : > { %v14330_v8 = vpop.f32.mrb[62].mxu1  ;;  %v6318_v6 = vsel %vm314_vm0, %v8439_v40, %v14177_v7  ;;  %v5755_v5 = vadd.f32 %v13886_v23, %v5754_v60  ;;  %v16199_v7 = vld [vmem:[#allocation178_spill] sm:$0xff] }
 0x75c   : > { %v5757_v2 = vpop.f32.mrb[63].mxu1  ;;  %5985 = vrot.lane.b32.xlu1 %v3726_v12, %s8470_s10  ;;  %v6349_v12 = vsel %vm1480_vm7, %v6317_v18, %v14237_v16  ;;  %v6350_v53 = vsel %vm1480_vm7, %v6318_v6, %v5972_v62  ;;  %v14370_v59 = vpop.permute.xlu0 %5849  ;;  %v3639_v43 = vadd.f32 %v14183_v19, %v16199_v7  ;;  %v16203_v6 = vld [vmem:[#allocation152_spill] sm:$0xff] }
 0x75d   : > { %v6381_v60 = vsel %vm1545_vm8, %v6349_v12, %v14201_v61  ;;  %v5797_v26 = vmax.f32 %v5755_v5, 0.0  ;;  %v6382_v16 = vsel %vm1545_vm8, %v6350_v53, %v14268_v25  ;;  %v5691_v25 = vadd.f32 %v13886_v23, %v13753_v50 }
 0x75e   : > { %6147 = vrot.lane.b32.xlu0 %v5053_v58, %s8471_s11  ;;  %v6260_v29 = vpop.permute.xlu1 %6259  ;;  %v14381_v17 = vsel %vm1610_vm9, %v6381_v60, %v6226_v15  ;;  %v5018_v58 = vadd.f32 %v14219_v22, %v14280_v20  ;;  %v3727_v10 = vmax.f32 %v3639_v43, 0.0  ;;  %v16201_v20 = vld [vmem:[#allocation73_spill] sm:$0xff]  ;;  %v3647_v5 = vadd.f32 %v14183_v19, %v16203_v6  ;;  %v16205_v43 = vld [vmem:[#allocation163_spill] sm:$0xff] }
 0x75f   : > { %v14348_v28 = vsel %vm1610_vm9, %v6398_v52, %v6260_v29  ;;  %v3708_v29 = vadd.f32 %v14183_v19, %v16201_v20  ;;  %v5699_v60 = vadd.f32 %v16205_v43, %v13886_v23  ;;  %v8442_v6 = vld [vmem:[%s8674_s8 + $0x30] sm:$0xff] }
 0x760   : > { %6239 = vrot.lane.b32.xlu1 %v5780_v47, %s8472_s12  ;;  %v8134_v63 = vpack.c.bf16 %v14348_v28, %v14345_v0  ;;  %v14393_v14 = vpop.permute.xlu0 %6103  ;;  %v16200_v47 = vld [vmem:[#allocation90_spill] sm:$0xff]  ;;  %v5054_v52 = vmax.f32 %v5018_v58, 0.0  ;;  %v3729_v7 = vmax.f32 %v3647_v5, 0.0 }
 0x761   : > { %v2366_v31 = vadd.f32 %v14165_v33, %v16200_v47  ;;  %v3744_v18 = vmax.f32 %v3708_v29, 0.0  ;;  %v5758_v33 = vadd.f32 %v13886_v23, %v5757_v2  ;;  %v8440_v58 = vld [vmem:[%s8674_s8 + $0xb0] sm:$0xff]  ;;  %v5783_v20 = vmax.f32 %v5699_v60, 0.0  ;;  %v8443_v5 = vld [vmem:[%s8674_s8 + $0x38] sm:$0xff] }
 0x762   : > { %5861 = vrot.lane.b32.xlu0 %v2447_v35, %s8469_s9  ;;  %8135 = vmatprep.subr.bf16.mxu0 %v8134_v63  ;;  %v14363_v24 = vpop.permute.xlu1 %5973  ;;  %v5781_v35 = vmax.f32 %v5691_v25, 0.0  ;;  %v16202_v63 = vld [vmem:[#allocation77_spill] sm:$0xff]  ;;  %v5766_v29 = vadd.f32 %v14330_v8, %v13886_v23 }
 0x763   : > { %v2448_v50 = vmax.f32 %v2366_v31, 0.0 }
 0x764   : > { %6019 = vrot.lane.b32.xlu1 %v3743_v32, %s8470_s10  ;;  %v4954_v32 = vadd.f32 %v14219_v22, %v16202_v63  ;;  %v14404_v48 = vpop.permute.xlu0 %5883 }
 0x766   : > { %6115 = vrot.lane.b32.xlu0 %v5037_v13, %s8471_s11  ;;  %v6228_v62 = vpop.permute.xlu1 %6227  ;;  %v5038_v12 = vmax.f32 %v4954_v32, 0.0  ;;  %v5798_v13 = vmax.f32 %v5758_v33, 0.0 }
 0x767   : > { %v14384_v54 = vsel %vm1610_vm9, %v6382_v16, %v6228_v62  ;;  %v3728_v16 = vmax.f32 %v3644_v11, 0.0  ;;  %v16206_v62 = vld [vmem:[#allocation79_spill] sm:$0xff] }
 0x768   : > { %v8136_v61 = vpack.c.bf16 %v14384_v54, %v14381_v17  ;;  %6273 = vrot.lane.b32.xlu1 %v5797_v26, %s8472_s12 }
 0x76a   : > { %5895 = vrot.lane.b32.xlu0 %v2464_v38, %s8469_s9  ;;  %8137 = vmatpush3.bf16.msra.mxu0 %v8136_v61  ;;  %v6008_v15 = vpop.permute.xlu1 %6007  ;;  %v5694_v38 = vadd.f32 %v13886_v23, %v16206_v62  ;;  %v6335_v61 = vsel %vm314_vm0, %v8440_v58, %v14223_v21  ;;  %v16207_v21 = vld [vmem:[#allocation159_spill] sm:$0xff]  ;;  %v16209_v58 = vld [vmem:[#allocation193_spill] sm:$0xff] }
 0x76b   : > { %v6367_v31 = vsel %vm1480_vm7, %v6335_v61, %v14325_v57  ;;  %v5702_v61 = vadd.f32 %v16209_v58, %v13886_v23 }
 0x76c   : > { %5987 = vrot.lane.b32.xlu1 %v3727_v10, %s8470_s10  ;;  %v8441_v10 = vld [vmem:[%s8674_s8 + $0xb8] sm:$0xff]  ;;  %v6399_v63 = vsel %vm1545_vm8, %v6367_v31, %v14278_v51 }
 0x76d   : > { %v6336_v25 = vsel %vm314_vm0, %v8441_v10, %v14273_v55  ;;  %v3711_v55 = vadd.f32 %v14183_v19, %v16207_v21 }
 0x76e   : > { %6149 = vrot.lane.b32.xlu0 %v5054_v52, %s8471_s11  ;;  %v6262_v1 = vpop.permute.xlu1 %6261  ;;  %v6368_v52 = vsel %vm1480_vm7, %v6336_v25, %v6008_v15  ;;  %v5784_v25 = vmax.f32 %v5702_v61, 0.0 }
 0x76f   : > { %v6400_v57 = vsel %vm1545_vm8, %v6368_v52, %v14339_v34  ;;  %v14449_v8 = vsel %vm1610_vm9, %v6399_v63, %v6262_v1  ;;  %v3745_v51 = vmax.f32 %v3711_v55, 0.0  ;;  %v6319_v34 = vsel %vm314_vm0, %v8442_v6, %v14262_v27 }
 0x770   : > { %6241 = vrot.lane.b32.xlu1 %v5781_v35, %s8472_s12  ;;  %v6320_v1 = vsel %vm314_vm0, %v8443_v5, %v14290_v4  ;;  %v6351_v11 = vsel %vm1480_vm7, %v6319_v34, %v14363_v24  ;;  %v5021_v27 = vadd.f32 %v14219_v22, %v14286_v49  ;;  %v16208_v49 = vld [vmem:[#allocation105_spill] sm:$0xff]  ;;  %v8205_v6 = vpack.i.bf16 %v14255_v36, %v14211_v9 }
 0x772   : > { %5863 = vrot.lane.b32.xlu0 %v2448_v50, %s8469_s9  ;;  %v5976_v40 = vpop.permute.xlu1 %5975  ;;  %v5782_v50 = vmax.f32 %v5694_v38, 0.0  ;;  %v5055_v38 = vmax.f32 %v5021_v27, 0.0 }
 0x774   : > { %v14411_v53 = vpop.permute.xlu0 %6137  ;;  %6021 = vrot.lane.b32.xlu1 %v3744_v18, %s8470_s10  ;;  %v5800_v18 = vmax.f32 %v5766_v29, 0.0 }
 0x776   : > { %6117 = vrot.lane.b32.xlu0 %v5038_v12, %s8471_s11  ;;  %v6230_v2 = vpop.permute.xlu1 %6229  ;;  %v5763_v12 = vadd.f32 %v14314_v41, %v13886_v23  ;;  %v6383_v41 = vsel %vm1545_vm8, %v6351_v11, %v14301_v45  ;;  %v4957_v45 = vadd.f32 %v14219_v22, %v16208_v49  ;;  %v8201_v23 = vpack.i.bf16 %v14078_v46, %v14112_v56 }
 0x778   : > { %v14419_v26 = vpop.permute.xlu0 %5851  ;;  %6275 = vrot.lane.b32.xlu1 %v5798_v13, %s8472_s12  ;;  %v6352_v13 = vsel %vm1480_vm7, %v6320_v1, %v5976_v40  ;;  %v5799_v4 = vmax.f32 %v5763_v12, 0.0 }
 0x779   : > { %v6384_v43 = vsel %vm1545_vm8, %v6352_v13, %v14393_v14 }
 0x77a   : > { %5991 = vrot.lane.b32.xlu0 %v3729_v7, %s8470_s10  ;;  %v14431_v47 = vpop.permute.xlu1 %6009 }
 0x77c   : > { %v14438_v35 = vpop.permute.xlu0 %6105  ;;  %5989 = vrot.lane.b32.xlu1 %v3728_v16, %s8470_s10  ;;  %v14481_v16 = vsel %vm1610_vm9, %v6383_v41, %v6230_v2  ;;  %v5039_v2 = vmax.f32 %v4957_v45, 0.0  ;;  %v8447_v41 = vld [vmem:[%s8674_s8 + $0x48] sm:$0xff] }
 0x77e   : > { %6245 = vrot.lane.b32.xlu0 %v5783_v20, %s8472_s12  ;;  %v6264_v15 = vpop.permute.xlu1 %6263 }
 0x77f   : > { %v14452_v32 = vsel %vm1610_vm9, %v6400_v57, %v6264_v15  ;;  %v8444_v57 = vld [vmem:[%s8674_s8 + $0xc0] sm:$0xff] }
 0x780   : > { %v14454_v33 = vpop.permute.xlu0 %5885  ;;  %6243 = vrot.lane.b32.xlu1 %v5782_v50, %s8472_s12  ;;  %v8138_v19 = vpack.c.bf16 %v14452_v32, %v14449_v8  ;;  %v8203_v50 = vpack.i.bf16 %v14138_v44, %v14115_v30  ;;  %v6337_v15 = vsel %vm314_vm0, %v8444_v57, %v14311_v3 }
 0x781   : > { %v6369_v34 = vsel %vm1480_vm7, %v6337_v15, %v14431_v47 }
 0x782   : > { %6279 = vrot.lane.b32.xlu0 %v5800_v18, %s8472_s12  ;;  %8139 = vmatprep.subr.bf16.mxu0 %v8138_v19  ;;  %v14468_v37 = vpop.permute.xlu1 %5977  ;;  %v8445_v18 = vld [vmem:[%s8674_s8 + $0xc8] sm:$0xff]  ;;  %v6401_v1 = vsel %vm1545_vm8, %v6369_v34, %v14411_v53 }
 0x783   : > { %v6338_v19 = vsel %vm314_vm0, %v8445_v18, %v14404_v48  ;;  %v8207_v48 = vpack.i.bf16 %v14258_v42, %v14214_v39  ;;  %v8449_v18 = vld [vmem:[%s8674_s8 + $0xd0] sm:$0xff] }
 0x784   : > { %v6140_v7 = vpop.permute.xlu0 %6139  ;;  %6023 = vrot.lane.b32.xlu1 %v3745_v51, %s8470_s10 }
 0x786   : > { %v6232_v60 = vpop.permute.xlu1 %6231 }
 0x787   : > { %v14484_v24 = vsel %vm1610_vm9, %v6384_v43, %v6232_v60  ;;  %v8209_v60 = vpack.i.bf16 %v14381_v17, %v14345_v0 }
 0x788   : > { %v8140_v40 = vpack.c.bf16 %v14484_v24, %v14481_v16  ;;  %v14488_v62 = vpop.permute.xlu0 %5853  ;;  %6277 = vrot.lane.b32.xlu1 %v5799_v4, %s8472_s12  ;;  %v8446_v4 = vld [vmem:[%s8674_s8 + $0x40] sm:$0xff] }
 0x789   : > { %v6321_v53 = vsel %vm314_vm0, %v8446_v4, %v14370_v59 }
 0x78a   : > { %8141 = vmatpush3.bf16.msra.mxu0 %v8140_v40  ;;  %v6012_v22 = vpop.permute.xlu1 %6011  ;;  %v6353_v40 = vsel %vm1480_vm7, %v6321_v53, %v14468_v37 }
 0x78b   : > { %v6370_v5 = vsel %vm1480_vm7, %v6338_v19, %v6012_v22  ;;  %v6385_v59 = vsel %vm1545_vm8, %v6353_v40, %v14438_v35  ;;  %v6339_v19 = vsel %vm314_vm0, %v8449_v18, %v14454_v33 }
 0x78c   : > { %v6108_v14 = vpop.permute.xlu0 %6107  ;;  %6151 = vrot.lane.b32.xlu1 %v5055_v38, %s8471_s11  ;;  %v6402_v12 = vsel %vm1545_vm8, %v6370_v5, %v6140_v7  ;;  %v6322_v7 = vsel %vm314_vm0, %v8447_v41, %v14419_v26 }
 0x790   : > { %v14496_v10 = vpop.permute.xlu0 %5887  ;;  %6119 = vrot.lane.b32.xlu1 %v5039_v2, %s8471_s11  ;;  %v8211_v2 = vpack.i.bf16 %v14384_v54, %v14348_v28 }
 0x794   : > { %v14499_v31 = vpop.permute.xlu0 %6141  ;;  %6247 = vrot.lane.b32.xlu1 %v5784_v25, %s8472_s12 }
 0x798   : > { %v14502_v52 = vpop.permute.xlu0 %5855 }
 0x79a   : > { %v6266_v20 = vpop.permute.xlu1 %6265 }
 0x79b   : > { %v14529_v13 = vsel %vm1610_vm9, %v6401_v1, %v6266_v20  ;;  %v8215_v20 = vpack.i.bf16 %v14484_v24, %v14452_v32 }
 0x79c   : > { %v14504_v29 = vpop.permute.xlu0 %6109 }
 0x79e   : > { %v5980_v21 = vpop.permute.xlu1 %5979 }
 0x79f   : > { %v6354_v49 = vsel %vm1480_vm7, %v6322_v7, %v5980_v21 }
 0x7a0   : > { %8202 = vxpose.xlu0.b32.start [1/16] (narrow) %v8201_v23, 40  ;;  %v14510_v63 = vpop.permute.xlu0 %5889  ;;  %v6386_v38 = vsel %vm1545_vm8, %v6354_v49, %v6108_v14  ;;  %v8213_v14 = vpack.i.bf16 %v14481_v16, %v14449_v8  ;;  %v8448_v23 = vld [vmem:[%s8674_s8 + $0x50] sm:$0xff]  ;;  %v8451_v49 = vld [vmem:[%s8674_s8 + $0x58] sm:$0xff] }
 0x7a2   : > { %v6234_v55 = vpop.permute.xlu1 %6233 }
 0x7a3   : > { %v14555_v58 = vsel %vm1610_vm9, %v6385_v59, %v6234_v55  ;;  %v6323_v55 = vsel %vm314_vm0, %v8448_v23, %v14488_v62 }
 0x7a4   : > { %8204 = vxpose.xlu0.b32.cont [2/16] (narrow) %v8203_v50, 40  ;;  %v6144_v3 = vpop.permute.xlu0 %6143  ;;  %v8217_v57 = vpack.i.bf16 %v14555_v58, %v14529_v13 }
 0x7a6   : > { %v6014_v51 = vpop.permute.xlu1 %6013 }
 0x7a7   : > { %v6371_v34 = vsel %vm1480_vm7, %v6339_v19, %v6014_v51  ;;  %v8450_v51 = vld [vmem:[%s8674_s8 + $0xd8] sm:$0xff] }
 0x7a8   : > { %8206 = vxpose.xlu0.b32.cont [3/16] (narrow) %v8205_v6, 40  ;;  %v14547_v45 = vpop.permute.xlu0 %5857 }
 0x7aa   : > { %v6268_v11 = vpop.permute.xlu1 %6267 }
 0x7ab   : > { %v14532_v27 = vsel %vm1610_vm9, %v6402_v12, %v6268_v11  ;;  %v6403_v11 = vsel %vm1545_vm8, %v6371_v34, %v14499_v31 }
 0x7ac   : > { %8208 = vxpose.xlu0.b32.cont [4/16] (narrow) %v8207_v48, 40  ;;  %v8142_v47 = vpack.c.bf16 %v14532_v27, %v14529_v13  ;;  %v6112_v25 = vpop.permute.xlu0 %6111 }
 0x7ae   : > { %8143 = vmatprep.subr.bf16.mxu0 %v8142_v47  ;;  %v5982_v43 = vpop.permute.xlu1 %5981 }
 0x7af   : > { %v6355_v15 = vsel %vm1480_vm7, %v6323_v55, %v5982_v43 }
 0x7b0   : > { %8210 = vxpose.xlu0.b32.cont [5/16] (narrow) %v8209_v60, 40  ;;  %v14566_v21 = vpop.permute.xlu0 %5891  ;;  %v6387_v5 = vsel %vm1545_vm8, %v6355_v15, %v14504_v29  ;;  %v6340_v29 = vsel %vm314_vm0, %v8450_v51, %v14496_v10  ;;  %v6324_v10 = vsel %vm314_vm0, %v8451_v49, %v14502_v52 }
 0x7b2   : > { %v6236_v26 = vpop.permute.xlu1 %6235 }
 0x7b3   : > { %v14558_v37 = vsel %vm1610_vm9, %v6386_v38, %v6236_v26 }
 0x7b4   : > { %v8144_v61 = vpack.c.bf16 %v14558_v37, %v14555_v58  ;;  %8212 = vxpose.xlu0.b32.cont [6/16] (narrow) %v8211_v2, 40  ;;  %v8219_v62 = vpack.i.bf16 %v14558_v37, %v14532_v27 }
 0x7b6   : > { %8145 = vmatpush3.bf16.msra.mxu0 %v8144_v61  ;;  %v6016_v35 = vpop.permute.xlu1 %6015 }
 0x7b7   : > { %v6372_v53 = vsel %vm1480_vm7, %v6340_v29, %v6016_v35  ;;  %v8454_v29 = vld [vmem:[%s8674_s8 + $0xe8] sm:$0xff] }
 0x7b8   : > { %8214 = vxpose.xlu0.b32.cont [7/16] (narrow) %v8213_v14, 40  ;;  %v6404_v31 = vsel %vm1545_vm8, %v6372_v53, %v6144_v3 }
 0x7ba   : > { %v6270_v22 = vpop.permute.xlu1 %6269 }
 0x7bb   : > { %v14588_v33 = vsel %vm1610_vm9, %v6403_v11, %v6270_v22 }
 0x7bc   : > { %8216 = vxpose.xlu0.b32.cont [8/16] (narrow) %v8215_v20, 40 }
 0x7be   : > { %v5984_v50 = vpop.permute.xlu1 %5983 }
 0x7bf   : > { %v6356_v38 = vsel %vm1480_vm7, %v6324_v10, %v5984_v50  ;;  %v8452_v50 = vld [vmem:[%s8674_s8 + $0xe0] sm:$0xff]  ;;  %v8455_v10 = vld [vmem:[%s8674_s8 + $0x68] sm:$0xff] }
 0x7c0   : > { %v6146_v6 = vpop.permute.xlu0 %6145  ;;  %8218 = vxpose.xlu0.b32.cont [9/16] (narrow) %v8217_v57, 40  ;;  %v6388_v3 = vsel %vm1545_vm8, %v6356_v38, %v6112_v25  ;;  %v6341_v25 = vsel %vm314_vm0, %v8452_v50, %v14510_v63  ;;  %v8453_v57 = vld [vmem:[%s8674_s8 + $0x60] sm:$0xff] }
 0x7c1   : > { %v6325_v15 = vsel %vm314_vm0, %v8453_v57, %v14547_v45 }
 0x7c2   : > { %v6238_v1 = vpop.permute.xlu1 %6237 }
 0x7c3   : > { %v14583_v12 = vsel %vm1610_vm9, %v6387_v5, %v6238_v1 }
 0x7c4   : > { %v5860_v48 = vpop.permute.xlu0 %5859  ;;  %8220 = vxpose.xlu0.b32.cont [10/16] (narrow) %v8219_v62, 40  ;;  %v8221_v4 = vpack.i.bf16 %v14583_v12, %v14588_v33 }
 0x7c6   : > { %v6018_v47 = vpop.permute.xlu1 %6017 }
 0x7c7   : > { %v6373_v19 = vsel %vm1480_vm7, %v6341_v25, %v6018_v47  ;;  %v6342_v47 = vsel %vm314_vm0, %v8454_v29, %v14566_v21  ;;  %v6326_v21 = vsel %vm314_vm0, %v8455_v10, %v5860_v48  ;;  %v8457_v25 = vld [vmem:[%s8674_s8 + $0xf0] sm:$0xff] }
 0x7c8   : > { %v6114_v41 = vpop.permute.xlu0 %6113  ;;  %8222 = vxpose.xlu0.b32.cont [11/16] (narrow) %v8221_v4, 40  ;;  %v6405_v1 = vsel %vm1545_vm8, %v6373_v19, %v6146_v6 }
 0x7ca   : > { %v6272_v7 = vpop.permute.xlu1 %6271 }
 0x7cb   : > { %v14598_v43 = vsel %vm1610_vm9, %v6404_v31, %v6272_v7 }
 0x7cc   : > { %v5894_v60 = vpop.permute.xlu0 %5893  ;;  %v8146_v40 = vpack.c.bf16 %v14598_v43, %v14588_v33 }
 0x7cd   : > { %v6343_v57 = vsel %vm314_vm0, %v8457_v25, %v5894_v60 }
 0x7ce   : > { %8147 = vmatprep.subr.bf16.mxu0 %v8146_v40  ;;  %v5986_v59 = vpop.permute.xlu1 %5985 }
 0x7cf   : > { %v6357_v34 = vsel %vm1480_vm7, %v6325_v15, %v5986_v59 }
 0x7d0   : > { %v6148_v26 = vpop.permute.xlu0 %6147  ;;  %v6389_v62 = vsel %vm1545_vm8, %v6357_v34, %v6114_v41 }
 0x7d2   : > { %v6240_v2 = vpop.permute.xlu1 %6239 }
 0x7d3   : > { %v14608_v61 = vsel %vm1610_vm9, %v6388_v3, %v6240_v2 }
 0x7d4   : > { %v8148_v35 = vpack.c.bf16 %v14608_v61, %v14583_v12  ;;  %v5862_v14 = vpop.permute.xlu0 %5861  ;;  %v8223_v52 = vpack.i.bf16 %v14608_v61, %v14598_v43 }
 0x7d6   : > { %8224 = vxpose.xlu0.b32.cont [12/16] (narrow) %v8223_v52, 40  ;;  %8149 = vmatpush3.bf16.msra.mxu0 %v8148_v35  ;;  %v6020_v22 = vpop.permute.xlu1 %6019  ;;  %v8456_v52 = vld [vmem:[%s8674_s8 + $0x70] sm:$0xff] }
 0x7d7   : > { %v6374_v53 = vsel %vm1480_vm7, %v6342_v47, %v6020_v22  ;;  %v6327_v22 = vsel %vm314_vm0, %v8456_v52, %v5862_v14 }
 0x7d8   : > { %v6116_v20 = vpop.permute.xlu0 %6115  ;;  %v6406_v41 = vsel %vm1545_vm8, %v6374_v53, %v6148_v26 }
 0x7da   : > { %v6274_v23 = vpop.permute.xlu1 %6273 }
 0x7db   : > { %v14625_v51 = vsel %vm1610_vm9, %v6405_v1, %v6274_v23 }
 0x7dc   : > { %v5896_v55 = vpop.permute.xlu0 %5895 }
 0x7de   : > { %v5988_v18 = vpop.permute.xlu1 %5987 }
 0x7df   : > { %v6358_v38 = vsel %vm1480_vm7, %v6326_v21, %v5988_v18 }
 0x7e0   : > { %v6150_v5 = vpop.permute.xlu0 %6149  ;;  %v6390_v2 = vsel %vm1545_vm8, %v6358_v38, %v6116_v20 }
 0x7e2   : > { %v6242_v11 = vpop.permute.xlu1 %6241 }
 0x7e3   : > { %v14628_v63 = vsel %vm1610_vm9, %v6389_v62, %v6242_v11  ;;  %v8458_v11 = vld [vmem:[%s8674_s8 + $0xf8] sm:$0xff] }
 0x7e4   : > { %v8225_v45 = vpack.i.bf16 %v14628_v63, %v14625_v51  ;;  %v5864_v4 = vpop.permute.xlu0 %5863 }
 0x7e6   : > { %8226 = vxpose.xlu0.b32.cont [13/16] (narrow) %v8225_v45, 40  ;;  %v6022_v6 = vpop.permute.xlu1 %6021  ;;  %v6344_v45 = vsel %vm314_vm0, %v8458_v11, %v5896_v55 }
 0x7e7   : > { %v6375_v15 = vsel %vm1480_vm7, %v6343_v57, %v6022_v6 }
 0x7e8   : > { %v6118_v40 = vpop.permute.xlu0 %6117  ;;  %v6407_v19 = vsel %vm1545_vm8, %v6375_v15, %v6150_v5 }
 0x7ea   : > { %v6276_v31 = vpop.permute.xlu1 %6275 }
 0x7eb   : > { %v14638_v7 = vsel %vm1610_vm9, %v6406_v41, %v6276_v31 }
 0x7ec   : > { %v8150_v49 = vpack.c.bf16 %v14638_v7, %v14625_v51  ;;  %v5992_v3 = vpop.permute.xlu0 %5991 }
 0x7ee   : > { %8151 = vmatprep.subr.bf16.mxu0 %v8150_v49  ;;  %v5990_v59 = vpop.permute.xlu1 %5989 }
 0x7ef   : > { %v6359_v50 = vsel %vm1480_vm7, %v6327_v22, %v5990_v59 }
 0x7f0   : > { %v6246_v18 = vpop.permute.xlu0 %6245  ;;  %v6391_v14 = vsel %vm1545_vm8, %v6359_v50, %v6118_v40  ;;  %v8459_v40 = vld [vmem:[%s8674_s8 + $0x78] sm:$0xff] }
 0x7f1   : > { %v14662_v1 = vsel %vm1610_vm9, %v6391_v14, %v6246_v18  ;;  %v6328_v49 = vsel %vm314_vm0, %v8459_v40, %v5864_v4 }
 0x7f2   : > { %v6244_v26 = vpop.permute.xlu1 %6243  ;;  %v6360_v55 = vsel %vm1480_vm7, %v6328_v49, %v5992_v3 }
 0x7f3   : > { %v14647_v35 = vsel %vm1610_vm9, %v6390_v2, %v6244_v26 }
 0x7f4   : > { %v8152_v23 = vpack.c.bf16 %v14647_v35, %v14628_v63  ;;  %v8227_v48 = vpack.i.bf16 %v14647_v35, %v14638_v7  ;;  %v6280_v6 = vpop.permute.xlu0 %6279 }
 0x7f6   : > { %8228 = vxpose.xlu0.b32.cont [14/16] (narrow) %v8227_v48, 40  ;;  %8153 = vmatpush3.bf16.msra.mxu0 %v8152_v23  ;;  %v6024_v20 = vpop.permute.xlu1 %6023 }
 0x7f7   : > { %v6376_v29 = vsel %vm1480_vm7, %v6344_v45, %v6024_v20 }
 0x7fa   : > { %v6278_v34 = vpop.permute.xlu1 %6277 }
 0x7fb   : > { %v14665_v62 = vsel %vm1610_vm9, %v6407_v19, %v6278_v34 }
 0x7fc   : > { %v8229_v60 = vpack.i.bf16 %v14662_v1, %v14665_v62 }
 0x7fe   : > { %8230 = vxpose.xlu0.b32.cont [15/16] (narrow) %v8229_v60, 40  ;;  %v6152_v47 = vpop.permute.xlu1 %6151 }
 0x7ff   : > { %v6408_v5 = vsel %vm1545_vm8, %v6376_v29, %v6152_v47 }
 0x800   : > { %v14674_v53 = vsel %vm1610_vm9, %v6408_v5, %v6280_v6 }
 0x801   : > { %v8154_v41 = vpack.c.bf16 %v14674_v53, %v14665_v62 }
 0x802   : > { %v6120_v31 = vpop.permute.xlu1 %6119 }
 0x803   : > { %8155 = vmatprep.subr.bf16.mxu0 %v8154_v41  ;;  %v6392_v10 = vsel %vm1545_vm8, %v6360_v55, %v6120_v31 }
 0x806   : > { %v6248_v21 = vpop.permute.xlu1 %6247 }
 0x807   : > { %v14683_v59 = vsel %vm1610_vm9, %v6392_v10, %v6248_v21 }
 0x808   : > { %v8156_v38 = vpack.c.bf16 %v14683_v59, %v14662_v1  ;;  %v8231_v2 = vpack.i.bf16 %v14683_v59, %v14674_v53 }
 0x80a   : > { %8232 = vxpose.xlu0.b32.end [16/16] (narrow) %v8231_v2, 40  ;;  %8157 = vmatpush3.bf16.msra.mxu0 %v8156_v38 }
 0x84e   : > { %v8233_v26 = vpop.trf.xlu0 }
 0x84f   : > { %v8237_v52 = vunpack.i.h.bf16 %v8233_v26  ;;  %v8234_v22 = vunpack.i.l.bf16 %v8233_v26 }
 0x851   : > { %6569 = vmatprep.mubr.f32.mxu0 %v8234_v22 }
 0x852   : > { %v8238_v4 = vpop.trf.xlu0  ;;  %6570 = vmatmul.mubr.f32.vlgmr.msra.gmra.mrb[64].mxu0 %v8237_v52 }
 0x853   : > { %v8239_v3 = vunpack.i.l.bf16 %v8238_v4  ;;  %v8242_v23 = vunpack.i.h.bf16 %v8238_v4 }
 0x855   : > { %6574 = vmatprep.mubr.f32.mxu0 %v8239_v3 }
 0x856   : > { %v8243_v48 = vpop.trf.xlu0  ;;  %6575 = vmatmul.mubr.f32.gmra.mrb[66].mxu0 %v8242_v23 }
 0x857   : > { %v8244_v50 = vunpack.i.l.bf16 %v8243_v48  ;;  %v8247_v25 = vunpack.i.h.bf16 %v8243_v48 }
 0x859   : > { %6579 = vmatprep.mubr.f32.mxu0 %v8244_v50 }
 0x85a   : > { %v8248_v57 = vpop.trf.xlu0  ;;  %6580 = vmatmul.mubr.f32.gmra.mrb[68].mxu0 %v8247_v25 }
 0x85b   : > { %v8249_v20 = vunpack.i.l.bf16 %v8248_v57  ;;  %v8252_v15 = vunpack.i.h.bf16 %v8248_v57 }
 0x85d   : > { %6584 = vmatprep.mubr.f32.mxu0 %v8249_v20 }
 0x85e   : > { %v8253_v18 = vpop.trf.xlu0  ;;  %6585 = vmatmul.mubr.f32.gmra.mrb[70].mxu0 %v8252_v15 }
 0x85f   : > { %v8257_v14 = vunpack.i.h.bf16 %v8253_v18  ;;  %v8254_v19 = vunpack.i.l.bf16 %v8253_v18 }
 0x861   : > { %6589 = vmatprep.mubr.f32.mxu0 %v8254_v19 }
 0x862   : > { %6590 = vmatmul.mubr.f32.gmra.mrb[72].mxu0 %v8257_v14 }
 0x925   : > { %v7791_v34 = vpop.f32.mrb[64].mxu0 }
 0x926   : > { %v7792_v60 = vpop.f32.mrb[65].mxu0 }
 0x927   : > { %v7793_v11 = vadd.f32 %v7792_v60, %v7791_v34 }
 0x929   : > { %v7794_v45 = vpop.f32.mrb[66].mxu0  ;;  %v6595_v29 = vsel %vm1675_vm10, %v7793_v11, -inf }
 0x92a   : > { %v7795_v47 = vpop.f32.mrb[67].mxu0  ;;  %6596 = vmax.xlane.f32.xlu1 %v6595_v29 }
 0x92b   : > { %v7796_v6 = vadd.f32 %v7795_v47, %v7794_v45 }
 0x92d   : > { %v7797_v5 = vpop.f32.mrb[68].mxu0  ;;  %v6598_v41 = vsel %vm1675_vm10, %v7796_v6, -inf }
 0x92e   : > { %v7798_v31 = vpop.f32.mrb[69].mxu0  ;;  %6599 = vmax.xlane.f32.xlu1 %v6598_v41 }
 0x92f   : > { %v7799_v40 = vadd.f32 %v7798_v31, %v7797_v5 }
 0x931   : > { %v7800_v49 = vpop.f32.mrb[70].mxu0  ;;  %v6601_v55 = vsel %vm1675_vm10, %v7799_v40, -inf }
 0x932   : > { %v7801_v10 = vpop.f32.mrb[71].mxu0  ;;  %6602 = vmax.xlane.f32.xlu1 %v6601_v55 }
 0x933   : > { %v7802_v21 = vadd.f32 %v7801_v10, %v7800_v49 }
 0x935   : > { %v7803_v38 = vpop.f32.mrb[72].mxu0  ;;  %v6604_v2 = vsel %vm1675_vm10, %v7802_v21, -inf }
 0x936   : > { %v7804_v26 = vpop.f32.mrb[73].mxu0  ;;  %6605 = vmax.xlane.f32.xlu1 %v6604_v2 }
 0x937   : > { %v7805_v52 = vadd.f32 %v7804_v26, %v7803_v38 }
 0x939   : > { %v6607_v22 = vsel %vm1675_vm10, %v7805_v52, -inf }
 0x93a   : > { %6608 = vmax.xlane.f32.xlu1 %v6607_v22 }
 0x9b7   : > { %v6597_v4 = vpop.xlane.xlu1 %6596 }
 0x9b8   : > { %v6610_v3 = vsub.f32 %v6597_v4, %v7793_v11 }
 0x9ba   : > { %v6615_v23 = vsel %vm1675_vm10, %v6610_v3, -inf }
 0x9bb   : > { %6616 = vmax.xlane.f32.xlu1 %v6615_v23  ;;  %v6600_v48 = vpop.xlane.xlu1 %6599 }
 0x9bc   : > { %v6611_v50 = vsub.f32 %v6600_v48, %v7796_v6 }
 0x9be   : > { %v6618_v25 = vsel %vm1675_vm10, %v6611_v50, -inf }
 0x9bf   : > { %6619 = vmax.xlane.f32.xlu1 %v6618_v25  ;;  %v6603_v57 = vpop.xlane.xlu1 %6602 }
 0x9c0   : > { %v6612_v20 = vsub.f32 %v6603_v57, %v7799_v40 }
 0x9c2   : > { %v6621_v15 = vsel %vm1675_vm10, %v6612_v20, -inf }
 0x9c3   : > { %6622 = vmax.xlane.f32.xlu1 %v6621_v15  ;;  %v6606_v18 = vpop.xlane.xlu1 %6605  ;;  %v7006_v15 = vld [vmem:[#allocation3] sm:$0x1] }
 0x9c4   : > { %v6613_v14 = vsub.f32 %v6606_v18, %v7802_v21  ;;  %8182 = vpush %v7006_v15 }
 0x9c6   : > { %v6624_v19 = vsel %vm1675_vm10, %v6613_v14, -inf }
 0x9c7   : > { %6625 = vmax.xlane.f32.xlu1 %v6624_v19  ;;  %v6609_v34 = vpop.xlane.xlu1 %6608 }
 0x9c8   : > { %v6614_v60 = vsub.f32 %v6609_v34, %v7805_v52 }
 0x9ca   : > { %v6627_v11 = vsel %vm1675_vm10, %v6614_v60, -inf }
 0x9cb   : > { %6628 = vmax.xlane.f32.xlu1 %v6627_v11 }
 0x9f5   : > { %s8183_s19 = spop %8182 }
 0xa48   : > { %v6617_v45 = vpop.xlane.xlu1 %6616 }
 0xa49   : > { %v6630_v29 = vsub.f32 %v6610_v3, %v6617_v45 }
 0xa4b   : > { %v6635_v47 = vmul.f32 1.442695, %v6630_v29 }
 0xa4c   : > { %v6620_v6 = vpop.xlane.xlu1 %6619 }
 0xa4d   : > { %8281 = vpow2.f32 %v6635_v47  ;;  %v6631_v5 = vsub.f32 %v6611_v50, %v6620_v6 }
 0xa4f   : > { %v6637_v41 = vmul.f32 1.442695, %v6631_v5 }
 0xa50   : > { %v6623_v31 = vpop.xlane.xlu1 %6622 }
 0xa51   : > { %8283 = vpow2.f32 %v6637_v41  ;;  %v6632_v40 = vsub.f32 %v6612_v20, %v6623_v31 }
 0xa53   : > { %v6639_v49 = vmul.f32 1.442695, %v6632_v40 }
 0xa54   : > { %v6626_v55 = vpop.xlane.xlu1 %6625 }
 0xa55   : > { %8285 = vpow2.f32 %v6639_v49  ;;  %v6633_v10 = vsub.f32 %v6613_v14, %v6626_v55 }
 0xa57   : > { %v8282_v21 = vpop.eup %8281  ;;  %v6641_v38 = vmul.f32 1.442695, %v6633_v10 }
 0xa58   : > { %v6629_v2 = vpop.xlane.xlu1 %6628  ;;  %v6645_v26 = vsel %vm1675_vm10, %v8282_v21, 0.0 }
 0xa59   : > { %8287 = vpow2.f32 %v6641_v38  ;;  %v6634_v52 = vsub.f32 %v6614_v60, %v6629_v2  ;;  %6646 = vadd.xlane.f32.xlu1 %v6645_v26  ;;  %v8279_v38 = vld [vmem:[%s15015_s3 + $0x8] sm:$0xff]   ;;  %v8280_v2 = vld [vmem:[%s15015_s3 + $0x10] ss:$0 sps:$4 sm:$0xff]  }
 0xa5a   : > { %v7158_v26 = vsel %vm2268_vm6, %v8280_v2, 0 }
 0xa5b   : > { %v8284_v22 = vpop.eup %8283  ;;  %v6643_v4 = vmul.f32 1.442695, %v6634_v52  ;;  %v14782_v52 = vstv %s8183_s19 }
 0xa5c   : > { %v6648_v3 = vsel %vm1675_vm10, %v8284_v22, 0.0 }
 0xa5d   : > { %8289 = vpow2.f32 %v6643_v4  ;;  %6649 = vadd.xlane.f32.xlu1 %v6648_v3 }
 0xa5f   : > { %v8286_v23 = vpop.eup %8285 }
 0xa60   : > { %v6651_v48 = vsel %vm1675_vm10, %v8286_v23, 0.0 }
 0xa61   : > { %6652 = vadd.xlane.f32.xlu1 %v6651_v48 }
 0xa63   : > { %v8288_v50 = vpop.eup %8287 }
 0xa64   : > { %v6654_v25 = vsel %vm1675_vm10, %v8288_v50, 0.0 }
 0xa65   : > { %6655 = vadd.xlane.f32.xlu1 %v6654_v25 }
 0xa67   : > { %v8290_v57 = vpop.eup %8289 }
 0xa68   : > { %v6657_v20 = vsel %vm1675_vm10, %v8290_v57, 0.0 }
 0xa69   : > { %6658 = vadd.xlane.f32.xlu1 %v6657_v20 }
 0xae6   : > { %v6647_v18 = vpop.xlane.xlu1 %6646 }
 0xae7   : > { %8291 = vrcp.f32 %v6647_v18 }
 0xaea   : > { %v6650_v14 = vpop.xlane.xlu1 %6649 }
 0xaeb   : > { %8293 = vrcp.f32 %v6650_v14 }
 0xaee   : > { %v6653_v19 = vpop.xlane.xlu1 %6652 }
 0xaef   : > { %8295 = vrcp.f32 %v6653_v19 }
 0xaf1   : > { %v8292_v60 = vpop.eup %8291 }
 0xaf2   : > { %v6656_v34 = vpop.xlane.xlu1 %6655  ;;  %v6665_v29 = vmul.f32 %v8292_v60, %v8282_v21  ;;  %v8278_v21 = vld [vmem:[%s15015_s3] sm:$0xff]  }
 0xaf3   : > { %8297 = vrcp.f32 %v6656_v34  ;;  %8088 = vmatprep.subr.bf16.mxu0 %v8278_v21 }
 0xaf4   : > { %8089 = vmatpush3.bf16.msra.mxu0 %v8278_v21 }
 0xaf5   : > { %v8294_v11 = vpop.eup %8293  ;;  %8090 = vmatprep.subr.bf16.mxu0 %v8279_v38 }
 0xaf6   : > { %v6659_v45 = vpop.xlane.xlu1 %6658  ;;  %v6666_v47 = vmul.f32 %v8294_v11, %v8284_v22 }
 0xaf7   : > { %8299 = vrcp.f32 %v6659_v45 }
 0xaf8   : > { %v8158_v6 = vpack.c.bf16 %v6666_v47, %v6665_v29  ;;  %8091 = vmatpush3.bf16.msra.mxu0 %v8279_v38 }
 0xaf9   : > { %v8296_v5 = vpop.eup %8295  ;;  %8180 = vmatprep.subr.msk.bf16.mxu0 %vm2268_vm6, %v8280_v2 }
 0xafa   : > { %8160 = vmatprep.subr.msk.bf16.mxu1 %vm8159_vm2, %v8158_v6  ;;  %v6667_v31 = vmul.f32 %v8296_v5, %v8286_v23 }
 0xafb   : > { %8163 = vmatpush3.bf16.xpose.msk.msra.mxu1 %vm8159_vm2, %v8158_v6 }
 0xafc   : > { %8093 = vmatpush3.bf16.msra.mxu0 %v7158_v26 }
 0xafd   : > { %v8298_v41 = vpop.eup %8297 }
 0xafe   : > { %v6668_v40 = vmul.f32 %v8298_v41, %v8288_v50 }
 0xb00   : > { %v8164_v49 = vpack.c.bf16 %v6668_v40, %v6667_v31 }
 0xb01   : > { %v8300_v55 = vpop.eup %8299 }
 0xb02   : > { %8166 = vmatprep.subr.msk.bf16.mxu1 %vm8159_vm2, %v8164_v49  ;;  %v6669_v10 = vmul.f32 %v8300_v55, %v8290_v57 }
 0xb03   : > { %8169 = vmatpush3.bf16.xpose.msk.msra.mxu1 %vm8159_vm2, %v8164_v49 }
 0xb04   : > { %8038 = vmatprep.subr.msk.mxu1 %vm1675_vm10, %v6669_v10 }
 0xb0b   : > { %8039 = vmatpush3.xpose.msk.msra.mxu1 %vm1675_vm10, %v6669_v10 }
 0xb0c   : > { %8170 = vmatprep.subr.bf16.mxu1 %v8278_v21 }
 0xb0e   : > { %8041 = vmatmul.mubr.msk.f32.vlgmr.msra.gmra.mrb[64].mxu1 %vm1675_vm10, %v14138_v44 }
 0xb0f   : > { %8043 = vmatprep.mubr.msk.f32.mxu1 %vm1675_vm10, %v14255_v36  ;;  %8173 = vmatpush3.bf16.msra.mxu1 %v8278_v21 }
 0xb10   : > { %8171 = vmatprep.subr.bf16.mxu1 %v8279_v38 }
 0xb12   : > { %8044 = vmatmul.mubr.msk.f32.gmra.mrb[66].mxu1 %vm1675_vm10, %v14258_v42 }
 0xb13   : > { %8046 = vmatprep.mubr.msk.f32.mxu1 %vm1675_vm10, %v14381_v17  ;;  %8174 = vmatpush3.bf16.msra.mxu1 %v8279_v38 }
 0xb14   : > { %8181 = vmatprep.subr.msk.bf16.mxu1 %vm2268_vm6, %v8280_v2 }
 0xb16   : > { %8047 = vmatmul.mubr.msk.f32.gmra.mrb[68].mxu1 %vm1675_vm10, %v14384_v54 }
 0xb17   : > { %8049 = vmatprep.mubr.msk.f32.mxu1 %vm1675_vm10, %v14481_v16  ;;  %8175 = vmatpush3.bf16.msra.mxu1 %v7158_v26 }
 0xb1a   : > { %8050 = vmatmul.mubr.msk.f32.gmra.mrb[70].mxu1 %vm1675_vm10, %v14484_v24 }
 0xb1b   : > { %8052 = vmatprep.mubr.msk.f32.mxu1 %vm1675_vm10, %v14555_v58 }
 0xb1e   : > { %8053 = vmatmul.mubr.msk.f32.gmra.mrb[72].mxu1 %vm1675_vm10, %v14558_v37 }
 0xb1f   : > { %8055 = vmatprep.mubr.msk.f32.mxu1 %vm1675_vm10, %v14583_v12 }
 0xb22   : > { %8056 = vmatmul.mubr.msk.f32.gmra.mrb[74].mxu1 %vm1675_vm10, %v14608_v61 }
 0xb23   : > { %8058 = vmatprep.mubr.msk.f32.mxu1 %vm1675_vm10, %v14628_v63 }
 0xb26   : > { %8059 = vmatmul.mubr.msk.f32.gmra.mrb[76].mxu1 %vm1675_vm10, %v14647_v35 }
 0xb27   : > { %8061 = vmatprep.mubr.msk.f32.mxu1 %vm1675_vm10, %v14662_v1 }
 0xb2a   : > { %8062 = vmatmul.mubr.msk.f32.gmra.mrb[78].mxu1 %vm1675_vm10, %v14683_v59 }
 0xb2b   : > { %8064 = vmatprep.mubr.msk.f32.mxu1 %vm1675_vm10, %v14112_v56 }
 0xb2e   : > { %8065 = vmatmul.mubr.msk.f32.gmra.mrb[80].mxu1 %vm1675_vm10, %v14115_v30 }
 0xb2f   : > { %8067 = vmatprep.mubr.msk.f32.mxu1 %vm1675_vm10, %v14211_v9 }
 0xb32   : > { %8068 = vmatmul.mubr.msk.f32.gmra.mrb[82].mxu1 %vm1675_vm10, %v14214_v39 }
 0xb33   : > { %8070 = vmatprep.mubr.msk.f32.mxu1 %vm1675_vm10, %v14345_v0 }
 0xb36   : > { %8071 = vmatmul.mubr.msk.f32.gmra.mrb[84].mxu1 %vm1675_vm10, %v14348_v28 }
 0xb37   : > { %8073 = vmatprep.mubr.msk.f32.mxu1 %vm1675_vm10, %v14449_v8 }
 0xb3a   : > { %8074 = vmatmul.mubr.msk.f32.gmra.mrb[86].mxu1 %vm1675_vm10, %v14452_v32 }
 0xb3b   : > { %8076 = vmatprep.mubr.msk.f32.mxu1 %vm1675_vm10, %v14529_v13 }
 0xb3e   : > { %8077 = vmatmul.mubr.msk.f32.gmra.mrb[88].mxu1 %vm1675_vm10, %v14532_v27 }
 0xb3f   : > { %8079 = vmatprep.mubr.msk.f32.mxu1 %vm1675_vm10, %v14588_v33 }
 0xb42   : > { %8080 = vmatmul.mubr.msk.f32.gmra.mrb[90].mxu1 %vm1675_vm10, %v14598_v43 }
 0xb43   : > { %8082 = vmatprep.mubr.msk.f32.mxu1 %vm1675_vm10, %v14625_v51 }
 0xb46   : > { %8083 = vmatmul.mubr.msk.f32.gmra.mrb[92].mxu1 %vm1675_vm10, %v14638_v7 }
 0xb47   : > { %8085 = vmatprep.mubr.msk.f32.mxu1 %vm1675_vm10, %v14665_v62 }
 0xb4a   : > { %8086 = vmatmul.mubr.msk.f32.gmra.mrb[94].mxu1 %vm1675_vm10, %v14674_v53 }
 0xbe1   : > { %v8042_v22 = vpop.f32.mrb[64].mxu1 }
 0xbe2   : > { %v7010_v4 = vmul.f32 %v8042_v22, %v14782_v52  ;;  %v6847_v3 = vpop.f32.mrb[65].mxu1 }
 0xbe3   : > { %v7009_v23 = vmul.f32 %v14782_v52, %v6847_v3 }
 0xbe4   : > { %v7042_v48 = vadd.f32 %v7010_v4, %v14138_v44 }
 0xbe5   : > { %v7041_v50 = vadd.f32 %v7009_v23, %v14078_v46  ;;  %v8045_v25 = vpop.f32.mrb[66].mxu1 }
 0xbe6   : > { %v7012_v57 = vmul.f32 %v8045_v25, %v14782_v52  ;;  %v6857_v20 = vpop.f32.mrb[67].mxu1 }
 0xbe7   : > { %v7073_v15 = vpack.c.bf16 %v7042_v48, %v7041_v50  ;;  %v7011_v18 = vmul.f32 %v14782_v52, %v6857_v20 }
 0xbe8   : > { %v7044_v14 = vadd.f32 %v7012_v57, %v14258_v42 }
 0xbe9   : > { %v7043_v19 = vadd.f32 %v7011_v18, %v14255_v36  ;;  %v8048_v34 = vpop.f32.mrb[68].mxu1  ;;  %8094 = vmatprep.mubr.msk.bf16.mxu0 %vm1675_vm10, %v7073_v15 }
 0xbea   : > { %v7014_v60 = vmul.f32 %v8048_v34, %v14782_v52  ;;  %v6867_v11 = vpop.f32.mrb[69].mxu1 }
 0xbeb   : > { %v7074_v44 = vpack.c.bf16 %v7044_v14, %v7043_v19  ;;  %v7013_v46 = vmul.f32 %v14782_v52, %v6867_v11 }
 0xbec   : > { %v7046_v45 = vadd.f32 %v7014_v60, %v14384_v54 }
 0xbed   : > { %v7045_v29 = vadd.f32 %v7013_v46, %v14381_v17  ;;  %v8051_v47 = vpop.f32.mrb[70].mxu1  ;;  %8095 = vmatmul.mubr.msk.bf16.vlgmr.msra.gmra.mrb[76].mxu0 %vm1675_vm10, %v7074_v44 }
 0xbee   : > { %v7016_v42 = vmul.f32 %v8051_v47, %v14782_v52  ;;  %v6877_v6 = vpop.f32.mrb[71].mxu1 }
 0xbef   : > { %v7075_v36 = vpack.c.bf16 %v7046_v45, %v7045_v29  ;;  %v7015_v5 = vmul.f32 %v14782_v52, %v6877_v6 }
 0xbf0   : > { %v7048_v41 = vadd.f32 %v7016_v42, %v14484_v24 }
 0xbf1   : > { %v7047_v31 = vadd.f32 %v7015_v5, %v14481_v16  ;;  %v8054_v40 = vpop.f32.mrb[72].mxu1  ;;  %8098 = vmatprep.mubr.msk.bf16.mxu0 %vm1675_vm10, %v7075_v36 }
 0xbf2   : > { %v7018_v54 = vmul.f32 %v8054_v40, %v14782_v52  ;;  %v6887_v49 = vpop.f32.mrb[73].mxu1 }
 0xbf3   : > { %v7076_v17 = vpack.c.bf16 %v7048_v41, %v7047_v31  ;;  %v7017_v55 = vmul.f32 %v14782_v52, %v6887_v49 }
 0xbf4   : > { %v7050_v10 = vadd.f32 %v7018_v54, %v14558_v37 }
 0xbf5   : > { %v7049_v21 = vadd.f32 %v7017_v55, %v14555_v58  ;;  %v8057_v38 = vpop.f32.mrb[74].mxu1  ;;  %8099 = vmatmul.mubr.msk.bf16.gmra.mrb[80].mxu0 %vm1675_vm10, %v7076_v17 }
 0xbf6   : > { %v7020_v24 = vmul.f32 %v8057_v38, %v14782_v52  ;;  %v6897_v2 = vpop.f32.mrb[75].mxu1 }
 0xbf7   : > { %v7077_v16 = vpack.c.bf16 %v7050_v10, %v7049_v21  ;;  %v7019_v26 = vmul.f32 %v14782_v52, %v6897_v2 }
 0xbf8   : > { %v7052_v22 = vadd.f32 %v7020_v24, %v14608_v61 }
 0xbf9   : > { %v7051_v4 = vadd.f32 %v7019_v26, %v14583_v12  ;;  %v8060_v3 = vpop.f32.mrb[76].mxu1  ;;  %8102 = vmatprep.mubr.msk.bf16.mxu0 %vm1675_vm10, %v7077_v16 }
 0xbfa   : > { %v7022_v37 = vmul.f32 %v8060_v3, %v14782_v52  ;;  %v6907_v23 = vpop.f32.mrb[77].mxu1 }
 0xbfb   : > { %v7078_v58 = vpack.c.bf16 %v7052_v22, %v7051_v4  ;;  %v7021_v48 = vmul.f32 %v14782_v52, %v6907_v23 }
 0xbfc   : > { %v7054_v50 = vadd.f32 %v7022_v37, %v14647_v35 }
 0xbfd   : > { %v7053_v25 = vadd.f32 %v7021_v48, %v14628_v63  ;;  %v8063_v57 = vpop.f32.mrb[78].mxu1  ;;  %8103 = vmatmul.mubr.msk.bf16.gmra.mrb[84].mxu0 %vm1675_vm10, %v7078_v58 }
 0xbfe   : > { %v7024_v61 = vmul.f32 %v8063_v57, %v14782_v52  ;;  %v6917_v20 = vpop.f32.mrb[79].mxu1 }
 0xbff   : > { %v7079_v12 = vpack.c.bf16 %v7054_v50, %v7053_v25  ;;  %v7023_v15 = vmul.f32 %v14782_v52, %v6917_v20 }
 0xc00   : > { %v7056_v18 = vadd.f32 %v7024_v61, %v14683_v59 }
 0xc01   : > { %v7055_v14 = vadd.f32 %v7023_v15, %v14662_v1  ;;  %v8066_v19 = vpop.f32.mrb[80].mxu1  ;;  %8106 = vmatprep.mubr.msk.bf16.mxu0 %vm1675_vm10, %v7079_v12 }
 0xc02   : > { %v7026_v35 = vmul.f32 %v8066_v19, %v14782_v52  ;;  %v6927_v34 = vpop.f32.mrb[81].mxu1 }
 0xc03   : > { %v7080_v63 = vpack.c.bf16 %v7056_v18, %v7055_v14  ;;  %v7025_v60 = vmul.f32 %v14782_v52, %v6927_v34  ;;  %v14872_v18 = vld [vmem:[%s15017_s5] ss:$0 sm:$0xff] }
 0xc04   : > { %v7058_v11 = vadd.f32 %v7026_v35, %v14115_v30 }
 0xc05   : > { %v7057_v44 = vadd.f32 %v7025_v60, %v14112_v56  ;;  %v8069_v46 = vpop.f32.mrb[82].mxu1  ;;  %8107 = vmatmul.mubr.msk.bf16.gmra.mrb[88].mxu0 %vm1675_vm10, %v7080_v63 }
 0xc06   : > { %v7028_v59 = vmul.f32 %v8069_v46, %v14782_v52  ;;  %v6937_v45 = vpop.f32.mrb[83].mxu1 }
 0xc07   : > { %v7081_v1 = vpack.c.bf16 %v7058_v11, %v7057_v44  ;;  %v7027_v29 = vmul.f32 %v14782_v52, %v6937_v45 }
 0xc08   : > { %v7060_v47 = vadd.f32 %v7028_v59, %v14214_v39 }
 0xc09   : > { %v7059_v42 = vadd.f32 %v7027_v29, %v14211_v9  ;;  %v8072_v6 = vpop.f32.mrb[84].mxu1  ;;  %8110 = vmatprep.mubr.msk.bf16.mxu0 %vm1675_vm10, %v7081_v1 }
 0xc0a   : > { %v7030_v30 = vmul.f32 %v8072_v6, %v14782_v52  ;;  %v6947_v36 = vpop.f32.mrb[85].mxu1 }
 0xc0b   : > { %v7082_v56 = vpack.c.bf16 %v7060_v47, %v7059_v42  ;;  %v7029_v5 = vmul.f32 %v14782_v52, %v6947_v36 }
 0xc0c   : > { %v7062_v41 = vadd.f32 %v7030_v30, %v14348_v28 }
 0xc0d   : > { %v7061_v31 = vadd.f32 %v7029_v5, %v14345_v0  ;;  %v8075_v40 = vpop.f32.mrb[86].mxu1  ;;  %8111 = vmatmul.mubr.msk.bf16.gmra.mrb[92].mxu0 %vm1675_vm10, %v7082_v56 }
 0xc0e   : > { %v7032_v39 = vmul.f32 %v8075_v40, %v14782_v52  ;;  %v6957_v54 = vpop.f32.mrb[87].mxu1 }
 0xc0f   : > { %v7083_v9 = vpack.c.bf16 %v7062_v41, %v7061_v31  ;;  %v7031_v49 = vmul.f32 %v14782_v52, %v6957_v54 }
 0xc10   : > { %v7064_v17 = vadd.f32 %v7032_v39, %v14452_v32 }
 0xc11   : > { %v7063_v55 = vadd.f32 %v7031_v49, %v14449_v8  ;;  %v8078_v10 = vpop.f32.mrb[88].mxu1  ;;  %8114 = vmatprep.mubr.msk.bf16.mxu0 %vm1675_vm10, %v7083_v9 }
 0xc12   : > { %v7034_v28 = vmul.f32 %v8078_v10, %v14782_v52  ;;  %v6967_v21 = vpop.f32.mrb[89].mxu1 }
 0xc13   : > { %v7084_v0 = vpack.c.bf16 %v7064_v17, %v7063_v55  ;;  %v7033_v38 = vmul.f32 %v14782_v52, %v6967_v21 }
 0xc14   : > { %v7066_v24 = vadd.f32 %v7034_v28, %v14532_v27 }
 0xc15   : > { %v7065_v2 = vadd.f32 %v7033_v38, %v14529_v13  ;;  %v8081_v16 = vpop.f32.mrb[90].mxu1  ;;  %8115 = vmatmul.mubr.msk.bf16.gmra.mrb[96].mxu0 %vm1675_vm10, %v7084_v0 }
 0xc16   : > { %v7036_v32 = vmul.f32 %v8081_v16, %v14782_v52  ;;  %v6977_v26 = vpop.f32.mrb[91].mxu1 }
 0xc17   : > { %v7085_v8 = vpack.c.bf16 %v7066_v24, %v7065_v2  ;;  %v7035_v22 = vmul.f32 %v14782_v52, %v6977_v26 }
 0xc18   : > { %v7068_v4 = vadd.f32 %v7036_v32, %v14598_v43 }
 0xc19   : > { %v7067_v3 = vadd.f32 %v7035_v22, %v14588_v33  ;;  %v8084_v37 = vpop.f32.mrb[92].mxu1  ;;  %8118 = vmatprep.mubr.msk.bf16.mxu0 %vm1675_vm10, %v7085_v8 }
 0xc1a   : > { %v7038_v27 = vmul.f32 %v8084_v37, %v14782_v52  ;;  %v6987_v23 = vpop.f32.mrb[93].mxu1 }
 0xc1b   : > { %v7086_v13 = vpack.c.bf16 %v7068_v4, %v7067_v3  ;;  %v7037_v58 = vmul.f32 %v14782_v52, %v6987_v23 }
 0xc1c   : > { %v7070_v48 = vadd.f32 %v7038_v27, %v14638_v7 }
 0xc1d   : > { %v7069_v50 = vadd.f32 %v7037_v58, %v14625_v51  ;;  %v8087_v25 = vpop.f32.mrb[94].mxu1  ;;  %8119 = vmatmul.mubr.msk.bf16.gmra.mrb[100].mxu0 %vm1675_vm10, %v7086_v13  ;;  %v14867_v51 = vld [vmem:[%s15016_s4] ss:$0 sm:$0xff] }
 0xc1e   : > { %v7040_v43 = vmul.f32 %v8087_v25, %v14782_v52  ;;  %v6997_v33 = vpop.f32.mrb[95].mxu1 }
 0xc1f   : > { %v7087_v57 = vpack.c.bf16 %v7070_v48, %v7069_v50  ;;  %v7039_v61 = vmul.f32 %v14782_v52, %v6997_v33 }
 0xc20   : > { %v7072_v20 = vadd.f32 %v7040_v43, %v14674_v53 }
 0xc21   : > { %v7071_v12 = vadd.f32 %v7039_v61, %v14665_v62  ;;  %8122 = vmatprep.mubr.msk.bf16.mxu1 %vm1675_vm10, %v7087_v57 }
 0xc23   : > { %v7088_v15 = vpack.c.bf16 %v7072_v20, %v7071_v12 }
 0xc25   : > { %8123 = vmatmul.mubr.msk.bf16.vlgmr.msra.gmra.mrb[96].mxu1 %vm1675_vm10, %v7088_v15 }
 0xcc0   : > { %v8096_v7 = vpop.f32.mrb[76].mxu0 }
 0xcc1   : > { %v7330_v53 = vmul.f32 %v8096_v7, %v14867_v51  ;;  %v7194_v52 = vpop.f32.mrb[77].mxu0 }
 0xcc2   : > { %v7328_v62 = vmul.f32 %v14867_v51, %v7194_v52  ;;  %v8097_v14 = vpop.f32.mrb[78].mxu0 }
 0xcc3   : > { %v7369_v19 = vadd.f32 %v14872_v18, %v7330_v53  ;;  %v7331_v35 = vmul.f32 %v8097_v14, %v14867_v51  ;;  %v7197_v34 = vpop.f32.mrb[79].mxu0 }
 0xcc4   : > { %v7367_v63 = vadd.f32 %v14872_v18, %v7328_v62  ;;  %v7329_v60 = vmul.f32 %v14867_v51, %v7197_v34 }
 0xcc5   : > { %7401 = vst.msk [vmem:[%s14880_s22 + $0x10] sm:$0xff] %vm314_vm0, %v7369_v19  ;;  %v7370_v11 = vadd.f32 %v14872_v18, %v7331_v35 }
 0xcc6   : > { %7399 = vst.msk [vmem:[%s14880_s22] sm:$0xff] %vm314_vm0, %v7367_v63  ;;  %v7368_v44 = vadd.f32 %v14872_v18, %v7329_v60 }
 0xcc7   : > { %7402 = vst.msk [vmem:[%s14880_s22 + $0x18] sm:$0xff] %vm314_vm0, %v7370_v11 }
 0xcc8   : > { %7400 = vst.msk [vmem:[%s14880_s22 + $0x8] sm:$0xff] %vm314_vm0, %v7368_v44  ;;  %v8100_v46 = vpop.f32.mrb[80].mxu0 }
 0xcc9   : > { %v7334_v59 = vmul.f32 %v8100_v46, %v14867_v51  ;;  %v7210_v45 = vpop.f32.mrb[81].mxu0 }
 0xcca   : > { %v7332_v1 = vmul.f32 %v14867_v51, %v7210_v45  ;;  %v8101_v29 = vpop.f32.mrb[82].mxu0 }
 0xccb   : > { %v7373_v47 = vadd.f32 %v14872_v18, %v7334_v59  ;;  %v7335_v42 = vmul.f32 %v8101_v29, %v14867_v51  ;;  %v7213_v6 = vpop.f32.mrb[83].mxu0 }
 0xccc   : > { %v7371_v30 = vadd.f32 %v14872_v18, %v7332_v1  ;;  %v7333_v36 = vmul.f32 %v14867_v51, %v7213_v6 }
 0xccd   : > { %7405 = vst.msk [vmem:[%s14880_s22 + $0x30] sm:$0xff] %vm314_vm0, %v7373_v47  ;;  %v7374_v56 = vadd.f32 %v14872_v18, %v7335_v42 }
 0xcce   : > { %7403 = vst.msk [vmem:[%s14880_s22 + $0x20] sm:$0xff] %vm314_vm0, %v7371_v30  ;;  %v7372_v5 = vadd.f32 %v14872_v18, %v7333_v36 }
 0xccf   : > { %7406 = vst.msk [vmem:[%s14880_s22 + $0x38] sm:$0xff] %vm314_vm0, %v7374_v56 }
 0xcd0   : > { %7404 = vst.msk [vmem:[%s14880_s22 + $0x28] sm:$0xff] %vm314_vm0, %v7372_v5  ;;  %v8104_v41 = vpop.f32.mrb[84].mxu0 }
 0xcd1   : > { %v7338_v31 = vmul.f32 %v8104_v41, %v14867_v51  ;;  %v7226_v40 = vpop.f32.mrb[85].mxu0 }
 0xcd2   : > { %v7336_v39 = vmul.f32 %v14867_v51, %v7226_v40  ;;  %v8105_v54 = vpop.f32.mrb[86].mxu0 }
 0xcd3   : > { %v7377_v9 = vadd.f32 %v14872_v18, %v7338_v31  ;;  %v7339_v49 = vmul.f32 %v8105_v54, %v14867_v51  ;;  %v7229_v17 = vpop.f32.mrb[87].mxu0 }
 0xcd4   : > { %v7375_v55 = vadd.f32 %v14872_v18, %v7336_v39  ;;  %v7337_v10 = vmul.f32 %v14867_v51, %v7229_v17 }
 0xcd5   : > { %7409 = vst.msk [vmem:[%s14880_s22 + $0x50] sm:$0xff] %vm314_vm0, %v7377_v9  ;;  %v7378_v28 = vadd.f32 %v14872_v18, %v7339_v49 }
 0xcd6   : > { %7407 = vst.msk [vmem:[%s14880_s22 + $0x40] sm:$0xff] %vm314_vm0, %v7375_v55  ;;  %v7376_v21 = vadd.f32 %v14872_v18, %v7337_v10 }
 0xcd7   : > { %7410 = vst.msk [vmem:[%s14880_s22 + $0x58] sm:$0xff] %vm314_vm0, %v7378_v28 }
 0xcd8   : > { %7408 = vst.msk [vmem:[%s14880_s22 + $0x48] sm:$0xff] %vm314_vm0, %v7376_v21  ;;  %v8108_v0 = vpop.f32.mrb[88].mxu0 }
 0xcd9   : > { %v7342_v38 = vmul.f32 %v8108_v0, %v14867_v51  ;;  %v7242_v24 = vpop.f32.mrb[89].mxu0 }
 0xcda   : > { %v7340_v2 = vmul.f32 %v14867_v51, %v7242_v24  ;;  %v8109_v16 = vpop.f32.mrb[90].mxu0 }
 0xcdb   : > { %v7381_v32 = vadd.f32 %v14872_v18, %v7342_v38  ;;  %v7343_v26 = vmul.f32 %v8109_v16, %v14867_v51  ;;  %v7245_v8 = vpop.f32.mrb[91].mxu0 }
 0xcdc   : > { %v7379_v22 = vadd.f32 %v14872_v18, %v7340_v2  ;;  %v7341_v4 = vmul.f32 %v14867_v51, %v7245_v8 }
 0xcdd   : > { %7413 = vst.msk [vmem:[%s14880_s22 + $0x70] sm:$0xff] %vm314_vm0, %v7381_v32  ;;  %v7382_v3 = vadd.f32 %v14872_v18, %v7343_v26 }
 0xcde   : > { %7411 = vst.msk [vmem:[%s14880_s22 + $0x60] sm:$0xff] %vm314_vm0, %v7379_v22  ;;  %v7380_v37 = vadd.f32 %v14872_v18, %v7341_v4 }
 0xcdf   : > { %7414 = vst.msk [vmem:[%s14880_s22 + $0x78] sm:$0xff] %vm314_vm0, %v7382_v3 }
 0xce0   : > { %7412 = vst.msk [vmem:[%s14880_s22 + $0x68] sm:$0xff] %vm314_vm0, %v7380_v37  ;;  %v8112_v27 = vpop.f32.mrb[92].mxu0 }
 0xce1   : > { %v7346_v23 = vmul.f32 %v8112_v27, %v14867_v51  ;;  %v7258_v13 = vpop.f32.mrb[93].mxu0 }
 0xce2   : > { %v7344_v58 = vmul.f32 %v14867_v51, %v7258_v13  ;;  %v8113_v48 = vpop.f32.mrb[94].mxu0 }
 0xce3   : > { %v7385_v50 = vadd.f32 %v14872_v18, %v7346_v23  ;;  %v7347_v25 = vmul.f32 %v8113_v48, %v14867_v51  ;;  %v7261_v43 = vpop.f32.mrb[95].mxu0 }
 0xce4   : > { %v7383_v33 = vadd.f32 %v14872_v18, %v7344_v58  ;;  %v7345_v57 = vmul.f32 %v14867_v51, %v7261_v43 }
 0xce5   : > { %7417 = vst.msk [vmem:[%s14880_s22 + $0x90] sm:$0xff] %vm314_vm0, %v7385_v50  ;;  %v7386_v61 = vadd.f32 %v14872_v18, %v7347_v25 }
 0xce6   : > { %7415 = vst.msk [vmem:[%s14880_s22 + $0x80] sm:$0xff] %vm314_vm0, %v7383_v33  ;;  %v7384_v20 = vadd.f32 %v14872_v18, %v7345_v57 }
 0xce7   : > { %7418 = vst.msk [vmem:[%s14880_s22 + $0x98] sm:$0xff] %vm314_vm0, %v7386_v61 }
 0xce8   : > { %7416 = vst.msk [vmem:[%s14880_s22 + $0x88] sm:$0xff] %vm314_vm0, %v7384_v20  ;;  %v8116_v12 = vpop.f32.mrb[96].mxu0 }
 0xce9   : > { %v7350_v15 = vmul.f32 %v8116_v12, %v14867_v51  ;;  %v7274_v7 = vpop.f32.mrb[97].mxu0 }
 0xcea   : > { %v7348_v53 = vmul.f32 %v14867_v51, %v7274_v7  ;;  %v8117_v52 = vpop.f32.mrb[98].mxu0 }
 0xceb   : > { %v7389_v62 = vadd.f32 %v14872_v18, %v7350_v15  ;;  %v7351_v14 = vmul.f32 %v8117_v52, %v14867_v51  ;;  %v7277_v19 = vpop.f32.mrb[99].mxu0 }
 0xcec   : > { %v7387_v35 = vadd.f32 %v14872_v18, %v7348_v53  ;;  %v7349_v34 = vmul.f32 %v14867_v51, %v7277_v19 }
 0xced   : > { %7421 = vst.msk [vmem:[%s14880_s22 + $0xb0] sm:$0xff] %vm314_vm0, %v7389_v62  ;;  %v7390_v63 = vadd.f32 %v14872_v18, %v7351_v14 }
 0xcee   : > { %7419 = vst.msk [vmem:[%s14880_s22 + $0xa0] sm:$0xff] %vm314_vm0, %v7387_v35  ;;  %v7388_v60 = vadd.f32 %v14872_v18, %v7349_v34 }
 0xcef   : > { %7422 = vst.msk [vmem:[%s14880_s22 + $0xb8] sm:$0xff] %vm314_vm0, %v7390_v63 }
 0xcf0   : > { %7420 = vst.msk [vmem:[%s14880_s22 + $0xa8] sm:$0xff] %vm314_vm0, %v7388_v60  ;;  %v8120_v11 = vpop.f32.mrb[100].mxu0 }
 0xcf1   : > { %v7354_v44 = vmul.f32 %v8120_v11, %v14867_v51  ;;  %v7290_v46 = vpop.f32.mrb[101].mxu0 }
 0xcf2   : > { %v7352_v59 = vmul.f32 %v14867_v51, %v7290_v46  ;;  %v8121_v45 = vpop.f32.mrb[102].mxu0 }
 0xcf3   : > { %v7393_v1 = vadd.f32 %v14872_v18, %v7354_v44  ;;  %v7355_v29 = vmul.f32 %v8121_v45, %v14867_v51  ;;  %v7293_v47 = vpop.f32.mrb[103].mxu0 }
 0xcf4   : > { %v7391_v42 = vadd.f32 %v14872_v18, %v7352_v59  ;;  %v7353_v6 = vmul.f32 %v14867_v51, %v7293_v47 }
 0xcf5   : > { %7425 = vst.msk [vmem:[%s14880_s22 + $0xd0] sm:$0xff] %vm314_vm0, %v7393_v1  ;;  %v7394_v30 = vadd.f32 %v14872_v18, %v7355_v29 }
 0xcf6   : > { %7423 = vst.msk [vmem:[%s14880_s22 + $0xc0] sm:$0xff] %vm314_vm0, %v7391_v42  ;;  %v7392_v36 = vadd.f32 %v14872_v18, %v7353_v6 }
 0xcf7   : > { %7426 = vst.msk [vmem:[%s14880_s22 + $0xd8] sm:$0xff] %vm314_vm0, %v7394_v30 }
 0xcf8   : > { %7424 = vst.msk [vmem:[%s14880_s22 + $0xc8] sm:$0xff] %vm314_vm0, %v7392_v36  ;;  %v8124_v56 = vpop.f32.mrb[96].mxu1 }
 0xcf9   : > { %v7358_v5 = vmul.f32 %v8124_v56, %v14867_v51  ;;  %v7306_v41 = vpop.f32.mrb[97].mxu1 }
 0xcfa   : > { %v7356_v31 = vmul.f32 %v14867_v51, %v7306_v41  ;;  %v8125_v40 = vpop.f32.mrb[98].mxu1 }
 0xcfb   : > { %v7397_v39 = vadd.f32 %v14872_v18, %v7358_v5  ;;  %v7359_v54 = vmul.f32 %v8125_v40, %v14867_v51  ;;  %v7309_v9 = vpop.f32.mrb[99].mxu1 }
 0xcfc   : > { %v7395_v49 = vadd.f32 %v14872_v18, %v7356_v31  ;;  %v7357_v17 = vmul.f32 %v14867_v51, %v7309_v9 }
 0xcfd   : > { %7429 = vst.msk [vmem:[%s14880_s22 + $0xf0] sm:$0xff] %vm314_vm0, %v7397_v39  ;;  %v7398_v55 = vadd.f32 %v14872_v18, %v7359_v54 }
 0xcfe   : > { %7427 = vst.msk [vmem:[%s14880_s22 + $0xe0] sm:$0xff] %vm314_vm0, %v7395_v49  ;;  %v7396_v10 = vadd.f32 %v14872_v18, %v7357_v17 }
 0xcff   : > { %7430 = vst.msk [vmem:[%s14880_s22 + $0xf8] sm:$0xff] %vm314_vm0, %v7398_v55 }
 0xd00   : > { %7428 = vst.msk [vmem:[%s14880_s22 + $0xe8] sm:$0xff] %vm314_vm0, %v7396_v10 }
 0xd01 PF: > { %s19_s26 = sadd.s32 1, %s8466_s26  }
 0xd02   : > { %p16_p4 = scmp.ge.s32.totalorder %s19_s26, 4  }
 0xd04   :  { %18 = sbr.rel (!%p16_p4) target bundleno = 3 (0x3), region = 85 }

</bundles_post_ra>
